<compile_context>
chip_gen: v7x
topology: tpu7x:2x2x1
jax: 0.10.0
libtpu: 0.0.40
codegen_flags: <defaults>
</compile_context>

<pallas_src>
import jax
import jax.numpy as jnp
from jax.experimental import pallas as pl
from jax.experimental.pallas import tpu as pltpu


def _round_up(x, m):
    return ((x + m - 1) // m) * m


def _layer_plan(in_channel, out_channels, kernel_size):
    """Static per-layer packing plan (tap replication / grouping)."""
    T = kernel_size * kernel_size
    chans = [in_channel] + list(out_channels)
    L = len(out_channels)

    def rep_for(ci):
        # Number of kernel taps whose channels are packed side by side into one
        # 128-lane matmul reduction block (= channel-replication factor of the
        # activation feeding that layer).  Degrades to 1 (plain per-tap matmuls)
        # when channels are wide.
        if ci >= 128:
            return 1
        return min(T, max(1, 128 // ci))

    plan = []
    for l in range(L):
        ci, co = chans[l], chans[l + 1]
        rep_in = rep_for(ci)
        rep_out = rep_for(co) if l < L - 1 else 1   # final output: plain channels
        plan.append(dict(
            ci=ci, co=co, rep_in=rep_in, rep_out=rep_out,
            n_groups=-(-T // rep_in),
            k_lanes=_round_up(rep_in * ci, 128),
            n_lanes=_round_up(rep_out * co, 128),
        ))
    return plan


# ----------------------------------------------------------------------------
# Fused whole-network kernel (all layers, one image per grid step)
# ----------------------------------------------------------------------------
def _make_fused_cnn_kernel(H, W, KH, KW, plan, w_off, w_pad, cp, act_dtype):
    pad = KH // 2
    HW = H * W
    T = KH * KW
    L = len(plan)

    def kernel(*refs):
        x_ref = refs[0]                       # (H, W, k_lanes_0) replicated input
        w_refs = refs[1:1 + L]                # (n_groups, k_lanes, n_lanes) bf16
        b_refs = refs[1 + L:1 + 2 * L]        # (1, n_lanes) f32
        sel_refs = refs[1 + 2 * L:1 + 3 * L]  # (rep, 1, k_lanes) f32 0/1 lane masks
        out_ref = refs[1 + 3 * L]             # (H, W, n_lanes_last)
        xpad_ref = refs[2 + 3 * L]            # (H+2p, w_pad, cp) halo activation buf

        # ---- zero only the halo border; the interior is fully overwritten ----
        zrow = jnp.zeros((pad, w_pad, cp), act_dtype)
        xpad_ref[pl.ds(0, pad), :, :] = zrow
        xpad_ref[pl.ds(pad + H, pad), :, :] = zrow
        zleft = jnp.zeros((H, w_off, cp), act_dtype)
        xpad_ref[pl.ds(pad, H), pl.ds(0, w_off), :] = zleft
        w_right = w_pad - w_off - W
        zright = jnp.zeros((H, w_right, cp), act_dtype)
        xpad_ref[pl.ds(pad, H), pl.ds(w_off + W, w_right), :] = zright

        # ---- stage the (tap-replicated, lane-padded) input into the interior ----
        k0 = plan[0]["k_lanes"]
        xpad_ref[pl.ds(pad, H), pl.ds(w_off, W), pl.ds(0, k0)] = x_ref[...]

        # ---- fused conv + bias + ReLU layer loop (static unroll, L small) ----
        for l, cfg in enumerate(plan):
            ci = cfg["ci"]
            rep = cfg["rep_in"]
            n_groups = cfg["n_groups"]
            k_lanes = cfg["k_lanes"]
            n_lanes = cfg["n_lanes"]

            acc = None
            for g in range(n_groups):
                n_taps = min(rep, T - g * rep)
                col = None
                for j in range(n_taps):
                    t = g * rep + j
                    kh, kw = t // KW, t % KW
                    patch = xpad_ref[pl.ds(kh, H),
                                     pl.ds(w_off - pad + kw, W),
                                     pl.ds(0, k_lanes)].reshape(HW, k_lanes)
                    if n_taps == 1:
                        # Lanes outside [0, ci) hit zero weight rows -> no mask.
                        col = patch
                    else:
                        sel = sel_refs[l][j]          # (1, k_lanes) 0/1 mask
                        col = patch * sel if col is None else col + patch * sel

                # One lane-dense bf16 MXU matmul per group, f32 accumulation.
                part = jnp.dot(col.astype(jnp.bfloat16), w_refs[l][g],
                               preferred_element_type=jnp.float32)
                acc = part if acc is None else acc + part

            y = jnp.maximum(acc + b_refs[l][...], 0.0)        # bias + ReLU (f32)

            if l == L - 1:
                out_ref[...] = y.reshape(H, W, n_lanes).astype(out_ref.dtype)
            else:
                # Aligned inter-layer writeback into the halo-buffer interior.
                xpad_ref[pl.ds(pad, H), pl.ds(w_off, W), pl.ds(0, n_lanes)] = (
                    y.reshape(H, W, n_lanes).astype(act_dtype))

    return kernel


# ----------------------------------------------------------------------------
# Wrapper: tap-replicated packing of input / weights / biases, pallas_call
# ----------------------------------------------------------------------------
def cnn_forward_pallas(x_nhwc, params):
    """Sequential CNN forward: [conv(same, stride 1) + ReLU] * L, fully fused."""
    N, H, W, Cin = x_nhwc.shape
    weights = [w for (w, _) in params["layers"]]
    biases = [b for (_, b) in params["layers"]]
    L = len(weights)
    KH, KW = weights[0].shape[0], weights[0].shape[1]
    T = KH * KW
    pad = KH // 2
    cout_last = weights[-1].shape[-1]
    out_channels = [w.shape[-1] for w in weights]

    plan = _layer_plan(Cin, out_channels, KH)
    act_dtype = jnp.float32

    # Interior W offset: multiple of the f32 sublane tile (8) and >= halo width,
    # so inter-layer stores and centre-tap loads are fully aligned.
    w_off = max(8, _round_up(pad, 8))
    w_pad_total = w_off + W + w_off
    cp = max(cfg["k_lanes"] for cfg in plan)

    # Input: replicate channels once per packed tap, pad lanes to 128 multiple.
    rep0, k0 = plan[0]["rep_in"], plan[0]["k_lanes"]
    xp = jnp.tile(x_nhwc, (1, 1, 1, rep0))
    xp = jnp.pad(xp, ((0, 0), (0, 0), (0, 0), (0, k0 - rep0 * Cin))).astype(act_dtype)

    # Weights -> (n_groups, k_lanes, n_lanes) bf16 slabs: tap replication on the
    # reduction lanes, next-layer replication on the output lanes.
    w_slabs, b_slabs, sel_slabs = [], [], []
    for cfg, w, b in zip(plan, weights, biases):
        ci, co = cfg["ci"], cfg["co"]
        rep, rep_out = cfg["rep_in"], cfg["rep_out"]
        ng, kl, nl = cfg["n_groups"], cfg["k_lanes"], cfg["n_lanes"]

        w2 = w.reshape(T, ci, co)
        w2 = jnp.tile(w2, (1, 1, rep_out))                          # replicate outputs
        w2 = jnp.pad(w2, ((0, ng * rep - T), (0, 0), (0, nl - rep_out * co)))
        w2 = w2.reshape(ng, rep * ci, nl)
        w2 = jnp.pad(w2, ((0, 0), (0, kl - rep * ci), (0, 0)))
        w_slabs.append(w2.astype(jnp.bfloat16))                     # (ng, kl, nl)

        b2 = jnp.tile(b, rep_out)
        b2 = jnp.pad(b2, (0, nl - rep_out * co)).reshape(1, nl)
        b_slabs.append(b2.astype(jnp.float32))                      # (1, nl)

        lane = jnp.arange(kl)
        sel = jnp.stack(
            [((lane >= j * ci) & (lane < (j + 1) * ci)).astype(jnp.float32)
             for j in range(rep)]).reshape(rep, 1, kl)
        sel_slabs.append(sel)                                       # (rep, 1, kl)

    in_specs = [pl.BlockSpec((None, H, W, k0), lambda n: (n, 0, 0, 0))]
    for cfg in plan:
        in_specs.append(pl.BlockSpec(
            (cfg["n_groups"], cfg["k_lanes"], cfg["n_lanes"]), lambda n: (0, 0, 0)))
    for cfg in plan:
        in_specs.append(pl.BlockSpec((1, cfg["n_lanes"]), lambda n: (0, 0)))
    for cfg in plan:
        in_specs.append(pl.BlockSpec(
            (cfg["rep_in"], 1, cfg["k_lanes"]), lambda n: (0, 0, 0)))

    n_last = plan[-1]["n_lanes"]
    kernel = _make_fused_cnn_kernel(H, W, KH, KW, plan, w_off, w_pad_total, cp,
                                    act_dtype)

    out_padded = pl.pallas_call(
        kernel,
        out_shape=jax.ShapeDtypeStruct((N, H, W, n_last), x_nhwc.dtype),
        grid=(N,),  # one image per step; with N>=2 both v7x TensorCores are busy
        in_specs=in_specs,
        out_specs=pl.BlockSpec((None, H, W, n_last), lambda n: (n, 0, 0, 0)),
        scratch_shapes=[pltpu.VMEM((H + 2 * pad, w_pad_total, cp), act_dtype)],
        compiler_params=pltpu.CompilerParams(
            dimension_semantics=("parallel",),
            vmem_limit_bytes=32 * 1024 * 1024,
        ),
    )(xp, *w_slabs, *b_slabs, *sel_slabs)

    # Slice the valid output channels only at the very end.
    return out_padded[..., :cout_last]


# ----------------------------------------------------------------------------
# Parameters (deterministic init, mirrors CNN.__init__ layer shapes)
# ----------------------------------------------------------------------------
def init_params(key, in_channel, n_channel_list, kernel_size=3):
    params = {"layers": []}
    chans = [in_channel] + list(n_channel_list)
    for i in range(len(n_channel_list)):
        key, kw_, kb_ = jax.random.split(key, 3)
        w = 0.1 * jax.random.normal(
            kw_, (kernel_size, kernel_size, chans[i], chans[i + 1]), jnp.float32)
        b = 0.1 * jax.random.normal(kb_, (chans[i + 1],), jnp.float32)
        params["layers"].append((w, b))
    return params


# ----------------------------------------------------------------------------
# Pure-JAX reference
# ----------------------------------------------------------------------------
def cnn_forward_ref(x_nhwc, params):
    x = x_nhwc
    for w, b in params["layers"]:
        y = jax.lax.conv_general_dilated(
            x, w, window_strides=(1, 1), padding="SAME",
            dimension_numbers=("NHWC", "HWIO", "NHWC"))
        x = jnp.maximum(y + b, 0.0)
    return x


# ----------------------------------------------------------------------------
if __name__ == "__main__":
    # CNN(in_channel=4, n_channel_list=[8, 8, 8, 8],
    #     activation_list=nn.ReLU(), kernel_size=3)
    in_channel = 4
    n_channel_list = [8, 8, 8, 8]
    kernel_size = 3

    key = jax.random.PRNGKey(0)
    key, kx = jax.random.split(key)

    # PyTorch-style NCHW input at small shapes; kernel layout is NHWC.
    x_nchw = jax.random.normal(kx, (2, in_channel, 16, 16), jnp.float32)
    x_nhwc = jnp.transpose(x_nchw, (0, 2, 3, 1))

    params = init_params(key, in_channel, n_channel_list, kernel_size)

    out = cnn_forward_pallas(x_nhwc, params)
    out = jax.block_until_ready(out)

    ref = cnn_forward_ref(x_nhwc, params)
    ref = jax.block_until_ready(ref)

    assert out.shape == (2, 16, 16, n_channel_list[-1]), out.shape
    # bf16 MXU operands (f32 accumulation) -> 2e-2 tolerance vs the f32 reference.
    if not jnp.allclose(out, ref, rtol=2e-2, atol=2e-2):
        max_err = float(jnp.max(jnp.abs(out - ref)))
        raise AssertionError(f"Pallas output mismatch vs reference, max_err={max_err}")

    print("KERNEL_OK")
</pallas_src>

<mosaic_0001>
module attributes {stable_mosaic.version = 11 : i64} {
  func.func @kernel(%arg0: i32, %arg1: memref<1x16x16x128xf32, #tpu.memory_space<vmem>>, %arg2: memref<1x128x128xbf16, #tpu.memory_space<vmem>>, %arg3: memref<1x128x128xbf16, #tpu.memory_space<vmem>>, %arg4: memref<1x128x128xbf16, #tpu.memory_space<vmem>>, %arg5: memref<1x128x128xbf16, #tpu.memory_space<vmem>>, %arg6: memref<1x128xf32, #tpu.memory_space<vmem>>, %arg7: memref<1x128xf32, #tpu.memory_space<vmem>>, %arg8: memref<1x128xf32, #tpu.memory_space<vmem>>, %arg9: memref<1x128xf32, #tpu.memory_space<vmem>>, %arg10: memref<9x1x128xf32, #tpu.memory_space<vmem>>, %arg11: memref<9x1x128xf32, #tpu.memory_space<vmem>>, %arg12: memref<9x1x128xf32, #tpu.memory_space<vmem>>, %arg13: memref<9x1x128xf32, #tpu.memory_space<vmem>>, %arg14: memref<1x16x16x128xf32, #tpu.memory_space<vmem>>, %arg15: memref<18x32x128xf32, #tpu.memory_space<vmem>>) attributes {dimension_semantics = [#tpu.dimension_semantics<parallel>], iteration_bounds = array<i64: 2>, scalar_prefetch = 0 : i64, scratch_operands = 1 : i64, tpu.core_type = #tpu.core_type<tc>, window_params = [{transform_indices = @transform_0, window_bounds = array<i64: 1, 16, 16, 128>}, {pipeline_mode = #tpu.pipeline_mode<synchronous>, transform_indices = @transform_1, window_bounds = array<i64: 1, 128, 128>}, {pipeline_mode = #tpu.pipeline_mode<synchronous>, transform_indices = @transform_2, window_bounds = array<i64: 1, 128, 128>}, {pipeline_mode = #tpu.pipeline_mode<synchronous>, transform_indices = @transform_3, window_bounds = array<i64: 1, 128, 128>}, {pipeline_mode = #tpu.pipeline_mode<synchronous>, transform_indices = @transform_4, window_bounds = array<i64: 1, 128, 128>}, {pipeline_mode = #tpu.pipeline_mode<synchronous>, transform_indices = @transform_5, window_bounds = array<i64: 1, 128>}, {pipeline_mode = #tpu.pipeline_mode<synchronous>, transform_indices = @transform_6, window_bounds = array<i64: 1, 128>}, {pipeline_mode = #tpu.pipeline_mode<synchronous>, transform_indices = @transform_7, window_bounds = array<i64: 1, 128>}, {pipeline_mode = #tpu.pipeline_mode<synchronous>, transform_indices = @transform_8, window_bounds = array<i64: 1, 128>}, {pipeline_mode = #tpu.pipeline_mode<synchronous>, transform_indices = @transform_9, window_bounds = array<i64: 9, 1, 128>}, {pipeline_mode = #tpu.pipeline_mode<synchronous>, transform_indices = @transform_10, window_bounds = array<i64: 9, 1, 128>}, {pipeline_mode = #tpu.pipeline_mode<synchronous>, transform_indices = @transform_11, window_bounds = array<i64: 9, 1, 128>}, {pipeline_mode = #tpu.pipeline_mode<synchronous>, transform_indices = @transform_12, window_bounds = array<i64: 9, 1, 128>}, {transform_indices = @transform_13, window_bounds = array<i64: 1, 16, 16, 128>}]} {
    %cst = arith.constant 0.000000e+00 : f32
    %0 = vector.broadcast %cst : f32 to vector<1x32x128xf32>
    %c0 = arith.constant 0 : index
    %c0_0 = arith.constant 0 : index
    %c0_1 = arith.constant 0 : index
    %1 = vector.load %arg15[%c0, %c0_0, %c0_1] : memref<18x32x128xf32, #tpu.memory_space<vmem>>, vector<1x32x128xf32>
    tpu.vector_store %arg15[%c0, %c0_0, %c0_1], %0 {strides = array<i32>} : memref<18x32x128xf32, #tpu.memory_space<vmem>>, vector<1x32x128xf32>,
    %c17 = arith.constant 17 : index
    %c0_2 = arith.constant 0 : index
    %c0_3 = arith.constant 0 : index
    %2 = vector.load %arg15[%c17, %c0_2, %c0_3] : memref<18x32x128xf32, #tpu.memory_space<vmem>>, vector<1x32x128xf32>
    tpu.vector_store %arg15[%c17, %c0_2, %c0_3], %0 {strides = array<i32>} : memref<18x32x128xf32, #tpu.memory_space<vmem>>, vector<1x32x128xf32>,
    %cst_4 = arith.constant 0.000000e+00 : f32
    %3 = vector.broadcast %cst_4 : f32 to vector<16x8x128xf32>
    %c1 = arith.constant 1 : index
    %c0_5 = arith.constant 0 : index
    %c0_6 = arith.constant 0 : index
    %4 = vector.load %arg15[%c1, %c0_5, %c0_6] : memref<18x32x128xf32, #tpu.memory_space<vmem>>, vector<16x8x128xf32>
    tpu.vector_store %arg15[%c1, %c0_5, %c0_6], %3 {strides = array<i32>} : memref<18x32x128xf32, #tpu.memory_space<vmem>>, vector<16x8x128xf32>,
    %cst_7 = arith.constant 0.000000e+00 : f32
    %5 = vector.broadcast %cst_7 : f32 to vector<16x8x128xf32>
    %c1_8 = arith.constant 1 : index
    %c24 = arith.constant 24 : index
    %c0_9 = arith.constant 0 : index
    %6 = vector.load %arg15[%c1_8, %c24, %c0_9] : memref<18x32x128xf32, #tpu.memory_space<vmem>>, vector<16x8x128xf32>
    tpu.vector_store %arg15[%c1_8, %c24, %c0_9], %5 {strides = array<i32>} : memref<18x32x128xf32, #tpu.memory_space<vmem>>, vector<16x8x128xf32>,
    %c0_10 = arith.constant 0 : index
    %c0_11 = arith.constant 0 : index
    %c0_12 = arith.constant 0 : index
    %c0_13 = arith.constant 0 : index
    %7 = vector.load %arg1[%c0_10, %c0_11, %c0_12, %c0_13] : memref<1x16x16x128xf32, #tpu.memory_space<vmem>>, vector<1x16x16x128xf32>
    %8 = vector.shape_cast %7 : vector<1x16x16x128xf32> to vector<16x16x128xf32>
    %c1_14 = arith.constant 1 : index
    %c8 = arith.constant 8 : index
    %c0_15 = arith.constant 0 : index
    %9 = vector.load %arg15[%c1_14, %c8, %c0_15] : memref<18x32x128xf32, #tpu.memory_space<vmem>>, vector<16x16x128xf32>
    tpu.vector_store %arg15[%c1_14, %c8, %c0_15], %8 {strides = array<i32>} : memref<18x32x128xf32, #tpu.memory_space<vmem>>, vector<16x16x128xf32>,
    %c0_16 = arith.constant 0 : index
    %c7 = arith.constant 7 : index
    %c0_17 = arith.constant 0 : index
    %10 = vector.load %arg15[%c0_16, %c7, %c0_17] : memref<18x32x128xf32, #tpu.memory_space<vmem>>, vector<16x16x128xf32>
    %11 = vector.shape_cast %10 : vector<16x16x128xf32> to vector<256x128xf32>
    %c0_18 = arith.constant 0 : index
    %c0_19 = arith.constant 0 : index
    %c0_20 = arith.constant 0 : index
    %12 = vector.load %arg10[%c0_18, %c0_19, %c0_20] : memref<9x1x128xf32, #tpu.memory_space<vmem>>, vector<1x1x128xf32>
    %13 = vector.shape_cast %12 : vector<1x1x128xf32> to vector<1x128xf32>
    %14 = vector.broadcast %13 : vector<1x128xf32> to vector<256x128xf32>
    %15 = arith.mulf %11, %14 : vector<256x128xf32>
    %c0_21 = arith.constant 0 : index
    %c8_22 = arith.constant 8 : index
    %c0_23 = arith.constant 0 : index
    %16 = vector.load %arg15[%c0_21, %c8_22, %c0_23] : memref<18x32x128xf32, #tpu.memory_space<vmem>>, vector<16x16x128xf32>
    %17 = vector.shape_cast %16 : vector<16x16x128xf32> to vector<256x128xf32>
    %c1_24 = arith.constant 1 : index
    %c0_25 = arith.constant 0 : index
    %c0_26 = arith.constant 0 : index
    %18 = vector.load %arg10[%c1_24, %c0_25, %c0_26] : memref<9x1x128xf32, #tpu.memory_space<vmem>>, vector<1x1x128xf32>
    %19 = vector.shape_cast %18 : vector<1x1x128xf32> to vector<1x128xf32>
    %20 = vector.broadcast %19 : vector<1x128xf32> to vector<256x128xf32>
    %21 = arith.mulf %17, %20 : vector<256x128xf32>
    %22 = arith.addf %15, %21 : vector<256x128xf32>
    %c0_27 = arith.constant 0 : index
    %c9 = arith.constant 9 : index
    %c0_28 = arith.constant 0 : index
    %23 = vector.load %arg15[%c0_27, %c9, %c0_28] : memref<18x32x128xf32, #tpu.memory_space<vmem>>, vector<16x16x128xf32>
    %24 = vector.shape_cast %23 : vector<16x16x128xf32> to vector<256x128xf32>
    %c2 = arith.constant 2 : index
    %c0_29 = arith.constant 0 : index
    %c0_30 = arith.constant 0 : index
    %25 = vector.load %arg10[%c2, %c0_29, %c0_30] : memref<9x1x128xf32, #tpu.memory_space<vmem>>, vector<1x1x128xf32>
    %26 = vector.shape_cast %25 : vector<1x1x128xf32> to vector<1x128xf32>
    %27 = vector.broadcast %26 : vector<1x128xf32> to vector<256x128xf32>
    %28 = arith.mulf %24, %27 : vector<256x128xf32>
    %29 = arith.addf %22, %28 : vector<256x128xf32>
    %c1_31 = arith.constant 1 : index
    %c7_32 = arith.constant 7 : index
    %c0_33 = arith.constant 0 : index
    %30 = vector.load %arg15[%c1_31, %c7_32, %c0_33] : memref<18x32x128xf32, #tpu.memory_space<vmem>>, vector<16x16x128xf32>
    %31 = vector.shape_cast %30 : vector<16x16x128xf32> to vector<256x128xf32>
    %c3 = arith.constant 3 : index
    %c0_34 = arith.constant 0 : index
    %c0_35 = arith.constant 0 : index
    %32 = vector.load %arg10[%c3, %c0_34, %c0_35] : memref<9x1x128xf32, #tpu.memory_space<vmem>>, vector<1x1x128xf32>
    %33 = vector.shape_cast %32 : vector<1x1x128xf32> to vector<1x128xf32>
    %34 = vector.broadcast %33 : vector<1x128xf32> to vector<256x128xf32>
    %35 = arith.mulf %31, %34 : vector<256x128xf32>
    %36 = arith.addf %29, %35 : vector<256x128xf32>
    %c1_36 = arith.constant 1 : index
    %c8_37 = arith.constant 8 : index
    %c0_38 = arith.constant 0 : index
    %37 = vector.load %arg15[%c1_36, %c8_37, %c0_38] : memref<18x32x128xf32, #tpu.memory_space<vmem>>, vector<16x16x128xf32>
    %38 = vector.shape_cast %37 : vector<16x16x128xf32> to vector<256x128xf32>
    %c4 = arith.constant 4 : index
    %c0_39 = arith.constant 0 : index
    %c0_40 = arith.constant 0 : index
    %39 = vector.load %arg10[%c4, %c0_39, %c0_40] : memref<9x1x128xf32, #tpu.memory_space<vmem>>, vector<1x1x128xf32>
    %40 = vector.shape_cast %39 : vector<1x1x128xf32> to vector<1x128xf32>
    %41 = vector.broadcast %40 : vector<1x128xf32> to vector<256x128xf32>
    %42 = arith.mulf %38, %41 : vector<256x128xf32>
    %43 = arith.addf %36, %42 : vector<256x128xf32>
    %c1_41 = arith.constant 1 : index
    %c9_42 = arith.constant 9 : index
    %c0_43 = arith.constant 0 : index
    %44 = vector.load %arg15[%c1_41, %c9_42, %c0_43] : memref<18x32x128xf32, #tpu.memory_space<vmem>>, vector<16x16x128xf32>
    %45 = vector.shape_cast %44 : vector<16x16x128xf32> to vector<256x128xf32>
    %c5 = arith.constant 5 : index
    %c0_44 = arith.constant 0 : index
    %c0_45 = arith.constant 0 : index
    %46 = vector.load %arg10[%c5, %c0_44, %c0_45] : memref<9x1x128xf32, #tpu.memory_space<vmem>>, vector<1x1x128xf32>
    %47 = vector.shape_cast %46 : vector<1x1x128xf32> to vector<1x128xf32>
    %48 = vector.broadcast %47 : vector<1x128xf32> to vector<256x128xf32>
    %49 = arith.mulf %45, %48 : vector<256x128xf32>
    %50 = arith.addf %43, %49 : vector<256x128xf32>
    %c2_46 = arith.constant 2 : index
    %c7_47 = arith.constant 7 : index
    %c0_48 = arith.constant 0 : index
    %51 = vector.load %arg15[%c2_46, %c7_47, %c0_48] : memref<18x32x128xf32, #tpu.memory_space<vmem>>, vector<16x16x128xf32>
    %52 = vector.shape_cast %51 : vector<16x16x128xf32> to vector<256x128xf32>
    %c6 = arith.constant 6 : index
    %c0_49 = arith.constant 0 : index
    %c0_50 = arith.constant 0 : index
    %53 = vector.load %arg10[%c6, %c0_49, %c0_50] : memref<9x1x128xf32, #tpu.memory_space<vmem>>, vector<1x1x128xf32>
    %54 = vector.shape_cast %53 : vector<1x1x128xf32> to vector<1x128xf32>
    %55 = vector.broadcast %54 : vector<1x128xf32> to vector<256x128xf32>
    %56 = arith.mulf %52, %55 : vector<256x128xf32>
    %57 = arith.addf %50, %56 : vector<256x128xf32>
    %c2_51 = arith.constant 2 : index
    %c8_52 = arith.constant 8 : index
    %c0_53 = arith.constant 0 : index
    %58 = vector.load %arg15[%c2_51, %c8_52, %c0_53] : memref<18x32x128xf32, #tpu.memory_space<vmem>>, vector<16x16x128xf32>
    %59 = vector.shape_cast %58 : vector<16x16x128xf32> to vector<256x128xf32>
    %c7_54 = arith.constant 7 : index
    %c0_55 = arith.constant 0 : index
    %c0_56 = arith.constant 0 : index
    %60 = vector.load %arg10[%c7_54, %c0_55, %c0_56] : memref<9x1x128xf32, #tpu.memory_space<vmem>>, vector<1x1x128xf32>
    %61 = vector.shape_cast %60 : vector<1x1x128xf32> to vector<1x128xf32>
    %62 = vector.broadcast %61 : vector<1x128xf32> to vector<256x128xf32>
    %63 = arith.mulf %59, %62 : vector<256x128xf32>
    %64 = arith.addf %57, %63 : vector<256x128xf32>
    %c2_57 = arith.constant 2 : index
    %c9_58 = arith.constant 9 : index
    %c0_59 = arith.constant 0 : index
    %65 = vector.load %arg15[%c2_57, %c9_58, %c0_59] : memref<18x32x128xf32, #tpu.memory_space<vmem>>, vector<16x16x128xf32>
    %66 = vector.shape_cast %65 : vector<16x16x128xf32> to vector<256x128xf32>
    %c8_60 = arith.constant 8 : index
    %c0_61 = arith.constant 0 : index
    %c0_62 = arith.constant 0 : index
    %67 = vector.load %arg10[%c8_60, %c0_61, %c0_62] : memref<9x1x128xf32, #tpu.memory_space<vmem>>, vector<1x1x128xf32>
    %68 = vector.shape_cast %67 : vector<1x1x128xf32> to vector<1x128xf32>
    %69 = vector.broadcast %68 : vector<1x128xf32> to vector<256x128xf32>
    %70 = arith.mulf %66, %69 : vector<256x128xf32>
    %71 = arith.addf %64, %70 : vector<256x128xf32>
    %72 = arith.truncf %71 : vector<256x128xf32> to vector<256x128xbf16>
    %c0_63 = arith.constant 0 : index
    %c0_64 = arith.constant 0 : index
    %c0_65 = arith.constant 0 : index
    %73 = vector.load %arg2[%c0_63, %c0_64, %c0_65] : memref<1x128x128xbf16, #tpu.memory_space<vmem>>, vector<1x128x128xbf16>
    %74 = vector.shape_cast %73 : vector<1x128x128xbf16> to vector<128x128xbf16>
    %cst_66 = arith.constant dense<0.000000e+00> : vector<256x128xf32>
    %75 = tpu.matmul %72, %74, %cst_66 {dimension_numbers = #tpu.dot_dimension_numbers<[1], [0], [0], [1], [0, 0, 1, 1], [], []>} : vector<256x128xbf16>, vector<128x128xbf16>, vector<256x128xf32> -> vector<256x128xf32>
    %c0_67 = arith.constant 0 : index
    %c0_68 = arith.constant 0 : index
    %76 = vector.load %arg6[%c0_67, %c0_68] : memref<1x128xf32, #tpu.memory_space<vmem>>, vector<1x128xf32>
    %77 = vector.broadcast %76 : vector<1x128xf32> to vector<256x128xf32>
    %78 = arith.addf %75, %77 : vector<256x128xf32>
    %cst_69 = arith.constant 0.000000e+00 : f32
    %79 = vector.broadcast %cst_69 : f32 to vector<256x128xf32>
    %80 = arith.maximumf %78, %79 : vector<256x128xf32>
    %81 = vector.shape_cast %80 : vector<256x128xf32> to vector<16x16x128xf32>
    %c1_70 = arith.constant 1 : index
    %c8_71 = arith.constant 8 : index
    %c0_72 = arith.constant 0 : index
    %82 = vector.load %arg15[%c1_70, %c8_71, %c0_72] : memref<18x32x128xf32, #tpu.memory_space<vmem>>, vector<16x16x128xf32>
    tpu.vector_store %arg15[%c1_70, %c8_71, %c0_72], %81 {strides = array<i32>} : memref<18x32x128xf32, #tpu.memory_space<vmem>>, vector<16x16x128xf32>,
    %c0_73 = arith.constant 0 : index
    %c7_74 = arith.constant 7 : index
    %c0_75 = arith.constant 0 : index
    %83 = vector.load %arg15[%c0_73, %c7_74, %c0_75] : memref<18x32x128xf32, #tpu.memory_space<vmem>>, vector<16x16x128xf32>
    %84 = vector.shape_cast %83 : vector<16x16x128xf32> to vector<256x128xf32>
    %c0_76 = arith.constant 0 : index
    %c0_77 = arith.constant 0 : index
    %c0_78 = arith.constant 0 : index
    %85 = vector.load %arg11[%c0_76, %c0_77, %c0_78] : memref<9x1x128xf32, #tpu.memory_space<vmem>>, vector<1x1x128xf32>
    %86 = vector.shape_cast %85 : vector<1x1x128xf32> to vector<1x128xf32>
    %87 = vector.broadcast %86 : vector<1x128xf32> to vector<256x128xf32>
    %88 = arith.mulf %84, %87 : vector<256x128xf32>
    %c0_79 = arith.constant 0 : index
    %c8_80 = arith.constant 8 : index
    %c0_81 = arith.constant 0 : index
    %89 = vector.load %arg15[%c0_79, %c8_80, %c0_81] : memref<18x32x128xf32, #tpu.memory_space<vmem>>, vector<16x16x128xf32>
    %90 = vector.shape_cast %89 : vector<16x16x128xf32> to vector<256x128xf32>
    %c1_82 = arith.constant 1 : index
    %c0_83 = arith.constant 0 : index
    %c0_84 = arith.constant 0 : index
    %91 = vector.load %arg11[%c1_82, %c0_83, %c0_84] : memref<9x1x128xf32, #tpu.memory_space<vmem>>, vector<1x1x128xf32>
    %92 = vector.shape_cast %91 : vector<1x1x128xf32> to vector<1x128xf32>
    %93 = vector.broadcast %92 : vector<1x128xf32> to vector<256x128xf32>
    %94 = arith.mulf %90, %93 : vector<256x128xf32>
    %95 = arith.addf %88, %94 : vector<256x128xf32>
    %c0_85 = arith.constant 0 : index
    %c9_86 = arith.constant 9 : index
    %c0_87 = arith.constant 0 : index
    %96 = vector.load %arg15[%c0_85, %c9_86, %c0_87] : memref<18x32x128xf32, #tpu.memory_space<vmem>>, vector<16x16x128xf32>
    %97 = vector.shape_cast %96 : vector<16x16x128xf32> to vector<256x128xf32>
    %c2_88 = arith.constant 2 : index
    %c0_89 = arith.constant 0 : index
    %c0_90 = arith.constant 0 : index
    %98 = vector.load %arg11[%c2_88, %c0_89, %c0_90] : memref<9x1x128xf32, #tpu.memory_space<vmem>>, vector<1x1x128xf32>
    %99 = vector.shape_cast %98 : vector<1x1x128xf32> to vector<1x128xf32>
    %100 = vector.broadcast %99 : vector<1x128xf32> to vector<256x128xf32>
    %101 = arith.mulf %97, %100 : vector<256x128xf32>
    %102 = arith.addf %95, %101 : vector<256x128xf32>
    %c1_91 = arith.constant 1 : index
    %c7_92 = arith.constant 7 : index
    %c0_93 = arith.constant 0 : index
    %103 = vector.load %arg15[%c1_91, %c7_92, %c0_93] : memref<18x32x128xf32, #tpu.memory_space<vmem>>, vector<16x16x128xf32>
    %104 = vector.shape_cast %103 : vector<16x16x128xf32> to vector<256x128xf32>
    %c3_94 = arith.constant 3 : index
    %c0_95 = arith.constant 0 : index
    %c0_96 = arith.constant 0 : index
    %105 = vector.load %arg11[%c3_94, %c0_95, %c0_96] : memref<9x1x128xf32, #tpu.memory_space<vmem>>, vector<1x1x128xf32>
    %106 = vector.shape_cast %105 : vector<1x1x128xf32> to vector<1x128xf32>
    %107 = vector.broadcast %106 : vector<1x128xf32> to vector<256x128xf32>
    %108 = arith.mulf %104, %107 : vector<256x128xf32>
    %109 = arith.addf %102, %108 : vector<256x128xf32>
    %c1_97 = arith.constant 1 : index
    %c8_98 = arith.constant 8 : index
    %c0_99 = arith.constant 0 : index
    %110 = vector.load %arg15[%c1_97, %c8_98, %c0_99] : memref<18x32x128xf32, #tpu.memory_space<vmem>>, vector<16x16x128xf32>
    %111 = vector.shape_cast %110 : vector<16x16x128xf32> to vector<256x128xf32>
    %c4_100 = arith.constant 4 : index
    %c0_101 = arith.constant 0 : index
    %c0_102 = arith.constant 0 : index
    %112 = vector.load %arg11[%c4_100, %c0_101, %c0_102] : memref<9x1x128xf32, #tpu.memory_space<vmem>>, vector<1x1x128xf32>
    %113 = vector.shape_cast %112 : vector<1x1x128xf32> to vector<1x128xf32>
    %114 = vector.broadcast %113 : vector<1x128xf32> to vector<256x128xf32>
    %115 = arith.mulf %111, %114 : vector<256x128xf32>
    %116 = arith.addf %109, %115 : vector<256x128xf32>
    %c1_103 = arith.constant 1 : index
    %c9_104 = arith.constant 9 : index
    %c0_105 = arith.constant 0 : index
    %117 = vector.load %arg15[%c1_103, %c9_104, %c0_105] : memref<18x32x128xf32, #tpu.memory_space<vmem>>, vector<16x16x128xf32>
    %118 = vector.shape_cast %117 : vector<16x16x128xf32> to vector<256x128xf32>
    %c5_106 = arith.constant 5 : index
    %c0_107 = arith.constant 0 : index
    %c0_108 = arith.constant 0 : index
    %119 = vector.load %arg11[%c5_106, %c0_107, %c0_108] : memref<9x1x128xf32, #tpu.memory_space<vmem>>, vector<1x1x128xf32>
    %120 = vector.shape_cast %119 : vector<1x1x128xf32> to vector<1x128xf32>
    %121 = vector.broadcast %120 : vector<1x128xf32> to vector<256x128xf32>
    %122 = arith.mulf %118, %121 : vector<256x128xf32>
    %123 = arith.addf %116, %122 : vector<256x128xf32>
    %c2_109 = arith.constant 2 : index
    %c7_110 = arith.constant 7 : index
    %c0_111 = arith.constant 0 : index
    %124 = vector.load %arg15[%c2_109, %c7_110, %c0_111] : memref<18x32x128xf32, #tpu.memory_space<vmem>>, vector<16x16x128xf32>
    %125 = vector.shape_cast %124 : vector<16x16x128xf32> to vector<256x128xf32>
    %c6_112 = arith.constant 6 : index
    %c0_113 = arith.constant 0 : index
    %c0_114 = arith.constant 0 : index
    %126 = vector.load %arg11[%c6_112, %c0_113, %c0_114] : memref<9x1x128xf32, #tpu.memory_space<vmem>>, vector<1x1x128xf32>
    %127 = vector.shape_cast %126 : vector<1x1x128xf32> to vector<1x128xf32>
    %128 = vector.broadcast %127 : vector<1x128xf32> to vector<256x128xf32>
    %129 = arith.mulf %125, %128 : vector<256x128xf32>
    %130 = arith.addf %123, %129 : vector<256x128xf32>
    %c2_115 = arith.constant 2 : index
    %c8_116 = arith.constant 8 : index
    %c0_117 = arith.constant 0 : index
    %131 = vector.load %arg15[%c2_115, %c8_116, %c0_117] : memref<18x32x128xf32, #tpu.memory_space<vmem>>, vector<16x16x128xf32>
    %132 = vector.shape_cast %131 : vector<16x16x128xf32> to vector<256x128xf32>
    %c7_118 = arith.constant 7 : index
    %c0_119 = arith.constant 0 : index
    %c0_120 = arith.constant 0 : index
    %133 = vector.load %arg11[%c7_118, %c0_119, %c0_120] : memref<9x1x128xf32, #tpu.memory_space<vmem>>, vector<1x1x128xf32>
    %134 = vector.shape_cast %133 : vector<1x1x128xf32> to vector<1x128xf32>
    %135 = vector.broadcast %134 : vector<1x128xf32> to vector<256x128xf32>
    %136 = arith.mulf %132, %135 : vector<256x128xf32>
    %137 = arith.addf %130, %136 : vector<256x128xf32>
    %c2_121 = arith.constant 2 : index
    %c9_122 = arith.constant 9 : index
    %c0_123 = arith.constant 0 : index
    %138 = vector.load %arg15[%c2_121, %c9_122, %c0_123] : memref<18x32x128xf32, #tpu.memory_space<vmem>>, vector<16x16x128xf32>
    %139 = vector.shape_cast %138 : vector<16x16x128xf32> to vector<256x128xf32>
    %c8_124 = arith.constant 8 : index
    %c0_125 = arith.constant 0 : index
    %c0_126 = arith.constant 0 : index
    %140 = vector.load %arg11[%c8_124, %c0_125, %c0_126] : memref<9x1x128xf32, #tpu.memory_space<vmem>>, vector<1x1x128xf32>
    %141 = vector.shape_cast %140 : vector<1x1x128xf32> to vector<1x128xf32>
    %142 = vector.broadcast %141 : vector<1x128xf32> to vector<256x128xf32>
    %143 = arith.mulf %139, %142 : vector<256x128xf32>
    %144 = arith.addf %137, %143 : vector<256x128xf32>
    %145 = arith.truncf %144 : vector<256x128xf32> to vector<256x128xbf16>
    %c0_127 = arith.constant 0 : index
    %c0_128 = arith.constant 0 : index
    %c0_129 = arith.constant 0 : index
    %146 = vector.load %arg3[%c0_127, %c0_128, %c0_129] : memref<1x128x128xbf16, #tpu.memory_space<vmem>>, vector<1x128x128xbf16>
    %147 = vector.shape_cast %146 : vector<1x128x128xbf16> to vector<128x128xbf16>
    %cst_130 = arith.constant dense<0.000000e+00> : vector<256x128xf32>
    %148 = tpu.matmul %145, %147, %cst_130 {dimension_numbers = #tpu.dot_dimension_numbers<[1], [0], [0], [1], [0, 0, 1, 1], [], []>} : vector<256x128xbf16>, vector<128x128xbf16>, vector<256x128xf32> -> vector<256x128xf32>
    %c0_131 = arith.constant 0 : index
    %c0_132 = arith.constant 0 : index
    %149 = vector.load %arg7[%c0_131, %c0_132] : memref<1x128xf32, #tpu.memory_space<vmem>>, vector<1x128xf32>
    %150 = vector.broadcast %149 : vector<1x128xf32> to vector<256x128xf32>
    %151 = arith.addf %148, %150 : vector<256x128xf32>
    %cst_133 = arith.constant 0.000000e+00 : f32
    %152 = vector.broadcast %cst_133 : f32 to vector<256x128xf32>
    %153 = arith.maximumf %151, %152 : vector<256x128xf32>
    %154 = vector.shape_cast %153 : vector<256x128xf32> to vector<16x16x128xf32>
    %c1_134 = arith.constant 1 : index
    %c8_135 = arith.constant 8 : index
    %c0_136 = arith.constant 0 : index
    %155 = vector.load %arg15[%c1_134, %c8_135, %c0_136] : memref<18x32x128xf32, #tpu.memory_space<vmem>>, vector<16x16x128xf32>
    tpu.vector_store %arg15[%c1_134, %c8_135, %c0_136], %154 {strides = array<i32>} : memref<18x32x128xf32, #tpu.memory_space<vmem>>, vector<16x16x128xf32>,
    %c0_137 = arith.constant 0 : index
    %c7_138 = arith.constant 7 : index
    %c0_139 = arith.constant 0 : index
    %156 = vector.load %arg15[%c0_137, %c7_138, %c0_139] : memref<18x32x128xf32, #tpu.memory_space<vmem>>, vector<16x16x128xf32>
    %157 = vector.shape_cast %156 : vector<16x16x128xf32> to vector<256x128xf32>
    %c0_140 = arith.constant 0 : index
    %c0_141 = arith.constant 0 : index
    %c0_142 = arith.constant 0 : index
    %158 = vector.load %arg12[%c0_140, %c0_141, %c0_142] : memref<9x1x128xf32, #tpu.memory_space<vmem>>, vector<1x1x128xf32>
    %159 = vector.shape_cast %158 : vector<1x1x128xf32> to vector<1x128xf32>
    %160 = vector.broadcast %159 : vector<1x128xf32> to vector<256x128xf32>
    %161 = arith.mulf %157, %160 : vector<256x128xf32>
    %c0_143 = arith.constant 0 : index
    %c8_144 = arith.constant 8 : index
    %c0_145 = arith.constant 0 : index
    %162 = vector.load %arg15[%c0_143, %c8_144, %c0_145] : memref<18x32x128xf32, #tpu.memory_space<vmem>>, vector<16x16x128xf32>
    %163 = vector.shape_cast %162 : vector<16x16x128xf32> to vector<256x128xf32>
    %c1_146 = arith.constant 1 : index
    %c0_147 = arith.constant 0 : index
    %c0_148 = arith.constant 0 : index
    %164 = vector.load %arg12[%c1_146, %c0_147, %c0_148] : memref<9x1x128xf32, #tpu.memory_space<vmem>>, vector<1x1x128xf32>
    %165 = vector.shape_cast %164 : vector<1x1x128xf32> to vector<1x128xf32>
    %166 = vector.broadcast %165 : vector<1x128xf32> to vector<256x128xf32>
    %167 = arith.mulf %163, %166 : vector<256x128xf32>
    %168 = arith.addf %161, %167 : vector<256x128xf32>
    %c0_149 = arith.constant 0 : index
    %c9_150 = arith.constant 9 : index
    %c0_151 = arith.constant 0 : index
    %169 = vector.load %arg15[%c0_149, %c9_150, %c0_151] : memref<18x32x128xf32, #tpu.memory_space<vmem>>, vector<16x16x128xf32>
    %170 = vector.shape_cast %169 : vector<16x16x128xf32> to vector<256x128xf32>
    %c2_152 = arith.constant 2 : index
    %c0_153 = arith.constant 0 : index
    %c0_154 = arith.constant 0 : index
    %171 = vector.load %arg12[%c2_152, %c0_153, %c0_154] : memref<9x1x128xf32, #tpu.memory_space<vmem>>, vector<1x1x128xf32>
    %172 = vector.shape_cast %171 : vector<1x1x128xf32> to vector<1x128xf32>
    %173 = vector.broadcast %172 : vector<1x128xf32> to vector<256x128xf32>
    %174 = arith.mulf %170, %173 : vector<256x128xf32>
    %175 = arith.addf %168, %174 : vector<256x128xf32>
    %c1_155 = arith.constant 1 : index
    %c7_156 = arith.constant 7 : index
    %c0_157 = arith.constant 0 : index
    %176 = vector.load %arg15[%c1_155, %c7_156, %c0_157] : memref<18x32x128xf32, #tpu.memory_space<vmem>>, vector<16x16x128xf32>
    %177 = vector.shape_cast %176 : vector<16x16x128xf32> to vector<256x128xf32>
    %c3_158 = arith.constant 3 : index
    %c0_159 = arith.constant 0 : index
    %c0_160 = arith.constant 0 : index
    %178 = vector.load %arg12[%c3_158, %c0_159, %c0_160] : memref<9x1x128xf32, #tpu.memory_space<vmem>>, vector<1x1x128xf32>
    %179 = vector.shape_cast %178 : vector<1x1x128xf32> to vector<1x128xf32>
    %180 = vector.broadcast %179 : vector<1x128xf32> to vector<256x128xf32>
    %181 = arith.mulf %177, %180 : vector<256x128xf32>
    %182 = arith.addf %175, %181 : vector<256x128xf32>
    %c1_161 = arith.constant 1 : index
    %c8_162 = arith.constant 8 : index
    %c0_163 = arith.constant 0 : index
    %183 = vector.load %arg15[%c1_161, %c8_162, %c0_163] : memref<18x32x128xf32, #tpu.memory_space<vmem>>, vector<16x16x128xf32>
    %184 = vector.shape_cast %183 : vector<16x16x128xf32> to vector<256x128xf32>
    %c4_164 = arith.constant 4 : index
    %c0_165 = arith.constant 0 : index
    %c0_166 = arith.constant 0 : index
    %185 = vector.load %arg12[%c4_164, %c0_165, %c0_166] : memref<9x1x128xf32, #tpu.memory_space<vmem>>, vector<1x1x128xf32>
    %186 = vector.shape_cast %185 : vector<1x1x128xf32> to vector<1x128xf32>
    %187 = vector.broadcast %186 : vector<1x128xf32> to vector<256x128xf32>
    %188 = arith.mulf %184, %187 : vector<256x128xf32>
    %189 = arith.addf %182, %188 : vector<256x128xf32>
    %c1_167 = arith.constant 1 : index
    %c9_168 = arith.constant 9 : index
    %c0_169 = arith.constant 0 : index
    %190 = vector.load %arg15[%c1_167, %c9_168, %c0_169] : memref<18x32x128xf32, #tpu.memory_space<vmem>>, vector<16x16x128xf32>
    %191 = vector.shape_cast %190 : vector<16x16x128xf32> to vector<256x128xf32>
    %c5_170 = arith.constant 5 : index
    %c0_171 = arith.constant 0 : index
    %c0_172 = arith.constant 0 : index
    %192 = vector.load %arg12[%c5_170, %c0_171, %c0_172] : memref<9x1x128xf32, #tpu.memory_space<vmem>>, vector<1x1x128xf32>
    %193 = vector.shape_cast %192 : vector<1x1x128xf32> to vector<1x128xf32>
    %194 = vector.broadcast %193 : vector<1x128xf32> to vector<256x128xf32>
    %195 = arith.mulf %191, %194 : vector<256x128xf32>
    %196 = arith.addf %189, %195 : vector<256x128xf32>
    %c2_173 = arith.constant 2 : index
    %c7_174 = arith.constant 7 : index
    %c0_175 = arith.constant 0 : index
    %197 = vector.load %arg15[%c2_173, %c7_174, %c0_175] : memref<18x32x128xf32, #tpu.memory_space<vmem>>, vector<16x16x128xf32>
    %198 = vector.shape_cast %197 : vector<16x16x128xf32> to vector<256x128xf32>
    %c6_176 = arith.constant 6 : index
    %c0_177 = arith.constant 0 : index
    %c0_178 = arith.constant 0 : index
    %199 = vector.load %arg12[%c6_176, %c0_177, %c0_178] : memref<9x1x128xf32, #tpu.memory_space<vmem>>, vector<1x1x128xf32>
    %200 = vector.shape_cast %199 : vector<1x1x128xf32> to vector<1x128xf32>
    %201 = vector.broadcast %200 : vector<1x128xf32> to vector<256x128xf32>
    %202 = arith.mulf %198, %201 : vector<256x128xf32>
    %203 = arith.addf %196, %202 : vector<256x128xf32>
    %c2_179 = arith.constant 2 : index
    %c8_180 = arith.constant 8 : index
    %c0_181 = arith.constant 0 : index
    %204 = vector.load %arg15[%c2_179, %c8_180, %c0_181] : memref<18x32x128xf32, #tpu.memory_space<vmem>>, vector<16x16x128xf32>
    %205 = vector.shape_cast %204 : vector<16x16x128xf32> to vector<256x128xf32>
    %c7_182 = arith.constant 7 : index
    %c0_183 = arith.constant 0 : index
    %c0_184 = arith.constant 0 : index
    %206 = vector.load %arg12[%c7_182, %c0_183, %c0_184] : memref<9x1x128xf32, #tpu.memory_space<vmem>>, vector<1x1x128xf32>
    %207 = vector.shape_cast %206 : vector<1x1x128xf32> to vector<1x128xf32>
    %208 = vector.broadcast %207 : vector<1x128xf32> to vector<256x128xf32>
    %209 = arith.mulf %205, %208 : vector<256x128xf32>
    %210 = arith.addf %203, %209 : vector<256x128xf32>
    %c2_185 = arith.constant 2 : index
    %c9_186 = arith.constant 9 : index
    %c0_187 = arith.constant 0 : index
    %211 = vector.load %arg15[%c2_185, %c9_186, %c0_187] : memref<18x32x128xf32, #tpu.memory_space<vmem>>, vector<16x16x128xf32>
    %212 = vector.shape_cast %211 : vector<16x16x128xf32> to vector<256x128xf32>
    %c8_188 = arith.constant 8 : index
    %c0_189 = arith.constant 0 : index
    %c0_190 = arith.constant 0 : index
    %213 = vector.load %arg12[%c8_188, %c0_189, %c0_190] : memref<9x1x128xf32, #tpu.memory_space<vmem>>, vector<1x1x128xf32>
    %214 = vector.shape_cast %213 : vector<1x1x128xf32> to vector<1x128xf32>
    %215 = vector.broadcast %214 : vector<1x128xf32> to vector<256x128xf32>
    %216 = arith.mulf %212, %215 : vector<256x128xf32>
    %217 = arith.addf %210, %216 : vector<256x128xf32>
    %218 = arith.truncf %217 : vector<256x128xf32> to vector<256x128xbf16>
    %c0_191 = arith.constant 0 : index
    %c0_192 = arith.constant 0 : index
    %c0_193 = arith.constant 0 : index
    %219 = vector.load %arg4[%c0_191, %c0_192, %c0_193] : memref<1x128x128xbf16, #tpu.memory_space<vmem>>, vector<1x128x128xbf16>
    %220 = vector.shape_cast %219 : vector<1x128x128xbf16> to vector<128x128xbf16>
    %cst_194 = arith.constant dense<0.000000e+00> : vector<256x128xf32>
    %221 = tpu.matmul %218, %220, %cst_194 {dimension_numbers = #tpu.dot_dimension_numbers<[1], [0], [0], [1], [0, 0, 1, 1], [], []>} : vector<256x128xbf16>, vector<128x128xbf16>, vector<256x128xf32> -> vector<256x128xf32>
    %c0_195 = arith.constant 0 : index
    %c0_196 = arith.constant 0 : index
    %222 = vector.load %arg8[%c0_195, %c0_196] : memref<1x128xf32, #tpu.memory_space<vmem>>, vector<1x128xf32>
    %223 = vector.broadcast %222 : vector<1x128xf32> to vector<256x128xf32>
    %224 = arith.addf %221, %223 : vector<256x128xf32>
    %cst_197 = arith.constant 0.000000e+00 : f32
    %225 = vector.broadcast %cst_197 : f32 to vector<256x128xf32>
    %226 = arith.maximumf %224, %225 : vector<256x128xf32>
    %227 = vector.shape_cast %226 : vector<256x128xf32> to vector<16x16x128xf32>
    %c1_198 = arith.constant 1 : index
    %c8_199 = arith.constant 8 : index
    %c0_200 = arith.constant 0 : index
    %228 = vector.load %arg15[%c1_198, %c8_199, %c0_200] : memref<18x32x128xf32, #tpu.memory_space<vmem>>, vector<16x16x128xf32>
    tpu.vector_store %arg15[%c1_198, %c8_199, %c0_200], %227 {strides = array<i32>} : memref<18x32x128xf32, #tpu.memory_space<vmem>>, vector<16x16x128xf32>,
    %c0_201 = arith.constant 0 : index
    %c7_202 = arith.constant 7 : index
    %c0_203 = arith.constant 0 : index
    %229 = vector.load %arg15[%c0_201, %c7_202, %c0_203] : memref<18x32x128xf32, #tpu.memory_space<vmem>>, vector<16x16x128xf32>
    %230 = vector.shape_cast %229 : vector<16x16x128xf32> to vector<256x128xf32>
    %c0_204 = arith.constant 0 : index
    %c0_205 = arith.constant 0 : index
    %c0_206 = arith.constant 0 : index
    %231 = vector.load %arg13[%c0_204, %c0_205, %c0_206] : memref<9x1x128xf32, #tpu.memory_space<vmem>>, vector<1x1x128xf32>
    %232 = vector.shape_cast %231 : vector<1x1x128xf32> to vector<1x128xf32>
    %233 = vector.broadcast %232 : vector<1x128xf32> to vector<256x128xf32>
    %234 = arith.mulf %230, %233 : vector<256x128xf32>
    %c0_207 = arith.constant 0 : index
    %c8_208 = arith.constant 8 : index
    %c0_209 = arith.constant 0 : index
    %235 = vector.load %arg15[%c0_207, %c8_208, %c0_209] : memref<18x32x128xf32, #tpu.memory_space<vmem>>, vector<16x16x128xf32>
    %236 = vector.shape_cast %235 : vector<16x16x128xf32> to vector<256x128xf32>
    %c1_210 = arith.constant 1 : index
    %c0_211 = arith.constant 0 : index
    %c0_212 = arith.constant 0 : index
    %237 = vector.load %arg13[%c1_210, %c0_211, %c0_212] : memref<9x1x128xf32, #tpu.memory_space<vmem>>, vector<1x1x128xf32>
    %238 = vector.shape_cast %237 : vector<1x1x128xf32> to vector<1x128xf32>
    %239 = vector.broadcast %238 : vector<1x128xf32> to vector<256x128xf32>
    %240 = arith.mulf %236, %239 : vector<256x128xf32>
    %241 = arith.addf %234, %240 : vector<256x128xf32>
    %c0_213 = arith.constant 0 : index
    %c9_214 = arith.constant 9 : index
    %c0_215 = arith.constant 0 : index
    %242 = vector.load %arg15[%c0_213, %c9_214, %c0_215] : memref<18x32x128xf32, #tpu.memory_space<vmem>>, vector<16x16x128xf32>
    %243 = vector.shape_cast %242 : vector<16x16x128xf32> to vector<256x128xf32>
    %c2_216 = arith.constant 2 : index
    %c0_217 = arith.constant 0 : index
    %c0_218 = arith.constant 0 : index
    %244 = vector.load %arg13[%c2_216, %c0_217, %c0_218] : memref<9x1x128xf32, #tpu.memory_space<vmem>>, vector<1x1x128xf32>
    %245 = vector.shape_cast %244 : vector<1x1x128xf32> to vector<1x128xf32>
    %246 = vector.broadcast %245 : vector<1x128xf32> to vector<256x128xf32>
    %247 = arith.mulf %243, %246 : vector<256x128xf32>
    %248 = arith.addf %241, %247 : vector<256x128xf32>
    %c1_219 = arith.constant 1 : index
    %c7_220 = arith.constant 7 : index
    %c0_221 = arith.constant 0 : index
    %249 = vector.load %arg15[%c1_219, %c7_220, %c0_221] : memref<18x32x128xf32, #tpu.memory_space<vmem>>, vector<16x16x128xf32>
    %250 = vector.shape_cast %249 : vector<16x16x128xf32> to vector<256x128xf32>
    %c3_222 = arith.constant 3 : index
    %c0_223 = arith.constant 0 : index
    %c0_224 = arith.constant 0 : index
    %251 = vector.load %arg13[%c3_222, %c0_223, %c0_224] : memref<9x1x128xf32, #tpu.memory_space<vmem>>, vector<1x1x128xf32>
    %252 = vector.shape_cast %251 : vector<1x1x128xf32> to vector<1x128xf32>
    %253 = vector.broadcast %252 : vector<1x128xf32> to vector<256x128xf32>
    %254 = arith.mulf %250, %253 : vector<256x128xf32>
    %255 = arith.addf %248, %254 : vector<256x128xf32>
    %c1_225 = arith.constant 1 : index
    %c8_226 = arith.constant 8 : index
    %c0_227 = arith.constant 0 : index
    %256 = vector.load %arg15[%c1_225, %c8_226, %c0_227] : memref<18x32x128xf32, #tpu.memory_space<vmem>>, vector<16x16x128xf32>
    %257 = vector.shape_cast %256 : vector<16x16x128xf32> to vector<256x128xf32>
    %c4_228 = arith.constant 4 : index
    %c0_229 = arith.constant 0 : index
    %c0_230 = arith.constant 0 : index
    %258 = vector.load %arg13[%c4_228, %c0_229, %c0_230] : memref<9x1x128xf32, #tpu.memory_space<vmem>>, vector<1x1x128xf32>
    %259 = vector.shape_cast %258 : vector<1x1x128xf32> to vector<1x128xf32>
    %260 = vector.broadcast %259 : vector<1x128xf32> to vector<256x128xf32>
    %261 = arith.mulf %257, %260 : vector<256x128xf32>
    %262 = arith.addf %255, %261 : vector<256x128xf32>
    %c1_231 = arith.constant 1 : index
    %c9_232 = arith.constant 9 : index
    %c0_233 = arith.constant 0 : index
    %263 = vector.load %arg15[%c1_231, %c9_232, %c0_233] : memref<18x32x128xf32, #tpu.memory_space<vmem>>, vector<16x16x128xf32>
    %264 = vector.shape_cast %263 : vector<16x16x128xf32> to vector<256x128xf32>
    %c5_234 = arith.constant 5 : index
    %c0_235 = arith.constant 0 : index
    %c0_236 = arith.constant 0 : index
    %265 = vector.load %arg13[%c5_234, %c0_235, %c0_236] : memref<9x1x128xf32, #tpu.memory_space<vmem>>, vector<1x1x128xf32>
    %266 = vector.shape_cast %265 : vector<1x1x128xf32> to vector<1x128xf32>
    %267 = vector.broadcast %266 : vector<1x128xf32> to vector<256x128xf32>
    %268 = arith.mulf %264, %267 : vector<256x128xf32>
    %269 = arith.addf %262, %268 : vector<256x128xf32>
    %c2_237 = arith.constant 2 : index
    %c7_238 = arith.constant 7 : index
    %c0_239 = arith.constant 0 : index
    %270 = vector.load %arg15[%c2_237, %c7_238, %c0_239] : memref<18x32x128xf32, #tpu.memory_space<vmem>>, vector<16x16x128xf32>
    %271 = vector.shape_cast %270 : vector<16x16x128xf32> to vector<256x128xf32>
    %c6_240 = arith.constant 6 : index
    %c0_241 = arith.constant 0 : index
    %c0_242 = arith.constant 0 : index
    %272 = vector.load %arg13[%c6_240, %c0_241, %c0_242] : memref<9x1x128xf32, #tpu.memory_space<vmem>>, vector<1x1x128xf32>
    %273 = vector.shape_cast %272 : vector<1x1x128xf32> to vector<1x128xf32>
    %274 = vector.broadcast %273 : vector<1x128xf32> to vector<256x128xf32>
    %275 = arith.mulf %271, %274 : vector<256x128xf32>
    %276 = arith.addf %269, %275 : vector<256x128xf32>
    %c2_243 = arith.constant 2 : index
    %c8_244 = arith.constant 8 : index
    %c0_245 = arith.constant 0 : index
    %277 = vector.load %arg15[%c2_243, %c8_244, %c0_245] : memref<18x32x128xf32, #tpu.memory_space<vmem>>, vector<16x16x128xf32>
    %278 = vector.shape_cast %277 : vector<16x16x128xf32> to vector<256x128xf32>
    %c7_246 = arith.constant 7 : index
    %c0_247 = arith.constant 0 : index
    %c0_248 = arith.constant 0 : index
    %279 = vector.load %arg13[%c7_246, %c0_247, %c0_248] : memref<9x1x128xf32, #tpu.memory_space<vmem>>, vector<1x1x128xf32>
    %280 = vector.shape_cast %279 : vector<1x1x128xf32> to vector<1x128xf32>
    %281 = vector.broadcast %280 : vector<1x128xf32> to vector<256x128xf32>
    %282 = arith.mulf %278, %281 : vector<256x128xf32>
    %283 = arith.addf %276, %282 : vector<256x128xf32>
    %c2_249 = arith.constant 2 : index
    %c9_250 = arith.constant 9 : index
    %c0_251 = arith.constant 0 : index
    %284 = vector.load %arg15[%c2_249, %c9_250, %c0_251] : memref<18x32x128xf32, #tpu.memory_space<vmem>>, vector<16x16x128xf32>
    %285 = vector.shape_cast %284 : vector<16x16x128xf32> to vector<256x128xf32>
    %c8_252 = arith.constant 8 : index
    %c0_253 = arith.constant 0 : index
    %c0_254 = arith.constant 0 : index
    %286 = vector.load %arg13[%c8_252, %c0_253, %c0_254] : memref<9x1x128xf32, #tpu.memory_space<vmem>>, vector<1x1x128xf32>
    %287 = vector.shape_cast %286 : vector<1x1x128xf32> to vector<1x128xf32>
    %288 = vector.broadcast %287 : vector<1x128xf32> to vector<256x128xf32>
    %289 = arith.mulf %285, %288 : vector<256x128xf32>
    %290 = arith.addf %283, %289 : vector<256x128xf32>
    %291 = arith.truncf %290 : vector<256x128xf32> to vector<256x128xbf16>
    %c0_255 = arith.constant 0 : index
    %c0_256 = arith.constant 0 : index
    %c0_257 = arith.constant 0 : index
    %292 = vector.load %arg5[%c0_255, %c0_256, %c0_257] : memref<1x128x128xbf16, #tpu.memory_space<vmem>>, vector<1x128x128xbf16>
    %293 = vector.shape_cast %292 : vector<1x128x128xbf16> to vector<128x128xbf16>
    %cst_258 = arith.constant dense<0.000000e+00> : vector<256x128xf32>
    %294 = tpu.matmul %291, %293, %cst_258 {dimension_numbers = #tpu.dot_dimension_numbers<[1], [0], [0], [1], [0, 0, 1, 1], [], []>} : vector<256x128xbf16>, vector<128x128xbf16>, vector<256x128xf32> -> vector<256x128xf32>
    %c0_259 = arith.constant 0 : index
    %c0_260 = arith.constant 0 : index
    %295 = vector.load %arg9[%c0_259, %c0_260] : memref<1x128xf32, #tpu.memory_space<vmem>>, vector<1x128xf32>
    %296 = vector.broadcast %295 : vector<1x128xf32> to vector<256x128xf32>
    %297 = arith.addf %294, %296 : vector<256x128xf32>
    %cst_261 = arith.constant 0.000000e+00 : f32
    %298 = vector.broadcast %cst_261 : f32 to vector<256x128xf32>
    %299 = arith.maximumf %297, %298 : vector<256x128xf32>
    %300 = vector.shape_cast %299 : vector<256x128xf32> to vector<16x16x128xf32>
    %c0_262 = arith.constant 0 : index
    %c0_263 = arith.constant 0 : index
    %c0_264 = arith.constant 0 : index
    %c0_265 = arith.constant 0 : index
    %301 = vector.load %arg14[%c0_262, %c0_263, %c0_264, %c0_265] : memref<1x16x16x128xf32, #tpu.memory_space<vmem>>, vector<1x16x16x128xf32>
    %302 = vector.shape_cast %301 : vector<1x16x16x128xf32> to vector<16x16x128xf32>
    %303 = vector.shape_cast %300 : vector<16x16x128xf32> to vector<1x16x16x128xf32>
    tpu.vector_store %arg14[%c0_262, %c0_263, %c0_264, %c0_265], %303 {strides = array<i32>} : memref<1x16x16x128xf32, #tpu.memory_space<vmem>>, vector<1x16x16x128xf32>,
    return
  }
  func.func @transform_0(%arg0: i32) -> (i32, i32, i32, i32) {
    %c0_i32 = arith.constant 0 : i32
    %c0_i32_0 = arith.constant 0 : i32
    %c0_i32_1 = arith.constant 0 : i32
    %c0_i32_2 = arith.constant 0 : i32
    return %arg0, %c0_i32, %c0_i32_0, %c0_i32_1 : i32, i32, i32, i32
  }
  func.func @transform_1(%arg0: i32) -> (i32, i32, i32) {
    %c0_i32 = arith.constant 0 : i32
    %c0_i32_0 = arith.constant 0 : i32
    %c0_i32_1 = arith.constant 0 : i32
    %c0_i32_2 = arith.constant 0 : i32
    return %c0_i32, %c0_i32_0, %c0_i32_1 : i32, i32, i32
  }
  func.func @transform_2(%arg0: i32) -> (i32, i32, i32) {
    %c0_i32 = arith.constant 0 : i32
    %c0_i32_0 = arith.constant 0 : i32
    %c0_i32_1 = arith.constant 0 : i32
    %c0_i32_2 = arith.constant 0 : i32
    return %c0_i32, %c0_i32_0, %c0_i32_1 : i32, i32, i32
  }
  func.func @transform_3(%arg0: i32) -> (i32, i32, i32) {
    %c0_i32 = arith.constant 0 : i32
    %c0_i32_0 = arith.constant 0 : i32
    %c0_i32_1 = arith.constant 0 : i32
    %c0_i32_2 = arith.constant 0 : i32
    return %c0_i32, %c0_i32_0, %c0_i32_1 : i32, i32, i32
  }
  func.func @transform_4(%arg0: i32) -> (i32, i32, i32) {
    %c0_i32 = arith.constant 0 : i32
    %c0_i32_0 = arith.constant 0 : i32
    %c0_i32_1 = arith.constant 0 : i32
    %c0_i32_2 = arith.constant 0 : i32
    return %c0_i32, %c0_i32_0, %c0_i32_1 : i32, i32, i32
  }
  func.func @transform_5(%arg0: i32) -> (i32, i32) {
    %c0_i32 = arith.constant 0 : i32
    %c0_i32_0 = arith.constant 0 : i32
    %c0_i32_1 = arith.constant 0 : i32
    return %c0_i32, %c0_i32_0 : i32, i32
  }
  func.func @transform_6(%arg0: i32) -> (i32, i32) {
    %c0_i32 = arith.constant 0 : i32
    %c0_i32_0 = arith.constant 0 : i32
    %c0_i32_1 = arith.constant 0 : i32
    return %c0_i32, %c0_i32_0 : i32, i32
  }
  func.func @transform_7(%arg0: i32) -> (i32, i32) {
    %c0_i32 = arith.constant 0 : i32
    %c0_i32_0 = arith.constant 0 : i32
    %c0_i32_1 = arith.constant 0 : i32
    return %c0_i32, %c0_i32_0 : i32, i32
  }
  func.func @transform_8(%arg0: i32) -> (i32, i32) {
    %c0_i32 = arith.constant 0 : i32
    %c0_i32_0 = arith.constant 0 : i32
    %c0_i32_1 = arith.constant 0 : i32
    return %c0_i32, %c0_i32_0 : i32, i32
  }
  func.func @transform_9(%arg0: i32) -> (i32, i32, i32) {
    %c0_i32 = arith.constant 0 : i32
    %c0_i32_0 = arith.constant 0 : i32
    %c0_i32_1 = arith.constant 0 : i32
    %c0_i32_2 = arith.constant 0 : i32
    return %c0_i32, %c0_i32_0, %c0_i32_1 : i32, i32, i32
  }
  func.func @transform_10(%arg0: i32) -> (i32, i32, i32) {
    %c0_i32 = arith.constant 0 : i32
    %c0_i32_0 = arith.constant 0 : i32
    %c0_i32_1 = arith.constant 0 : i32
    %c0_i32_2 = arith.constant 0 : i32
    return %c0_i32, %c0_i32_0, %c0_i32_1 : i32, i32, i32
  }
  func.func @transform_11(%arg0: i32) -> (i32, i32, i32) {
    %c0_i32 = arith.constant 0 : i32
    %c0_i32_0 = arith.constant 0 : i32
    %c0_i32_1 = arith.constant 0 : i32
    %c0_i32_2 = arith.constant 0 : i32
    return %c0_i32, %c0_i32_0, %c0_i32_1 : i32, i32, i32
  }
  func.func @transform_12(%arg0: i32) -> (i32, i32, i32) {
    %c0_i32 = arith.constant 0 : i32
    %c0_i32_0 = arith.constant 0 : i32
    %c0_i32_1 = arith.constant 0 : i32
    %c0_i32_2 = arith.constant 0 : i32
    return %c0_i32, %c0_i32_0, %c0_i32_1 : i32, i32, i32
  }
  func.func @transform_13(%arg0: i32) -> (i32, i32, i32, i32) {
    %c0_i32 = arith.constant 0 : i32
    %c0_i32_0 = arith.constant 0 : i32
    %c0_i32_1 = arith.constant 0 : i32
    %c0_i32_2 = arith.constant 0 : i32
    return %arg0, %c0_i32, %c0_i32_0, %c0_i32_1 : i32, i32, i32, i32
  }
}

</mosaic_0001>

<bundles_post_ra>
// kernel: tpu_custom_call.1
= control target key start
LH: loop header
LB: loop body
LE: loop exit
PB: predicated region body
PF: predicated region fallthrough
CT: control target
= control target key end

     0   :  { %s9796_s0 = inlined_call_operand.hbm [shape: f32[2,16,16,128], index: 0, kind: input, shape index: {}]   ;;  %s9797_s1 = inlined_call_operand.hbm [shape: bf16[1,128,128], index: 1, kind: input, shape index: {}]   ;;  %s9798_s2 = inlined_call_operand.hbm [shape: bf16[1,128,128], index: 2, kind: input, shape index: {}]   ;;  %s9799_s3 = inlined_call_operand.hbm [shape: bf16[1,128,128], index: 3, kind: input, shape index: {}]   ;;  %s9800_s4 = inlined_call_operand.hbm [shape: bf16[1,128,128], index: 4, kind: input, shape index: {}]   ;;  %s9801_s5 = inlined_call_operand.hbm [shape: f32[1,128], index: 5, kind: input, shape index: {}]   ;;  %s9802_s6 = inlined_call_operand.vmem [shape: f32[1,128], index: 6, kind: input, shape index: {}]   ;;  %s9803_s7 = inlined_call_operand.hbm [shape: f32[1,128], index: 7, kind: input, shape index: {}]   ;;  %s9804_s8 = inlined_call_operand.hbm [shape: f32[1,128], index: 8, kind: input, shape index: {}]   ;;  %s9805_s9 = inlined_call_operand.vmem [shape: f32[9,1,128], index: 9, kind: input, shape index: {}]   ;;  %s9806_s10 = inlined_call_operand.vmem [shape: f32[9,1,128], index: 10, kind: input, shape index: {}]   ;;  %s9807_s11 = inlined_call_operand.vmem [shape: f32[9,1,128], index: 11, kind: input, shape index: {}]   ;;  %s9808_s12 = inlined_call_operand.vmem [shape: f32[9,1,128], index: 12, kind: input, shape index: {}]   ;;  %s9809_s13 = inlined_call_operand.hbm [shape: f32[2,16,16,128], index: 13, kind: output, shape index: {}]  }
   0x1   :  { %9833 = sst [smem:[#allocation30_spill]] %s9796_s0 }
   0x2   :  { %9834 = sst [smem:[#allocation31_spill]] %s9797_s1 }
   0x3   :  { %9835 = sst [smem:[#allocation32_spill]] %s9802_s6 }
   0x4   :  { %9836 = sst [smem:[#allocation33_spill]] %s9806_s10 }
   0x5   :  { %9837 = sst [smem:[#allocation34_spill]] %s9807_s11 }
   0x6   :  { %9838 = sst [smem:[#allocation35_spill]] %s9808_s12 }
   0x7   :  { %9839 = sst [smem:[#allocation36_spill]] %s9809_s13 }
   0x8   :  { %18 = vsyncpa [#allocation4], 0 }
   0x9   :  { %20 = vsyncpa [#allocation4 + $0x1], 0 }
   0xa   :  { %21 = vsyncpa [#allocation7], 0 }
   0xb   :  { %22 = vsyncpa [#allocation10], 0 }
   0xc   :  { %23 = vsyncpa [#allocation13], 0 }
   0xd   :  { %24 = vsyncpa [#allocation16], 0 }
   0xe   :  { %25 = vsyncpa [#allocation5], 0 }
   0xf   :  { %27 = vsyncpa [#allocation5 + $0x1], 0  ;;  %s6698_s25 = smov 0   ;;  %s6700_s26 = smov 0  }
  0x10   :  { %s6702_s27 = smov 0   ;;  %s6704_s28 = smov 0  }
  0x11 LB: > { %s6612_s29 = smov [#allocation6]   ;;  %s6719_s14 = sadd.s32 4294967295, %s6610_s28   ;;  %s6610_s28 = sphi %s6704_s28, %s9884_s28   ;;  %s6606_s27 = sphi %s6702_s27, %s9883_s27   ;;  %s6602_s26 = sphi %s6700_s26, %s9882_s26   ;;  %s6598_s25 = sphi %s6698_s25, %s9881_s25  }
  0x12   : > { %s354_s30 = sshll.u32 %s6612_s29, 4  ;;  %p5678_p0 = scmp.ge.s32.totalorder %s6610_s28, 1  ;;  %s6724_s30 = int_to_ptr.vmem [resolvable:$true] %s354_s30 }
  0x13   : > { %p9817_p1 = scmp.eq.s32.totalorder %s6719_s14, 0  ;;  %p342_p2 = scmp.lt.s32.totalorder %s6610_s28, 3 }
  0x14   : > { %s6613_s16 = smov [#allocation9]   ;;  %s6614_s19 = smov [#allocation12]  }
  0x15   : > { %p6726_p3 = pnand %p5678_p0, %p342_p2  ;;  %s380_s17 = sshll.u32 %s6613_s16, 4  ;;  %s6739_s17 = int_to_ptr.vmem [resolvable:$true] %s380_s17 }
  0x16   : > { %s407_s20 = sshll.u32 %s6614_s19, 4  ;;  %s9842_s1 = sld [smem:[#allocation31_spill]]  ;;  %s6741_s20 = int_to_ptr.vmem [resolvable:$true] %s407_s20 }
  0x17   : > { %s9840_s15 = scalar_select %p6726_p3, 1, 0 }
  0x18   : > { %p6131_p5 = pneg %p6726_p3 }
  0x1a   : > { %p6735_p6 = pnand %p6131_p5, %p9817_p1 }
  0x1c   : > { %s6302_s23 = scalar_lea.hbm %s9842_s1, 1024  ;;  %p6751_p8 = pneg %p6735_p6 }
  0x1d   : > { %p6303_p7 = scmp.ne.s32.totalorder %s9842_s1, %s6302_s23  ;;  %p6309_p11 = scmp.lt.u32.totalorder %s6302_s23, %s9842_s1 }
  0x1f   : > { %p6305_p9 = pnand %p6751_p8, %p6303_p7 }
  0x21   : > { %p6306_p10 = pneg %p6305_p9 }
  0x23   : > { %p6311_p12 = pnand %p6309_p11, %p6306_p10 }
  0x25   : > { %6314 = shalt.err (!%p6311_p12)
}
  0x26   : > { %s6315_s21 = scalar_lea.vmem %s6724_s30, 1024  ;;  %p6323_p5 = scmp.lt.s32.totalorder %s6724_s30, %s6724_s30 }
  0x27   : > { %p6316_p13 = scmp.ne.s32.totalorder %s6724_s30, %s6315_s21  ;;  %p6324_p4 = scmp.lt.s32.totalorder %s6315_s21, %s6315_s21 }
  0x29   : > { %p6318_p0 = pnand %p6316_p13, %p6751_p8  ;;  %p6325_p7 = por %p6324_p4, %p6323_p5 }
  0x2b   : > { %p6319_p2 = pneg %p6318_p0 }
  0x2d   : > { %p6326_p9 = pnand %p6325_p7, %p6319_p2 }
  0x2f   : > { %6329 = shalt.err (!%p6326_p9)
}
  0x30   : > { %s9815_s22 = smov 64   ;;  %s6616_s13 = smov 4  }
  0x31   : > { %6134 = dma.hbm_to_vmem [thread:$0]  (!%p6735_p6), %s9842_s1, 1024, %s6724_s30, [#allocation7], %s9815_s22, %s9815_s22, %s6616_s13  }
  0x32   : > { %s6330_s21 = scalar_lea.hbm %s9799_s3, 1024 }
  0x33   : > { %p6331_p4 = scmp.ne.s32.totalorder %s9799_s3, %s6330_s21  ;;  %p6337_p12 = scmp.lt.u32.totalorder %s6330_s21, %s9799_s3 }
  0x35   : > { %p6333_p10 = pnand %p6331_p4, %p6751_p8 }
  0x37   : > { %p6334_p11 = pneg %p6333_p10 }
  0x39   : > { %p6339_p13 = pnand %p6337_p12, %p6334_p11 }
  0x3b   : > { %6342 = shalt.err (!%p6339_p13)
}
  0x3c   : > { %s6343_s30 = scalar_lea.vmem %s6739_s17, 1024  ;;  %p6351_p7 = scmp.lt.s32.totalorder %s6739_s17, %s6739_s17 }
  0x3d   : > { %p6344_p0 = scmp.ne.s32.totalorder %s6739_s17, %s6343_s30  ;;  %p6352_p9 = scmp.lt.s32.totalorder %s6343_s30, %s6343_s30 }
  0x3f   : > { %p6346_p2 = pnand %p6344_p0, %p6751_p8  ;;  %p6353_p4 = por %p6352_p9, %p6351_p7 }
  0x41   : > { %p6347_p5 = pneg %p6346_p2 }
  0x43   : > { %p6354_p10 = pnand %p6353_p4, %p6347_p5 }
  0x45   : > { %6357 = shalt.err (!%p6354_p10)
}
  0x46   : > { %6140 = dma.hbm_to_vmem [thread:$0]  (!%p6735_p6), %s9799_s3, 1024, %s6739_s17, [#allocation10], %s9815_s22, %s9815_s22, %s6616_s13  }
  0x47   : > { %s6358_s23 = scalar_lea.hbm %s9801_s5, 16 }
  0x48   : > { %p6359_p11 = scmp.ne.s32.totalorder %s9801_s5, %s6358_s23  ;;  %p6365_p0 = scmp.lt.u32.totalorder %s6358_s23, %s9801_s5 }
  0x4a   : > { %p6361_p12 = pnand %p6359_p11, %p6751_p8 }
  0x4c   : > { %p6362_p13 = pneg %p6361_p12 }
  0x4e   : > { %p6367_p2 = pnand %p6365_p0, %p6362_p13 }
  0x50   : > { %6370 = shalt.err (!%p6367_p2)
}
  0x51   : > { %s6371_s17 = scalar_lea.vmem %s6741_s20, 16  ;;  %s6378_s30 = scalar_lea.vmem %s6741_s20, 32 }
  0x52   : > { %p6372_p5 = scmp.ne.s32.totalorder %s6741_s20, %s6371_s17  ;;  %p6379_p4 = scmp.lt.s32.totalorder %s6741_s20, %s6741_s20 }
  0x53   : > { %p6380_p10 = scmp.lt.s32.totalorder %s6378_s30, %s6371_s17 }
  0x54   : > { %p6374_p7 = pnand %p6372_p5, %p6751_p8 }
  0x55   : > { %p6381_p11 = por %p6380_p10, %p6379_p4 }
  0x56   : > { %p6375_p9 = pneg %p6374_p7 }
  0x58   : > { %p6382_p12 = pnand %p6381_p11, %p6375_p9 }
  0x5a   : > { %6385 = shalt.err (!%p6382_p12)
}
  0x5b   : > { %6146 = dma.hbm_to_vmem [thread:$0]  (!%p6735_p6), %s9801_s5, 16, %s6741_s20, [#allocation13]  }
  0x5c   : > { %s6617_s11 = smov [#allocation8]   ;;  %s6618_s23 = smov [#allocation11]  }
  0x5d   : > { %s367_s12 = sshll.u32 %s6617_s11, 4  ;;  %s393_s24 = sshll.u32 %s6618_s23, 4  ;;  %s368_s12 = int_to_ptr.vmem [resolvable:$true] %s367_s12  ;;  %s394_s24 = int_to_ptr.vmem [resolvable:$true] %s393_s24 }
  0x5e   : > { %s6386_s21 = scalar_lea.hbm %s9798_s2, 1024 }
  0x5f   : > { %p6387_p13 = scmp.ne.s32.totalorder %s9798_s2, %s6386_s21  ;;  %p6393_p5 = scmp.lt.u32.totalorder %s6386_s21, %s9798_s2 }
  0x61   : > { %p6389_p0 = pnand %p6387_p13, %p6751_p8 }
  0x63   : > { %p6390_p2 = pneg %p6389_p0 }
  0x65   : > { %p6395_p7 = pnand %p6393_p5, %p6390_p2 }
  0x67   : > { %6398 = shalt.err (!%p6395_p7)
}
  0x68   : > { %s6399_s20 = scalar_lea.vmem %s368_s12, 1024  ;;  %p6407_p11 = scmp.lt.s32.totalorder %s368_s12, %s368_s12 }
  0x69   : > { %p6400_p9 = scmp.ne.s32.totalorder %s368_s12, %s6399_s20  ;;  %p6408_p12 = scmp.lt.s32.totalorder %s6399_s20, %s6399_s20 }
  0x6b   : > { %p6402_p4 = pnand %p6400_p9, %p6751_p8  ;;  %p6409_p1 = por %p6408_p12, %p6407_p11 }
  0x6d   : > { %p6403_p10 = pneg %p6402_p4 }
  0x6f   : > { %p6410_p3 = pnand %p6409_p1, %p6403_p10 }
  0x71   : > { %6413 = shalt.err (!%p6410_p3)
}
  0x72   : > { %s9844_s10 = smov 64   ;;  %s6414_s19 = scalar_lea.hbm %s9800_s4, 1024 }
  0x73   : > { %6137 = dma.hbm_to_vmem [thread:$0]  (!%p6735_p6), %s9798_s2, 1024, %s368_s12, [#allocation7], %s9844_s10, %s9844_s10, %s6616_s13  }
  0x74   : > { %p6415_p1 = scmp.ne.s32.totalorder %s9800_s4, %s6414_s19  ;;  %p6421_p0 = scmp.lt.u32.totalorder %s6414_s19, %s9800_s4 }
  0x76   : > { %p6417_p3 = pnand %p6415_p1, %p6751_p8 }
  0x78   : > { %p6418_p13 = pneg %p6417_p3 }
  0x7a   : > { %p6423_p2 = pnand %p6421_p0, %p6418_p13 }
  0x7c   : > { %6426 = shalt.err (!%p6423_p2)
}
  0x7d   : > { %s6427_s20 = scalar_lea.vmem %s394_s24, 1024  ;;  %p6435_p4 = scmp.lt.s32.totalorder %s394_s24, %s394_s24 }
  0x7e   : > { %p6428_p5 = scmp.ne.s32.totalorder %s394_s24, %s6427_s20  ;;  %p6436_p10 = scmp.lt.s32.totalorder %s6427_s20, %s6427_s20 }
  0x80   : > { %p6430_p7 = pnand %p6428_p5, %p6751_p8  ;;  %p6437_p11 = por %p6436_p10, %p6435_p4 }
  0x82   : > { %p6431_p9 = pneg %p6430_p7 }
  0x84   : > { %p6438_p12 = pnand %p6437_p11, %p6431_p9 }
  0x86   : > { %6441 = shalt.err (!%p6438_p12)
}
  0x87   : > { %6143 = dma.hbm_to_vmem [thread:$0]  (!%p6735_p6), %s9800_s4, 1024, %s394_s24, [#allocation10], %s9844_s10, %s9844_s10, %s6616_s13  }
  0x88   : > { %s6619_s11 = smov [#allocation14]   ;;  %s6620_s29 = smov [#allocation15]  }
  0x89   : > { %s421_s23 = sshll.u32 %s6619_s11, 4  ;;  %s432_s19 = sshll.u32 %s6620_s29, 4  ;;  %s422_s23 = int_to_ptr.vmem [resolvable:$true] %s421_s23  ;;  %s433_s19 = int_to_ptr.vmem [resolvable:$true] %s432_s19 }
  0x8a   : > { %s6442_s30 = scalar_lea.hbm %s9803_s7, 16 }
  0x8b   : > { %p6443_p1 = scmp.ne.s32.totalorder %s9803_s7, %s6442_s30  ;;  %p6449_p0 = scmp.lt.u32.totalorder %s6442_s30, %s9803_s7 }
  0x8d   : > { %p6445_p3 = pnand %p6443_p1, %p6751_p8 }
  0x8f   : > { %p6446_p13 = pneg %p6445_p3 }
  0x91   : > { %p6451_p2 = pnand %p6449_p0, %p6446_p13 }
  0x93   : > { %6454 = shalt.err (!%p6451_p2)
}
  0x94   : > { %s6455_s13 = scalar_lea.vmem %s422_s23, 16  ;;  %s6462_s24 = scalar_lea.vmem %s422_s23, 32 }
  0x95   : > { %p6456_p5 = scmp.ne.s32.totalorder %s422_s23, %s6455_s13  ;;  %p6463_p4 = scmp.lt.s32.totalorder %s422_s23, %s422_s23 }
  0x96   : > { %p6464_p10 = scmp.lt.s32.totalorder %s6462_s24, %s6455_s13 }
  0x97   : > { %p6458_p7 = pnand %p6456_p5, %p6751_p8 }
  0x98   : > { %p6465_p11 = por %p6464_p10, %p6463_p4 }
  0x99   : > { %p6459_p9 = pneg %p6458_p7 }
  0x9b   : > { %p6466_p12 = pnand %p6465_p11, %p6459_p9 }
  0x9d   : > { %6469 = shalt.err (!%p6466_p12)
}
  0x9e   : > { %6149 = dma.hbm_to_vmem [thread:$0]  (!%p6735_p6), %s9803_s7, 16, %s422_s23, [#allocation13]  }
  0x9f   : > { %s6470_s29 = scalar_lea.hbm %s9804_s8, 16 }
  0xa0   : > { %p6471_p1 = scmp.ne.s32.totalorder %s9804_s8, %s6470_s29  ;;  %p6477_p0 = scmp.lt.u32.totalorder %s6470_s29, %s9804_s8 }
  0xa2   : > { %p6473_p3 = pnand %p6471_p1, %p6751_p8 }
  0xa4   : > { %p6474_p13 = pneg %p6473_p3 }
  0xa6   : > { %p6479_p2 = pnand %p6477_p0, %p6474_p13 }
  0xa8   : > { %6482 = shalt.err (!%p6479_p2)
}
  0xa9   : > { %s6483_s20 = scalar_lea.vmem %s433_s19, 16  ;;  %s6490_s23 = scalar_lea.vmem %s433_s19, 32 }
  0xaa   : > { %p6484_p5 = scmp.ne.s32.totalorder %s433_s19, %s6483_s20  ;;  %p6491_p4 = scmp.lt.s32.totalorder %s433_s19, %s433_s19 }
  0xab   : > { %p6492_p10 = scmp.lt.s32.totalorder %s6490_s23, %s6483_s20 }
  0xac   : > { %p6486_p7 = pnand %p6484_p5, %p6751_p8 }
  0xad   : > { %p6493_p11 = por %p6492_p10, %p6491_p4 }
  0xae   : > { %p6487_p9 = pneg %p6486_p7 }
  0xb0   : > { %p6494_p12 = pnand %p6493_p11, %p6487_p9 }
  0xb2   : > { %6497 = shalt.err (!%p6494_p12)
}
  0xb3   : > { %6152 = dma.hbm_to_vmem [thread:$0]  (!%p6735_p6), %s9804_s8, 16, %s433_s19, [#allocation16]  }
  0xb4   : > { %s5677_s16 = sadd.s32 4294967294, %s6610_s28   ;;  %s6905_s18 = sadd.s32 1, %s6610_s28  }
  0xb5   : > { %s40_s24 = sadd.s32 1, %s6606_s27  ;;  %s37_s10 = ssub.s32 %s6610_s28, %s6905_s18 }
  0xb6   : > { %p47_p8 = scmp.ne.s32.totalorder %s6606_s27, %s6602_s26  ;;  %p38_p1 = scmp.eq.s32.totalorder %s37_s10, 0 }
  0xb7   : > { %p48_p3 = scmp.eq.s32.totalorder %s6610_s28, 0  ;;  %p53_p13 = scmp.ne.s32.totalorder %s6602_s26, %s6598_s25 }
  0xb8   : > { %p329_p0 = scmp.eq.s32.totalorder %s6719_s14, 1  ;;  %p9845_p5 = scmp.eq.s32.totalorder %s6719_s14, 0 }
  0xb9   : > { %s6917_s22 = scalar_select %p38_p1, %s6606_s27, %s40_s24  }
  0xba   : > { %p49_p2 = por %p48_p3, %p47_p8  ;;  %p6921_p7 = por %p9845_p5, %p53_p13 }
  0xbb   : > { %p6925_p6 = por %p329_p0, %p47_p8  ;;  %p335_p9 = scmp.eq.s32.totalorder %s5677_s16, 1 }
  0xbc   : > { %p6168_p4 = scmp.lt.s32.totalorder %s6610_s28, 2  ;;  %s455_s11 = sand.u32 1, %s6606_s27  }
  0xbd   : > { %s9847_s19 = scalar_select %p6925_p6, 1, 0 }
  0xbe   : > { %p6931_p10 = por %p335_p9, %p53_p13  ;;  %s5687_s21 = sshll.u32 %s455_s11, 8 }
  0xbf   : > { %s5809_s17 = sshll.u32 %s6610_s28, 12  ;;  %s9849_s0 = sld [smem:[#allocation30_spill]] }
  0xc0   : > { %s9848_s29 = scalar_select %p6931_p10, 1, 0 }
  0xc1   : > { %s459_s23 = scalar_lea.vmem [#allocation3], %s5687_s21  ;;  %p6941_p11 = pnand %p6168_p4, %p49_p2 }
  0xc2   : > { %s466_s12 = sshll.u32 %s459_s23, 4  ;;  %s6947_s16 = scalar_lea.sflag [#allocation4], %s455_s11  ;;  %s6945_s12 = int_to_ptr.vmem [resolvable:$true] %s466_s12 }
  0xc3   : > { %p6500_p8 = pneg %p6941_p11 }
  0xc5   : > { %s6939_s20 = scalar_lea.hbm %s9849_s0, %s5809_s17  ;;  %s6503_s17 = scalar_lea.hbm %s9849_s0, 8192 }
  0xc6   : > { %s6498_s24 = scalar_lea.hbm %s6939_s20, 4096  ;;  %p6504_p13 = scmp.lt.u32.totalorder %s6939_s20, %s9849_s0 }
  0xc7   : > { %p6499_p12 = scmp.ne.s32.totalorder %s6939_s20, %s6498_s24  ;;  %p6505_p0 = scmp.lt.u32.totalorder %s6503_s17, %s6498_s24 }
  0xc8   : > { %p6507_p5 = scmp.lt.u32.totalorder %s6498_s24, %s6939_s20 }
  0xc9   : > { %p6501_p1 = pnand %p6500_p8, %p6499_p12  ;;  %p6506_p2 = por %p6505_p0, %p6504_p13 }
  0xcb   : > { %p6502_p3 = pneg %p6501_p1  ;;  %p6508_p9 = por %p6507_p5, %p6506_p2 }
  0xcd   : > { %p6509_p4 = pnand %p6508_p9, %p6502_p3 }
  0xcf   : > { %6512 = shalt.err (!%p6509_p4)
}
  0xd0   : > { %s6513_s11 = scalar_lea.vmem %s6945_s12, 4096  ;;  %s6621_s23 = smov [#allocation3]  }
  0xd1   : > { %p6514_p12 = scmp.ne.s32.totalorder %s6945_s12, %s6513_s11  ;;  %s6518_s10 = sshll.u32 %s6621_s23, 4  ;;  %s6519_s10 = int_to_ptr.vmem [resolvable:$false] %s6518_s10 }
  0xd2   : > { %s6520_s21 = scalar_lea.vmem %s6519_s10, 8192  ;;  %p6521_p6 = scmp.lt.s32.totalorder %s6945_s12, %s6519_s10 }
  0xd3   : > { %p6516_p1 = pnand %p6514_p12, %p6500_p8  ;;  %p6522_p13 = scmp.lt.s32.totalorder %s6520_s21, %s6513_s11 }
  0xd5   : > { %p6517_p10 = pneg %p6516_p1  ;;  %p6523_p0 = por %p6522_p13, %p6521_p6 }
  0xd7   : > { %p6524_p2 = pnand %p6523_p0, %p6517_p10 }
  0xd9   : > { %6527 = shalt.err (!%p6524_p2)
}
  0xda   : > { %s6622_s24 = smov 128   ;;  %s6623_s17 = smov 8  }
  0xdb   : > { %6156 = dma.hbm_to_vmem [thread:$0]  (!%p6941_p11), %s6939_s20, 4096, %s6945_s12, %s6947_s16, %s6622_s24, %s6622_s24, %s6623_s17  }
  0xdc   : > { %p9851_p8 = scmp.ne.s32.totalorder %s9840_s15, 0 }
  0xde   : > { %478 = sbr.rel (%p9851_p8) target bundleno = 1428 (0x594), region = 72 }
  0xe5   : > { %s6978_s30 = sand.u32 1, %s6602_s26  }
  0xe6   : > { %s5691_s6 = sshll.u32 %s6978_s30, 8  ;;  %s481_s11 = scalar_lea.sflag [#allocation4], %s6978_s30 }
  0xe7   : > { %s6984_s23 = scalar_lea.vmem [#allocation3], %s5691_s6 }
  0xe8   : > { %6573 = dma.done.wait (%p6921_p7), %s481_s11, 4096  }
  0xe9   : > { %6575 = vsyncadd (%p6921_p7), %s481_s11, 4294963200  ;;  %p9852_p6 = scmp.eq.s32.totalorder %s6719_s14, 0 }
  0xeb   : > { %6577 = dma.done.wait (%p9852_p6), [#allocation7], 2048   ;;  %p9853_p10 = pmov %p9852_p6 }
  0xec   : > { %p9854_p11 = pmov %p9852_p6 }
  0xed   : > { %6579 = vsyncadd (%p9853_p10), [#allocation7], 4294965248 }
  0xee   : > { %6581 = dma.done.wait (%p9854_p11), [#allocation10], 2048   ;;  %p9855_p3 = pmov %p9852_p6 }
  0xf0   : > { %6583 = vsyncadd (%p9855_p3), [#allocation10], 4294965248  ;;  %p9856_p5 = pmov %p9855_p3 }
  0xf1   : > { %p9857_p9 = pmov %p9855_p3 }
  0xf2   : > { %6585 = dma.done.wait (%p9856_p5), [#allocation13], 32  }
  0xf3   : > { %6587 = vsyncadd (%p9857_p9), [#allocation13], 4294967264  ;;  %p9858_p7 = pmov %p9855_p3 }
  0xf4   : > { %p9859_p4 = pmov %p9855_p3 }
  0xf5   : > { %6589 = dma.done.wait (%p9858_p7), [#allocation16], 16  }
  0xf6   : > { %6591 = vsyncadd (%p9859_p4), [#allocation16], 4294967280  ;;  %v6624_v0 = vmov 0.0   ;;  %v6223_v1 = vld [vmem:[#allocation6] sm:$0xff]   ;;  %v6224_v2 = vld [vmem:[#allocation6 + $0x8] sm:$0xff]   ;;  %s9872_s12 = sld [smem:[#allocation33_spill]] }
  0xf7   : > { %556 = vst [vmem:[#allocation2] sm:$0xff] %v6624_v0  ;;  %557 = vst [vmem:[#allocation2 + $0x8] sm:$0xff] %v6624_v0  ;;  %5907 = vmatprep.subr.bf16.mxu0 %v6223_v1  ;;  %v6225_v3 = vld [vmem:[#allocation6 + $0x10] sm:$0xff]   ;;  %v6226_v4 = vld [vmem:[#allocation6 + $0x18] sm:$0xff]   ;;  %s9874_s17 = sld [smem:[#allocation34_spill]]  ;;  %s9875_s1 = sld [smem:[#allocation35_spill]] }
  0xf8   : > { %558 = vst [vmem:[#allocation2 + $0x10] sm:$0xff] %v6624_v0  ;;  %559 = vst [vmem:[#allocation2 + $0x18] sm:$0xff] %v6624_v0  ;;  %5908 = vmatpush3.bf16.msra.mxu0 %v6223_v1  ;;  %v598_v5 = vld [vmem:[%s6984_s23] sm:$0xff]  ;;  %v599_v6 = vld [vmem:[%s6984_s23 + $0x8] sm:$0xff]  ;;  %s9683_s16 = scalar_lea.vmem [#allocation17], %s5691_s6  ;;  %s5810_s6 = sshll.u32 %s6719_s14, 12 }
  0xf9   : > { %566 = vst [vmem:[#allocation2 + $0x20] sm:$0xff] %v6624_v0  ;;  %567 = vst [vmem:[#allocation2 + $0x40] sm:$0xff] %v6624_v0  ;;  %5909 = vmatprep.subr.bf16.mxu0 %v6224_v2  ;;  %v600_v7 = vld [vmem:[%s6984_s23 + $0x10] sm:$0xff]  ;;  %v601_v8 = vld [vmem:[%s6984_s23 + $0x18] sm:$0xff]  ;;  %s5537_s10 = sshll.u32 %s9683_s16, 4  ;;  %s9876_s11 = sld [smem:[#allocation36_spill]]  ;;  %s9749_s10 = int_to_ptr.vmem [resolvable:$true] %s5537_s10 }
  0xfa   : > { %582 = vst [vmem:[#allocation2 + $0x38] sm:$0xff] %v6624_v0  ;;  %583 = vst [vmem:[#allocation2 + $0x58] sm:$0xff] %v6624_v0  ;;  %v7013_v11 = vld [vmem:[%s9805_s9] ss:$0 sm:$0xff]  ;;  %v7018_v12 = vld [vmem:[%s9805_s9 + $0x1] ss:$0 sm:$0xff] }
  0xfb   : > { %561 = vst [vmem:[#allocation2 + $0x220] sm:$0xff] %v6624_v0  ;;  %562 = vst [vmem:[#allocation2 + $0x228] sm:$0xff] %v6624_v0  ;;  %v7020_v14 = vld [vmem:[#allocation6 + $0x20] sm:$0xff]   ;;  %v773_v17 = vmul.f32 0.0, %v7018_v12  ;;  %v7031_v20 = vmul.f32 %v7018_v12, %v598_v5  ;;  %v7051_v26 = vmul.f32 %v7018_v12, %v599_v6  ;;  %v7054_v27 = vmul.f32 %v7018_v12, %v600_v7  ;;  %v7075_v35 = vld [vmem:[#allocation6 + $0x28] sm:$0xff]   ;;  %s6528_s20 = scalar_lea.vmem %s9749_s10, 4096 }
  0xfc   : > { %563 = vst [vmem:[#allocation2 + $0x230] sm:$0xff] %v6624_v0  ;;  %564 = vst [vmem:[#allocation2 + $0x238] sm:$0xff] %v6624_v0  ;;  %5910 = vmatpush3.bf16.msra.mxu0 %v6224_v2  ;;  %v7028_v19 = vld [vmem:[%s9805_s9 + $0x2] ss:$0 sm:$0xff]  ;;  %v7038_v23 = vld [vmem:[%s9805_s9 + $0x3] ss:$0 sm:$0xff]  ;;  %v7126_v54 = vmul.f32 %v7018_v12, %v601_v8  ;;  %p6529_p12 = scmp.ne.s32.totalorder %s9749_s10, %s6528_s20 }
  0xfd   : > { %568 = vst [vmem:[#allocation2 + $0x60] sm:$0xff] %v6624_v0  ;;  %569 = vst [vmem:[#allocation2 + $0x80] sm:$0xff] %v6624_v0  ;;  %5911 = vmatprep.subr.bf16.mxu0 %v6225_v3  ;;  %v7043_v24 = vld [vmem:[%s9805_s9 + $0x4] ss:$0 sm:$0xff]  ;;  %v7048_v25 = vld [vmem:[%s9805_s9 + $0x5] ss:$0 sm:$0xff] }
  0xfe   : > { %570 = vst [vmem:[#allocation2 + $0xa0] sm:$0xff] %v6624_v0  ;;  %571 = vst [vmem:[#allocation2 + $0xc0] sm:$0xff] %v6624_v0  ;;  %v662_v9 = vld [vmem:[#allocation2 + $0x7] sm:$0xff]  ;;  %v7057_v30 = vmul.f32 %v7043_v24, %v598_v5  ;;  %v7060_v31 = vmul.f32 %v7043_v24, %v599_v6  ;;  %v7065_v32 = vld [vmem:[%s9805_s9 + $0x6] ss:$0 sm:$0xff]  ;;  %v7093_v40 = vmul.f32 %v7043_v24, %v600_v7  ;;  %p9877_p1 = scmp.ne.s32.totalorder %s9847_s19, 0 }
  0xff   : > { %572 = vst [vmem:[#allocation2 + $0xe0] sm:$0xff] %v6624_v0  ;;  %573 = vst [vmem:[#allocation2 + $0x100] sm:$0xff] %v6624_v0  ;;  %v663_v10 = vld [vmem:[#allocation2 + $0xf] sm:$0xff]  ;;  %v701_v15 = vmul.f32 %v7013_v11, %v662_v9  ;;  %v7070_v33 = vld [vmem:[%s9805_s9 + $0x7] ss:$0 sm:$0xff]  ;;  %v7096_v41 = vmul.f32 %v7043_v24, %v601_v8  ;;  %s9747_s15 = scalar_lea.hbm %s9876_s11, %s5810_s6  ;;  %s6625_s13 = smov [#allocation17]  }
 0x100   : > { %574 = vst [vmem:[#allocation2 + $0x120] sm:$0xff] %v6624_v0  ;;  %575 = vst [vmem:[#allocation2 + $0x140] sm:$0xff] %v6624_v0  ;;  %v837_v13 = vld [vmem:[#allocation2 + $0x9] sm:$0xff]  ;;  %5912 = vmatpush3.bf16.msra.mxu0 %v6225_v3  ;;  %v702_v16 = vmul.f32 %v7013_v11, %v663_v10  ;;  %v838_v18 = vld [vmem:[#allocation2 + $0x11] sm:$0xff]  ;;  %v7078_v36 = vmul.f32 %v7070_v33, %v600_v7  ;;  %v7081_v37 = vmul.f32 %v7070_v33, %v601_v8  ;;  %p6530_p13 = pnand %p6529_p12, %p9877_p1  ;;  %s6532_s0 = sshll.u32 %s6625_s13, 4  ;;  %s6533_s0 = int_to_ptr.vmem [resolvable:$false] %s6532_s0 }
 0x101   : > { %576 = vst [vmem:[#allocation2 + $0x160] sm:$0xff] %v6624_v0  ;;  %577 = vst [vmem:[#allocation2 + $0x180] sm:$0xff] %v6624_v0  ;;  %5913 = vmatprep.subr.bf16.mxu0 %v6226_v4  ;;  %v877_v21 = vmul.f32 %v7028_v19, %v837_v13  ;;  %v878_v22 = vmul.f32 %v7028_v19, %v838_v18  ;;  %v805_v28 = vadd.f32 %v773_v17, %v701_v15  ;;  %v7073_v34 = vld [vmem:[%s6984_s23 + $0x20] sm:$0xff]  ;;  %v7086_v38 = vld [vmem:[%s9805_s9 + $0x8] ss:$0 sm:$0xff]  ;;  %s6534_s6 = scalar_lea.vmem %s6533_s0, 8192  ;;  %p6535_p2 = scmp.lt.s32.totalorder %s9749_s10, %s6533_s0 }
 0x102   : > { %578 = vst [vmem:[#allocation2 + $0x1a0] sm:$0xff] %v6624_v0  ;;  %579 = vst [vmem:[#allocation2 + $0x1c0] sm:$0xff] %v6624_v0  ;;  %v806_v29 = vadd.f32 %v773_v17, %v702_v16  ;;  %v7089_v39 = vld [vmem:[%s6984_s23 + $0x28] sm:$0xff]  ;;  %v7099_v42 = vld [vmem:[%s6984_s23 + $0x30] sm:$0xff]  ;;  %v7107_v46 = vmul.f32 %v7070_v33, %v7073_v34  ;;  %v7130_v55 = vmul.f32 %v7043_v24, %v7073_v34  ;;  %p6531_p0 = pneg %p6530_p13  ;;  %p6536_p8 = scmp.lt.s32.totalorder %s6534_s6, %s6528_s20 }
 0x103   : > { %580 = vst [vmem:[#allocation2 + $0x1e0] sm:$0xff] %v6624_v0  ;;  %581 = vst [vmem:[#allocation2 + $0x200] sm:$0xff] %v6624_v0  ;;  %v7102_v43 = vld [vmem:[%s6984_s23 + $0x38] sm:$0xff]  ;;  %v909_v44 = vadd.f32 %v877_v21, %v805_v28  ;;  %v7111_v47 = vmul.f32 %v7070_v33, %v7089_v39  ;;  %v7116_v48 = vld [vmem:[%s6984_s23 + $0x40] sm:$0xff]  ;;  %v7134_v56 = vmul.f32 %v7043_v24, %v7089_v39 }
 0x104   : > { %584 = vst [vmem:[#allocation2 + $0x78] sm:$0xff] %v6624_v0  ;;  %585 = vst [vmem:[#allocation2 + $0x98] sm:$0xff] %v6624_v0  ;;  %5914 = vmatpush3.bf16.msra.mxu0 %v6226_v4  ;;  %v910_v45 = vadd.f32 %v878_v22, %v806_v29  ;;  %v7119_v49 = vld [vmem:[%s6984_s23 + $0x48] sm:$0xff]  ;;  %v7122_v50 = vld [vmem:[%s6984_s23 + $0x50] sm:$0xff]  ;;  %v7138_v57 = vmul.f32 %v7070_v33, %v7099_v42  ;;  %p6537_p6 = por %p6536_p8, %p6535_p2 }
 0x105   : > { %586 = vst [vmem:[#allocation2 + $0xb8] sm:$0xff] %v6624_v0  ;;  %587 = vst [vmem:[#allocation2 + $0xd8] sm:$0xff] %v6624_v0  ;;  %5915 = vmatprep.subr.bf16.mxu0 %v7020_v14  ;;  %v7151_v1 = vld [vmem:[#allocation6 + $0x30] sm:$0xff]   ;;  %v7171_v16 = vld [vmem:[%s6984_s23 + $0x60] sm:$0xff] }
 0x106   : > { %588 = vst [vmem:[#allocation2 + $0xf8] sm:$0xff] %v6624_v0  ;;  %589 = vst [vmem:[#allocation2 + $0x118] sm:$0xff] %v6624_v0  ;;  %v7174_v17 = vld [vmem:[%s6984_s23 + $0x68] sm:$0xff]  ;;  %v7177_v18 = vld [vmem:[%s6984_s23 + $0x70] sm:$0xff]  ;;  %p6538_p10 = pnand %p6537_p6, %p6531_p0 }
 0x107   : > { %590 = vst [vmem:[#allocation2 + $0x138] sm:$0xff] %v6624_v0  ;;  %591 = vst [vmem:[#allocation2 + $0x158] sm:$0xff] %v6624_v0  ;;  %v7187_v29 = vld [vmem:[%s6984_s23 + $0x78] sm:$0xff] }
 0x108   : > { %592 = vst [vmem:[#allocation2 + $0x178] sm:$0xff] %v6624_v0  ;;  %593 = vst [vmem:[#allocation2 + $0x198] sm:$0xff] %v6624_v0  ;;  %5916 = vmatpush3.bf16.msra.mxu0 %v7020_v14 }
 0x109   : > { %594 = vst [vmem:[#allocation2 + $0x1b8] sm:$0xff] %v6624_v0  ;;  %595 = vst [vmem:[#allocation2 + $0x1d8] sm:$0xff] %v6624_v0  ;;  %5917 = vmatprep.subr.bf16.mxu0 %v7075_v35 }
 0x10a   : > { %596 = vst [vmem:[#allocation2 + $0x1f8] sm:$0xff] %v6624_v0  ;;  %597 = vst [vmem:[#allocation2 + $0x218] sm:$0xff] %v6624_v0 }
 0x10b   : > { %630 = vst [vmem:[#allocation2 + $0x28] sm:$0xff] %v598_v5  ;;  %631 = vst [vmem:[#allocation2 + $0x30] sm:$0xff] %v599_v6 }
 0x10c   : > { %632 = vst [vmem:[#allocation2 + $0x48] sm:$0xff] %v600_v7  ;;  %633 = vst [vmem:[#allocation2 + $0x50] sm:$0xff] %v601_v8  ;;  %v7160_v8 = vld [vmem:[%s6984_s23 + $0x58] sm:$0xff]  ;;  %5918 = vmatpush3.bf16.msra.mxu0 %v7075_v35 }
 0x10d   : > { %634 = vst [vmem:[#allocation2 + $0x68] sm:$0xff] %v7073_v34  ;;  %635 = vst [vmem:[#allocation2 + $0x70] sm:$0xff] %v7089_v39  ;;  %5919 = vmatprep.subr.bf16.mxu0 %v7151_v1 }
 0x10e   : > { %636 = vst [vmem:[#allocation2 + $0x88] sm:$0xff] %v7099_v42  ;;  %637 = vst [vmem:[#allocation2 + $0x90] sm:$0xff] %v7102_v43 }
 0x10f   : > { %638 = vst [vmem:[#allocation2 + $0xa8] sm:$0xff] %v7116_v48  ;;  %639 = vst [vmem:[#allocation2 + $0xb0] sm:$0xff] %v7119_v49 }
 0x110   : > { %640 = vst [vmem:[#allocation2 + $0xc8] sm:$0xff] %v7122_v50  ;;  %641 = vst [vmem:[#allocation2 + $0xd0] sm:$0xff] %v7160_v8  ;;  %5920 = vmatpush3.bf16.msra.mxu0 %v7151_v1 }
 0x111   : > { %9860 = vst [vmem:[#allocation24_spill] sm:$0xff] %v7177_v18  ;;  %642 = vst [vmem:[#allocation2 + $0xe8] sm:$0xff] %v7171_v16 }
 0x112   : > { %v941_v51 = vld [vmem:[#allocation2 + $0x27] sm:$0xff]  ;;  %v942_v52 = vld [vmem:[#allocation2 + $0x2f] sm:$0xff]  ;;  %643 = vst [vmem:[#allocation2 + $0xf0] sm:$0xff] %v7174_v17  ;;  %9861 = vst [vmem:[#allocation25_spill] sm:$0xff] %v7187_v29 }
 0x113   : > { %v1149_v53 = vld [vmem:[#allocation2 + $0x29] sm:$0xff]  ;;  %v981_v58 = vmul.f32 %v7038_v23, %v941_v51  ;;  %v982_v59 = vmul.f32 %v7038_v23, %v942_v52  ;;  %v1150_v60 = vld [vmem:[#allocation2 + $0x31] sm:$0xff]  ;;  %v703_v0 = vmul.f32 %v7013_v11, %v941_v51  ;;  %v704_v7 = vmul.f32 %v7013_v11, %v942_v52  ;;  %644 = vst [vmem:[#allocation2 + $0x108] sm:$0xff] %v7177_v18 }
 0x114   : > { %v1189_v61 = vmul.f32 %v7048_v25, %v1149_v53  ;;  %v7146_v62 = vld [vmem:[#allocation2 + $0x47] sm:$0xff]  ;;  %v7148_v63 = vld [vmem:[#allocation2 + $0x4f] sm:$0xff]  ;;  %v1190_v2 = vmul.f32 %v7048_v25, %v1150_v60  ;;  %v879_v22 = vmul.f32 %v7028_v19, %v1149_v53  ;;  %v880_v28 = vmul.f32 %v7028_v19, %v1150_v60  ;;  %645 = vst [vmem:[#allocation2 + $0x110] sm:$0xff] %v7187_v29 }
 0x115   : > { %v1294_v3 = vmul.f32 %v7065_v32, %v7146_v62  ;;  %v1295_v4 = vmul.f32 %v7065_v32, %v7148_v63  ;;  %v1462_v5 = vld [vmem:[#allocation2 + $0x49] sm:$0xff]  ;;  %v1463_v6 = vld [vmem:[#allocation2 + $0x51] sm:$0xff]  ;;  %v1013_v9 = vadd.f32 %v981_v58, %v909_v44  ;;  %v1014_v10 = vadd.f32 %v982_v59, %v910_v45  ;;  %v7191_v44 = vld [vmem:[%s6984_s23 + $0x80] sm:$0xff] }
 0x116   : > { %v7164_v13 = vmul.f32 %v7086_v38, %v1462_v5  ;;  %v7167_v15 = vmul.f32 %v7086_v38, %v1463_v6  ;;  %v807_v14 = vadd.f32 %v7031_v20, %v703_v0  ;;  %v808_v21 = vadd.f32 %v7051_v26, %v704_v7  ;;  %9862 = vst [vmem:[#allocation26_spill] sm:$0xff] %v7191_v44  ;;  %v7194_v45 = vld [vmem:[%s6984_s23 + $0x88] sm:$0xff]  ;;  %v7206_v53 = vld [vmem:[%s6984_s23 + $0x90] sm:$0xff]  ;;  %v7209_v58 = vld [vmem:[%s6984_s23 + $0x98] sm:$0xff] }
 0x117   : > { %9863 = vst [vmem:[#allocation27_spill] sm:$0xff] %v7194_v45  ;;  %v1117_v20 = vadd.f32 %v7057_v30, %v1013_v9  ;;  %v1118_v26 = vadd.f32 %v7060_v31, %v1014_v10  ;;  %v983_v51 = vmul.f32 %v7038_v23, %v7146_v62  ;;  %v984_v52 = vmul.f32 %v7038_v23, %v7148_v63  ;;  %v7213_v0 = vld [vmem:[#allocation2 + $0x67] sm:$0xff]  ;;  %v7215_v7 = vld [vmem:[#allocation2 + $0x6f] sm:$0xff] }
 0x118   : > { %646 = vst [vmem:[#allocation2 + $0x128] sm:$0xff] %v7191_v44  ;;  %647 = vst [vmem:[#allocation2 + $0x130] sm:$0xff] %v7194_v45  ;;  %v911_v59 = vadd.f32 %v879_v22, %v807_v14  ;;  %v912_v30 = vadd.f32 %v880_v28, %v808_v21  ;;  %v1191_v31 = vmul.f32 %v7048_v25, %v1462_v5  ;;  %v7224_v22 = vld [vmem:[#allocation2 + $0x69] sm:$0xff]  ;;  %v7226_v28 = vld [vmem:[#allocation2 + $0x71] sm:$0xff] }
 0x119   : > { %9864 = vst [vmem:[#allocation28_spill] sm:$0xff] %v7206_v53  ;;  %9865 = vst [vmem:[#allocation29_spill] sm:$0xff] %v7209_v58  ;;  %v1192_v60 = vmul.f32 %v7048_v25, %v1463_v6  ;;  %v1221_v9 = vadd.f32 %v1189_v61, %v1117_v20  ;;  %v1222_v10 = vadd.f32 %v1190_v2, %v1118_v26  ;;  %v6230_v45 = vld [vmem:[#allocation6 + $0x38] sm:$0xff]  }
 0x11a   : > { %648 = vst [vmem:[#allocation2 + $0x148] sm:$0xff] %v7206_v53  ;;  %649 = vst [vmem:[#allocation2 + $0x150] sm:$0xff] %v7209_v58  ;;  %v1296_v14 = vmul.f32 %v7065_v32, %v7213_v0  ;;  %v1297_v21 = vmul.f32 %v7065_v32, %v7215_v7  ;;  %v1015_v53 = vadd.f32 %v983_v51, %v911_v59  ;;  %5921 = vmatprep.subr.bf16.mxu0 %v6230_v45 }
 0x11b   : > { %v1016_v44 = vadd.f32 %v984_v52, %v912_v30  ;;  %v1504_v35 = vmul.f32 %v7086_v38, %v7224_v22  ;;  %v1505_v61 = vmul.f32 %v7086_v38, %v7226_v28  ;;  %v1326_v2 = vadd.f32 %v1294_v3, %v1221_v9  ;;  %5922 = vmatpush3.bf16.msra.mxu0 %v6230_v45 }
 0x11c   : > { %v1327_v20 = vadd.f32 %v1295_v4, %v1222_v10  ;;  %v705_v26 = vmul.f32 %v7013_v11, %v7146_v62  ;;  %v706_v58 = vmul.f32 %v7013_v11, %v7148_v63  ;;  %v1119_v29 = vadd.f32 %v7093_v40, %v1015_v53 }
 0x11d   : > { %v1120_v18 = vadd.f32 %v7096_v41, %v1016_v44  ;;  %v881_v51 = vmul.f32 %v7028_v19, %v1462_v5  ;;  %v882_v52 = vmul.f32 %v7028_v19, %v1463_v6  ;;  %v1430_v59 = vadd.f32 %v7078_v36, %v1326_v2  ;;  %v7276_v2 = vld [vmem:[%s6984_s23 + $0xa8] sm:$0xff] }
 0x11e   : > { %v1431_v3 = vadd.f32 %v7081_v37, %v1327_v20  ;;  %v809_v4 = vadd.f32 %v7054_v27, %v705_v26  ;;  %v810_v62 = vadd.f32 %v7126_v54, %v706_v58  ;;  %v1223_v63 = vadd.f32 %v1191_v31, %v1119_v29  ;;  %v7258_v58 = vld [vmem:[#allocation2 + $0x8f] sm:$0xff]  ;;  %651 = vst [vmem:[#allocation2 + $0x170] sm:$0xff] %v7276_v2 }
 0x11f   : > { %v1224_v30 = vadd.f32 %v1192_v60, %v1120_v18  ;;  %v985_v40 = vmul.f32 %v7038_v23, %v7213_v0  ;;  %v986_v41 = vmul.f32 %v7038_v23, %v7215_v7  ;;  %v1534_v5 = vadd.f32 %v7164_v13, %v1430_v59  ;;  %v7256_v18 = vld [vmem:[#allocation2 + $0x87] sm:$0xff] }
 0x120   : > { %v1535_v1 = vadd.f32 %v7167_v15, %v1431_v3  ;;  %v913_v36 = vadd.f32 %v881_v51, %v809_v4  ;;  %v914_v6 = vadd.f32 %v882_v52, %v810_v62  ;;  %v1328_v37 = vadd.f32 %v1296_v14, %v1223_v63  ;;  %v7262_v31 = vld [vmem:[#allocation2 + $0x89] sm:$0xff]  ;;  %v7270_v14 = vld [vmem:[#allocation2 + $0x91] sm:$0xff]  ;;  %v7293_v59 = vld [vmem:[%s6984_s23 + $0xc0] sm:$0xff] }
 0x121   : > { %v1329_v44 = vadd.f32 %v1297_v21, %v1224_v30  ;;  %v1193_v27 = vmul.f32 %v7048_v25, %v7224_v22  ;;  %v1194_v54 = vmul.f32 %v7048_v25, %v7226_v28  ;;  %v1298_v15 = vmul.f32 %v7065_v32, %v7256_v18  ;;  %v7273_v21 = vld [vmem:[%s6984_s23 + $0xa0] sm:$0xff]  ;;  %v7287_v51 = vld [vmem:[%s6984_s23 + $0xb0] sm:$0xff]  ;;  %v7290_v52 = vld [vmem:[%s6984_s23 + $0xb8] sm:$0xff]  ;;  %654 = vst [vmem:[#allocation2 + $0x1a8] sm:$0xff] %v7293_v59 }
 0x122   : > { %v1566_v29 = vpack.c.bf16 %v1535_v1, %v1534_v5  ;;  %v1017_v53 = vadd.f32 %v985_v40, %v913_v36  ;;  %v1018_v13 = vadd.f32 %v986_v41, %v914_v6  ;;  %v1432_v60 = vadd.f32 %v7107_v46, %v1328_v37  ;;  %650 = vst [vmem:[#allocation2 + $0x168] sm:$0xff] %v7273_v21  ;;  %v7302_v62 = vld [vmem:[%s6984_s23 + $0xc8] sm:$0xff]  ;;  %v7306_v63 = vld [vmem:[%s6984_s23 + $0xd0] sm:$0xff]  ;;  %v7319_v40 = vld [vmem:[%s6984_s23 + $0xe0] sm:$0xff] }
 0x123   : > { %v1433_v9 = vadd.f32 %v7111_v47, %v1329_v44  ;;  %v1299_v45 = vmul.f32 %v7065_v32, %v7258_v58  ;;  %v1403_v10 = vmul.f32 %v7070_v33, %v7102_v43  ;;  %v1506_v47 = vmul.f32 %v7086_v38, %v7262_v31  ;;  %652 = vst [vmem:[#allocation2 + $0x188] sm:$0xff] %v7287_v51  ;;  %v7322_v41 = vld [vmem:[%s6984_s23 + $0xe8] sm:$0xff]  ;;  %v628_v5 = vld [vmem:[%s6984_s23 + $0xf0] sm:$0xff]  ;;  %v629_v6 = vld [vmem:[%s6984_s23 + $0xf8] sm:$0xff] }
 0x124   : > { %5923 = vmatprep.mubr.bf16.mxu0 %v1566_v29  ;;  %v1121_v20 = vadd.f32 %v7130_v55, %v1017_v53  ;;  %v1122_v46 = vadd.f32 %v7134_v56, %v1018_v13  ;;  %v1507_v26 = vmul.f32 %v7086_v38, %v7270_v14  ;;  %v1536_v55 = vadd.f32 %v1504_v35, %v1432_v60  ;;  %v7309_v35 = vld [vmem:[%s6984_s23 + $0xd8] sm:$0xff]  ;;  %v7334_v29 = vld [vmem:[#allocation2 + $0xa7] sm:$0xff]  ;;  %v7336_v53 = vld [vmem:[#allocation2 + $0xaf] sm:$0xff]  ;;  %s9873_s23 = sld [smem:[#allocation32_spill]] }
 0x125   : > { %v1537_v56 = vadd.f32 %v1505_v61, %v1433_v9  ;;  %v707_v3 = vmul.f32 %v7013_v11, %v7213_v0  ;;  %v708_v4 = vmul.f32 %v7013_v11, %v7215_v7  ;;  %653 = vst [vmem:[#allocation2 + $0x190] sm:$0xff] %v7290_v52  ;;  %v779_v30 = vmul.f32 %v7018_v12, %v7073_v34 }
 0x126   : > { %v1225_v61 = vadd.f32 %v1193_v27, %v1121_v20  ;;  %v1226_v0 = vadd.f32 %v1194_v54, %v1122_v46  ;;  %v780_v7 = vmul.f32 %v7018_v12, %v7089_v39  ;;  %655 = vst [vmem:[#allocation2 + $0x1b0] sm:$0xff] %v7302_v62  ;;  %656 = vst [vmem:[#allocation2 + $0x1c8] sm:$0xff] %v7306_v63 }
 0x127   : > { %657 = vst [vmem:[#allocation2 + $0x1d0] sm:$0xff] %v7309_v35  ;;  %v1567_v1 = vpack.c.bf16 %v1537_v56, %v1536_v55  ;;  %v883_v36 = vmul.f32 %v7028_v19, %v7224_v22  ;;  %v884_v34 = vmul.f32 %v7028_v19, %v7226_v28  ;;  %v987_v39 = vmul.f32 %v7038_v23, %v7256_v18 }
 0x128   : > { %658 = vst [vmem:[#allocation2 + $0x1e8] sm:$0xff] %v7319_v40  ;;  %659 = vst [vmem:[#allocation2 + $0x1f0] sm:$0xff] %v7322_v41  ;;  %v1330_v37 = vadd.f32 %v1298_v15, %v1225_v61  ;;  %v1331_v44 = vadd.f32 %v1299_v45, %v1226_v0  ;;  %v811_v27 = vadd.f32 %v779_v30, %v707_v3 }
 0x129   : > { %660 = vst [vmem:[#allocation2 + $0x208] sm:$0xff] %v628_v5  ;;  %v812_v54 = vadd.f32 %v780_v7, %v708_v4  ;;  %661 = vst [vmem:[#allocation2 + $0x210] sm:$0xff] %v629_v6  ;;  %5924 = vmatmul.mubr.bf16.vlgmr.msra.gmra.mrb[0].mxu0 %v1567_v1  ;;  %v988_v22 = vmul.f32 %v7038_v23, %v7258_v58  ;;  %v1091_v28 = vmul.f32 %v7043_v24, %v7099_v42 }
 0x12a   : > { %v1092_v13 = vmul.f32 %v7043_v24, %v7102_v43  ;;  %v1434_v15 = vadd.f32 %v7138_v57, %v1330_v37  ;;  %v1435_v60 = vadd.f32 %v1403_v10, %v1331_v44  ;;  %v915_v9 = vadd.f32 %v883_v36, %v811_v27  ;;  %v1468_v57 = vld [vmem:[#allocation2 + $0xa9] sm:$0xff] }
 0x12b   : > { %v916_v45 = vadd.f32 %v884_v34, %v812_v54  ;;  %v1195_v20 = vmul.f32 %v7048_v25, %v7262_v31  ;;  %v1196_v46 = vmul.f32 %v7048_v25, %v7270_v14  ;;  %v1300_v55 = vmul.f32 %v7065_v32, %v7334_v29 }
 0x12c   : > { %v1301_v56 = vmul.f32 %v7065_v32, %v7336_v53  ;;  %v1538_v3 = vadd.f32 %v1506_v47, %v1434_v15  ;;  %v1539_v4 = vadd.f32 %v1507_v26, %v1435_v60  ;;  %v1019_v61 = vadd.f32 %v987_v39, %v915_v9  ;;  %v1469_v26 = vld [vmem:[#allocation2 + $0xb1] sm:$0xff]  ;;  %v1262_v60 = vld [vmem:[#allocation2 + $0xc7] sm:$0xff] }
 0x12d   : > { %v1020_v0 = vadd.f32 %v988_v22, %v916_v45  ;;  %v1404_v10 = vmul.f32 %v7070_v33, %v7116_v48  ;;  %v1405_v30 = vmul.f32 %v7070_v33, %v7119_v49  ;;  %v1508_v7 = vmul.f32 %v7086_v38, %v1468_v57  ;;  %v1263_v9 = vld [vmem:[#allocation2 + $0xcf] sm:$0xff] }
 0x12e   : > { %v709_v5 = vmul.f32 %v7013_v11, %v7256_v18  ;;  %v1568_v1 = vpack.c.bf16 %v1539_v4, %v1538_v3  ;;  %v1123_v36 = vadd.f32 %v1091_v28, %v1019_v61  ;;  %v710_v47 = vmul.f32 %v7013_v11, %v7258_v58  ;;  %v1470_v45 = vld [vmem:[#allocation2 + $0xc9] sm:$0xff] }
 0x12f   : > { %v1124_v34 = vadd.f32 %v1092_v13, %v1020_v0  ;;  %v781_v39 = vmul.f32 %v7018_v12, %v7099_v42  ;;  %v782_v6 = vmul.f32 %v7018_v12, %v7102_v43  ;;  %v885_v37 = vmul.f32 %v7028_v19, %v7262_v31 }
 0x130   : > { %v886_v44 = vmul.f32 %v7028_v19, %v7270_v14  ;;  %5927 = vmatprep.mubr.bf16.mxu0 %v1568_v1  ;;  %v1227_v18 = vadd.f32 %v1195_v20, %v1123_v36  ;;  %v1509_v54 = vmul.f32 %v7086_v38, %v1469_v26  ;;  %v989_v58 = vmul.f32 %v7038_v23, %v7334_v29 }
 0x131   : > { %v1228_v27 = vadd.f32 %v1196_v46, %v1124_v34  ;;  %v813_v22 = vadd.f32 %v781_v39, %v709_v5  ;;  %v814_v28 = vadd.f32 %v782_v6, %v710_v47  ;;  %v990_v42 = vmul.f32 %v7038_v23, %v7336_v53 }
 0x132   : > { %v1093_v43 = vmul.f32 %v7043_v24, %v7116_v48  ;;  %v1332_v31 = vadd.f32 %v1300_v55, %v1227_v18  ;;  %v1094_v14 = vmul.f32 %v7043_v24, %v7119_v49  ;;  %v1197_v15 = vmul.f32 %v7048_v25, %v1468_v57 }
 0x133   : > { %v1333_v13 = vadd.f32 %v1301_v56, %v1228_v27  ;;  %v917_v20 = vadd.f32 %v885_v37, %v813_v22  ;;  %v918_v46 = vadd.f32 %v886_v44, %v814_v28  ;;  %v1198_v3 = vmul.f32 %v7048_v25, %v1469_v26  ;;  %v1471_v44 = vld [vmem:[#allocation2 + $0xd1] sm:$0xff] }
 0x134   : > { %v1302_v4 = vmul.f32 %v7065_v32, %v1262_v60  ;;  %v1436_v61 = vadd.f32 %v1404_v10, %v1332_v31  ;;  %v1303_v5 = vmul.f32 %v7065_v32, %v1263_v9  ;;  %v1406_v55 = vmul.f32 %v7070_v33, %v7122_v50  ;;  %v7401_v31 = vld [vmem:[#allocation2 + $0xef] sm:$0xff] }
 0x135   : > { %v1437_v0 = vadd.f32 %v1405_v30, %v1333_v13  ;;  %v1021_v56 = vadd.f32 %v989_v58, %v917_v20  ;;  %v1022_v1 = vadd.f32 %v990_v42, %v918_v46  ;;  %v1407_v36 = vmul.f32 %v7070_v33, %v7160_v8  ;;  %v1472_v46 = vld [vmem:[#allocation2 + $0xe9] sm:$0xff] }
 0x136   : > { %v1510_v34 = vmul.f32 %v7086_v38, %v1470_v45  ;;  %v1540_v47 = vadd.f32 %v1508_v7, %v1436_v61  ;;  %v711_v6 = vmul.f32 %v7013_v11, %v7334_v29  ;;  %v712_v10 = vmul.f32 %v7013_v11, %v7336_v53 }
 0x137   : > { %v1541_v39 = vadd.f32 %v1509_v54, %v1437_v0  ;;  %v1125_v30 = vadd.f32 %v1093_v43, %v1021_v56  ;;  %v1126_v37 = vadd.f32 %v1094_v14, %v1022_v1  ;;  %v783_v18 = vmul.f32 %v7018_v12, %v7116_v48  ;;  %v7399_v43 = vld [vmem:[#allocation2 + $0xe7] sm:$0xff] }
 0x138   : > { %v784_v27 = vmul.f32 %v7018_v12, %v7119_v49  ;;  %v887_v22 = vmul.f32 %v7028_v19, %v1468_v57  ;;  %v888_v7 = vmul.f32 %v7028_v19, %v1469_v26  ;;  %v991_v54 = vmul.f32 %v7038_v23, %v1262_v60 }
 0x139   : > { %v1569_v58 = vpack.c.bf16 %v1541_v39, %v1540_v47  ;;  %v1229_v29 = vadd.f32 %v1197_v15, %v1125_v30  ;;  %v1230_v28 = vadd.f32 %v1198_v3, %v1126_v37  ;;  %v815_v42 = vadd.f32 %v783_v18, %v711_v6 }
 0x13a   : > { %v816_v53 = vadd.f32 %v784_v27, %v712_v10  ;;  %v1511_v48 = vmul.f32 %v7086_v38, %v1471_v44  ;;  %v992_v49 = vmul.f32 %v7038_v23, %v1263_v9  ;;  %v1095_v57 = vmul.f32 %v7043_v24, %v7122_v50 }
 0x13b   : > { %5928 = vmatmul.mubr.bf16.gmra.mrb[4].mxu0 %v1569_v58  ;;  %v1096_v26 = vmul.f32 %v7043_v24, %v7160_v8  ;;  %v1334_v13 = vadd.f32 %v1302_v4, %v1229_v29  ;;  %v1335_v14 = vadd.f32 %v1303_v5, %v1230_v28  ;;  %v919_v15 = vadd.f32 %v887_v22, %v815_v42 }
 0x13c   : > { %v920_v20 = vadd.f32 %v888_v7, %v816_v53  ;;  %v1199_v3 = vmul.f32 %v7048_v25, %v1470_v45  ;;  %v1200_v61 = vmul.f32 %v7048_v25, %v1471_v44  ;;  %v1304_v0 = vmul.f32 %v7065_v32, %v7399_v43 }
 0x13d   : > { %v1305_v56 = vmul.f32 %v7065_v32, %v7401_v31  ;;  %v1438_v1 = vadd.f32 %v1406_v55, %v1334_v13  ;;  %v1439_v47 = vadd.f32 %v1407_v36, %v1335_v14  ;;  %v1023_v39 = vadd.f32 %v991_v54, %v919_v15  ;;  %v1266_v14 = vld [vmem:[#allocation2 + $0x107] sm:$0xff] }
 0x13e   : > { %v1024_v6 = vadd.f32 %v992_v49, %v920_v20  ;;  %v1408_v4 = vmul.f32 %v7070_v33, %v7171_v16  ;;  %v1409_v5 = vmul.f32 %v7070_v33, %v7174_v17  ;;  %v1512_v10 = vmul.f32 %v7086_v38, %v1472_v46 }
 0x13f   : > { %v713_v30 = vmul.f32 %v7013_v11, %v1262_v60  ;;  %v1542_v37 = vadd.f32 %v1510_v34, %v1438_v1  ;;  %v1543_v18 = vadd.f32 %v1511_v48, %v1439_v47  ;;  %v1127_v27 = vadd.f32 %v1095_v57, %v1023_v39  ;;  %v1473_v60 = vld [vmem:[#allocation2 + $0xf1] sm:$0xff]  ;;  %v9866_v39 = vld [vmem:[#allocation24_spill] sm:$0xff] }
 0x140   : > { %v1128_v58 = vadd.f32 %v1096_v26, %v1024_v6  ;;  %v714_v22 = vmul.f32 %v7013_v11, %v1263_v9  ;;  %v785_v55 = vmul.f32 %v7018_v12, %v7122_v50  ;;  %v786_v36 = vmul.f32 %v7018_v12, %v7160_v8 }
 0x141   : > { %v889_v7 = vmul.f32 %v7028_v19, %v1470_v45  ;;  %v1570_v54 = vpack.c.bf16 %v1543_v18, %v1542_v37  ;;  %v1231_v29 = vadd.f32 %v1199_v3, %v1127_v27  ;;  %v890_v42 = vmul.f32 %v7028_v19, %v1471_v44  ;;  %v9867_v27 = vld [vmem:[#allocation25_spill] sm:$0xff] }
 0x142   : > { %v1232_v28 = vadd.f32 %v1200_v61, %v1128_v58  ;;  %v817_v34 = vadd.f32 %v785_v55, %v713_v30  ;;  %v818_v53 = vadd.f32 %v786_v36, %v714_v22  ;;  %v993_v48 = vmul.f32 %v7038_v23, %v7399_v43  ;;  %v1267_v61 = vld [vmem:[#allocation2 + $0x10f] sm:$0xff] }
 0x143   : > { %v994_v9 = vmul.f32 %v7038_v23, %v7401_v31  ;;  %5931 = vmatprep.mubr.bf16.mxu0 %v1570_v54  ;;  %v1336_v50 = vadd.f32 %v1304_v0, %v1231_v29  ;;  %v1513_v8 = vmul.f32 %v7086_v38, %v1473_v60  ;;  %v1097_v45 = vmul.f32 %v7043_v24, %v7171_v16  ;;  %v1474_v30 = vld [vmem:[#allocation2 + $0x109] sm:$0xff]  ;;  %v1475_v54 = vld [vmem:[#allocation2 + $0x111] sm:$0xff] }
 0x144   : > { %v1337_v49 = vadd.f32 %v1305_v56, %v1232_v28  ;;  %v921_v57 = vadd.f32 %v889_v7, %v817_v34  ;;  %v922_v26 = vadd.f32 %v890_v42, %v818_v53  ;;  %v1098_v44 = vmul.f32 %v7043_v24, %v7174_v17 }
 0x145   : > { %v1201_v13 = vmul.f32 %v7048_v25, %v1472_v46  ;;  %v1440_v15 = vadd.f32 %v1408_v4, %v1336_v50  ;;  %v1202_v3 = vmul.f32 %v7048_v25, %v1473_v60  ;;  %v1306_v0 = vmul.f32 %v7065_v32, %v1266_v14 }
 0x146   : > { %v1441_v20 = vadd.f32 %v1409_v5, %v1337_v49  ;;  %v1025_v56 = vadd.f32 %v993_v48, %v921_v57  ;;  %v1026_v1 = vadd.f32 %v994_v9, %v922_v26  ;;  %v1307_v47 = vmul.f32 %v7065_v32, %v1267_v61  ;;  %v1268_v26 = vld [vmem:[#allocation2 + $0x127] sm:$0xff] }
 0x147   : > { %v1410_v6 = vmul.f32 %v7070_v33, %v9866_v39  ;;  %v1544_v37 = vadd.f32 %v1512_v10, %v1440_v15  ;;  %v1411_v58 = vmul.f32 %v7070_v33, %v9867_v27  ;;  %v1514_v4 = vmul.f32 %v7086_v38, %v1474_v30 }
 0x148   : > { %v1545_v18 = vadd.f32 %v1513_v8, %v1441_v20  ;;  %v1129_v5 = vadd.f32 %v1097_v45, %v1025_v56  ;;  %v1130_v22 = vadd.f32 %v1098_v44, %v1026_v1  ;;  %v715_v55 = vmul.f32 %v7013_v11, %v7399_v43  ;;  %v1269_v44 = vld [vmem:[#allocation2 + $0x12f] sm:$0xff] }
 0x149   : > { %v716_v36 = vmul.f32 %v7013_v11, %v7401_v31  ;;  %v787_v29 = vmul.f32 %v7018_v12, %v7171_v16  ;;  %v788_v10 = vmul.f32 %v7018_v12, %v7174_v17  ;;  %v891_v28 = vmul.f32 %v7028_v19, %v1472_v46  ;;  %v9868_v1 = vld [vmem:[#allocation26_spill] sm:$0xff] }
 0x14a   : > { %v1571_v7 = vpack.c.bf16 %v1545_v18, %v1544_v37  ;;  %v1233_v42 = vadd.f32 %v1201_v13, %v1129_v5  ;;  %v1234_v34 = vadd.f32 %v1202_v3, %v1130_v22  ;;  %v1515_v53 = vmul.f32 %v7086_v38, %v1475_v54  ;;  %v9869_v37 = vld [vmem:[#allocation27_spill] sm:$0xff]  ;;  %v1476_v5 = vld [vmem:[#allocation2 + $0x129] sm:$0xff] }
 0x14b   : > { %v892_v48 = vmul.f32 %v7028_v19, %v1473_v60  ;;  %v819_v43 = vadd.f32 %v787_v29, %v715_v55  ;;  %v820_v9 = vadd.f32 %v788_v10, %v716_v36  ;;  %v995_v31 = vmul.f32 %v7038_v23, %v1266_v14 }
 0x14c   : > { %5932 = vmatmul.mubr.bf16.gmra.mrb[8].mxu0 %v1571_v7  ;;  %v996_v50 = vmul.f32 %v7038_v23, %v1267_v61  ;;  %v1338_v49 = vadd.f32 %v1306_v0, %v1233_v42  ;;  %v1339_v16 = vadd.f32 %v1307_v47, %v1234_v34  ;;  %v1099_v17 = vmul.f32 %v7043_v24, %v9866_v39 }
 0x14d   : > { %v1100_v46 = vmul.f32 %v7043_v24, %v9867_v27  ;;  %v923_v8 = vadd.f32 %v891_v28, %v819_v43  ;;  %v924_v45 = vadd.f32 %v892_v48, %v820_v9  ;;  %v1203_v57 = vmul.f32 %v7048_v25, %v1474_v30  ;;  %v1477_v43 = vld [vmem:[#allocation2 + $0x131] sm:$0xff] }
 0x14e   : > { %v1204_v60 = vmul.f32 %v7048_v25, %v1475_v54  ;;  %v1442_v13 = vadd.f32 %v1410_v6, %v1338_v49  ;;  %v1443_v15 = vadd.f32 %v1411_v58, %v1339_v16  ;;  %v1308_v20 = vmul.f32 %v7065_v32, %v1268_v26  ;;  %v1270_v16 = vld [vmem:[#allocation2 + $0x147] sm:$0xff] }
 0x14f   : > { %v1309_v3 = vmul.f32 %v7065_v32, %v1269_v44  ;;  %v1027_v0 = vadd.f32 %v995_v31, %v923_v8  ;;  %v1028_v56 = vadd.f32 %v996_v50, %v924_v45  ;;  %v1412_v47 = vmul.f32 %v7070_v33, %v9868_v1  ;;  %v1271_v45 = vld [vmem:[#allocation2 + $0x14f] sm:$0xff] }
 0x150   : > { %v1413_v18 = vmul.f32 %v7070_v33, %v9869_v37  ;;  %v1546_v22 = vadd.f32 %v1514_v4, %v1442_v13  ;;  %v1547_v55 = vadd.f32 %v1515_v53, %v1443_v15  ;;  %v1516_v36 = vmul.f32 %v7086_v38, %v1476_v5 }
 0x151   : > { %v717_v6 = vmul.f32 %v7013_v11, %v1266_v14  ;;  %v1131_v58 = vadd.f32 %v1099_v17, %v1027_v0  ;;  %v1132_v7 = vadd.f32 %v1100_v46, %v1028_v56  ;;  %v718_v29 = vmul.f32 %v7013_v11, %v1267_v61  ;;  %v9870_v56 = vld [vmem:[#allocation28_spill] sm:$0xff] }
 0x152   : > { %v789_v10 = vmul.f32 %v7018_v12, %v9866_v39  ;;  %v1572_v28 = vpack.c.bf16 %v1547_v55, %v1546_v22  ;;  %v790_v42 = vmul.f32 %v7018_v12, %v9867_v27  ;;  %v893_v34 = vmul.f32 %v7028_v19, %v1474_v30  ;;  %v9871_v55 = vld [vmem:[#allocation29_spill] sm:$0xff] }
 0x153   : > { %v894_v4 = vmul.f32 %v7028_v19, %v1475_v54  ;;  %v1235_v53 = vadd.f32 %v1203_v57, %v1131_v58  ;;  %v1236_v48 = vadd.f32 %v1204_v60, %v1132_v7  ;;  %v997_v14 = vmul.f32 %v7038_v23, %v1268_v26 }
 0x154   : > { %v821_v9 = vadd.f32 %v789_v10, %v717_v6  ;;  %5935 = vmatprep.mubr.bf16.mxu0 %v1572_v28  ;;  %v1517_v61 = vmul.f32 %v7086_v38, %v1477_v43  ;;  %v822_v31 = vadd.f32 %v790_v42, %v718_v29  ;;  %v998_v39 = vmul.f32 %v7038_v23, %v1269_v44 }
 0x155   : > { %v1101_v50 = vmul.f32 %v7043_v24, %v9868_v1  ;;  %v1340_v27 = vadd.f32 %v1308_v20, %v1235_v53  ;;  %v1341_v49 = vadd.f32 %v1309_v3, %v1236_v48  ;;  %v1102_v54 = vmul.f32 %v7043_v24, %v9869_v37  ;;  %v1478_v20 = vld [vmem:[#allocation2 + $0x149] sm:$0xff] }
 0x156   : > { %v925_v30 = vadd.f32 %v893_v34, %v821_v9  ;;  %v926_v17 = vadd.f32 %v894_v4, %v822_v31  ;;  %v1205_v46 = vmul.f32 %v7048_v25, %v1476_v5  ;;  %v1206_v8 = vmul.f32 %v7048_v25, %v1477_v43 }
 0x157   : > { %v1310_v57 = vmul.f32 %v7065_v32, %v1270_v16  ;;  %v1444_v60 = vadd.f32 %v1412_v47, %v1340_v27  ;;  %v1445_v13 = vadd.f32 %v1413_v18, %v1341_v49  ;;  %v1311_v0 = vmul.f32 %v7065_v32, %v1271_v45 }
 0x158   : > { %v1029_v15 = vadd.f32 %v997_v14, %v925_v30  ;;  %v1030_v3 = vadd.f32 %v998_v39, %v926_v17  ;;  %v1414_v22 = vmul.f32 %v7070_v33, %v9870_v56  ;;  %v1415_v6 = vmul.f32 %v7070_v33, %v9871_v55  ;;  %v1479_v14 = vld [vmem:[#allocation2 + $0x151] sm:$0xff] }
 0x159   : > { %v1518_v58 = vmul.f32 %v7086_v38, %v1478_v20  ;;  %v1548_v7 = vadd.f32 %v1516_v36, %v1444_v60  ;;  %v1549_v29 = vadd.f32 %v1517_v61, %v1445_v13  ;;  %v719_v28 = vmul.f32 %v7013_v11, %v1268_v26  ;;  %v7515_v30 = vld [vmem:[#allocation2 + $0x16f] sm:$0xff] }
 0x15a   : > { %v1133_v10 = vadd.f32 %v1101_v50, %v1029_v15  ;;  %v1134_v47 = vadd.f32 %v1102_v54, %v1030_v3  ;;  %v720_v18 = vmul.f32 %v7013_v11, %v1269_v44  ;;  %v791_v42 = vmul.f32 %v7018_v12, %v9868_v1 }
 0x15b   : > { %v792_v34 = vmul.f32 %v7018_v12, %v9869_v37  ;;  %v1573_v4 = vpack.c.bf16 %v1549_v29, %v1548_v7  ;;  %v895_v48 = vmul.f32 %v7028_v19, %v1476_v5  ;;  %v896_v9 = vmul.f32 %v7028_v19, %v1477_v43  ;;  %v7511_v43 = vld [vmem:[#allocation2 + $0x167] sm:$0xff]  ;;  %v7548_v29 = vld [vmem:[%s9805_s9 + $0x2] ss:$0 sm:$0xff] }
 0x15c   : > { %v1237_v53 = vadd.f32 %v1205_v46, %v1133_v10  ;;  %v1238_v36 = vadd.f32 %v1206_v8, %v1134_v47  ;;  %v823_v61 = vadd.f32 %v791_v42, %v719_v28  ;;  %v999_v26 = vmul.f32 %v7038_v23, %v1270_v16 }
 0x15d   : > { %v824_v31 = vadd.f32 %v792_v34, %v720_v18  ;;  %5936 = vmatmul.mubr.bf16.gmra.mrb[12].mxu0 %v1573_v4  ;;  %v1519_v44 = vmul.f32 %v7086_v38, %v1479_v14  ;;  %v1000_v1 = vmul.f32 %v7038_v23, %v1271_v45  ;;  %v1103_v12 = vmul.f32 %v7043_v24, %v9870_v56  ;;  %v1481_v18 = vld [vmem:[#allocation2 + $0x171] sm:$0xff] }
 0x15e   : > { %v1342_v11 = vadd.f32 %v1310_v57, %v1237_v53  ;;  %v1343_v37 = vadd.f32 %v1311_v0, %v1238_v36  ;;  %v927_v39 = vadd.f32 %v895_v48, %v823_v61  ;;  %v1104_v19 = vmul.f32 %v7043_v24, %v9871_v55  ;;  %v7521_v57 = vld [vmem:[#allocation2 + $0x169] sm:$0xff] }
 0x15f   : > { %v928_v5 = vadd.f32 %v896_v9, %v824_v31  ;;  %v1207_v27 = vmul.f32 %v7048_v25, %v1478_v20  ;;  %v1208_v49 = vmul.f32 %v7048_v25, %v1479_v14  ;;  %v1312_v23 = vmul.f32 %v7065_v32, %v7511_v43  ;;  %v7565_v9 = vld [vmem:[%s9805_s9 + $0x4] ss:$0 sm:$0xff] }
 0x160   : > { %v1446_v50 = vadd.f32 %v1414_v22, %v1342_v11  ;;  %v1447_v54 = vadd.f32 %v1415_v6, %v1343_v37  ;;  %v1031_v17 = vadd.f32 %v999_v26, %v927_v39  ;;  %v1313_v8 = vmul.f32 %v7065_v32, %v7515_v30  ;;  %v7532_v22 = vld [vmem:[%s9805_s9] ss:$0 sm:$0xff]  ;;  %v7574_v26 = vld [vmem:[%s9805_s9 + $0x5] ss:$0 sm:$0xff]  ;;  %v1274_v11 = vld [vmem:[#allocation2 + $0x187] sm:$0xff] }
 0x161   : > { %v1032_v46 = vadd.f32 %v1000_v1, %v928_v5  ;;  %v1416_v60 = vmul.f32 %v7070_v33, %v7273_v21  ;;  %v1417_v25 = vmul.f32 %v7070_v33, %v7276_v2  ;;  %v1520_v13 = vmul.f32 %v7086_v38, %v7521_v57  ;;  %v1275_v37 = vld [vmem:[#allocation2 + $0x18f] sm:$0xff]  ;;  %v7582_v39 = vld [vmem:[%s9805_s9 + $0x6] ss:$0 sm:$0xff] }
 0x162   : > { %v1550_v24 = vadd.f32 %v1518_v58, %v1446_v50  ;;  %v1551_v15 = vadd.f32 %v1519_v44, %v1447_v54  ;;  %v1135_v0 = vadd.f32 %v1103_v12, %v1031_v17  ;;  %v721_v32 = vmul.f32 %v7532_v22, %v1270_v16  ;;  %v7539_v58 = vld [vmem:[%s9805_s9 + $0x1] ss:$0 sm:$0xff]  ;;  %v1482_v54 = vld [vmem:[#allocation2 + $0x189] sm:$0xff] }
 0x163   : > { %v1136_v3 = vadd.f32 %v1104_v19, %v1032_v46  ;;  %v722_v6 = vmul.f32 %v7532_v22, %v1271_v45  ;;  %v793_v33 = vmul.f32 %v7539_v58, %v9870_v56  ;;  %v794_v7 = vmul.f32 %v7539_v58, %v9871_v55  ;;  %v7555_v56 = vld [vmem:[%s9805_s9 + $0x3] ss:$0 sm:$0xff] }
 0x164   : > { %v897_v16 = vmul.f32 %v7548_v29, %v1478_v20  ;;  %v1574_v10 = vpack.c.bf16 %v1551_v15, %v1550_v24  ;;  %v1239_v45 = vadd.f32 %v1207_v27, %v1135_v0  ;;  %v898_v47 = vmul.f32 %v7548_v29, %v1479_v14  ;;  %v7598_v24 = vld [vmem:[%s9805_s9 + $0x8] ss:$0 sm:$0xff] }
 0x165   : > { %v1240_v28 = vadd.f32 %v1208_v49, %v1136_v3  ;;  %v825_v42 = vadd.f32 %v793_v33, %v721_v32  ;;  %v826_v34 = vadd.f32 %v794_v7, %v722_v6  ;;  %v1001_v55 = vmul.f32 %v7555_v56, %v7511_v43  ;;  %v7589_v49 = vld [vmem:[%s9805_s9 + $0x7] ss:$0 sm:$0xff]  ;;  %v1483_v32 = vld [vmem:[#allocation2 + $0x191] sm:$0xff] }
 0x166   : > { %v1002_v4 = vmul.f32 %v7555_v56, %v7515_v30  ;;  %5939 = vmatprep.mubr.bf16.mxu0 %v1574_v10  ;;  %v1344_v20 = vadd.f32 %v1312_v23, %v1239_v45  ;;  %v1521_v48 = vmul.f32 %v7086_v38, %v1481_v18  ;;  %v1105_v36 = vmul.f32 %v7565_v9, %v7273_v21 }
 0x167   : > { %v1345_v53 = vadd.f32 %v1313_v8, %v1240_v28  ;;  %v929_v14 = vadd.f32 %v897_v16, %v825_v42  ;;  %v930_v61 = vadd.f32 %v898_v47, %v826_v34  ;;  %v1106_v31 = vmul.f32 %v7565_v9, %v7276_v2 }
 0x168   : > { %v1209_v38 = vmul.f32 %v7574_v26, %v7521_v57  ;;  %v1448_v44 = vadd.f32 %v1416_v60, %v1344_v20  ;;  %v1210_v12 = vmul.f32 %v7574_v26, %v1481_v18  ;;  %v1314_v5 = vmul.f32 %v7582_v39, %v1274_v11 }
 0x169   : > { %v1449_v1 = vadd.f32 %v1417_v25, %v1345_v53  ;;  %v1033_v19 = vadd.f32 %v1001_v55, %v929_v14  ;;  %v1034_v50 = vadd.f32 %v1002_v4, %v930_v61  ;;  %v1315_v27 = vmul.f32 %v7582_v39, %v1275_v37  ;;  %v1276_v53 = vld [vmem:[#allocation2 + $0x1a7] sm:$0xff] }
 0x16a   : > { %v1418_v23 = vmul.f32 %v7589_v49, %v7287_v51  ;;  %v1552_v17 = vadd.f32 %v1520_v13, %v1448_v44  ;;  %v1419_v8 = vmul.f32 %v7589_v49, %v7290_v52  ;;  %v1522_v60 = vmul.f32 %v7598_v24, %v1482_v54 }
 0x16b   : > { %v1553_v46 = vadd.f32 %v1521_v48, %v1449_v1  ;;  %v1137_v25 = vadd.f32 %v1105_v36, %v1033_v19  ;;  %v1138_v15 = vadd.f32 %v1106_v31, %v1034_v50  ;;  %v723_v0 = vmul.f32 %v7532_v22, %v7511_v43  ;;  %v1277_v48 = vld [vmem:[#allocation2 + $0x1af] sm:$0xff] }
 0x16c   : > { %v724_v3 = vmul.f32 %v7532_v22, %v7515_v30  ;;  %v795_v6 = vmul.f32 %v7539_v58, %v7273_v21  ;;  %v796_v33 = vmul.f32 %v7539_v58, %v7276_v2  ;;  %v899_v7 = vmul.f32 %v7548_v29, %v7521_v57 }
 0x16d   : > { %v1575_v13 = vpack.c.bf16 %v1553_v46, %v1552_v17  ;;  %v1241_v16 = vadd.f32 %v1209_v38, %v1137_v25  ;;  %v1242_v10 = vadd.f32 %v1210_v12, %v1138_v15  ;;  %v1523_v45 = vmul.f32 %v7598_v24, %v1483_v32 }
 0x16e   : > { %v900_v43 = vmul.f32 %v7548_v29, %v1481_v18  ;;  %v827_v28 = vadd.f32 %v795_v6, %v723_v0  ;;  %v828_v30 = vadd.f32 %v796_v33, %v724_v3  ;;  %v1003_v47 = vmul.f32 %v7555_v56, %v1274_v11  ;;  %v1485_v33 = vld [vmem:[#allocation2 + $0x1b1] sm:$0xff] }
 0x16f   : > { %5940 = vmatmul.mubr.bf16.gmra.mrb[16].mxu0 %v1575_v13  ;;  %v1004_v42 = vmul.f32 %v7555_v56, %v1275_v37  ;;  %v1346_v21 = vadd.f32 %v1314_v5, %v1241_v16  ;;  %v1347_v34 = vadd.f32 %v1315_v27, %v1242_v10  ;;  %v1107_v2 = vmul.f32 %v7565_v9, %v7287_v51  ;;  %v1484_v5 = vld [vmem:[#allocation2 + $0x1a9] sm:$0xff] }
 0x170   : > { %v1108_v57 = vmul.f32 %v7565_v9, %v7290_v52  ;;  %v931_v55 = vadd.f32 %v899_v7, %v827_v28  ;;  %v932_v4 = vadd.f32 %v900_v43, %v828_v30  ;;  %v1211_v20 = vmul.f32 %v7574_v26, %v1482_v54  ;;  %v1278_v43 = vld [vmem:[#allocation2 + $0x1c7] sm:$0xff] }
 0x171   : > { %v1212_v18 = vmul.f32 %v7574_v26, %v1483_v32  ;;  %v1450_v36 = vadd.f32 %v1418_v23, %v1346_v21  ;;  %v1451_v14 = vadd.f32 %v1419_v8, %v1347_v34  ;;  %v1316_v61 = vmul.f32 %v7582_v39, %v1276_v53 }
 0x172   : > { %v1317_v31 = vmul.f32 %v7582_v39, %v1277_v48  ;;  %v1035_v38 = vadd.f32 %v1003_v47, %v931_v55  ;;  %v1036_v44 = vadd.f32 %v1004_v42, %v932_v4  ;;  %v1420_v1 = vmul.f32 %v7589_v49, %v7293_v59  ;;  %v1279_v42 = vld [vmem:[#allocation2 + $0x1cf] sm:$0xff] }
 0x173   : > { %v1421_v12 = vmul.f32 %v7589_v49, %v7302_v62  ;;  %v1554_v19 = vadd.f32 %v1522_v60, %v1450_v36  ;;  %v1555_v50 = vadd.f32 %v1523_v45, %v1451_v14  ;;  %v1524_v27 = vmul.f32 %v7598_v24, %v1484_v5  ;;  %v1486_v4 = vld [vmem:[#allocation2 + $0x1c9] sm:$0xff] }
 0x174   : > { %v725_v23 = vmul.f32 %v7532_v22, %v1274_v11  ;;  %v1139_v17 = vadd.f32 %v1107_v2, %v1035_v38  ;;  %v1140_v46 = vadd.f32 %v1108_v57, %v1036_v44  ;;  %v726_v8 = vmul.f32 %v7532_v22, %v1275_v37 }
 0x175   : > { %v797_v25 = vmul.f32 %v7539_v58, %v7287_v51  ;;  %v1576_v15 = vpack.c.bf16 %v1555_v50, %v1554_v19  ;;  %v798_v0 = vmul.f32 %v7539_v58, %v7290_v52  ;;  %v901_v3 = vmul.f32 %v7548_v29, %v1482_v54 }
 0x176   : > { %v902_v60 = vmul.f32 %v7548_v29, %v1483_v32  ;;  %v1243_v13 = vadd.f32 %v1211_v20, %v1139_v17  ;;  %v1244_v6 = vadd.f32 %v1212_v18, %v1140_v46  ;;  %v1005_v11 = vmul.f32 %v7555_v56, %v1276_v53 }
 0x177   : > { %v829_v7 = vadd.f32 %v797_v25, %v725_v23  ;;  %5943 = vmatprep.mubr.bf16.mxu0 %v1576_v15  ;;  %v1525_v37 = vmul.f32 %v7598_v24, %v1485_v33  ;;  %v830_v16 = vadd.f32 %v798_v0, %v726_v8  ;;  %v1006_v51 = vmul.f32 %v7555_v56, %v1277_v48  ;;  %v1487_v25 = vld [vmem:[#allocation2 + $0x1d1] sm:$0xff] }
 0x178   : > { %v1109_v10 = vmul.f32 %v7565_v9, %v7293_v59  ;;  %v1348_v52 = vadd.f32 %v1316_v61, %v1243_v13  ;;  %v1349_v45 = vadd.f32 %v1317_v31, %v1244_v6  ;;  %v1110_v32 = vmul.f32 %v7565_v9, %v7302_v62 }
 0x179   : > { %v933_v54 = vadd.f32 %v901_v3, %v829_v7  ;;  %v934_v28 = vadd.f32 %v902_v60, %v830_v16  ;;  %v1213_v30 = vmul.f32 %v7574_v26, %v1484_v5  ;;  %v1214_v47 = vmul.f32 %v7574_v26, %v1485_v33 }
 0x17a   : > { %v1318_v21 = vmul.f32 %v7582_v39, %v1278_v43  ;;  %v1452_v34 = vadd.f32 %v1420_v1, %v1348_v52  ;;  %v1453_v2 = vadd.f32 %v1421_v12, %v1349_v45  ;;  %v1319_v55 = vmul.f32 %v7582_v39, %v1279_v42  ;;  %v1281_v52 = vld [vmem:[#allocation2 + $0x1ef] sm:$0xff] }
 0x17b   : > { %v1037_v57 = vadd.f32 %v1005_v11, %v933_v54  ;;  %v1038_v20 = vadd.f32 %v1006_v51, %v934_v28  ;;  %v1422_v18 = vmul.f32 %v7589_v49, %v7306_v63  ;;  %v1423_v36 = vmul.f32 %v7589_v49, %v7309_v35 }
 0x17c   : > { %v1526_v14 = vmul.f32 %v7598_v24, %v1486_v4  ;;  %v1556_v61 = vadd.f32 %v1524_v27, %v1452_v34  ;;  %v1557_v31 = vadd.f32 %v1525_v37, %v1453_v2  ;;  %v727_v44 = vmul.f32 %v7532_v22, %v1276_v53  ;;  %v1280_v37 = vld [vmem:[#allocation2 + $0x1e7] sm:$0xff] }
 0x17d   : > { %v1141_v38 = vadd.f32 %v1109_v10, %v1037_v57  ;;  %v1142_v1 = vadd.f32 %v1110_v32, %v1038_v20  ;;  %v728_v12 = vmul.f32 %v7532_v22, %v1277_v48  ;;  %v799_v19 = vmul.f32 %v7539_v58, %v7293_v59 }
 0x17e   : > { %v800_v50 = vmul.f32 %v7539_v58, %v7302_v62  ;;  %v1577_v23 = vpack.c.bf16 %v1557_v31, %v1556_v61  ;;  %v903_v46 = vmul.f32 %v7548_v29, %v1484_v5  ;;  %v904_v8 = vmul.f32 %v7548_v29, %v1485_v33 }
 0x17f   : > { %v1245_v17 = vadd.f32 %v1213_v30, %v1141_v38  ;;  %v1246_v27 = vadd.f32 %v1214_v47, %v1142_v1  ;;  %v831_v15 = vadd.f32 %v799_v19, %v727_v44  ;;  %v1007_v53 = vmul.f32 %v7555_v56, %v1278_v43  ;;  %v6231_v47 = vld [vmem:[#allocation8] sm:$0xff]   ;;  %v1488_v44 = vld [vmem:[#allocation2 + $0x1e9] sm:$0xff]  ;;  %v1489_v1 = vld [vmem:[#allocation2 + $0x1f1] sm:$0xff] }
 0x180   : > { %v832_v0 = vadd.f32 %v800_v50, %v728_v12  ;;  %5944 = vmatmul.mubr.bf16.gmra.mrb[20].mxu0 %v1577_v23  ;;  %v1527_v3 = vmul.f32 %v7598_v24, %v1487_v25  ;;  %v1008_v59 = vmul.f32 %v7555_v56, %v1279_v42  ;;  %v1111_v62 = vmul.f32 %v7565_v9, %v7306_v63 }
 0x181   : > { %v1350_v48 = vadd.f32 %v1318_v21, %v1245_v17  ;;  %v1351_v60 = vadd.f32 %v1319_v55, %v1246_v27  ;;  %v935_v13 = vadd.f32 %v903_v46, %v831_v15  ;;  %v1112_v6 = vmul.f32 %v7565_v9, %v7309_v35  ;;  %5955 = vmatprep.subr.bf16.mxu1 %v6231_v47 }
 0x182   : > { %v936_v5 = vadd.f32 %v904_v8, %v832_v0  ;;  %v1215_v7 = vmul.f32 %v7574_v26, %v1486_v4  ;;  %v1216_v11 = vmul.f32 %v7574_v26, %v1487_v25  ;;  %v1320_v45 = vmul.f32 %v7582_v39, %v1280_v37  ;;  %5956 = vmatpush3.bf16.msra.mxu1 %v6231_v47  ;;  %v1282_v0 = vld [vmem:[#allocation2 + $0x207] sm:$0xff]  ;;  %v6267_v47 = vld [vmem:[#allocation2 + $0x210] sm:$0xff] }
 0x183   : > { %v1454_v33 = vadd.f32 %v1422_v18, %v1350_v48  ;;  %v1455_v16 = vadd.f32 %v1423_v36, %v1351_v60  ;;  %v1039_v51 = vadd.f32 %v1007_v53, %v935_v13  ;;  %v1321_v32 = vmul.f32 %v7582_v39, %v1281_v52 }
 0x184   : > { %v1040_v10 = vadd.f32 %v1008_v59, %v936_v5  ;;  %v1424_v28 = vmul.f32 %v7589_v49, %v7319_v40  ;;  %v1425_v30 = vmul.f32 %v7589_v49, %v7322_v41  ;;  %v729_v57 = vmul.f32 %v7532_v22, %v1278_v43  ;;  %v1283_v59 = vld [vmem:[#allocation2 + $0x20f] sm:$0xff] }
 0x185   : > { %v1558_v54 = vadd.f32 %v1526_v14, %v1454_v33  ;;  %v1559_v21 = vadd.f32 %v1527_v3, %v1455_v16  ;;  %v1143_v34 = vadd.f32 %v1111_v62, %v1039_v51  ;;  %v730_v55 = vmul.f32 %v7532_v22, %v1279_v42  ;;  %v6265_v51 = vld [vmem:[#allocation2 + $0x1e8] sm:$0xff] }
 0x186   : > { %v1144_v2 = vadd.f32 %v1112_v6, %v1040_v10  ;;  %v801_v20 = vmul.f32 %v7539_v58, %v7306_v63  ;;  %v802_v18 = vmul.f32 %v7539_v58, %v7309_v35  ;;  %v905_v36 = vmul.f32 %v7548_v29, %v1486_v4 }
 0x187   : > { %v1578_v14 = vpack.c.bf16 %v1559_v21, %v1558_v54  ;;  %v1247_v61 = vadd.f32 %v1215_v7, %v1143_v34  ;;  %v906_v38 = vmul.f32 %v7548_v29, %v1487_v25  ;;  %v1009_v42 = vmul.f32 %v7555_v56, %v1280_v37 }
 0x188   : > { %v1248_v31 = vadd.f32 %v1216_v11, %v1144_v2  ;;  %v833_v43 = vadd.f32 %v801_v20, %v729_v57  ;;  %v834_v12 = vadd.f32 %v802_v18, %v730_v55  ;;  %v1010_v63 = vmul.f32 %v7555_v56, %v1281_v52  ;;  %v1491_v2 = vld [vmem:[#allocation2 + $0x211] sm:$0xff] }
 0x189   : > { %5947 = vmatprep.mubr.bf16.mxu0 %v1578_v14  ;;  %v1352_v19 = vadd.f32 %v1320_v45, %v1247_v61  ;;  %v1528_v4 = vmul.f32 %v7598_v24, %v1488_v44  ;;  %v1529_v50 = vmul.f32 %v7598_v24, %v1489_v1  ;;  %v1113_v46 = vmul.f32 %v7565_v9, %v7319_v40  ;;  %v6264_v40 = vld [vmem:[#allocation2 + $0x208] sm:$0xff]  ;;  %v6266_v45 = vld [vmem:[#allocation2 + $0x1f0] sm:$0xff] }
 0x18a   : > { %v1353_v35 = vadd.f32 %v1321_v32, %v1248_v31  ;;  %v937_v23 = vadd.f32 %v905_v36, %v833_v43  ;;  %v938_v17 = vadd.f32 %v906_v38, %v834_v12  ;;  %v1114_v8 = vmul.f32 %v7565_v9, %v7322_v41  ;;  %v6232_v14 = vld [vmem:[#allocation8 + $0x8] sm:$0xff]  }
 0x18b   : > { %v1456_v27 = vadd.f32 %v1424_v28, %v1352_v19  ;;  %v1217_v15 = vmul.f32 %v7574_v26, %v1488_v44  ;;  %v1218_v3 = vmul.f32 %v7574_v26, %v1489_v1  ;;  %v1322_v62 = vmul.f32 %v7582_v39, %v1282_v0  ;;  %v1284_v43 = vld [vmem:[#allocation2 + $0x227] sm:$0xff]  ;;  %v1285_v12 = vld [vmem:[#allocation2 + $0x22f] sm:$0xff]  ;;  %5957 = vmatprep.subr.bf16.mxu1 %v6232_v14 }
 0x18c   : > { %v1457_v25 = vadd.f32 %v1425_v30, %v1353_v35  ;;  %v1041_v53 = vadd.f32 %v1009_v42, %v937_v23  ;;  %v1042_v48 = vadd.f32 %v1010_v63, %v938_v17  ;;  %v1323_v5 = vmul.f32 %v7582_v39, %v1283_v59  ;;  %5958 = vmatpush3.bf16.msra.mxu1 %v6232_v14  ;;  %v6233_v35 = vld [vmem:[#allocation8 + $0x10] sm:$0xff]  }
 0x18d   : > { %v1560_v60 = vadd.f32 %v1528_v4, %v1456_v27  ;;  %v1426_v6 = vmul.f32 %v6264_v40, %v7589_v49  ;;  %v731_v7 = vmul.f32 %v7532_v22, %v1280_v37  ;;  %v732_v11 = vmul.f32 %v7532_v22, %v1281_v52  ;;  %v1490_v37 = vld [vmem:[#allocation2 + $0x209] sm:$0xff]  ;;  %5959 = vmatprep.subr.bf16.mxu1 %v6233_v35 }
 0x18e   : > { %v1561_v13 = vadd.f32 %v1529_v50, %v1457_v25  ;;  %v1145_v41 = vadd.f32 %v1113_v46, %v1041_v53  ;;  %v1146_v33 = vadd.f32 %v1114_v8, %v1042_v48  ;;  %v803_v10 = vmul.f32 %v6265_v51, %v7539_v58  ;;  %v1492_v27 = vld [vmem:[#allocation2 + $0x229] sm:$0xff]  ;;  %v1493_v25 = vld [vmem:[#allocation2 + $0x231] sm:$0xff]  ;;  %v6268_v53 = vld [vmem:[#allocation2] sm:$0xff] }
 0x18f   : > { %v804_v54 = vmul.f32 %v6266_v45, %v7539_v58  ;;  %v907_v32 = vmul.f32 %v7548_v29, %v1488_v44  ;;  %v1427_v21 = vmul.f32 %v6267_v47, %v7589_v49  ;;  %v908_v34 = vmul.f32 %v7548_v29, %v1489_v1 }
 0x190   : > { %v1579_v16 = vpack.c.bf16 %v1561_v13, %v1560_v60  ;;  %v1249_v28 = vadd.f32 %v1217_v15, %v1145_v41  ;;  %v1250_v30 = vadd.f32 %v1218_v3, %v1146_v33  ;;  %v835_v22 = vadd.f32 %v803_v10, %v731_v7  ;;  %5960 = vmatpush3.bf16.msra.mxu1 %v6233_v35  ;;  %v6235_v41 = vld [vmem:[#allocation8 + $0x20] sm:$0xff]   ;;  %v6237_v33 = vld [vmem:[#allocation8 + $0x30] sm:$0xff]   ;;  %v6238_v7 = vld [vmem:[#allocation8 + $0x38] sm:$0xff]  }
 0x191   : > { %v836_v52 = vadd.f32 %v804_v54, %v732_v11  ;;  %v1011_v57 = vmul.f32 %v7555_v56, %v1282_v0  ;;  %v1012_v55 = vmul.f32 %v7555_v56, %v1283_v59  ;;  %v1530_v18 = vmul.f32 %v7598_v24, %v1490_v37  ;;  %v1878_v11 = vld [vmem:[#allocation2 + $0x7] sm:$0xff]  ;;  %v1879_v10 = vld [vmem:[#allocation2 + $0xf] sm:$0xff] }
 0x192   : > { %5948 = vmatmul.mubr.bf16.gmra.mrb[24].mxu0 %v1579_v16  ;;  %v1354_v20 = vadd.f32 %v1322_v62, %v1249_v28  ;;  %v1355_v58 = vadd.f32 %v1323_v5, %v1250_v30  ;;  %v1531_v36 = vmul.f32 %v7598_v24, %v1491_v2  ;;  %v939_v61 = vadd.f32 %v907_v32, %v835_v22  ;;  %v7721_v16 = vld [vmem:[%s9872_s12] ss:$0 sm:$0xff]  ;;  %v7727_v32 = vld [vmem:[%s9872_s12 + $0x1] ss:$0 sm:$0xff] }
 0x193   : > { %v940_v31 = vadd.f32 %v908_v34, %v836_v52  ;;  %v1115_v29 = vmul.f32 %v6264_v40, %v7565_v9  ;;  %v1116_v38 = vmul.f32 %v6267_v47, %v7565_v9  ;;  %v1219_v63 = vmul.f32 %v7574_v26, %v1490_v37  ;;  %v2053_v52 = vld [vmem:[#allocation2 + $0x9] sm:$0xff] }
 0x194   : > { %v1458_v44 = vadd.f32 %v1426_v6, %v1354_v20  ;;  %v1459_v1 = vadd.f32 %v1427_v21, %v1355_v58  ;;  %v1043_v42 = vadd.f32 %v1011_v57, %v939_v61  ;;  %v1220_v19 = vmul.f32 %v7574_v26, %v1491_v2  ;;  %v6234_v6 = vld [vmem:[#allocation8 + $0x18] sm:$0xff]   ;;  %v7737_v57 = vld [vmem:[%s9872_s12 + $0x2] ss:$0 sm:$0xff] }
 0x195   : > { %v1044_v56 = vadd.f32 %v1012_v55, %v940_v31  ;;  %v1324_v46 = vmul.f32 %v7582_v39, %v1284_v43  ;;  %v1325_v9 = vmul.f32 %v7582_v39, %v1285_v12  ;;  %v1428_v48 = vmul.f32 %v6268_v53, %v7589_v49  ;;  %5961 = vmatprep.subr.bf16.mxu1 %v6234_v6  ;;  %v6236_v49 = vld [vmem:[#allocation8 + $0x28] sm:$0xff]   ;;  %v2054_v58 = vld [vmem:[#allocation2 + $0x11] sm:$0xff]  ;;  %v7755_v43 = vld [vmem:[%s9872_s12 + $0x6] ss:$0 sm:$0xff] }
 0x196   : > { %v1562_v4 = vadd.f32 %v1530_v18, %v1458_v44  ;;  %v1563_v50 = vadd.f32 %v1531_v36, %v1459_v1  ;;  %v1147_v23 = vadd.f32 %v1115_v29, %v1043_v42  ;;  %v1532_v59 = vmul.f32 %v7598_v24, %v1492_v27  ;;  %5962 = vmatpush3.bf16.msra.mxu1 %v6234_v6  ;;  %v7750_v44 = vld [vmem:[%s9872_s12 + $0x7] ss:$0 sm:$0xff]  ;;  %v7760_v42 = vld [vmem:[%s9872_s12 + $0x3] ss:$0 sm:$0xff]  ;;  %v7788_v27 = vld [vmem:[%s9872_s12 + $0x5] ss:$0 sm:$0xff] }
 0x197   : > { %v1148_v17 = vadd.f32 %v1116_v38, %v1044_v56  ;;  %v1533_v62 = vmul.f32 %v7598_v24, %v1493_v25  ;;  %5963 = vmatprep.subr.bf16.mxu1 %v6235_v41  ;;  %v7716_v24 = vld [vmem:[#allocation12] ss:$0 sm:$0xff]  ;;  %v1917_v47 = vmul.f32 %v7721_v16, %v1878_v11  ;;  %v1989_v21 = vmul.f32 %v6268_v53, %v7727_v32  ;;  %v7745_v38 = vld [vmem:[%s9872_s12 + $0x4] ss:$0 sm:$0xff] }
 0x198   : > { %v1580_v8 = vpack.c.bf16 %v1563_v50, %v1562_v4  ;;  %v1251_v15 = vadd.f32 %v1219_v63, %v1147_v23  ;;  %v1918_v22 = vmul.f32 %v7721_v16, %v1879_v10  ;;  %v2093_v61 = vmul.f32 %v7737_v57, %v2053_v52  ;;  %v7778_v23 = vld [vmem:[%s9872_s12 + $0x8] ss:$0 sm:$0xff] }
 0x199   : > { %v1252_v0 = vadd.f32 %v1220_v19, %v1148_v17  ;;  %v2021_v14 = vadd.f32 %v1989_v21, %v1917_v47  ;;  %v2094_v29 = vmul.f32 %v7737_v57, %v2054_v58 }
 0x19a   : > { %5951 = vmatprep.mubr.bf16.mxu0 %v1580_v8  ;;  %v1356_v26 = vadd.f32 %v1324_v46, %v1251_v15  ;;  %5964 = vmatpush3.bf16.msra.mxu1 %v6235_v41  ;;  %v2022_v31 = vadd.f32 %v1989_v21, %v1918_v22 }
 0x19b   : > { %v1357_v3 = vadd.f32 %v1325_v9, %v1252_v0  ;;  %5965 = vmatprep.subr.bf16.mxu1 %v6236_v49  ;;  %v2125_v1 = vadd.f32 %v2093_v61, %v2021_v14 }
 0x19c   : > { %v1460_v60 = vadd.f32 %v1428_v48, %v1356_v26  ;;  %v2126_v12 = vadd.f32 %v2094_v29, %v2022_v31 }
 0x19d   : > { %v1461_v13 = vadd.f32 %v1428_v48, %v1357_v3 }
 0x19e   : > { %v1564_v39 = vadd.f32 %v1532_v59, %v1460_v60  ;;  %5966 = vmatpush3.bf16.msra.mxu1 %v6236_v49 }
 0x19f   : > { %v1565_v5 = vadd.f32 %v1533_v62, %v1461_v13  ;;  %5967 = vmatprep.subr.bf16.mxu1 %v6237_v33 }
 0x1a1   : > { %v1581_v40 = vpack.c.bf16 %v1565_v5, %v1564_v39 }
 0x1a2   : > { %5968 = vmatpush3.bf16.msra.mxu1 %v6237_v33 }
 0x1a3   : > { %5952 = vmatmul.mubr.bf16.gmra.mrb[28].mxu0 %v1581_v40  ;;  %5969 = vmatprep.subr.bf16.mxu1 %v6238_v7 }
 0x1a6   : > { %5970 = vmatpush3.bf16.msra.mxu1 %v6238_v7 }
 0x1fc   : > { %v5925_v51 = vpop.f32.mrb[0].mxu0 }
 0x1fd   : > { %v1696_v45 = vadd.f32 %v5925_v51, %v7716_v24  ;;  %v1687_v54 = vpop.f32.mrb[1].mxu0 }
 0x1fe   : > { %v1688_v28 = vadd.f32 %v7716_v24, %v1687_v54  ;;  %v5926_v30 = vpop.f32.mrb[2].mxu0 }
 0x1ff   : > { %v1816_v34 = vmax.f32 %v1696_v45, 0.0  ;;  %v1699_v37 = vadd.f32 %v5926_v30, %v7716_v24  ;;  %v1690_v2 = vpop.f32.mrb[3].mxu0 }
 0x200   : > { %v1814_v55 = vmax.f32 %v1688_v28, 0.0  ;;  %v1691_v20 = vadd.f32 %v7716_v24, %v1690_v2 }
 0x201   : > { %1848 = vst [vmem:[#allocation2 + $0x48] sm:$0xff] %v1816_v34  ;;  %v1817_v18 = vmax.f32 %v1699_v37, 0.0  ;;  %v7763_v56 = vmul.f32 %v7750_v44, %v1816_v34  ;;  %v7766_v63 = vmul.f32 %v7745_v38, %v1816_v34  ;;  %v7769_v19 = vmul.f32 %v7727_v32, %v1816_v34 }
 0x202   : > { %1846 = vst [vmem:[#allocation2 + $0x28] sm:$0xff] %v1814_v55  ;;  %v1815_v36 = vmax.f32 %v1691_v20, 0.0  ;;  %v2301_v35 = vmul.f32 %v7745_v38, %v1814_v55  ;;  %v1991_v17 = vmul.f32 %v7727_v32, %v1814_v55 }
 0x203   : > { %1849 = vst [vmem:[#allocation2 + $0x50] sm:$0xff] %v1817_v18  ;;  %v7773_v50 = vmul.f32 %v7750_v44, %v1817_v18  ;;  %v7782_v46 = vmul.f32 %v7745_v38, %v1817_v18  ;;  %v1994_v0 = vmul.f32 %v7727_v32, %v1817_v18 }
 0x204   : > { %1847 = vst [vmem:[#allocation2 + $0x30] sm:$0xff] %v1815_v36  ;;  %v2302_v8 = vmul.f32 %v7745_v38, %v1815_v36  ;;  %v1992_v15 = vmul.f32 %v7727_v32, %v1815_v36 }
 0x208   : > { %v2469_v4 = vld [vmem:[#allocation2 + $0x47] sm:$0xff] }
 0x209   : > { %v2157_v9 = vld [vmem:[#allocation2 + $0x27] sm:$0xff]  ;;  %v2509_v25 = vmul.f32 %v7755_v43, %v2469_v4  ;;  %v2199_v62 = vmul.f32 %v7760_v42, %v2469_v4  ;;  %v1921_v60 = vmul.f32 %v7721_v16, %v2469_v4 }
 0x20a   : > { %v2197_v53 = vmul.f32 %v7760_v42, %v2157_v9  ;;  %v2470_v48 = vld [vmem:[#allocation2 + $0x4f] sm:$0xff]  ;;  %v1919_v59 = vmul.f32 %v7721_v16, %v2157_v9 }
 0x20b   : > { %v2677_v26 = vld [vmem:[#allocation2 + $0x49] sm:$0xff]  ;;  %v2678_v3 = vld [vmem:[#allocation2 + $0x51] sm:$0xff]  ;;  %v2510_v40 = vmul.f32 %v7755_v43, %v2470_v48  ;;  %v2200_v49 = vmul.f32 %v7760_v42, %v2470_v48 }
 0x20c   : > { %v2158_v13 = vld [vmem:[#allocation2 + $0x2f] sm:$0xff]  ;;  %v2717_v6 = vmul.f32 %v7778_v23, %v2677_v26  ;;  %v2718_v41 = vmul.f32 %v7778_v23, %v2678_v3  ;;  %v2229_v7 = vadd.f32 %v2197_v53, %v2125_v1  ;;  %v2023_v54 = vadd.f32 %v1991_v17, %v1919_v59 }
 0x20d   : > { %v2365_v39 = vld [vmem:[#allocation2 + $0x29] sm:$0xff]  ;;  %v2366_v5 = vld [vmem:[#allocation2 + $0x31] sm:$0xff]  ;;  %v2198_v33 = vmul.f32 %v7760_v42, %v2158_v13  ;;  %v1920_v45 = vmul.f32 %v7721_v16, %v2158_v13  ;;  %v2407_v2 = vmul.f32 %v7788_v27, %v2677_v26  ;;  %v2408_v58 = vmul.f32 %v7788_v27, %v2678_v3 }
 0x20e   : > { %v2405_v11 = vmul.f32 %v7788_v27, %v2365_v39  ;;  %v2406_v51 = vmul.f32 %v7788_v27, %v2366_v5  ;;  %v5929_v10 = vpop.f32.mrb[4].mxu0  ;;  %v2095_v28 = vmul.f32 %v7737_v57, %v2365_v39  ;;  %v2096_v30 = vmul.f32 %v7737_v57, %v2366_v5 }
 0x20f   : > { %v1712_v47 = vadd.f32 %v5929_v10, %v7716_v24  ;;  %v1703_v21 = vpop.f32.mrb[5].mxu0  ;;  %v2230_v34 = vadd.f32 %v2198_v33, %v2126_v12  ;;  %v2333_v37 = vadd.f32 %v2301_v35, %v2229_v7  ;;  %v2024_v55 = vadd.f32 %v1992_v15, %v1920_v45 }
 0x210   : > { %v1704_v22 = vadd.f32 %v7716_v24, %v1703_v21  ;;  %v5930_v52 = vpop.f32.mrb[6].mxu0  ;;  %v2127_v20 = vadd.f32 %v2095_v28, %v2023_v54  ;;  %v1922_v15 = vmul.f32 %v7721_v16, %v2470_v48  ;;  %v2025_v33 = vadd.f32 %v7769_v19, %v1921_v60 }
 0x211   : > { %v1820_v18 = vmax.f32 %v1712_v47, 0.0  ;;  %v1715_v36 = vadd.f32 %v5930_v52, %v7716_v24  ;;  %v1706_v14 = vpop.f32.mrb[7].mxu0  ;;  %v2334_v61 = vadd.f32 %v2302_v8, %v2230_v34  ;;  %v2437_v31 = vadd.f32 %v2405_v11, %v2333_v37 }
 0x212   : > { %v1818_v29 = vmax.f32 %v1704_v22, 0.0  ;;  %v1707_v1 = vadd.f32 %v7716_v24, %v1706_v14  ;;  %v2128_v12 = vadd.f32 %v2096_v30, %v2024_v55  ;;  %v2231_v35 = vadd.f32 %v2199_v62, %v2127_v20 }
 0x213   : > { %1852 = vst [vmem:[#allocation2 + $0x88] sm:$0xff] %v1820_v18  ;;  %v1821_v4 = vmax.f32 %v1715_v36, 0.0  ;;  %v2438_v17 = vadd.f32 %v2406_v51, %v2334_v61  ;;  %v2541_v9 = vadd.f32 %v2509_v25, %v2437_v31  ;;  %v2026_v62 = vadd.f32 %v1994_v0, %v1922_v15 }
 0x214   : > { %1850 = vst [vmem:[#allocation2 + $0x68] sm:$0xff] %v1818_v29  ;;  %v1819_v53 = vmax.f32 %v1707_v1, 0.0  ;;  %v2232_v59 = vadd.f32 %v2200_v49, %v2128_v12  ;;  %v2335_v13 = vadd.f32 %v7766_v63, %v2231_v35  ;;  %v2615_v39 = vmul.f32 %v7750_v44, %v1818_v29 }
 0x215   : > { %1853 = vst [vmem:[#allocation2 + $0x90] sm:$0xff] %v1821_v4  ;;  %v2542_v8 = vadd.f32 %v2510_v40, %v2438_v17  ;;  %v2645_v5 = vadd.f32 %v7763_v56, %v2541_v9  ;;  %v2097_v11 = vmul.f32 %v7737_v57, %v2677_v26  ;;  %v2098_v51 = vmul.f32 %v7737_v57, %v2678_v3 }
 0x216   : > { %1851 = vst [vmem:[#allocation2 + $0x70] sm:$0xff] %v1819_v53  ;;  %v2336_v7 = vadd.f32 %v7782_v46, %v2232_v59  ;;  %v2439_v25 = vadd.f32 %v2407_v2, %v2335_v13  ;;  %v2616_v48 = vmul.f32 %v7750_v44, %v1819_v53  ;;  %v2305_v40 = vmul.f32 %v7745_v38, %v1818_v29 }
 0x217   : > { %v2646_v49 = vadd.f32 %v7773_v50, %v2542_v8  ;;  %v2749_v63 = vadd.f32 %v2717_v6, %v2645_v5  ;;  %v2129_v56 = vadd.f32 %v2097_v11, %v2025_v33  ;;  %v2306_v19 = vmul.f32 %v7745_v38, %v1819_v53 }
 0x218   : > { %v2440_v10 = vadd.f32 %v2408_v58, %v2336_v7  ;;  %v7826_v0 = vmul.f32 %v7750_v44, %v1820_v18  ;;  %v2130_v60 = vadd.f32 %v2098_v51, %v2026_v62  ;;  %v7829_v45 = vmul.f32 %v7750_v44, %v1821_v4 }
 0x219   : > { %v2750_v46 = vadd.f32 %v2718_v41, %v2646_v49  ;;  %v1995_v26 = vmul.f32 %v7727_v32, %v1818_v29  ;;  %v1996_v6 = vmul.f32 %v7727_v32, %v1819_v53  ;;  %v7834_v3 = vmul.f32 %v7745_v38, %v1820_v18 }
 0x21a   : > { %v2473_v50 = vld [vmem:[#allocation2 + $0x87] sm:$0xff]  ;;  %v7837_v54 = vmul.f32 %v7745_v38, %v1821_v4  ;;  %v7840_v28 = vmul.f32 %v7727_v32, %v1820_v18  ;;  %v7859_v58 = vmul.f32 %v7727_v32, %v1821_v4 }
 0x21b   : > { %v2781_v30 = vpack.c.bf16 %v2750_v46, %v2749_v63  ;;  %v2471_v41 = vld [vmem:[#allocation2 + $0x67] sm:$0xff]  ;;  %v2513_v47 = vmul.f32 %v7755_v43, %v2473_v50  ;;  %v7844_v21 = vmul.f32 %v7760_v42, %v2473_v50  ;;  %v7847_v34 = vmul.f32 %v7721_v16, %v2473_v50 }
 0x21c   : > { %v2511_v37 = vmul.f32 %v7755_v43, %v2471_v41  ;;  %v2201_v2 = vmul.f32 %v7760_v42, %v2471_v41  ;;  %v7851_v22 = vld [vmem:[#allocation2 + $0x8f] sm:$0xff]  ;;  %v1923_v20 = vmul.f32 %v7721_v16, %v2471_v41 }
 0x21d   : > { %v7853_v52 = vld [vmem:[#allocation2 + $0x89] sm:$0xff]  ;;  %v7855_v55 = vld [vmem:[#allocation2 + $0x91] sm:$0xff]  ;;  %5971 = vmatprep.mubr.bf16.mxu1 %v2781_v30  ;;  %v2514_v61 = vmul.f32 %v7755_v43, %v7851_v22  ;;  %v2204_v1 = vmul.f32 %v7760_v42, %v7851_v22 }
 0x21e   : > { %v2472_v18 = vld [vmem:[#allocation2 + $0x6f] sm:$0xff]  ;;  %v2721_v31 = vmul.f32 %v7778_v23, %v7853_v52  ;;  %v7867_v29 = vmul.f32 %v7778_v23, %v7855_v55  ;;  %v2543_v35 = vadd.f32 %v2511_v37, %v2439_v25  ;;  %v2233_v53 = vadd.f32 %v2201_v2, %v2129_v56 }
 0x21f   : > { %v2679_v36 = vld [vmem:[#allocation2 + $0x69] sm:$0xff]  ;;  %v2680_v14 = vld [vmem:[#allocation2 + $0x71] sm:$0xff]  ;;  %v2512_v12 = vmul.f32 %v7755_v43, %v2472_v18  ;;  %v5933_v9 = vpop.f32.mrb[8].mxu0  ;;  %v2202_v15 = vmul.f32 %v7760_v42, %v2472_v18  ;;  %v1924_v7 = vmul.f32 %v7721_v16, %v2472_v18  ;;  %v2027_v51 = vadd.f32 %v1995_v26, %v1923_v20 }
 0x220   : > { %v2719_v4 = vmul.f32 %v7778_v23, %v2679_v36  ;;  %v2720_v17 = vmul.f32 %v7778_v23, %v2680_v14  ;;  %v2409_v59 = vmul.f32 %v7788_v27, %v2679_v36  ;;  %v2410_v13 = vmul.f32 %v7788_v27, %v2680_v14  ;;  %v1719_v5 = vpop.f32.mrb[9].mxu0 }
 0x221   : > { %v1728_v8 = vadd.f32 %v5933_v9, %v7716_v24  ;;  %v2544_v33 = vadd.f32 %v2512_v12, %v2440_v10  ;;  %v2647_v62 = vadd.f32 %v2615_v39, %v2543_v35  ;;  %v1720_v25 = vadd.f32 %v7716_v24, %v1719_v5  ;;  %v5934_v11 = vpop.f32.mrb[10].mxu0 }
 0x222   : > { %v2234_v49 = vadd.f32 %v2202_v15, %v2130_v60  ;;  %v2337_v63 = vadd.f32 %v2305_v40, %v2233_v53  ;;  %v1731_v56 = vadd.f32 %v5934_v11, %v7716_v24  ;;  %v1722_v50 = vpop.f32.mrb[11].mxu0  ;;  %v2028_v40 = vadd.f32 %v1996_v6, %v1924_v7 }
 0x223   : > { %v7880_v46 = vmax.f32 %v1728_v8, 0.0  ;;  %v2648_v30 = vadd.f32 %v2616_v48, %v2544_v33  ;;  %v2751_v41 = vadd.f32 %v2719_v4, %v2647_v62  ;;  %v7883_v37 = vmax.f32 %v1720_v25, 0.0  ;;  %v6239_v33 = vld [vmem:[#allocation9] sm:$0xff]   ;;  %v6240_v62 = vld [vmem:[#allocation9 + $0x8] sm:$0xff]  }
 0x224   : > { %v1723_v10 = vadd.f32 %v7716_v24, %v1722_v50  ;;  %v2338_v39 = vadd.f32 %v2306_v19, %v2234_v49  ;;  %v2441_v2 = vadd.f32 %v2409_v59, %v2337_v63  ;;  %v7887_v18 = vmax.f32 %v1731_v56, 0.0  ;;  %6003 = vmatprep.subr.bf16.mxu0 %v6239_v33 }
 0x225   : > { %1856 = vst [vmem:[#allocation2 + $0xc8] sm:$0xff] %v7880_v46  ;;  %v2752_v60 = vadd.f32 %v2720_v17, %v2648_v30  ;;  %v2099_v26 = vmul.f32 %v7737_v57, %v2679_v36  ;;  %1854 = vst [vmem:[#allocation2 + $0xa8] sm:$0xff] %v7883_v37  ;;  %v2100_v35 = vmul.f32 %v7737_v57, %v2680_v14  ;;  %6004 = vmatpush3.bf16.msra.mxu0 %v6239_v33 }
 0x226   : > { %v7891_v20 = vmax.f32 %v1723_v10, 0.0  ;;  %v2442_v48 = vadd.f32 %v2410_v13, %v2338_v39  ;;  %v2545_v12 = vadd.f32 %v2513_v47, %v2441_v2  ;;  %1857 = vst [vmem:[#allocation2 + $0xd0] sm:$0xff] %v7887_v18  ;;  %v2411_v9 = vmul.f32 %v7788_v27, %v7853_v52  ;;  %6005 = vmatprep.subr.bf16.mxu0 %v6240_v62 }
 0x227   : > { %v2782_v19 = vpack.c.bf16 %v2752_v60, %v2751_v41  ;;  %v2131_v4 = vadd.f32 %v2099_v26, %v2027_v51  ;;  %v2412_v6 = vmul.f32 %v7788_v27, %v7855_v55  ;;  %v2132_v15 = vadd.f32 %v2100_v35, %v2028_v40 }
 0x228   : > { %1855 = vst [vmem:[#allocation2 + $0xb0] sm:$0xff] %v7891_v20  ;;  %v2546_v36 = vadd.f32 %v2514_v61, %v2442_v48  ;;  %v2649_v17 = vadd.f32 %v7826_v0, %v2545_v12  ;;  %v2619_v47 = vmul.f32 %v7750_v44, %v7883_v37  ;;  %v7906_v53 = vmul.f32 %v7750_v44, %v7891_v20 }
 0x229   : > { %5972 = vmatmul.mubr.bf16.vlgmr.msra.gmra.mrb[0].mxu1 %v2782_v19  ;;  %v2235_v14 = vadd.f32 %v7844_v21, %v2131_v4  ;;  %v1926_v59 = vmul.f32 %v7721_v16, %v7851_v22  ;;  %v2029_v13 = vadd.f32 %v7840_v28, %v7847_v34  ;;  %v2236_v8 = vadd.f32 %v2204_v1, %v2132_v15 }
 0x22a   : > { %v2650_v61 = vadd.f32 %v7829_v45, %v2546_v36  ;;  %v2753_v0 = vadd.f32 %v2721_v31, %v2649_v17  ;;  %v2101_v5 = vmul.f32 %v7737_v57, %v7853_v52  ;;  %v2102_v25 = vmul.f32 %v7737_v57, %v7855_v55  ;;  %6006 = vmatpush3.bf16.msra.mxu0 %v6240_v62 }
 0x22b   : > { %v2339_v21 = vadd.f32 %v7834_v3, %v2235_v14  ;;  %v2030_v7 = vadd.f32 %v7859_v58, %v1926_v59  ;;  %v2309_v22 = vmul.f32 %v7745_v38, %v7883_v37  ;;  %v2340_v45 = vadd.f32 %v7837_v54, %v2236_v8 }
 0x22c   : > { %v2754_v28 = vadd.f32 %v7867_v29, %v2650_v61  ;;  %v2133_v34 = vadd.f32 %v2101_v5, %v2029_v13  ;;  %v2310_v52 = vmul.f32 %v7745_v38, %v7891_v20  ;;  %v7925_v31 = vld [vmem:[#allocation2 + $0xc7] sm:$0xff]  ;;  %v7931_v11 = vmul.f32 %v7750_v44, %v7880_v46  ;;  %v6241_v29 = vld [vmem:[#allocation9 + $0x10] sm:$0xff]   ;;  %v6242_v61 = vld [vmem:[#allocation9 + $0x18] sm:$0xff]  }
 0x22d   : > { %v2443_v3 = vadd.f32 %v2411_v9, %v2339_v21  ;;  %v2475_v1 = vld [vmem:[#allocation2 + $0xa7] sm:$0xff]  ;;  %v2134_v58 = vadd.f32 %v2102_v25, %v2030_v7  ;;  %v2517_v55 = vmul.f32 %v7755_v43, %v7925_v31  ;;  %v2444_v49 = vadd.f32 %v2412_v6, %v2340_v45  ;;  %v7935_v56 = vld [vmem:[#allocation2 + $0xcf] sm:$0xff]  ;;  %6007 = vmatprep.subr.bf16.mxu0 %v6241_v29 }
 0x22e   : > { %v2783_v54 = vpack.c.bf16 %v2754_v28, %v2753_v0  ;;  %v2515_v63 = vmul.f32 %v7755_v43, %v2475_v1  ;;  %v2205_v51 = vmul.f32 %v7760_v42, %v2475_v1  ;;  %v7937_v50 = vld [vmem:[#allocation2 + $0xc9] sm:$0xff]  ;;  %v7939_v30 = vld [vmem:[#allocation2 + $0xd1] sm:$0xff]  ;;  %v2518_v2 = vmul.f32 %v7755_v43, %v7935_v56  ;;  %6008 = vmatpush3.bf16.msra.mxu0 %v6241_v29 }
 0x22f   : > { %v2476_v41 = vld [vmem:[#allocation2 + $0xaf] sm:$0xff]  ;;  %v7945_v60 = vmul.f32 %v7750_v44, %v7887_v18  ;;  %v7949_v40 = vmul.f32 %v7778_v23, %v7937_v50  ;;  %v7953_v26 = vmul.f32 %v7778_v23, %v7939_v30  ;;  %v1927_v59 = vmul.f32 %v7721_v16, %v2475_v1  ;;  %6009 = vmatprep.subr.bf16.mxu0 %v6242_v61 }
 0x230   : > { %v2683_v10 = vld [vmem:[#allocation2 + $0xa9] sm:$0xff]  ;;  %v2684_v39 = vld [vmem:[#allocation2 + $0xb1] sm:$0xff]  ;;  %5975 = vmatprep.mubr.bf16.mxu1 %v2783_v54  ;;  %v2516_v48 = vmul.f32 %v7755_v43, %v2476_v41  ;;  %v2547_v12 = vadd.f32 %v2515_v63, %v2443_v3  ;;  %v2206_v4 = vmul.f32 %v7760_v42, %v2476_v41  ;;  %v2237_v9 = vadd.f32 %v2205_v51, %v2133_v34  ;;  %v5937_v17 = vpop.f32.mrb[12].mxu0 }
 0x231   : > { %v2723_v35 = vmul.f32 %v7778_v23, %v2683_v10  ;;  %v2724_v19 = vmul.f32 %v7778_v23, %v2684_v39  ;;  %v2413_v6 = vmul.f32 %v7788_v27, %v2683_v10  ;;  %v2414_v36 = vmul.f32 %v7788_v27, %v2684_v39  ;;  %v1735_v8 = vpop.f32.mrb[13].mxu0 }
 0x232   : > { %v2548_v15 = vadd.f32 %v2516_v48, %v2444_v49  ;;  %v2651_v14 = vadd.f32 %v2619_v47, %v2547_v12  ;;  %v1928_v13 = vmul.f32 %v7721_v16, %v2476_v41  ;;  %v1744_v0 = vadd.f32 %v5937_v17, %v7716_v24  ;;  %v5938_v62 = vpop.f32.mrb[14].mxu0  ;;  %6010 = vmatpush3.bf16.msra.mxu0 %v6242_v61 }
 0x233   : > { %v2238_v5 = vadd.f32 %v2206_v4, %v2134_v58  ;;  %v2341_v33 = vadd.f32 %v2309_v22, %v2237_v9  ;;  %v1999_v21 = vmul.f32 %v7727_v32, %v7883_v37  ;;  %v1736_v7 = vadd.f32 %v7716_v24, %v1735_v8  ;;  %v1738_v3 = vpop.f32.mrb[15].mxu0 }
 0x234   : > { %v2652_v25 = vadd.f32 %v7906_v53, %v2548_v15  ;;  %v2755_v47 = vadd.f32 %v2723_v35, %v2651_v14  ;;  %v2000_v28 = vmul.f32 %v7727_v32, %v7891_v20  ;;  %v7970_v45 = vmax.f32 %v1744_v0, 0.0 }
 0x235   : > { %v1747_v34 = vadd.f32 %v5938_v62, %v7716_v24  ;;  %v2342_v1 = vadd.f32 %v2310_v52, %v2238_v5  ;;  %v2445_v58 = vadd.f32 %v2413_v6, %v2341_v33  ;;  %v7973_v22 = vmax.f32 %v1736_v7, 0.0 }
 0x236   : > { %v1739_v37 = vadd.f32 %v7716_v24, %v1738_v3  ;;  %v2756_v54 = vadd.f32 %v2724_v19, %v2652_v25  ;;  %v2031_v49 = vadd.f32 %v1999_v21, %v1927_v59  ;;  %1860 = vst [vmem:[#allocation2 + $0x108] sm:$0xff] %v7970_v45  ;;  %v2032_v51 = vadd.f32 %v2000_v28, %v1928_v13 }
 0x237   : > { %v7977_v53 = vmax.f32 %v1747_v34, 0.0  ;;  %v2446_v20 = vadd.f32 %v2414_v36, %v2342_v1  ;;  %v2549_v63 = vadd.f32 %v2517_v55, %v2445_v58  ;;  %1858 = vst [vmem:[#allocation2 + $0xe8] sm:$0xff] %v7973_v22  ;;  %v2103_v29 = vmul.f32 %v7737_v57, %v2683_v10 }
 0x238   : > { %v7980_v41 = vmax.f32 %v1739_v37, 0.0  ;;  %v2784_v52 = vpack.c.bf16 %v2756_v54, %v2755_v47  ;;  %v2104_v48 = vmul.f32 %v7737_v57, %v2684_v39  ;;  %v2207_v19 = vmul.f32 %v7760_v42, %v7925_v31 }
 0x239   : > { %1861 = vst [vmem:[#allocation2 + $0x110] sm:$0xff] %v7977_v53  ;;  %v2550_v12 = vadd.f32 %v2518_v2, %v2446_v20  ;;  %v2653_v35 = vadd.f32 %v7931_v11, %v2549_v63  ;;  %v2208_v55 = vmul.f32 %v7760_v42, %v7935_v56  ;;  %v2135_v4 = vadd.f32 %v2103_v29, %v2031_v49 }
 0x23a   : > { %1859 = vst [vmem:[#allocation2 + $0xf0] sm:$0xff] %v7980_v41  ;;  %5976 = vmatmul.mubr.bf16.gmra.mrb[4].mxu1 %v2784_v52  ;;  %v2136_v9 = vadd.f32 %v2104_v48, %v2032_v51  ;;  %v2311_v10 = vmul.f32 %v7745_v38, %v7880_v46  ;;  %v2312_v39 = vmul.f32 %v7745_v38, %v7887_v18 }
 0x23b   : > { %v2654_v11 = vadd.f32 %v7945_v60, %v2550_v12  ;;  %v2757_v2 = vadd.f32 %v7949_v40, %v2653_v35  ;;  %v2415_v6 = vmul.f32 %v7788_v27, %v7937_v50  ;;  %v2416_v36 = vmul.f32 %v7788_v27, %v7939_v30 }
 0x23c   : > { %v2239_v17 = vadd.f32 %v2207_v19, %v2135_v4  ;;  %v2240_v15 = vadd.f32 %v2208_v55, %v2136_v9  ;;  %v2623_v14 = vmul.f32 %v7750_v44, %v7973_v22  ;;  %v2624_v59 = vmul.f32 %v7750_v44, %v7980_v41 }
 0x23d   : > { %v2758_v13 = vadd.f32 %v7953_v26, %v2654_v11  ;;  %v1929_v60 = vmul.f32 %v7721_v16, %v7925_v31  ;;  %v1930_v40 = vmul.f32 %v7721_v16, %v7935_v56  ;;  %v2001_v61 = vmul.f32 %v7727_v32, %v7880_v46  ;;  %v8016_v21 = vld [vmem:[#allocation2 + $0x107] sm:$0xff] }
 0x23e   : > { %v2343_v0 = vadd.f32 %v2311_v10, %v2239_v17  ;;  %v2344_v8 = vadd.f32 %v2312_v39, %v2240_v15  ;;  %v2002_v5 = vmul.f32 %v7727_v32, %v7887_v18  ;;  %v2105_v33 = vmul.f32 %v7737_v57, %v7937_v50  ;;  %v2479_v7 = vld [vmem:[#allocation2 + $0xe7] sm:$0xff] }
 0x23f   : > { %v2785_v26 = vpack.c.bf16 %v2758_v13, %v2757_v2  ;;  %v2033_v62 = vadd.f32 %v2001_v61, %v1929_v60  ;;  %v2106_v31 = vmul.f32 %v7737_v57, %v7939_v30  ;;  %v2313_v56 = vmul.f32 %v7745_v38, %v7973_v22 }
 0x240   : > { %v2447_v46 = vadd.f32 %v2415_v6, %v2343_v0  ;;  %v2448_v25 = vadd.f32 %v2416_v36, %v2344_v8  ;;  %v2519_v47 = vmul.f32 %v7755_v43, %v2479_v7  ;;  %v2034_v28 = vadd.f32 %v2002_v5, %v1930_v40  ;;  %v8031_v63 = vld [vmem:[#allocation2 + $0x10f] sm:$0xff] }
 0x241   : > { %5979 = vmatprep.mubr.bf16.mxu1 %v2785_v26  ;;  %v2480_v18 = vld [vmem:[#allocation2 + $0xef] sm:$0xff]  ;;  %v2137_v3 = vadd.f32 %v2105_v33, %v2033_v62  ;;  %v2209_v1 = vmul.f32 %v7760_v42, %v2479_v7  ;;  %v2314_v58 = vmul.f32 %v7745_v38, %v7980_v41  ;;  %v2521_v30 = vmul.f32 %v7755_v43, %v8016_v21 }
 0x242   : > { %v2687_v34 = vld [vmem:[#allocation2 + $0xe9] sm:$0xff]  ;;  %v2688_v50 = vld [vmem:[#allocation2 + $0xf1] sm:$0xff]  ;;  %v2520_v37 = vmul.f32 %v7755_v43, %v2480_v18  ;;  %v2551_v54 = vadd.f32 %v2519_v47, %v2447_v46  ;;  %v5941_v51 = vpop.f32.mrb[16].mxu0  ;;  %v2138_v52 = vadd.f32 %v2106_v31, %v2034_v28  ;;  %v2210_v29 = vmul.f32 %v7760_v42, %v2480_v18 }
 0x243   : > { %v2727_v49 = vmul.f32 %v7778_v23, %v2687_v34  ;;  %v2728_v20 = vmul.f32 %v7778_v23, %v2688_v50  ;;  %v2241_v48 = vadd.f32 %v2209_v1, %v2137_v3  ;;  %v2417_v12 = vmul.f32 %v7788_v27, %v2687_v34  ;;  %v1751_v19 = vpop.f32.mrb[17].mxu0  ;;  %v2689_v40 = vld [vmem:[#allocation2 + $0x109] sm:$0xff]  ;;  %v2690_v5 = vld [vmem:[#allocation2 + $0x111] sm:$0xff] }
 0x244   : > { %v1760_v35 = vadd.f32 %v5941_v51, %v7716_v24  ;;  %v2552_v55 = vadd.f32 %v2520_v37, %v2448_v25  ;;  %v2655_v4 = vadd.f32 %v2623_v14, %v2551_v54  ;;  %v2418_v9 = vmul.f32 %v7788_v27, %v2688_v50  ;;  %v5942_v39 = vpop.f32.mrb[18].mxu0 }
 0x245   : > { %v1752_v10 = vadd.f32 %v7716_v24, %v1751_v19  ;;  %v2242_v11 = vadd.f32 %v2210_v29, %v2138_v52  ;;  %v2345_v2 = vadd.f32 %v2313_v56, %v2241_v48  ;;  %v2522_v6 = vmul.f32 %v7755_v43, %v8031_v63  ;;  %v1754_v15 = vpop.f32.mrb[19].mxu0 }
 0x246   : > { %v1832_v36 = vmax.f32 %v1760_v35, 0.0  ;;  %v1763_v17 = vadd.f32 %v5942_v39, %v7716_v24  ;;  %v2656_v13 = vadd.f32 %v2624_v59, %v2552_v55  ;;  %v2759_v60 = vadd.f32 %v2727_v49, %v2655_v4 }
 0x247   : > { %v8041_v61 = vmax.f32 %v1752_v10, 0.0  ;;  %v1755_v14 = vadd.f32 %v7716_v24, %v1754_v15  ;;  %v2346_v0 = vadd.f32 %v2314_v58, %v2242_v11  ;;  %v2449_v8 = vadd.f32 %v2417_v12, %v2345_v2  ;;  %v1965_v12 = vld [vmem:[#allocation2 + $0x108] sm:$0xff] }
 0x248   : > { %1864 = vst [vmem:[#allocation2 + $0x148] sm:$0xff] %v1832_v36  ;;  %v8044_v33 = vmax.f32 %v1763_v17, 0.0  ;;  %v2760_v26 = vadd.f32 %v2728_v20, %v2656_v13  ;;  %v2625_v62 = vmul.f32 %v7750_v44, %v7970_v45  ;;  %v2626_v31 = vmul.f32 %v7750_v44, %v7977_v53 }
 0x249   : > { %1862 = vst [vmem:[#allocation2 + $0x128] sm:$0xff] %v8041_v61  ;;  %v8051_v59 = vmax.f32 %v1755_v14, 0.0  ;;  %v2450_v56 = vadd.f32 %v2418_v9, %v2346_v0  ;;  %v2553_v46 = vadd.f32 %v2521_v30, %v2449_v8  ;;  %v2729_v25 = vmul.f32 %v7778_v23, %v2689_v40  ;;  %v1966_v9 = vld [vmem:[#allocation2 + $0x110] sm:$0xff] }
 0x24a   : > { %1865 = vst [vmem:[#allocation2 + $0x150] sm:$0xff] %v8044_v33  ;;  %v2786_v47 = vpack.c.bf16 %v2760_v26, %v2759_v60  ;;  %v2730_v28 = vmul.f32 %v7778_v23, %v2690_v5  ;;  %v1931_v3 = vmul.f32 %v7721_v16, %v2479_v7  ;;  %v1932_v1 = vmul.f32 %v7721_v16, %v2480_v18 }
 0x24b   : > { %1863 = vst [vmem:[#allocation2 + $0x130] sm:$0xff] %v8051_v59  ;;  %v2554_v58 = vadd.f32 %v2522_v6, %v2450_v56  ;;  %v2657_v37 = vadd.f32 %v2625_v62, %v2553_v46  ;;  %v2003_v54 = vmul.f32 %v7727_v32, %v7973_v22  ;;  %v2004_v30 = vmul.f32 %v7727_v32, %v7980_v41 }
 0x24c   : > { %5980 = vmatmul.mubr.bf16.gmra.mrb[8].mxu1 %v2786_v47  ;;  %v2107_v49 = vmul.f32 %v7737_v57, %v2687_v34  ;;  %v2108_v20 = vmul.f32 %v7737_v57, %v2688_v50  ;;  %v2211_v7 = vmul.f32 %v7760_v42, %v8016_v21  ;;  %v2212_v18 = vmul.f32 %v7760_v42, %v8031_v63 }
 0x24d   : > { %v2658_v51 = vadd.f32 %v2626_v31, %v2554_v58  ;;  %v2761_v52 = vadd.f32 %v2729_v25, %v2657_v37  ;;  %v2035_v29 = vadd.f32 %v2003_v54, %v1931_v3  ;;  %v2036_v48 = vadd.f32 %v2004_v30, %v1932_v1 }
 0x24e   : > { %v2315_v22 = vmul.f32 %v7745_v38, %v7970_v45  ;;  %v2316_v41 = vmul.f32 %v7745_v38, %v7977_v53  ;;  %v2419_v34 = vmul.f32 %v7788_v27, %v2689_v40  ;;  %v2420_v50 = vmul.f32 %v7788_v27, %v2690_v5 }
 0x24f   : > { %v2762_v35 = vadd.f32 %v2730_v28, %v2658_v51  ;;  %v2139_v19 = vadd.f32 %v2107_v49, %v2035_v29  ;;  %v2140_v55 = vadd.f32 %v2108_v20, %v2036_v48  ;;  %v2627_v4 = vmul.f32 %v7750_v44, %v8041_v61 }
 0x250   : > { %v8077_v10 = vld [vmem:[#allocation2 + $0x127] sm:$0xff]  ;;  %v2628_v39 = vmul.f32 %v7750_v44, %v8051_v59  ;;  %v1933_v45 = vmul.f32 %v7721_v16, %v8016_v21  ;;  %v1934_v53 = vmul.f32 %v7721_v16, %v8031_v63  ;;  %v2005_v11 = vmul.f32 %v7727_v32, %v1965_v12 }
 0x251   : > { %v2787_v2 = vpack.c.bf16 %v2762_v35, %v2761_v52  ;;  %v2243_v6 = vadd.f32 %v2211_v7, %v2139_v19  ;;  %v2244_v36 = vadd.f32 %v2212_v18, %v2140_v55  ;;  %v2523_v17 = vmul.f32 %v7755_v43, %v8077_v10 }
 0x252   : > { %v8088_v15 = vld [vmem:[#allocation2 + $0x12f] sm:$0xff]  ;;  %v2006_v14 = vmul.f32 %v7727_v32, %v1966_v9  ;;  %v2037_v21 = vadd.f32 %v2005_v11, %v1933_v45  ;;  %v2109_v0 = vmul.f32 %v7737_v57, %v2689_v40  ;;  %v2110_v63 = vmul.f32 %v7737_v57, %v2690_v5 }
 0x253   : > { %v8090_v13 = vld [vmem:[#allocation2 + $0x129] sm:$0xff]  ;;  %v8092_v60 = vld [vmem:[#allocation2 + $0x131] sm:$0xff]  ;;  %5983 = vmatprep.mubr.bf16.mxu1 %v2787_v2  ;;  %v2347_v8 = vadd.f32 %v2315_v22, %v2243_v6  ;;  %v2348_v26 = vadd.f32 %v2316_v41, %v2244_v36  ;;  %v2524_v62 = vmul.f32 %v7755_v43, %v8088_v15  ;;  %v2213_v47 = vmul.f32 %v7760_v42, %v8077_v10  ;;  %v5945_v40 = vpop.f32.mrb[20].mxu0 }
 0x254   : > { %v2731_v31 = vmul.f32 %v7778_v23, %v8090_v13  ;;  %v2732_v56 = vmul.f32 %v7778_v23, %v8092_v60  ;;  %v2038_v46 = vadd.f32 %v2006_v14, %v1934_v53  ;;  %v2141_v25 = vadd.f32 %v2109_v0, %v2037_v21  ;;  %v1767_v37 = vpop.f32.mrb[21].mxu0  ;;  %v2486_v9 = vld [vmem:[#allocation2 + $0x14f] sm:$0xff] }
 0x255   : > { %v2451_v28 = vadd.f32 %v2419_v34, %v2347_v8  ;;  %v2452_v5 = vadd.f32 %v2420_v50, %v2348_v26  ;;  %v2214_v3 = vmul.f32 %v7760_v42, %v8088_v15  ;;  %v2317_v1 = vmul.f32 %v7745_v38, %v8041_v61  ;;  %v5946_v7 = vpop.f32.mrb[22].mxu0  ;;  %v2485_v34 = vld [vmem:[#allocation2 + $0x147] sm:$0xff] }
 0x256   : > { %v1776_v58 = vadd.f32 %v5945_v40, %v7716_v24  ;;  %v2142_v54 = vadd.f32 %v2110_v63, %v2038_v46  ;;  %v2245_v30 = vadd.f32 %v2213_v47, %v2141_v25  ;;  %v2318_v49 = vmul.f32 %v7745_v38, %v8051_v59  ;;  %v1770_v12 = vpop.f32.mrb[23].mxu0  ;;  %v2589_v6 = vld [vmem:[#allocation2 + $0x148] sm:$0xff] }
 0x257   : > { %v1768_v20 = vadd.f32 %v7716_v24, %v1767_v37  ;;  %v2555_v18 = vadd.f32 %v2523_v17, %v2451_v28  ;;  %v2556_v51 = vadd.f32 %v2524_v62, %v2452_v5  ;;  %v2421_v52 = vmul.f32 %v7788_v27, %v8090_v13  ;;  %v2693_v21 = vld [vmem:[#allocation2 + $0x149] sm:$0xff]  ;;  %v2694_v62 = vld [vmem:[#allocation2 + $0x151] sm:$0xff] }
 0x258   : > { %v1836_v29 = vmax.f32 %v1776_v58, 0.0  ;;  %v1779_v48 = vadd.f32 %v5946_v7, %v7716_v24  ;;  %v2246_v22 = vadd.f32 %v2214_v3, %v2142_v54  ;;  %v2349_v41 = vadd.f32 %v2317_v1, %v2245_v30 }
 0x259   : > { %v8116_v50 = vmax.f32 %v1768_v20, 0.0  ;;  %v1771_v35 = vadd.f32 %v7716_v24, %v1770_v12  ;;  %v2659_v19 = vadd.f32 %v2627_v4, %v2555_v18  ;;  %v2660_v55 = vadd.f32 %v2628_v39, %v2556_v51 }
 0x25a   : > { %1868 = vst [vmem:[#allocation2 + $0x188] sm:$0xff] %v1836_v29  ;;  %v8119_v45 = vmax.f32 %v1779_v48, 0.0  ;;  %v2350_v53 = vadd.f32 %v2318_v49, %v2246_v22  ;;  %v2422_v11 = vmul.f32 %v7788_v27, %v8092_v60  ;;  %v2453_v2 = vadd.f32 %v2421_v52, %v2349_v41  ;;  %v1970_v52 = vld [vmem:[#allocation2 + $0x150] sm:$0xff] }
 0x25b   : > { %1866 = vst [vmem:[#allocation2 + $0x168] sm:$0xff] %v8116_v50  ;;  %v8124_v36 = vmax.f32 %v1771_v35, 0.0  ;;  %v2763_v17 = vadd.f32 %v2731_v31, %v2659_v19  ;;  %v2764_v14 = vadd.f32 %v2732_v56, %v2660_v55  ;;  %v2525_v24 = vmul.f32 %v7755_v43, %v2485_v34 }
 0x25c   : > { %1869 = vst [vmem:[#allocation2 + $0x190] sm:$0xff] %v8119_v45  ;;  %v2454_v4 = vadd.f32 %v2422_v11, %v2350_v53  ;;  %v2526_v39 = vmul.f32 %v7755_v43, %v2486_v9  ;;  %v2629_v8 = vmul.f32 %v7750_v44, %v2589_v6  ;;  %v2630_v26 = vmul.f32 %v7750_v44, %v8044_v33 }
 0x25d   : > { %1867 = vst [vmem:[#allocation2 + $0x170] sm:$0xff] %v8124_v36  ;;  %v2788_v0 = vpack.c.bf16 %v2764_v14, %v2763_v17  ;;  %v2557_v63 = vadd.f32 %v2525_v24, %v2453_v2  ;;  %v1935_v56 = vmul.f32 %v7721_v16, %v8077_v10  ;;  %v1936_v46 = vmul.f32 %v7721_v16, %v8088_v15 }
 0x25e   : > { %v2558_v31 = vadd.f32 %v2526_v39, %v2454_v4  ;;  %v2007_v25 = vmul.f32 %v7727_v32, %v8041_v61  ;;  %v2733_v40 = vmul.f32 %v7778_v23, %v2693_v21  ;;  %v2008_v28 = vmul.f32 %v7727_v32, %v8051_v59 }
 0x25f   : > { %5984 = vmatmul.mubr.bf16.gmra.mrb[12].mxu1 %v2788_v0  ;;  %v2661_v47 = vadd.f32 %v2629_v8, %v2557_v63  ;;  %v2111_v5 = vmul.f32 %v7737_v57, %v8090_v13  ;;  %v2734_v1 = vmul.f32 %v7778_v23, %v2694_v62  ;;  %v2112_v15 = vmul.f32 %v7737_v57, %v8092_v60 }
 0x260   : > { %v2662_v3 = vadd.f32 %v2630_v26, %v2558_v31  ;;  %v2039_v10 = vadd.f32 %v2007_v25, %v1935_v56  ;;  %v2040_v37 = vadd.f32 %v2008_v28, %v1936_v46  ;;  %v2215_v61 = vmul.f32 %v7760_v42, %v2485_v34 }
 0x261   : > { %v2765_v58 = vadd.f32 %v2733_v40, %v2661_v47  ;;  %v2216_v54 = vmul.f32 %v7760_v42, %v2486_v9  ;;  %v2319_v59 = vmul.f32 %v7745_v38, %v2589_v6  ;;  %v2320_v13 = vmul.f32 %v7745_v38, %v8044_v33 }
 0x262   : > { %v2766_v30 = vadd.f32 %v2734_v1, %v2662_v3  ;;  %v2143_v49 = vadd.f32 %v2111_v5, %v2039_v10  ;;  %v8152_v20 = vld [vmem:[#allocation2 + $0x167] sm:$0xff]  ;;  %v2144_v7 = vadd.f32 %v2112_v15, %v2040_v37  ;;  %v2423_v18 = vmul.f32 %v7788_v27, %v2693_v21  ;;  %v8198_v1 = vld [vmem:[%s9872_s12 + $0x4] ss:$0 sm:$0xff] }
 0x263   : > { %v2424_v60 = vmul.f32 %v7788_v27, %v2694_v62  ;;  %v2527_v51 = vmul.f32 %v7755_v43, %v8152_v20  ;;  %v1937_v22 = vmul.f32 %v7721_v16, %v2485_v34  ;;  %v1938_v41 = vmul.f32 %v7721_v16, %v2486_v9  ;;  %v8171_v16 = vld [vmem:[#allocation12] ss:$0 sm:$0xff]  ;;  %v8202_v15 = vld [vmem:[#allocation2 + $0x187] sm:$0xff] }
 0x264   : > { %v2789_v29 = vpack.c.bf16 %v2766_v30, %v2765_v58  ;;  %v2247_v48 = vadd.f32 %v2215_v61, %v2143_v49  ;;  %v8158_v12 = vld [vmem:[#allocation2 + $0x16f] sm:$0xff]  ;;  %v2248_v38 = vadd.f32 %v2216_v54, %v2144_v7  ;;  %v2631_v35 = vmul.f32 %v7750_v44, %v8116_v50  ;;  %v8210_v37 = vld [vmem:[%s9872_s12 + $0x8] ss:$0 sm:$0xff]  ;;  %v8221_v7 = vld [vmem:[%s9872_s12 + $0x5] ss:$0 sm:$0xff] }
 0x265   : > { %v2528_v33 = vmul.f32 %v7755_v43, %v8158_v12  ;;  %v2632_v27 = vmul.f32 %v7750_v44, %v8124_v36  ;;  %v5949_v19 = vpop.f32.mrb[24].mxu0  ;;  %v2009_v53 = vmul.f32 %v7727_v32, %v2589_v6  ;;  %v2010_v11 = vmul.f32 %v7727_v32, %v1970_v52  ;;  %v2695_v4 = vld [vmem:[#allocation2 + $0x169] sm:$0xff]  ;;  %v2696_v56 = vld [vmem:[#allocation2 + $0x171] sm:$0xff] }
 0x266   : > { %5987 = vmatprep.mubr.bf16.mxu1 %v2789_v29  ;;  %v2351_v55 = vadd.f32 %v2319_v59, %v2247_v48  ;;  %v2113_v34 = vmul.f32 %v7737_v57, %v2693_v21  ;;  %v8174_v9 = vadd.f32 %v8171_v16, %v5949_v19  ;;  %v1783_v43 = vpop.f32.mrb[25].mxu0  ;;  %v2352_v2 = vadd.f32 %v2320_v13, %v2248_v38  ;;  %v8204_v58 = vld [vmem:[#allocation2 + $0x18f] sm:$0xff]  ;;  %v8228_v29 = vld [vmem:[%s9872_s12 + $0x6] ss:$0 sm:$0xff] }
 0x267   : > { %v2114_v17 = vmul.f32 %v7737_v57, %v2694_v62  ;;  %v2217_v44 = vmul.f32 %v7760_v42, %v8152_v20  ;;  %v1784_v14 = vadd.f32 %v8171_v16, %v1783_v43  ;;  %v5950_v24 = vpop.f32.mrb[26].mxu0  ;;  %v2041_v32 = vadd.f32 %v2009_v53, %v1937_v22  ;;  %v8215_v49 = vld [vmem:[#allocation2 + $0x188] sm:$0xff]  ;;  %v8245_v19 = vld [vmem:[#allocation2 + $0x191] sm:$0xff] }
 0x268   : > { %v2455_v6 = vadd.f32 %v2423_v18, %v2351_v55  ;;  %v2042_v39 = vadd.f32 %v2010_v11, %v1938_v41  ;;  %v1840_v21 = vmax.f32 %v8174_v9, 0.0  ;;  %v1795_v0 = vadd.f32 %v8171_v16, %v5950_v24  ;;  %v1786_v63 = vpop.f32.mrb[27].mxu0  ;;  %v8234_v41 = vld [vmem:[#allocation2 + $0x189] sm:$0xff]  ;;  %v8250_v55 = vld [vmem:[%s9872_s12] ss:$0 sm:$0xff] }
 0x269   : > { %v2456_v8 = vadd.f32 %v2424_v60, %v2352_v2  ;;  %v2218_v26 = vmul.f32 %v7760_v42, %v8158_v12  ;;  %v8184_v57 = vmax.f32 %v1784_v14, 0.0  ;;  %v1787_v62 = vadd.f32 %v8171_v16, %v1786_v63  ;;  %v8259_v2 = vld [vmem:[%s9872_s12 + $0x1] ss:$0 sm:$0xff]  ;;  %v8270_v24 = vld [vmem:[%s9872_s12 + $0x2] ss:$0 sm:$0xff] }
 0x26a   : > { %v2559_v31 = vadd.f32 %v2527_v51, %v2455_v6  ;;  %v2145_v46 = vadd.f32 %v2113_v34, %v2041_v32  ;;  %1872 = vst [vmem:[#allocation2 + $0x1c8] sm:$0xff] %v1840_v21  ;;  %v8189_v25 = vmax.f32 %v1795_v0, 0.0  ;;  %v2735_v40 = vmul.f32 %v7778_v23, %v2695_v4 }
 0x26b   : > { %v2560_v47 = vadd.f32 %v2528_v33, %v2456_v8  ;;  %v2146_v28 = vadd.f32 %v2114_v17, %v2042_v39  ;;  %1870 = vst [vmem:[#allocation2 + $0x1a8] sm:$0xff] %v8184_v57  ;;  %v8193_v5 = vmax.f32 %v1787_v62, 0.0  ;;  %v2321_v10 = vmul.f32 %v8198_v1, %v8116_v50  ;;  %v8239_v33 = vld [vmem:[%s9872_s12 + $0x7] ss:$0 sm:$0xff] }
 0x26c   : > { %v2663_v42 = vadd.f32 %v2631_v35, %v2559_v31  ;;  %v2249_v3 = vadd.f32 %v2217_v44, %v2145_v46  ;;  %1873 = vst [vmem:[#allocation2 + $0x1d0] sm:$0xff] %v8189_v25  ;;  %v2736_v61 = vmul.f32 %v8210_v37, %v2696_v56  ;;  %v2322_v30 = vmul.f32 %v8198_v1, %v8124_v36 }
 0x26d   : > { %v2664_v23 = vadd.f32 %v2632_v27, %v2560_v47  ;;  %v2250_v54 = vadd.f32 %v2218_v26, %v2146_v28  ;;  %1871 = vst [vmem:[#allocation2 + $0x1b0] sm:$0xff] %v8193_v5  ;;  %v2425_v18 = vmul.f32 %v8221_v7, %v2695_v4  ;;  %v2426_v60 = vmul.f32 %v8221_v7, %v2696_v56 }
 0x26e   : > { %v2767_v59 = vadd.f32 %v2735_v40, %v2663_v42  ;;  %v2353_v13 = vadd.f32 %v2321_v10, %v2249_v3  ;;  %v2529_v48 = vmul.f32 %v8228_v29, %v8202_v15  ;;  %v2530_v22 = vmul.f32 %v8228_v29, %v8204_v58 }
 0x26f   : > { %v2768_v51 = vadd.f32 %v2736_v61, %v2664_v23  ;;  %v2354_v52 = vadd.f32 %v2322_v30, %v2250_v54  ;;  %v2633_v35 = vmul.f32 %v8239_v33, %v8215_v49  ;;  %v2634_v27 = vmul.f32 %v8239_v33, %v8119_v45  ;;  %v1974_v30 = vld [vmem:[#allocation2 + $0x190] sm:$0xff] }
 0x270   : > { %v2457_v38 = vadd.f32 %v2425_v18, %v2353_v13  ;;  %v1939_v53 = vmul.f32 %v8250_v55, %v8152_v20  ;;  %v1940_v43 = vmul.f32 %v8250_v55, %v8158_v12  ;;  %v2011_v17 = vmul.f32 %v8259_v2, %v8116_v50 }
 0x271   : > { %v2790_v11 = vpack.c.bf16 %v2768_v51, %v2767_v59  ;;  %v2458_v34 = vadd.f32 %v2426_v60, %v2354_v52  ;;  %v2737_v14 = vmul.f32 %v8210_v37, %v8234_v41  ;;  %v2012_v20 = vmul.f32 %v8259_v2, %v8124_v36  ;;  %v8279_v36 = vld [vmem:[%s9872_s12 + $0x3] ss:$0 sm:$0xff] }
 0x272   : > { %v2561_v44 = vadd.f32 %v2529_v48, %v2457_v38  ;;  %v2115_v12 = vmul.f32 %v8270_v24, %v2695_v4  ;;  %v2738_v32 = vmul.f32 %v8210_v37, %v8245_v19  ;;  %v2043_v50 = vadd.f32 %v2011_v17, %v1939_v53  ;;  %v8285_v26 = vld [vmem:[#allocation2 + $0x1a7] sm:$0xff] }
 0x273   : > { %5988 = vmatmul.mubr.bf16.gmra.mrb[16].mxu1 %v2790_v11  ;;  %v2562_v6 = vadd.f32 %v2530_v22, %v2458_v34  ;;  %v2116_v39 = vmul.f32 %v8270_v24, %v2696_v56  ;;  %v2044_v63 = vadd.f32 %v2012_v20, %v1940_v43  ;;  %v2219_v8 = vmul.f32 %v8279_v36, %v8202_v15 }
 0x274   : > { %v2665_v0 = vadd.f32 %v2633_v35, %v2561_v44  ;;  %v2220_v4 = vmul.f32 %v8279_v36, %v8204_v58  ;;  %v2147_v31 = vadd.f32 %v2115_v12, %v2043_v50  ;;  %v2323_v56 = vmul.f32 %v8198_v1, %v8215_v49  ;;  %v8291_v47 = vld [vmem:[#allocation2 + $0x1af] sm:$0xff] }
 0x275   : > { %v2666_v62 = vadd.f32 %v2634_v27, %v2562_v6  ;;  %v2324_v46 = vmul.f32 %v8198_v1, %v8119_v45  ;;  %v2148_v28 = vadd.f32 %v2116_v39, %v2044_v63  ;;  %v2427_v42 = vmul.f32 %v8221_v7, %v8234_v41  ;;  %v2699_v6 = vld [vmem:[#allocation2 + $0x1a9] sm:$0xff]  ;;  %v2700_v39 = vld [vmem:[#allocation2 + $0x1b1] sm:$0xff] }
 0x276   : > { %v2769_v40 = vadd.f32 %v2737_v14, %v2665_v0  ;;  %v2428_v3 = vmul.f32 %v8221_v7, %v8245_v19  ;;  %v2251_v23 = vadd.f32 %v2219_v8, %v2147_v31  ;;  %v2531_v61 = vmul.f32 %v8228_v29, %v8285_v26  ;;  %v5953_v45 = vpop.f32.mrb[28].mxu0 }
 0x277   : > { %v2770_v10 = vadd.f32 %v2738_v32, %v2666_v62  ;;  %v2532_v54 = vmul.f32 %v8228_v29, %v8291_v47  ;;  %v2252_v59 = vadd.f32 %v2220_v4, %v2148_v28  ;;  %v2635_v13 = vmul.f32 %v8239_v33, %v8184_v57  ;;  %v1799_v52 = vpop.f32.mrb[29].mxu0 }
 0x278   : > { %v2636_v18 = vmul.f32 %v8239_v33, %v8193_v5  ;;  %v1941_v60 = vmul.f32 %v8250_v55, %v8202_v15  ;;  %v8308_v51 = vadd.f32 %v8171_v16, %v5953_v45  ;;  %v2355_v22 = vadd.f32 %v2323_v56, %v2251_v23  ;;  %v5954_v27 = vpop.f32.mrb[30].mxu0 }
 0x279   : > { %v2791_v48 = vpack.c.bf16 %v2770_v10, %v2769_v40  ;;  %v1942_v38 = vmul.f32 %v8250_v55, %v8204_v58  ;;  %v1800_v35 = vadd.f32 %v8171_v16, %v1799_v52  ;;  %v2356_v53 = vadd.f32 %v2324_v46, %v2252_v59  ;;  %v1802_v17 = vpop.f32.mrb[31].mxu0  ;;  %v2494_v10 = vld [vmem:[#allocation2 + $0x1cf] sm:$0xff] }
 0x27a   : > { %v2013_v11 = vmul.f32 %v8259_v2, %v8215_v49  ;;  %v2014_v34 = vmul.f32 %v8259_v2, %v1974_v30  ;;  %v1844_v15 = vmax.f32 %v8308_v51, 0.0  ;;  %v1811_v43 = vadd.f32 %v8171_v16, %v5954_v27 }
 0x27b   : > { %5991 = vmatprep.mubr.bf16.mxu1 %v2791_v48  ;;  %v2459_v44 = vadd.f32 %v2427_v42, %v2355_v22  ;;  %v2117_v14 = vmul.f32 %v8270_v24, %v8234_v41  ;;  %v8320_v58 = vmax.f32 %v1800_v35, 0.0  ;;  %v1803_v20 = vadd.f32 %v8171_v16, %v1802_v17  ;;  %v2701_v48 = vld [vmem:[#allocation2 + $0x1c9] sm:$0xff] }
 0x27c   : > { %v2460_v12 = vadd.f32 %v2428_v3, %v2356_v53  ;;  %v2045_v32 = vadd.f32 %v2013_v11, %v1941_v60  ;;  %1876 = vst [vmem:[#allocation2 + $0x208] sm:$0xff] %v1844_v15  ;;  %v8325_v49 = vmax.f32 %v1811_v43, 0.0  ;;  %v2046_v0 = vadd.f32 %v2014_v34, %v1942_v38  ;;  %v2493_v3 = vld [vmem:[#allocation2 + $0x1c7] sm:$0xff]  ;;  %v2702_v34 = vld [vmem:[#allocation2 + $0x1d1] sm:$0xff] }
 0x27d   : > { %v2563_v50 = vadd.f32 %v2531_v61, %v2459_v44  ;;  %v2118_v63 = vmul.f32 %v8270_v24, %v8245_v19  ;;  %1874 = vst [vmem:[#allocation2 + $0x1e8] sm:$0xff] %v8320_v58  ;;  %v8330_v41 = vmax.f32 %v1803_v20, 0.0  ;;  %v2221_v4 = vmul.f32 %v8279_v36, %v8285_v26  ;;  %v6243_v53 = vld [vmem:[#allocation9 + $0x20] sm:$0xff]  }
 0x27e   : > { %v2564_v8 = vadd.f32 %v2532_v54, %v2460_v12  ;;  %v2149_v16 = vadd.f32 %v2117_v14, %v2045_v32  ;;  %1877 = vst [vmem:[#allocation2 + $0x210] sm:$0xff] %v8325_v49  ;;  %v2739_v31 = vmul.f32 %v8210_v37, %v2699_v6  ;;  %v2222_v46 = vmul.f32 %v8279_v36, %v8291_v47  ;;  %v2287_v12 = vld [vmem:[#allocation2 + $0x1c8] sm:$0xff] }
 0x27f   : > { %v2667_v62 = vadd.f32 %v2635_v13, %v2563_v50  ;;  %v2150_v56 = vadd.f32 %v2118_v63, %v2046_v0  ;;  %1875 = vst [vmem:[#allocation2 + $0x1f0] sm:$0xff] %v8330_v41  ;;  %v2740_v40 = vmul.f32 %v8210_v37, %v2700_v39  ;;  %v2325_v42 = vmul.f32 %v8198_v1, %v8184_v57 }
 0x280   : > { %v2668_v19 = vadd.f32 %v2636_v18, %v2564_v8  ;;  %v2253_v28 = vadd.f32 %v2221_v4, %v2149_v16  ;;  %v2326_v61 = vmul.f32 %v8198_v1, %v8193_v5  ;;  %v2429_v59 = vmul.f32 %v8221_v7, %v2699_v6  ;;  %6011 = vmatprep.subr.bf16.mxu0 %v6243_v53 }
 0x281   : > { %v2254_v23 = vadd.f32 %v2222_v46, %v2150_v56  ;;  %v2771_v54 = vadd.f32 %v2739_v31, %v2667_v62  ;;  %v2430_v18 = vmul.f32 %v8221_v7, %v2700_v39  ;;  %v2533_v60 = vmul.f32 %v8228_v29, %v2493_v3  ;;  %6012 = vmatpush3.bf16.msra.mxu0 %v6243_v53 }
 0x282   : > { %v2772_v30 = vadd.f32 %v2740_v40, %v2668_v19  ;;  %v2357_v45 = vadd.f32 %v2325_v42, %v2253_v28  ;;  %v2534_v52 = vmul.f32 %v8228_v29, %v2494_v10  ;;  %v1943_v35 = vmul.f32 %v8250_v55, %v8285_v26 }
 0x283   : > { %v2358_v13 = vadd.f32 %v2326_v61, %v2254_v23  ;;  %v1944_v27 = vmul.f32 %v8250_v55, %v8291_v47  ;;  %v2015_v43 = vmul.f32 %v8259_v2, %v8184_v57  ;;  %v2016_v17 = vmul.f32 %v8259_v2, %v8193_v5 }
 0x284   : > { %v2792_v22 = vpack.c.bf16 %v2772_v30, %v2771_v54  ;;  %v2461_v38 = vadd.f32 %v2429_v59, %v2357_v45  ;;  %v2119_v44 = vmul.f32 %v8270_v24, %v2699_v6  ;;  %v2637_v26 = vmul.f32 %v8239_v33, %v1840_v21  ;;  %v2495_v5 = vld [vmem:[#allocation2 + $0x1e7] sm:$0xff] }
 0x285   : > { %v2462_v11 = vadd.f32 %v2430_v18, %v2358_v13  ;;  %v2638_v47 = vmul.f32 %v8239_v33, %v8189_v25  ;;  %v2741_v20 = vmul.f32 %v8210_v37, %v2701_v48  ;;  %v2047_v50 = vadd.f32 %v2015_v43, %v1943_v35 }
 0x286   : > { %5992 = vmatmul.mubr.bf16.gmra.mrb[20].mxu1 %v2792_v22  ;;  %v2565_v14 = vadd.f32 %v2533_v60, %v2461_v38  ;;  %v2048_v57 = vadd.f32 %v2016_v17, %v1944_v27  ;;  %v2120_v0 = vmul.f32 %v8270_v24, %v2700_v39  ;;  %v2742_v63 = vmul.f32 %v8210_v37, %v2702_v34  ;;  %v2496_v31 = vld [vmem:[#allocation2 + $0x1ef] sm:$0xff] }
 0x287   : > { %v2566_v32 = vadd.f32 %v2534_v52, %v2462_v11  ;;  %v2223_v9 = vmul.f32 %v8279_v36, %v2493_v3  ;;  %v2224_v21 = vmul.f32 %v8279_v36, %v2494_v10  ;;  %v2151_v16 = vadd.f32 %v2119_v44, %v2047_v50  ;;  %v2703_v52 = vld [vmem:[#allocation2 + $0x1e9] sm:$0xff] }
 0x288   : > { %v2669_v6 = vadd.f32 %v2637_v26, %v2565_v14  ;;  %v2152_v4 = vadd.f32 %v2120_v0, %v2048_v57  ;;  %v2327_v62 = vmul.f32 %v8198_v1, %v2287_v12  ;;  %v2328_v56 = vmul.f32 %v8198_v1, %v8189_v25 }
 0x289   : > { %v2670_v8 = vadd.f32 %v2638_v47, %v2566_v32  ;;  %v2431_v39 = vmul.f32 %v8221_v7, %v2701_v48  ;;  %v2432_v46 = vmul.f32 %v8221_v7, %v2702_v34  ;;  %v2535_v19 = vmul.f32 %v8228_v29, %v2495_v5  ;;  %v2497_v47 = vld [vmem:[#allocation2 + $0x207] sm:$0xff] }
 0x28a   : > { %v2773_v40 = vadd.f32 %v2741_v20, %v2669_v6  ;;  %v2255_v42 = vadd.f32 %v2223_v9, %v2151_v16  ;;  %v2256_v23 = vadd.f32 %v2224_v21, %v2152_v4  ;;  %v2536_v61 = vmul.f32 %v8228_v29, %v2496_v31 }
 0x28b   : > { %v2774_v28 = vadd.f32 %v2742_v63, %v2670_v8  ;;  %v1945_v54 = vmul.f32 %v8250_v55, %v2493_v3  ;;  %v1946_v30 = vmul.f32 %v8250_v55, %v2494_v10  ;;  %v2017_v45 = vmul.f32 %v8259_v2, %v2287_v12  ;;  %v2704_v10 = vld [vmem:[#allocation2 + $0x1f1] sm:$0xff] }
 0x28c   : > { %v2359_v13 = vadd.f32 %v2327_v62, %v2255_v42  ;;  %v2360_v18 = vadd.f32 %v2328_v56, %v2256_v23  ;;  %v2018_v60 = vmul.f32 %v8259_v2, %v8189_v25  ;;  %v2121_v38 = vmul.f32 %v8270_v24, %v2701_v48  ;;  %v2498_v8 = vld [vmem:[#allocation2 + $0x20f] sm:$0xff] }
 0x28d   : > { %v2793_v59 = vpack.c.bf16 %v2774_v28, %v2773_v40  ;;  %v2049_v22 = vadd.f32 %v2017_v45, %v1945_v54  ;;  %v2122_v35 = vmul.f32 %v8270_v24, %v2702_v34  ;;  %v2225_v27 = vmul.f32 %v8279_v36, %v2495_v5  ;;  %v2706_v45 = vld [vmem:[#allocation2 + $0x211] sm:$0xff] }
 0x28e   : > { %v2463_v3 = vadd.f32 %v2431_v39, %v2359_v13  ;;  %v2464_v53 = vadd.f32 %v2432_v46, %v2360_v18  ;;  %v2050_v11 = vadd.f32 %v2018_v60, %v1946_v30  ;;  %v2226_v43 = vmul.f32 %v8279_v36, %v2496_v31  ;;  %v2291_v60 = vld [vmem:[#allocation2 + $0x208] sm:$0xff] }
 0x28f   : > { %5995 = vmatprep.mubr.bf16.mxu1 %v2793_v59  ;;  %v2639_v17 = vmul.f32 %v8239_v33, %v8320_v58  ;;  %v2640_v25 = vmul.f32 %v8239_v33, %v8330_v41  ;;  %v2153_v44 = vadd.f32 %v2121_v38, %v2049_v22  ;;  %v2743_v34 = vmul.f32 %v8210_v37, %v2703_v52 }
 0x290   : > { %v2567_v14 = vadd.f32 %v2535_v19, %v2463_v3  ;;  %v2568_v48 = vadd.f32 %v2536_v61, %v2464_v53  ;;  %v2154_v26 = vadd.f32 %v2122_v35, %v2050_v11  ;;  %v2744_v20 = vmul.f32 %v8210_v37, %v2704_v10  ;;  %v6244_v19 = vld [vmem:[#allocation9 + $0x28] sm:$0xff]  }
 0x291   : > { %v2257_v12 = vadd.f32 %v2225_v27, %v2153_v44  ;;  %v2329_v32 = vmul.f32 %v8198_v1, %v8320_v58  ;;  %v2330_v50 = vmul.f32 %v8198_v1, %v8330_v41  ;;  %v2433_v63 = vmul.f32 %v8221_v7, %v2703_v52  ;;  %6013 = vmatprep.subr.bf16.mxu0 %v6244_v19  ;;  %v2500_v3 = vld [vmem:[#allocation2 + $0x22f] sm:$0xff] }
 0x292   : > { %v2671_v57 = vadd.f32 %v2639_v17, %v2567_v14  ;;  %v2672_v0 = vadd.f32 %v2640_v25, %v2568_v48  ;;  %v2258_v6 = vadd.f32 %v2226_v43, %v2154_v26  ;;  %v2434_v21 = vmul.f32 %v8221_v7, %v2704_v10  ;;  %6014 = vmatpush3.bf16.msra.mxu0 %v6244_v19 }
 0x293   : > { %v2361_v9 = vadd.f32 %v2329_v32, %v2257_v12  ;;  %v2537_v16 = vmul.f32 %v8228_v29, %v2497_v47  ;;  %v1947_v4 = vmul.f32 %v8250_v55, %v2495_v5  ;;  %v1948_v46 = vmul.f32 %v8250_v55, %v2496_v31  ;;  %v2705_v31 = vld [vmem:[#allocation2 + $0x209] sm:$0xff]  ;;  %v2708_v12 = vld [vmem:[#allocation2 + $0x231] sm:$0xff] }
 0x294   : > { %v2775_v62 = vadd.f32 %v2743_v34, %v2671_v57  ;;  %v2776_v56 = vadd.f32 %v2744_v20, %v2672_v0  ;;  %v2362_v39 = vadd.f32 %v2330_v50, %v2258_v6  ;;  %v2019_v28 = vmul.f32 %v8259_v2, %v8320_v58  ;;  %v2707_v20 = vld [vmem:[#allocation2 + $0x229] sm:$0xff]  ;;  %v6279_v57 = vld [vmem:[#allocation2] sm:$0xff] }
 0x295   : > { %v2465_v40 = vadd.f32 %v2433_v63, %v2361_v9  ;;  %v2020_v42 = vmul.f32 %v8259_v2, %v8330_v41  ;;  %v2123_v23 = vmul.f32 %v8270_v24, %v2703_v52  ;;  %v2538_v30 = vmul.f32 %v8228_v29, %v2498_v8 }
 0x296   : > { %v2794_v61 = vpack.c.bf16 %v2776_v56, %v2775_v62  ;;  %v2466_v54 = vadd.f32 %v2434_v21, %v2362_v39  ;;  %v2641_v5 = vmul.f32 %v8239_v33, %v1844_v15  ;;  %v2051_v59 = vadd.f32 %v2019_v28, %v1947_v4  ;;  %v6246_v4 = vld [vmem:[#allocation9 + $0x38] sm:$0xff]   ;;  %v3093_v62 = vld [vmem:[#allocation2 + $0x7] sm:$0xff]  ;;  %v3094_v39 = vld [vmem:[#allocation2 + $0xf] sm:$0xff] }
 0x297   : > { %v2569_v55 = vadd.f32 %v2537_v16, %v2465_v40  ;;  %v2052_v13 = vadd.f32 %v2020_v42, %v1948_v46  ;;  %v2124_v58 = vmul.f32 %v8270_v24, %v2704_v10  ;;  %v2642_v41 = vmul.f32 %v8239_v33, %v8325_v49  ;;  %v2499_v24 = vld [vmem:[#allocation2 + $0x227] sm:$0xff] }
 0x298   : > { %5996 = vmatmul.mubr.bf16.gmra.mrb[24].mxu1 %v2794_v61  ;;  %v2570_v2 = vadd.f32 %v2538_v30, %v2466_v54  ;;  %v2227_v18 = vmul.f32 %v8279_v36, %v2497_v47  ;;  %v2155_v52 = vadd.f32 %v2123_v23, %v2051_v59  ;;  %v2228_v22 = vmul.f32 %v8279_v36, %v2498_v8  ;;  %v8440_v23 = vld [vmem:[%s9874_s17 + $0x1] ss:$0 sm:$0xff]  ;;  %v3268_v59 = vld [vmem:[#allocation2 + $0x9] sm:$0xff] }
 0x299   : > { %v2673_v51 = vadd.f32 %v2641_v5, %v2569_v55  ;;  %v2156_v15 = vadd.f32 %v2124_v58, %v2052_v13  ;;  %v2745_v35 = vmul.f32 %v8210_v37, %v2705_v31  ;;  %v2746_v27 = vmul.f32 %v8210_v37, %v2706_v45  ;;  %v3269_v13 = vld [vmem:[#allocation2 + $0x11] sm:$0xff]  ;;  %v8449_v58 = vld [vmem:[%s9874_s17 + $0x2] ss:$0 sm:$0xff] }
 0x29a   : > { %v2674_v38 = vadd.f32 %v2642_v41, %v2570_v2  ;;  %v2259_v53 = vadd.f32 %v2227_v18, %v2155_v52  ;;  %v2331_v11 = vmul.f32 %v8198_v1, %v2291_v60  ;;  %v2332_v43 = vmul.f32 %v8198_v1, %v8325_v49 }
 0x29b   : > { %v2260_v10 = vadd.f32 %v2228_v22, %v2156_v15  ;;  %v2777_v17 = vadd.f32 %v2745_v35, %v2673_v51  ;;  %v2435_v44 = vmul.f32 %v8221_v7, %v2705_v31  ;;  %v2436_v36 = vmul.f32 %v8221_v7, %v2706_v45  ;;  %v8456_v15 = vld [vmem:[%s9874_s17 + $0x4] ss:$0 sm:$0xff]  ;;  %v8461_v22 = vld [vmem:[%s9874_s17 + $0x7] ss:$0 sm:$0xff] }
 0x29c   : > { %v2778_v25 = vadd.f32 %v2746_v27, %v2674_v38  ;;  %v2363_v14 = vadd.f32 %v2331_v11, %v2259_v53  ;;  %v2539_v34 = vmul.f32 %v8228_v29, %v2499_v24  ;;  %v2540_v26 = vmul.f32 %v8228_v29, %v2500_v3  ;;  %v6245_v29 = vld [vmem:[#allocation9 + $0x30] sm:$0xff]   ;;  %v8466_v27 = vld [vmem:[%s9874_s17 + $0x3] ss:$0 sm:$0xff]  ;;  %v8471_v24 = vld [vmem:[%s9874_s17 + $0x6] ss:$0 sm:$0xff] }
 0x29d   : > { %v2364_v48 = vadd.f32 %v2332_v43, %v2260_v10  ;;  %v2643_v1 = vmul.f32 %v6279_v57, %v8239_v33  ;;  %v2747_v6 = vmul.f32 %v8210_v37, %v2707_v20  ;;  %v2748_v7 = vmul.f32 %v8210_v37, %v2708_v12  ;;  %6015 = vmatprep.subr.bf16.mxu0 %v6245_v29  ;;  %v8427_v33 = vld [vmem:[%s9873_s23] ss:$0 sm:$0xff] }
 0x29e   : > { %v2795_v47 = vpack.c.bf16 %v2778_v25, %v2777_v17  ;;  %v2467_v32 = vadd.f32 %v2435_v44, %v2363_v14  ;;  %6016 = vmatpush3.bf16.msra.mxu0 %v6245_v29  ;;  %v8432_v37 = vld [vmem:[%s9874_s17] ss:$0 sm:$0xff]  ;;  %v3204_v55 = vmul.f32 %v6279_v57, %v8440_v23  ;;  %v3308_v51 = vmul.f32 %v8449_v58, %v3268_v59  ;;  %v8486_v17 = vld [vmem:[%s9874_s17 + $0x8] ss:$0 sm:$0xff] }
 0x29f   : > { %v2468_v50 = vadd.f32 %v2436_v36, %v2364_v48  ;;  %6017 = vmatprep.subr.bf16.mxu0 %v6246_v4  ;;  %v3132_v42 = vmul.f32 %v8432_v37, %v3093_v62  ;;  %v3133_v5 = vmul.f32 %v8432_v37, %v3094_v39  ;;  %v3309_v52 = vmul.f32 %v8449_v58, %v3269_v13  ;;  %v8494_v48 = vld [vmem:[%s9874_s17 + $0x5] ss:$0 sm:$0xff] }
 0x2a0   : > { %5999 = vmatprep.mubr.bf16.mxu1 %v2795_v47  ;;  %v2571_v49 = vadd.f32 %v2539_v34, %v2467_v32 }
 0x2a1   : > { %v2572_v0 = vadd.f32 %v2540_v26, %v2468_v50  ;;  %v3236_v18 = vadd.f32 %v3204_v55, %v3132_v42  ;;  %v3237_v60 = vadd.f32 %v3204_v55, %v3133_v5 }
 0x2a2   : > { %v2675_v63 = vadd.f32 %v2643_v1, %v2571_v49  ;;  %6018 = vmatpush3.bf16.msra.mxu0 %v6246_v4 }
 0x2a3   : > { %v2676_v9 = vadd.f32 %v2643_v1, %v2572_v0  ;;  %v3340_v38 = vadd.f32 %v3308_v51, %v3236_v18  ;;  %v3341_v35 = vadd.f32 %v3309_v52, %v3237_v60 }
 0x2a4   : > { %v2779_v21 = vadd.f32 %v2747_v6, %v2675_v63 }
 0x2a5   : > { %v2780_v8 = vadd.f32 %v2748_v7, %v2676_v9 }
 0x2a7   : > { %v2796_v16 = vpack.c.bf16 %v2780_v8, %v2779_v21 }
 0x2a9   : > { %6000 = vmatmul.mubr.bf16.gmra.mrb[28].mxu1 %v2796_v16 }
 0x2fc   : > { %v5973_v56 = vpop.f32.mrb[0].mxu1 }
 0x2fd   : > { %v2911_v46 = vadd.f32 %v5973_v56, %v8427_v33  ;;  %v2902_v19 = vpop.f32.mrb[1].mxu1 }
 0x2fe   : > { %v2903_v40 = vadd.f32 %v8427_v33, %v2902_v19  ;;  %v5974_v28 = vpop.f32.mrb[2].mxu1 }
 0x2ff   : > { %v3031_v61 = vmax.f32 %v2911_v46, 0.0  ;;  %v2914_v54 = vadd.f32 %v5974_v28, %v8427_v33  ;;  %v2905_v30 = vpop.f32.mrb[3].mxu1 }
 0x300   : > { %v3029_v31 = vmax.f32 %v2903_v40, 0.0  ;;  %v2906_v45 = vadd.f32 %v8427_v33, %v2905_v30 }
 0x301   : > { %3063 = vst [vmem:[#allocation2 + $0x48] sm:$0xff] %v3031_v61  ;;  %v3032_v2 = vmax.f32 %v2914_v54, 0.0  ;;  %v8474_v3 = vmul.f32 %v8461_v22, %v3031_v61  ;;  %v8477_v53 = vmul.f32 %v8456_v15, %v3031_v61  ;;  %v3208_v44 = vmul.f32 %v8440_v23, %v3031_v61 }
 0x302   : > { %3061 = vst [vmem:[#allocation2 + $0x28] sm:$0xff] %v3029_v31  ;;  %v3030_v41 = vmax.f32 %v2906_v45, 0.0  ;;  %v3516_v10 = vmul.f32 %v8456_v15, %v3029_v31  ;;  %v3206_v25 = vmul.f32 %v8440_v23, %v3029_v31 }
 0x303   : > { %3064 = vst [vmem:[#allocation2 + $0x50] sm:$0xff] %v3032_v2  ;;  %v8481_v43 = vmul.f32 %v8461_v22, %v3032_v2  ;;  %v3519_v26 = vmul.f32 %v8456_v15, %v3032_v2  ;;  %v3209_v47 = vmul.f32 %v8440_v23, %v3032_v2 }
 0x304   : > { %3062 = vst [vmem:[#allocation2 + $0x30] sm:$0xff] %v3030_v41  ;;  %v3517_v14 = vmul.f32 %v8456_v15, %v3030_v41  ;;  %v3207_v34 = vmul.f32 %v8440_v23, %v3030_v41 }
 0x308   : > { %v3684_v11 = vld [vmem:[#allocation2 + $0x47] sm:$0xff] }
 0x309   : > { %v3372_v36 = vld [vmem:[#allocation2 + $0x27] sm:$0xff]  ;;  %v3724_v32 = vmul.f32 %v8471_v24, %v3684_v11  ;;  %v3414_v49 = vmul.f32 %v8466_v27, %v3684_v11  ;;  %v3136_v8 = vmul.f32 %v8432_v37, %v3684_v11 }
 0x30a   : > { %v3412_v20 = vmul.f32 %v8466_v27, %v3372_v36  ;;  %v3685_v12 = vld [vmem:[#allocation2 + $0x4f] sm:$0xff]  ;;  %v3134_v1 = vmul.f32 %v8432_v37, %v3372_v36 }
 0x30b   : > { %v3892_v50 = vld [vmem:[#allocation2 + $0x49] sm:$0xff]  ;;  %v3893_v57 = vld [vmem:[#allocation2 + $0x51] sm:$0xff]  ;;  %v3725_v63 = vmul.f32 %v8471_v24, %v3685_v12  ;;  %v3415_v62 = vmul.f32 %v8466_v27, %v3685_v12  ;;  %v3137_v36 = vmul.f32 %v8432_v37, %v3685_v12 }
 0x30c   : > { %v3373_v0 = vld [vmem:[#allocation2 + $0x2f] sm:$0xff]  ;;  %v3932_v9 = vmul.f32 %v8486_v17, %v3892_v50  ;;  %v3933_v21 = vmul.f32 %v8486_v17, %v3893_v57  ;;  %v3444_v16 = vadd.f32 %v3412_v20, %v3340_v38  ;;  %v3238_v19 = vadd.f32 %v3206_v25, %v3134_v1 }
 0x30d   : > { %v3580_v6 = vld [vmem:[#allocation2 + $0x29] sm:$0xff]  ;;  %v3581_v7 = vld [vmem:[#allocation2 + $0x31] sm:$0xff]  ;;  %v3413_v29 = vmul.f32 %v8466_v27, %v3373_v0  ;;  %v5977_v56 = vpop.f32.mrb[4].mxu1  ;;  %v3135_v46 = vmul.f32 %v8432_v37, %v3373_v0  ;;  %v3622_v59 = vmul.f32 %v8494_v48, %v3892_v50  ;;  %v3623_v0 = vmul.f32 %v8494_v48, %v3893_v57 }
 0x30e   : > { %v3620_v4 = vmul.f32 %v8494_v48, %v3580_v6  ;;  %v3621_v39 = vmul.f32 %v8494_v48, %v3581_v7  ;;  %v3310_v40 = vmul.f32 %v8449_v58, %v3580_v6  ;;  %v2927_v28 = vadd.f32 %v5977_v56, %v8427_v33  ;;  %v2918_v42 = vpop.f32.mrb[5].mxu1 }
 0x30f   : > { %v3445_v61 = vadd.f32 %v3413_v29, %v3341_v35  ;;  %v3548_v54 = vadd.f32 %v3516_v10, %v3444_v16  ;;  %v3311_v30 = vmul.f32 %v8449_v58, %v3581_v7  ;;  %v2919_v5 = vadd.f32 %v8427_v33, %v2918_v42  ;;  %v5978_v55 = vpop.f32.mrb[6].mxu1 }
 0x310   : > { %v3239_v31 = vadd.f32 %v3207_v34, %v3135_v46  ;;  %v3342_v45 = vadd.f32 %v3310_v40, %v3238_v19  ;;  %v3035_v13 = vmax.f32 %v2927_v28, 0.0  ;;  %v2930_v2 = vadd.f32 %v5978_v55, %v8427_v33  ;;  %v2921_v41 = vpop.f32.mrb[7].mxu1 }
 0x311   : > { %v3549_v18 = vadd.f32 %v3517_v14, %v3445_v61  ;;  %v3652_v60 = vadd.f32 %v3620_v4, %v3548_v54  ;;  %v3033_v51 = vmax.f32 %v2919_v5, 0.0  ;;  %v2922_v52 = vadd.f32 %v8427_v33, %v2921_v41 }
 0x312   : > { %v3343_v38 = vadd.f32 %v3311_v30, %v3239_v31  ;;  %v3446_v35 = vadd.f32 %v3414_v49, %v3342_v45  ;;  %3067 = vst [vmem:[#allocation2 + $0x88] sm:$0xff] %v3035_v13  ;;  %v3036_v10 = vmax.f32 %v2930_v2, 0.0  ;;  %v3240_v7 = vadd.f32 %v3208_v44, %v3136_v8 }
 0x313   : > { %v3653_v11 = vadd.f32 %v3621_v39, %v3549_v18  ;;  %v3756_v25 = vadd.f32 %v3724_v32, %v3652_v60  ;;  %3065 = vst [vmem:[#allocation2 + $0x68] sm:$0xff] %v3033_v51  ;;  %v3034_v34 = vmax.f32 %v2922_v52, 0.0  ;;  %v3241_v29 = vadd.f32 %v3209_v47, %v3137_v36 }
 0x314   : > { %v3447_v20 = vadd.f32 %v3415_v62, %v3343_v38  ;;  %v3550_v1 = vadd.f32 %v8477_v53, %v3446_v35  ;;  %3068 = vst [vmem:[#allocation2 + $0x90] sm:$0xff] %v3036_v10  ;;  %v3830_v32 = vmul.f32 %v8461_v22, %v3033_v51  ;;  %v3312_v12 = vmul.f32 %v8449_v58, %v3892_v50 }
 0x315   : > { %v3757_v14 = vadd.f32 %v3725_v63, %v3653_v11  ;;  %v3860_v6 = vadd.f32 %v8474_v3, %v3756_v25  ;;  %3066 = vst [vmem:[#allocation2 + $0x70] sm:$0xff] %v3034_v34  ;;  %v3831_v53 = vmul.f32 %v8461_v22, %v3034_v34  ;;  %v3313_v56 = vmul.f32 %v8449_v58, %v3893_v57 }
 0x316   : > { %v3551_v49 = vadd.f32 %v3519_v26, %v3447_v20  ;;  %v3654_v16 = vadd.f32 %v3622_v59, %v3550_v1  ;;  %v3344_v63 = vadd.f32 %v3312_v12, %v3240_v7  ;;  %v3520_v3 = vmul.f32 %v8456_v15, %v3033_v51 }
 0x317   : > { %v3861_v4 = vadd.f32 %v8481_v43, %v3757_v14  ;;  %v3964_v62 = vadd.f32 %v3932_v9, %v3860_v6  ;;  %v3521_v44 = vmul.f32 %v8456_v15, %v3034_v34  ;;  %v3345_v26 = vadd.f32 %v3313_v56, %v3241_v29 }
 0x318   : > { %v3655_v39 = vadd.f32 %v3623_v0, %v3551_v49  ;;  %v8531_v8 = vmul.f32 %v8461_v22, %v3035_v13  ;;  %v8534_v50 = vmul.f32 %v8461_v22, %v3036_v10  ;;  %v3210_v9 = vmul.f32 %v8440_v23, %v3033_v51 }
 0x319   : > { %v3965_v47 = vadd.f32 %v3933_v21, %v3861_v4  ;;  %v3688_v43 = vld [vmem:[#allocation2 + $0x87] sm:$0xff]  ;;  %v3211_v46 = vmul.f32 %v8440_v23, %v3034_v34  ;;  %v8539_v57 = vmul.f32 %v8456_v15, %v3035_v13  ;;  %v8542_v19 = vmul.f32 %v8456_v15, %v3036_v10 }
 0x31a   : > { %v3686_v21 = vld [vmem:[#allocation2 + $0x67] sm:$0xff]  ;;  %v3728_v28 = vmul.f32 %v8471_v24, %v3688_v43  ;;  %v3418_v42 = vmul.f32 %v8466_v27, %v3688_v43  ;;  %v8547_v61 = vmul.f32 %v8440_v23, %v3035_v13  ;;  %v8559_v59 = vmul.f32 %v8432_v37, %v3688_v43 }
 0x31b   : > { %v3996_v40 = vpack.c.bf16 %v3965_v47, %v3964_v62  ;;  %v3726_v54 = vmul.f32 %v8471_v24, %v3686_v21  ;;  %v3416_v30 = vmul.f32 %v8466_v27, %v3686_v21  ;;  %v8551_v5 = vld [vmem:[#allocation2 + $0x8f] sm:$0xff]  ;;  %v3138_v45 = vmul.f32 %v8432_v37, %v3686_v21 }
 0x31c   : > { %v8553_v55 = vld [vmem:[#allocation2 + $0x89] sm:$0xff]  ;;  %v8555_v31 = vld [vmem:[#allocation2 + $0x91] sm:$0xff]  ;;  %v3729_v18 = vmul.f32 %v8471_v24, %v8551_v5  ;;  %v3213_v52 = vmul.f32 %v8440_v23, %v3036_v10 }
 0x31d   : > { %6019 = vmatprep.mubr.bf16.mxu0 %v3996_v40  ;;  %v3687_v2 = vld [vmem:[#allocation2 + $0x6f] sm:$0xff]  ;;  %v8565_v60 = vmul.f32 %v8486_v17, %v8553_v55  ;;  %v8569_v51 = vmul.f32 %v8486_v17, %v8555_v31  ;;  %v3758_v35 = vadd.f32 %v3726_v54, %v3654_v16  ;;  %v3448_v34 = vadd.f32 %v3416_v30, %v3344_v63 }
 0x31e   : > { %v3894_v41 = vld [vmem:[#allocation2 + $0x69] sm:$0xff]  ;;  %v3895_v13 = vld [vmem:[#allocation2 + $0x71] sm:$0xff]  ;;  %v3727_v38 = vmul.f32 %v8471_v24, %v3687_v2  ;;  %v3417_v36 = vmul.f32 %v8466_v27, %v3687_v2  ;;  %v3139_v7 = vmul.f32 %v8432_v37, %v3687_v2  ;;  %v3242_v10 = vadd.f32 %v3210_v9, %v3138_v45 }
 0x31f   : > { %v3934_v11 = vmul.f32 %v8486_v17, %v3894_v41  ;;  %v3935_v25 = vmul.f32 %v8486_v17, %v3895_v13  ;;  %v3624_v20 = vmul.f32 %v8494_v48, %v3894_v41  ;;  %v3625_v1 = vmul.f32 %v8494_v48, %v3895_v13  ;;  %v5981_v0 = vpop.f32.mrb[8].mxu1 }
 0x320   : > { %v3759_v14 = vadd.f32 %v3727_v38, %v3655_v39  ;;  %v3862_v6 = vadd.f32 %v3830_v32, %v3758_v35  ;;  %v2943_v29 = vadd.f32 %v5981_v0, %v8427_v33  ;;  %v2934_v49 = vpop.f32.mrb[9].mxu1  ;;  %v3449_v16 = vadd.f32 %v3417_v36, %v3345_v26 }
 0x321   : > { %v3552_v12 = vadd.f32 %v3520_v3, %v3448_v34  ;;  %v3314_v4 = vmul.f32 %v8449_v58, %v3894_v41  ;;  %v2935_v62 = vadd.f32 %v8427_v33, %v2934_v49  ;;  %v5982_v56 = vpop.f32.mrb[10].mxu1  ;;  %v3243_v43 = vadd.f32 %v3211_v46, %v3139_v7 }
 0x322   : > { %v3863_v63 = vadd.f32 %v3831_v53, %v3759_v14  ;;  %v3966_v47 = vadd.f32 %v3934_v11, %v3862_v6  ;;  %v8582_v40 = vmax.f32 %v2943_v29, 0.0  ;;  %v2946_v32 = vadd.f32 %v5982_v56, %v8427_v33  ;;  %v2937_v39 = vpop.f32.mrb[11].mxu1  ;;  %v6247_v14 = vld [vmem:[#allocation11] sm:$0xff]   ;;  %v6248_v6 = vld [vmem:[#allocation11 + $0x8] sm:$0xff]  }
 0x323   : > { %v3553_v21 = vadd.f32 %v3521_v44, %v3449_v16  ;;  %v3656_v9 = vadd.f32 %v3624_v20, %v3552_v12  ;;  %v3037_v54 = vmax.f32 %v2935_v62, 0.0  ;;  %v2938_v30 = vadd.f32 %v8427_v33, %v2937_v39  ;;  %6051 = vmatprep.subr.bf16.mxu1 %v6247_v14  ;;  %v6249_v62 = vld [vmem:[#allocation11 + $0x10] sm:$0xff]  }
 0x324   : > { %v3967_v26 = vadd.f32 %v3935_v25, %v3863_v63  ;;  %v3315_v3 = vmul.f32 %v8449_v58, %v3895_v13  ;;  %3071 = vst [vmem:[#allocation2 + $0xc8] sm:$0xff] %v8582_v40  ;;  %v8588_v45 = vmax.f32 %v2946_v32, 0.0  ;;  %v3346_v46 = vadd.f32 %v3314_v4, %v3242_v10  ;;  %6052 = vmatpush3.bf16.msra.mxu1 %v6247_v14 }
 0x325   : > { %v3657_v53 = vadd.f32 %v3625_v1, %v3553_v21  ;;  %v3760_v2 = vadd.f32 %v3728_v28, %v3656_v9  ;;  %3069 = vst [vmem:[#allocation2 + $0xa8] sm:$0xff] %v3037_v54  ;;  %v3038_v41 = vmax.f32 %v2938_v30, 0.0  ;;  %v3419_v44 = vmul.f32 %v8466_v27, %v8551_v5  ;;  %6053 = vmatprep.subr.bf16.mxu1 %v6248_v6 }
 0x326   : > { %v3997_v38 = vpack.c.bf16 %v3967_v26, %v3966_v47  ;;  %v3347_v35 = vadd.f32 %v3315_v3, %v3243_v43  ;;  %3072 = vst [vmem:[#allocation2 + $0xd0] sm:$0xff] %v8588_v45  ;;  %v3450_v13 = vadd.f32 %v3418_v42, %v3346_v46  ;;  %v3626_v36 = vmul.f32 %v8494_v48, %v8553_v55 }
 0x327   : > { %v3761_v11 = vadd.f32 %v3729_v18, %v3657_v53  ;;  %v3864_v25 = vadd.f32 %v8531_v8, %v3760_v2  ;;  %3070 = vst [vmem:[#allocation2 + $0xb0] sm:$0xff] %v3038_v41  ;;  %v3627_v34 = vmul.f32 %v8494_v48, %v8555_v31  ;;  %v3834_v20 = vmul.f32 %v8461_v22, %v3037_v54 }
 0x328   : > { %6020 = vmatmul.mubr.bf16.vlgmr.msra.gmra.mrb[32].mxu0 %v3997_v38  ;;  %v3451_v28 = vadd.f32 %v3419_v44, %v3347_v35  ;;  %v3141_v1 = vmul.f32 %v8432_v37, %v8551_v5  ;;  %v3554_v18 = vadd.f32 %v8539_v57, %v3450_v13  ;;  %v3835_v8 = vmul.f32 %v8461_v22, %v3038_v41 }
 0x329   : > { %v3865_v0 = vadd.f32 %v8534_v50, %v3761_v11  ;;  %v3244_v42 = vadd.f32 %v8547_v61, %v8559_v59  ;;  %v3316_v29 = vmul.f32 %v8449_v58, %v8553_v55  ;;  %v3317_v5 = vmul.f32 %v8449_v58, %v8555_v31  ;;  %6054 = vmatpush3.bf16.msra.mxu1 %v6248_v6 }
 0x32a   : > { %v3555_v7 = vadd.f32 %v8542_v19, %v3451_v28  ;;  %v3245_v10 = vadd.f32 %v3213_v52, %v3141_v1  ;;  %v3968_v50 = vadd.f32 %v8565_v60, %v3864_v25  ;;  %v3658_v49 = vadd.f32 %v3626_v36, %v3554_v18  ;;  %6055 = vmatprep.subr.bf16.mxu1 %v6249_v62 }
 0x32b   : > { %v3969_v57 = vadd.f32 %v8569_v51, %v3865_v0  ;;  %v3524_v16 = vmul.f32 %v8456_v15, %v3037_v54  ;;  %v3348_v59 = vadd.f32 %v3316_v29, %v3244_v42  ;;  %v3525_v19 = vmul.f32 %v8456_v15, %v3038_v41  ;;  %v8615_v52 = vld [vmem:[#allocation2 + $0xc7] sm:$0xff] }
 0x32c   : > { %v3659_v61 = vadd.f32 %v3627_v34, %v3555_v7  ;;  %v3349_v12 = vadd.f32 %v3317_v5, %v3245_v10  ;;  %v3690_v4 = vld [vmem:[#allocation2 + $0xa7] sm:$0xff]  ;;  %v3732_v31 = vmul.f32 %v8471_v24, %v8615_v52  ;;  %v8621_v60 = vmul.f32 %v8461_v22, %v8582_v40 }
 0x32d   : > { %v3998_v55 = vpack.c.bf16 %v3969_v57, %v3968_v50  ;;  %v8625_v51 = vmul.f32 %v8461_v22, %v8588_v45  ;;  %v3730_v56 = vmul.f32 %v8471_v24, %v3690_v4  ;;  %v3420_v63 = vmul.f32 %v8466_v27, %v3690_v4  ;;  %v8629_v47 = vld [vmem:[#allocation2 + $0xcf] sm:$0xff]  ;;  %6056 = vmatpush3.bf16.msra.mxu1 %v6249_v62 }
 0x32e   : > { %v8631_v43 = vld [vmem:[#allocation2 + $0xc9] sm:$0xff]  ;;  %v3142_v32 = vmul.f32 %v8432_v37, %v3690_v4  ;;  %v3214_v39 = vmul.f32 %v8440_v23, %v3037_v54  ;;  %v3899_v30 = vld [vmem:[#allocation2 + $0xb1] sm:$0xff]  ;;  %v3733_v26 = vmul.f32 %v8471_v24, %v8629_v47  ;;  %v3215_v53 = vmul.f32 %v8440_v23, %v3038_v41 }
 0x32f   : > { %6023 = vmatprep.mubr.bf16.mxu0 %v3998_v55  ;;  %v3691_v21 = vld [vmem:[#allocation2 + $0xaf] sm:$0xff]  ;;  %v8639_v3 = vmul.f32 %v8486_v17, %v8631_v43  ;;  %v3422_v2 = vmul.f32 %v8466_v27, %v8615_v52  ;;  %v3762_v38 = vadd.f32 %v3730_v56, %v3658_v49  ;;  %v3939_v35 = vmul.f32 %v8486_v17, %v3899_v30  ;;  %v6250_v41 = vld [vmem:[#allocation11 + $0x18] sm:$0xff]  }
 0x330   : > { %v3898_v9 = vld [vmem:[#allocation2 + $0xa9] sm:$0xff]  ;;  %v3731_v46 = vmul.f32 %v8471_v24, %v3691_v21  ;;  %v3421_v44 = vmul.f32 %v8466_v27, %v3691_v21  ;;  %v3452_v11 = vadd.f32 %v3420_v63, %v3348_v59  ;;  %v3629_v13 = vmul.f32 %v8494_v48, %v3899_v30  ;;  %6057 = vmatprep.subr.bf16.mxu1 %v6250_v41  ;;  %v3901_v62 = vld [vmem:[#allocation2 + $0xd1] sm:$0xff] }
 0x331   : > { %v3938_v54 = vmul.f32 %v8486_v17, %v3898_v9  ;;  %v3628_v25 = vmul.f32 %v8494_v48, %v3898_v9  ;;  %v3866_v28 = vadd.f32 %v3834_v20, %v3762_v38  ;;  %v3143_v34 = vmul.f32 %v8432_v37, %v3691_v21  ;;  %6058 = vmatpush3.bf16.msra.mxu1 %v6250_v41 }
 0x332   : > { %v3763_v36 = vadd.f32 %v3731_v46, %v3659_v61  ;;  %v3246_v1 = vadd.f32 %v3214_v39, %v3142_v32  ;;  %v5985_v0 = vpop.f32.mrb[12].mxu1  ;;  %v3453_v18 = vadd.f32 %v3421_v44, %v3349_v12  ;;  %v3556_v42 = vadd.f32 %v3524_v16, %v3452_v11 }
 0x333   : > { %v3318_v14 = vmul.f32 %v8449_v58, %v3898_v9  ;;  %v3319_v6 = vmul.f32 %v8449_v58, %v3899_v30  ;;  %v2959_v7 = vadd.f32 %v5985_v0, %v8427_v33  ;;  %v2950_v10 = vpop.f32.mrb[13].mxu1  ;;  %v3970_v5 = vadd.f32 %v3938_v54, %v3866_v28 }
 0x334   : > { %v3867_v29 = vadd.f32 %v3835_v8, %v3763_v36  ;;  %v3247_v50 = vadd.f32 %v3215_v53, %v3143_v34  ;;  %v2951_v57 = vadd.f32 %v8427_v33, %v2950_v10  ;;  %v5986_v20 = vpop.f32.mrb[14].mxu1  ;;  %v3557_v49 = vadd.f32 %v3525_v19, %v3453_v18 }
 0x335   : > { %v3660_v61 = vadd.f32 %v3628_v25, %v3556_v42  ;;  %v3350_v59 = vadd.f32 %v3318_v14, %v3246_v1  ;;  %v8655_v12 = vmax.f32 %v2959_v7, 0.0  ;;  %v2962_v16 = vadd.f32 %v5986_v20, %v8427_v33  ;;  %v2953_v55 = vpop.f32.mrb[15].mxu1 }
 0x336   : > { %v3971_v4 = vadd.f32 %v3939_v35, %v3867_v29  ;;  %v3351_v56 = vadd.f32 %v3319_v6, %v3247_v50  ;;  %v3041_v63 = vmax.f32 %v2951_v57, 0.0  ;;  %v2954_v8 = vadd.f32 %v8427_v33, %v2953_v55 }
 0x337   : > { %v3661_v32 = vadd.f32 %v3629_v13, %v3557_v49  ;;  %v3764_v39 = vadd.f32 %v3732_v31, %v3660_v61  ;;  %3075 = vst [vmem:[#allocation2 + $0x108] sm:$0xff] %v8655_v12  ;;  %v8660_v21 = vmax.f32 %v2962_v16, 0.0  ;;  %v3423_v9 = vmul.f32 %v8466_v27, %v8629_v47 }
 0x338   : > { %v3999_v19 = vpack.c.bf16 %v3971_v4, %v3970_v5  ;;  %v3454_v30 = vadd.f32 %v3422_v2, %v3350_v59  ;;  %3073 = vst [vmem:[#allocation2 + $0xe8] sm:$0xff] %v3041_v63  ;;  %v3042_v53 = vmax.f32 %v2954_v8, 0.0  ;;  %v3526_v54 = vmul.f32 %v8456_v15, %v8582_v40 }
 0x339   : > { %v3765_v46 = vadd.f32 %v3733_v26, %v3661_v32  ;;  %v3868_v38 = vadd.f32 %v8621_v60, %v3764_v39  ;;  %3076 = vst [vmem:[#allocation2 + $0x110] sm:$0xff] %v8660_v21  ;;  %v3941_v31 = vmul.f32 %v8486_v17, %v3901_v62  ;;  %v3455_v35 = vadd.f32 %v3423_v9, %v3351_v56 }
 0x33a   : > { %6024 = vmatmul.mubr.bf16.gmra.mrb[36].mxu0 %v3999_v19  ;;  %v3527_v44 = vmul.f32 %v8456_v15, %v8588_v45  ;;  %v3630_v2 = vmul.f32 %v8494_v48, %v8631_v43  ;;  %3074 = vst [vmem:[#allocation2 + $0xf0] sm:$0xff] %v3042_v53  ;;  %v3558_v11 = vadd.f32 %v3526_v54, %v3454_v30 }
 0x33b   : > { %v3869_v26 = vadd.f32 %v8625_v51, %v3765_v46  ;;  %v3972_v60 = vadd.f32 %v8639_v3, %v3868_v38  ;;  %v3631_v25 = vmul.f32 %v8494_v48, %v3901_v62  ;;  %v3838_v41 = vmul.f32 %v8461_v22, %v3041_v63 }
 0x33c   : > { %v3559_v13 = vadd.f32 %v3527_v44, %v3455_v35  ;;  %v3144_v36 = vmul.f32 %v8432_v37, %v8615_v52  ;;  %v3145_v28 = vmul.f32 %v8432_v37, %v8629_v47  ;;  %v3839_v1 = vmul.f32 %v8461_v22, %v3042_v53 }
 0x33d   : > { %v3973_v34 = vadd.f32 %v3941_v31, %v3869_v26  ;;  %v3216_v51 = vmul.f32 %v8440_v23, %v8582_v40  ;;  %v3217_v3 = vmul.f32 %v8440_v23, %v8588_v45  ;;  %v3662_v0 = vadd.f32 %v3630_v2, %v3558_v11 }
 0x33e   : > { %v3663_v18 = vadd.f32 %v3631_v25, %v3559_v13  ;;  %v3320_v42 = vmul.f32 %v8449_v58, %v8631_v43  ;;  %v3321_v14 = vmul.f32 %v8449_v58, %v3901_v62  ;;  %v3528_v47 = vmul.f32 %v8456_v15, %v3041_v63  ;;  %v8690_v10 = vld [vmem:[#allocation2 + $0x107] sm:$0xff] }
 0x33f   : > { %v4000_v52 = vpack.c.bf16 %v3973_v34, %v3972_v60  ;;  %v3248_v6 = vadd.f32 %v3216_v51, %v3144_v36  ;;  %v3249_v7 = vadd.f32 %v3217_v3, %v3145_v28  ;;  %v3694_v29 = vld [vmem:[#allocation2 + $0xe7] sm:$0xff]  ;;  %v3529_v40 = vmul.f32 %v8456_v15, %v3042_v53 }
 0x340   : > { %v3736_v45 = vmul.f32 %v8471_v24, %v8690_v10  ;;  %v3840_v5 = vmul.f32 %v8461_v22, %v8655_v12  ;;  %v8699_v43 = vmul.f32 %v8461_v22, %v8660_v21  ;;  %v3734_v50 = vmul.f32 %v8471_v24, %v3694_v29  ;;  %v8703_v49 = vld [vmem:[#allocation2 + $0x10f] sm:$0xff] }
 0x341   : > { %6027 = vmatprep.mubr.bf16.mxu0 %v4000_v52  ;;  %v3352_v57 = vadd.f32 %v3320_v42, %v3248_v6  ;;  %v3424_v20 = vmul.f32 %v8466_v27, %v3694_v29  ;;  %v8705_v61 = vld [vmem:[#allocation2 + $0x109] sm:$0xff]  ;;  %v3218_v59 = vmul.f32 %v8440_v23, %v3041_v63  ;;  %v3903_v4 = vld [vmem:[#allocation2 + $0xf1] sm:$0xff]  ;;  %v3353_v56 = vadd.f32 %v3321_v14, %v3249_v7 }
 0x342   : > { %v3695_v16 = vld [vmem:[#allocation2 + $0xef] sm:$0xff]  ;;  %v3737_v8 = vmul.f32 %v8471_v24, %v8703_v49  ;;  %v3944_v32 = vmul.f32 %v8486_v17, %v8705_v61  ;;  %v3146_v39 = vmul.f32 %v8432_v37, %v3694_v29  ;;  %v3766_v19 = vadd.f32 %v3734_v50, %v3662_v0 }
 0x343   : > { %v3902_v55 = vld [vmem:[#allocation2 + $0xe9] sm:$0xff]  ;;  %v3735_v62 = vmul.f32 %v8471_v24, %v3695_v16  ;;  %v3943_v30 = vmul.f32 %v8486_v17, %v3903_v4  ;;  %v3425_v63 = vmul.f32 %v8466_v27, %v3695_v16  ;;  %v3456_v46 = vadd.f32 %v3424_v20, %v3352_v57 }
 0x344   : > { %v3942_v9 = vmul.f32 %v8486_v17, %v3902_v55  ;;  %v3632_v38 = vmul.f32 %v8494_v48, %v3902_v55  ;;  %v3633_v54 = vmul.f32 %v8494_v48, %v3903_v4  ;;  %v3870_v35 = vadd.f32 %v3838_v41, %v3766_v19 }
 0x345   : > { %v3767_v31 = vadd.f32 %v3735_v62, %v3663_v18  ;;  %v3147_v44 = vmul.f32 %v8432_v37, %v3695_v16  ;;  %v3219_v2 = vmul.f32 %v8440_v23, %v3042_v53  ;;  %v3457_v26 = vadd.f32 %v3425_v63, %v3353_v56  ;;  %v3905_v16 = vld [vmem:[#allocation2 + $0x111] sm:$0xff]  ;;  %v3180_v63 = vld [vmem:[#allocation2 + $0x108] sm:$0xff] }
 0x346   : > { %v3560_v60 = vadd.f32 %v3528_v47, %v3456_v46  ;;  %v3250_v11 = vadd.f32 %v3218_v59, %v3146_v39  ;;  %v3322_v25 = vmul.f32 %v8449_v58, %v3902_v55  ;;  %v5989_v13 = vpop.f32.mrb[16].mxu1  ;;  %v3974_v28 = vadd.f32 %v3942_v9, %v3870_v35 }
 0x347   : > { %v3871_v36 = vadd.f32 %v3839_v1, %v3767_v31  ;;  %v3251_v34 = vadd.f32 %v3219_v2, %v3147_v44  ;;  %v3323_v51 = vmul.f32 %v8449_v58, %v3903_v4  ;;  %v2975_v3 = vadd.f32 %v5989_v13, %v8427_v33  ;;  %v2966_v0 = vpop.f32.mrb[17].mxu1 }
 0x348   : > { %v3561_v18 = vadd.f32 %v3529_v40, %v3457_v26  ;;  %v3664_v41 = vadd.f32 %v3632_v38, %v3560_v60  ;;  %v3354_v42 = vadd.f32 %v3322_v25, %v3250_v11  ;;  %v2967_v14 = vadd.f32 %v8427_v33, %v2966_v0  ;;  %v5990_v53 = vpop.f32.mrb[18].mxu1 }
 0x349   : > { %v3975_v52 = vadd.f32 %v3943_v30, %v3871_v36  ;;  %v3355_v6 = vadd.f32 %v3323_v51, %v3251_v34  ;;  %v3426_v7 = vmul.f32 %v8466_v27, %v8690_v10  ;;  %v3047_v47 = vmax.f32 %v2975_v3, 0.0  ;;  %v2969_v29 = vpop.f32.mrb[19].mxu1 }
 0x34a   : > { %v2978_v1 = vadd.f32 %v5990_v53, %v8427_v33  ;;  %v3665_v50 = vadd.f32 %v3633_v54, %v3561_v18  ;;  %v3768_v57 = vadd.f32 %v3736_v45, %v3664_v41  ;;  %v3045_v20 = vmax.f32 %v2967_v14, 0.0 }
 0x34b   : > { %v2970_v59 = vadd.f32 %v8427_v33, %v2969_v29  ;;  %v4001_v40 = vpack.c.bf16 %v3975_v52, %v3974_v28  ;;  %v3427_v55 = vmul.f32 %v8466_v27, %v8703_v49  ;;  %3079 = vst [vmem:[#allocation2 + $0x148] sm:$0xff] %v3047_v47  ;;  %v3458_v62 = vadd.f32 %v3426_v7, %v3354_v42 }
 0x34c   : > { %v8731_v4 = vmax.f32 %v2978_v1, 0.0  ;;  %v3769_v56 = vadd.f32 %v3737_v8, %v3665_v50  ;;  %v3872_v39 = vadd.f32 %v3840_v5, %v3768_v57  ;;  %3077 = vst [vmem:[#allocation2 + $0x128] sm:$0xff] %v3045_v20  ;;  %v3530_v45 = vmul.f32 %v8456_v15, %v8655_v12  ;;  %v3181_v5 = vld [vmem:[#allocation2 + $0x110] sm:$0xff] }
 0x34d   : > { %v3046_v19 = vmax.f32 %v2970_v59, 0.0  ;;  %6028 = vmatmul.mubr.bf16.gmra.mrb[40].mxu0 %v4001_v40  ;;  %v3459_v9 = vadd.f32 %v3427_v55, %v3355_v6  ;;  %v3531_v30 = vmul.f32 %v8456_v15, %v8660_v21  ;;  %v3945_v38 = vmul.f32 %v8486_v17, %v3905_v16 }
 0x34e   : > { %3080 = vst [vmem:[#allocation2 + $0x150] sm:$0xff] %v8731_v4  ;;  %v3873_v46 = vadd.f32 %v8699_v43, %v3769_v56  ;;  %v3976_v8 = vadd.f32 %v3944_v32, %v3872_v39  ;;  %v3562_v54 = vadd.f32 %v3530_v45, %v3458_v62  ;;  %v3634_v35 = vmul.f32 %v8494_v48, %v8705_v61 }
 0x34f   : > { %3078 = vst [vmem:[#allocation2 + $0x130] sm:$0xff] %v3046_v19  ;;  %v3563_v31 = vadd.f32 %v3531_v30, %v3459_v9  ;;  %v3635_v12 = vmul.f32 %v8494_v48, %v3905_v16  ;;  %v3148_v21 = vmul.f32 %v8432_v37, %v8690_v10  ;;  %v3149_v2 = vmul.f32 %v8432_v37, %v8703_v49 }
 0x350   : > { %v3977_v44 = vadd.f32 %v3945_v38, %v3873_v46  ;;  %v3220_v43 = vmul.f32 %v8440_v23, %v3180_v63  ;;  %v3842_v32 = vmul.f32 %v8461_v22, %v3045_v20  ;;  %v3843_v26 = vmul.f32 %v8461_v22, %v3046_v19 }
 0x351   : > { %v3221_v60 = vmul.f32 %v8440_v23, %v3181_v5  ;;  %v3324_v11 = vmul.f32 %v8449_v58, %v8705_v61  ;;  %v3666_v13 = vadd.f32 %v3634_v35, %v3562_v54  ;;  %v3667_v36 = vadd.f32 %v3635_v12, %v3563_v31 }
 0x352   : > { %v4002_v25 = vpack.c.bf16 %v3977_v44, %v3976_v8  ;;  %v3252_v28 = vadd.f32 %v3220_v43, %v3148_v21  ;;  %v3325_v10 = vmul.f32 %v8449_v58, %v3905_v16  ;;  %v3532_v49 = vmul.f32 %v8456_v15, %v3045_v20  ;;  %v8756_v3 = vld [vmem:[#allocation2 + $0x147] sm:$0xff] }
 0x353   : > { %v3253_v34 = vadd.f32 %v3221_v60, %v3149_v2  ;;  %v3533_v51 = vmul.f32 %v8456_v15, %v3046_v19  ;;  %v8758_v0 = vld [vmem:[#allocation2 + $0x148] sm:$0xff]  ;;  %v3740_v61 = vmul.f32 %v8471_v24, %v8756_v3  ;;  %v8764_v42 = vmul.f32 %v8461_v22, %v8731_v4 }
 0x354   : > { %6031 = vmatprep.mubr.bf16.mxu0 %v4002_v25  ;;  %v3698_v18 = vld [vmem:[#allocation2 + $0x127] sm:$0xff]  ;;  %v3356_v41 = vadd.f32 %v3324_v11, %v3252_v28  ;;  %v3222_v14 = vmul.f32 %v8440_v23, %v3045_v20  ;;  %v3844_v7 = vmul.f32 %v8461_v22, %v8758_v0  ;;  %v3223_v20 = vmul.f32 %v8440_v23, %v3046_v19 }
 0x355   : > { %v3738_v53 = vmul.f32 %v8471_v24, %v3698_v18  ;;  %v3428_v52 = vmul.f32 %v8466_v27, %v3698_v18  ;;  %v8769_v6 = vld [vmem:[#allocation2 + $0x14f] sm:$0xff]  ;;  %v3150_v47 = vmul.f32 %v8432_v37, %v3698_v18  ;;  %v3357_v57 = vadd.f32 %v3325_v10, %v3253_v34 }
 0x356   : > { %v3699_v1 = vld [vmem:[#allocation2 + $0x12f] sm:$0xff]  ;;  %v3741_v59 = vmul.f32 %v8471_v24, %v8769_v6  ;;  %v3430_v40 = vmul.f32 %v8466_v27, %v8756_v3 }
 0x357   : > { %v3906_v29 = vld [vmem:[#allocation2 + $0x129] sm:$0xff]  ;;  %v3907_v50 = vld [vmem:[#allocation2 + $0x131] sm:$0xff]  ;;  %v3739_v16 = vmul.f32 %v8471_v24, %v3699_v1  ;;  %v3770_v55 = vadd.f32 %v3738_v53, %v3666_v13  ;;  %v3429_v62 = vmul.f32 %v8466_v27, %v3699_v1  ;;  %v3460_v9 = vadd.f32 %v3428_v52, %v3356_v41 }
 0x358   : > { %v3946_v56 = vmul.f32 %v8486_v17, %v3906_v29  ;;  %v3947_v39 = vmul.f32 %v8486_v17, %v3907_v50  ;;  %v3636_v45 = vmul.f32 %v8494_v48, %v3906_v29  ;;  %v3637_v30 = vmul.f32 %v8494_v48, %v3907_v50  ;;  %v3909_v52 = vld [vmem:[#allocation2 + $0x151] sm:$0xff] }
 0x359   : > { %v3771_v63 = vadd.f32 %v3739_v16, %v3667_v36  ;;  %v3874_v46 = vadd.f32 %v3842_v32, %v3770_v55  ;;  %v3151_v19 = vmul.f32 %v8432_v37, %v3699_v1  ;;  %v3254_v38 = vadd.f32 %v3222_v14, %v3150_v47  ;;  %v5993_v8 = vpop.f32.mrb[20].mxu1 }
 0x35a   : > { %v3461_v5 = vadd.f32 %v3429_v62, %v3357_v57  ;;  %v3564_v54 = vadd.f32 %v3532_v49, %v3460_v9  ;;  %v3326_v31 = vmul.f32 %v8449_v58, %v3906_v29  ;;  %v3327_v35 = vmul.f32 %v8449_v58, %v3907_v50  ;;  %v2982_v44 = vpop.f32.mrb[21].mxu1 }
 0x35b   : > { %v2991_v12 = vadd.f32 %v5993_v8, %v8427_v33  ;;  %v3875_v21 = vadd.f32 %v3843_v26, %v3771_v63  ;;  %v3978_v2 = vadd.f32 %v3946_v56, %v3874_v46  ;;  %v3255_v43 = vadd.f32 %v3223_v20, %v3151_v19  ;;  %v5994_v11 = vpop.f32.mrb[22].mxu1  ;;  %v3908_v26 = vld [vmem:[#allocation2 + $0x149] sm:$0xff] }
 0x35c   : > { %v2983_v60 = vadd.f32 %v8427_v33, %v2982_v44  ;;  %v3565_v32 = vadd.f32 %v3533_v51, %v3461_v5  ;;  %v3668_v25 = vadd.f32 %v3636_v45, %v3564_v54  ;;  %v3358_v13 = vadd.f32 %v3326_v31, %v3254_v38  ;;  %v2985_v34 = vpop.f32.mrb[23].mxu1 }
 0x35d   : > { %v3051_v36 = vmax.f32 %v2991_v12, 0.0  ;;  %v2994_v28 = vadd.f32 %v5994_v11, %v8427_v33  ;;  %v3979_v10 = vadd.f32 %v3947_v39, %v3875_v21  ;;  %v3359_v49 = vadd.f32 %v3327_v35, %v3255_v43 }
 0x35e   : > { %v3049_v18 = vmax.f32 %v2983_v60, 0.0  ;;  %v2986_v41 = vadd.f32 %v8427_v33, %v2985_v34  ;;  %v3669_v14 = vadd.f32 %v3637_v30, %v3565_v32  ;;  %v3772_v53 = vadd.f32 %v3740_v61, %v3668_v25 }
 0x35f   : > { %3083 = vst [vmem:[#allocation2 + $0x188] sm:$0xff] %v3051_v36  ;;  %v8792_v47 = vmax.f32 %v2994_v28, 0.0  ;;  %v4003_v1 = vpack.c.bf16 %v3979_v10, %v3978_v2  ;;  %v3431_v51 = vmul.f32 %v8466_v27, %v8769_v6  ;;  %v3462_v29 = vadd.f32 %v3430_v40, %v3358_v13  ;;  %v3185_v40 = vld [vmem:[#allocation2 + $0x150] sm:$0xff] }
 0x360   : > { %3081 = vst [vmem:[#allocation2 + $0x168] sm:$0xff] %v3049_v18  ;;  %v8796_v50 = vmax.f32 %v2986_v41, 0.0  ;;  %v3773_v57 = vadd.f32 %v3741_v59, %v3669_v14  ;;  %v3876_v20 = vadd.f32 %v3844_v7, %v3772_v53  ;;  %v3534_v33 = vmul.f32 %v8456_v15, %v8758_v0 }
 0x361   : > { %3084 = vst [vmem:[#allocation2 + $0x190] sm:$0xff] %v8792_v47  ;;  %6032 = vmatmul.mubr.bf16.gmra.mrb[44].mxu0 %v4003_v1  ;;  %v3948_v61 = vmul.f32 %v8486_v17, %v3908_v26  ;;  %v3949_v16 = vmul.f32 %v8486_v17, %v3909_v52  ;;  %v3463_v55 = vadd.f32 %v3431_v51, %v3359_v49 }
 0x362   : > { %v3535_v56 = vmul.f32 %v8456_v15, %v8731_v4  ;;  %3082 = vst [vmem:[#allocation2 + $0x170] sm:$0xff] %v8796_v50  ;;  %v3877_v59 = vadd.f32 %v8764_v42, %v3773_v57  ;;  %v3566_v7 = vadd.f32 %v3534_v33, %v3462_v29  ;;  %v3638_v39 = vmul.f32 %v8494_v48, %v3908_v26 }
 0x363   : > { %v3639_v62 = vmul.f32 %v8494_v48, %v3909_v52  ;;  %v3980_v9 = vadd.f32 %v3948_v61, %v3876_v20  ;;  %v3152_v30 = vmul.f32 %v8432_v37, %v8756_v3  ;;  %v3153_v63 = vmul.f32 %v8432_v37, %v8769_v6 }
 0x364   : > { %v3567_v45 = vadd.f32 %v3535_v56, %v3463_v55  ;;  %v3981_v46 = vadd.f32 %v3949_v16, %v3877_v59  ;;  %v3846_v4 = vmul.f32 %v8461_v22, %v3049_v18  ;;  %v3224_v19 = vmul.f32 %v8440_v23, %v8758_v0 }
 0x365   : > { %v3225_v42 = vmul.f32 %v8440_v23, %v3185_v40  ;;  %v3670_v38 = vadd.f32 %v3638_v39, %v3566_v7  ;;  %v3847_v5 = vmul.f32 %v8461_v22, %v8796_v50  ;;  %v3328_v54 = vmul.f32 %v8449_v58, %v3908_v26 }
 0x366   : > { %v3671_v8 = vadd.f32 %v3639_v62, %v3567_v45  ;;  %v4004_v31 = vpack.c.bf16 %v3981_v46, %v3980_v9  ;;  %v3256_v3 = vadd.f32 %v3224_v19, %v3152_v30  ;;  %v3329_v37 = vmul.f32 %v8449_v58, %v3909_v52  ;;  %v8821_v6 = vld [vmem:[#allocation2 + $0x187] sm:$0xff] }
 0x367   : > { %v3257_v35 = vadd.f32 %v3225_v42, %v3153_v63  ;;  %v8823_v12 = vld [vmem:[#allocation2 + $0x188] sm:$0xff]  ;;  %v3536_v0 = vmul.f32 %v8456_v15, %v3049_v18  ;;  %v3537_v23 = vmul.f32 %v8456_v15, %v8796_v50  ;;  %v3744_v21 = vmul.f32 %v8471_v24, %v8821_v6  ;;  %v8845_v15 = vld [vmem:[%s9874_s17 + $0x1] ss:$0 sm:$0xff] }
 0x368   : > { %v3702_v44 = vld [vmem:[#allocation2 + $0x167] sm:$0xff]  ;;  %v8832_v2 = vmul.f32 %v8461_v22, %v8823_v12  ;;  %6035 = vmatprep.mubr.bf16.mxu0 %v4004_v31  ;;  %v8836_v60 = vld [vmem:[#allocation2 + $0x18f] sm:$0xff]  ;;  %v8840_v11 = vmul.f32 %v8461_v22, %v8792_v47  ;;  %v3226_v32 = vmul.f32 %v8845_v15, %v3049_v18  ;;  %v3360_v28 = vadd.f32 %v3328_v54, %v3256_v3  ;;  %v8853_v22 = vld [vmem:[%s9874_s17] ss:$0 sm:$0xff] }
 0x369   : > { %v3742_v58 = vmul.f32 %v8471_v24, %v3702_v44  ;;  %v3432_v43 = vmul.f32 %v8466_v27, %v3702_v44  ;;  %v3703_v25 = vld [vmem:[#allocation2 + $0x16f] sm:$0xff]  ;;  %v3361_v34 = vadd.f32 %v3329_v37, %v3257_v35  ;;  %v3745_v10 = vmul.f32 %v8471_v24, %v8836_v60 }
 0x36a   : > { %v3910_v13 = vld [vmem:[#allocation2 + $0x169] sm:$0xff]  ;;  %v3911_v36 = vld [vmem:[#allocation2 + $0x171] sm:$0xff]  ;;  %v3154_v49 = vmul.f32 %v8853_v22, %v3702_v44  ;;  %v3743_v41 = vmul.f32 %v8471_v24, %v3703_v25  ;;  %v3433_v26 = vmul.f32 %v8466_v27, %v3703_v25  ;;  %v3155_v20 = vmul.f32 %v8853_v22, %v3703_v25  ;;  %v8868_v27 = vld [vmem:[%s9874_s17 + $0x2] ss:$0 sm:$0xff] }
 0x36b   : > { %v3774_v14 = vadd.f32 %v3742_v58, %v3670_v38  ;;  %v3950_v18 = vmul.f32 %v8486_v17, %v3910_v13  ;;  %v3951_v53 = vmul.f32 %v8486_v17, %v3911_v36  ;;  %v3464_v52 = vadd.f32 %v3432_v43, %v3360_v28  ;;  %v5997_v24 = vpop.f32.mrb[24].mxu1  ;;  %v3912_v31 = vld [vmem:[#allocation2 + $0x189] sm:$0xff]  ;;  %v3913_v3 = vld [vmem:[#allocation2 + $0x191] sm:$0xff]  ;;  %v8907_v25 = vld [vmem:[%s9874_s17 + $0x8] ss:$0 sm:$0xff] }
 0x36c   : > { %v3640_v1 = vmul.f32 %v8494_v48, %v3910_v13  ;;  %v3641_v51 = vmul.f32 %v8494_v48, %v3911_v36  ;;  %v3775_v29 = vadd.f32 %v3743_v41, %v3671_v8  ;;  %v3227_v33 = vmul.f32 %v8845_v15, %v8796_v50  ;;  %v8874_v48 = vld [vmem:[%s9873_s23] ss:$0 sm:$0xff]  ;;  %v2998_v50 = vpop.f32.mrb[25].mxu1 }
 0x36d   : > { %v3878_v57 = vadd.f32 %v3846_v4, %v3774_v14  ;;  %v3465_v61 = vadd.f32 %v3433_v26, %v3361_v34  ;;  %v3568_v16 = vadd.f32 %v3536_v0, %v3464_v52  ;;  %v3258_v55 = vadd.f32 %v3226_v32, %v3154_v49  ;;  %v5998_v62 = vpop.f32.mrb[26].mxu1  ;;  %v8893_v0 = vld [vmem:[%s9874_s17 + $0x3] ss:$0 sm:$0xff]  ;;  %v8925_v14 = vld [vmem:[%s9874_s17 + $0x5] ss:$0 sm:$0xff] }
 0x36e   : > { %v3330_v17 = vmul.f32 %v8868_v27, %v3910_v13  ;;  %v8877_v56 = vadd.f32 %v8874_v48, %v5997_v24  ;;  %v3879_v40 = vadd.f32 %v3847_v5, %v3775_v29  ;;  %v3259_v7 = vadd.f32 %v3227_v33, %v3155_v20  ;;  %v3001_v4 = vpop.f32.mrb[27].mxu1  ;;  %v8938_v20 = vld [vmem:[%s9874_s17 + $0x7] ss:$0 sm:$0xff] }
 0x36f   : > { %v3982_v59 = vadd.f32 %v3950_v18, %v3878_v57  ;;  %v2999_v39 = vadd.f32 %v8874_v48, %v2998_v50  ;;  %v3569_v9 = vadd.f32 %v3537_v23, %v3465_v61  ;;  %v3672_v45 = vadd.f32 %v3640_v1, %v3568_v16 }
 0x370   : > { %v3331_v30 = vmul.f32 %v8868_v27, %v3911_v36  ;;  %v3055_v63 = vmax.f32 %v8877_v56, 0.0  ;;  %v3010_v46 = vadd.f32 %v8874_v48, %v5998_v62  ;;  %v3983_v19 = vadd.f32 %v3951_v53, %v3879_v40  ;;  %v3189_v53 = vld [vmem:[#allocation2 + $0x190] sm:$0xff]  ;;  %v8956_v62 = vld [vmem:[%s9874_s17 + $0x6] ss:$0 sm:$0xff] }
 0x371   : > { %v3362_v42 = vadd.f32 %v3330_v17, %v3258_v55  ;;  %v8883_v38 = vmax.f32 %v2999_v39, 0.0  ;;  %v3002_v8 = vadd.f32 %v8874_v48, %v3001_v4  ;;  %v3673_v5 = vadd.f32 %v3641_v51, %v3569_v9 }
 0x372   : > { %v3776_v54 = vadd.f32 %v3744_v21, %v3672_v45  ;;  %3087 = vst [vmem:[#allocation2 + $0x1c8] sm:$0xff] %v3055_v63  ;;  %v8888_v35 = vmax.f32 %v3010_v46, 0.0  ;;  %v4005_v37 = vpack.c.bf16 %v3983_v19, %v3982_v59  ;;  %v3363_v44 = vadd.f32 %v3331_v30, %v3259_v7 }
 0x373   : > { %v3434_v23 = vmul.f32 %v8893_v0, %v8821_v6  ;;  %3085 = vst [vmem:[#allocation2 + $0x1a8] sm:$0xff] %v8883_v38  ;;  %v8898_v21 = vmax.f32 %v3002_v8, 0.0  ;;  %v3777_v58 = vadd.f32 %v3745_v10, %v3673_v5  ;;  %v3435_v32 = vmul.f32 %v8893_v0, %v8836_v60 }
 0x374   : > { %v3880_v43 = vadd.f32 %v8832_v2, %v3776_v54  ;;  %3088 = vst [vmem:[#allocation2 + $0x1d0] sm:$0xff] %v8888_v35  ;;  %6036 = vmatmul.mubr.bf16.gmra.mrb[48].mxu0 %v4005_v37  ;;  %v3952_v13 = vmul.f32 %v8907_v25, %v3912_v31  ;;  %v3953_v36 = vmul.f32 %v8907_v25, %v3913_v3  ;;  %v8914_v2 = vld [vmem:[%s9874_s17 + $0x4] ss:$0 sm:$0xff] }
 0x375   : > { %v3466_v28 = vadd.f32 %v3434_v23, %v3362_v42  ;;  %v3538_v34 = vmul.f32 %v8914_v2, %v8823_v12  ;;  %3086 = vst [vmem:[#allocation2 + $0x1b0] sm:$0xff] %v8898_v21  ;;  %v3881_v10 = vadd.f32 %v8840_v11, %v3777_v58  ;;  %v3467_v49 = vadd.f32 %v3435_v32, %v3363_v44 }
 0x376   : > { %v3539_v41 = vmul.f32 %v8914_v2, %v8792_v47  ;;  %v3642_v18 = vmul.f32 %v8925_v14, %v3912_v31  ;;  %v3984_v26 = vadd.f32 %v3952_v13, %v3880_v43  ;;  %v3643_v1 = vmul.f32 %v8925_v14, %v3913_v3 }
 0x377   : > { %v3570_v52 = vadd.f32 %v3538_v34, %v3466_v28  ;;  %v3156_v51 = vmul.f32 %v8853_v22, %v8821_v6  ;;  %v3985_v11 = vadd.f32 %v3953_v36, %v3881_v10  ;;  %v3157_v47 = vmul.f32 %v8853_v22, %v8836_v60 }
 0x378   : > { %v3571_v29 = vadd.f32 %v3539_v41, %v3467_v49  ;;  %v3228_v57 = vmul.f32 %v8845_v15, %v8823_v12  ;;  %v3850_v33 = vmul.f32 %v8938_v20, %v8883_v38  ;;  %v3851_v24 = vmul.f32 %v8938_v20, %v8898_v21 }
 0x379   : > { %v3229_v6 = vmul.f32 %v8845_v15, %v3189_v53  ;;  %v3332_v61 = vmul.f32 %v8868_v27, %v3912_v31  ;;  %v4006_v16 = vpack.c.bf16 %v3985_v11, %v3984_v26  ;;  %v3674_v60 = vadd.f32 %v3642_v18, %v3570_v52  ;;  %v8947_v17 = vld [vmem:[#allocation2 + $0x1c7] sm:$0xff] }
 0x37a   : > { %v3260_v55 = vadd.f32 %v3228_v57, %v3156_v51  ;;  %v3333_v12 = vmul.f32 %v8868_v27, %v3913_v3  ;;  %v3675_v50 = vadd.f32 %v3643_v1, %v3571_v29  ;;  %v3706_v40 = vld [vmem:[#allocation2 + $0x1a7] sm:$0xff]  ;;  %v3540_v7 = vmul.f32 %v8914_v2, %v8883_v38 }
 0x37b   : > { %v3261_v59 = vadd.f32 %v3229_v6, %v3157_v47  ;;  %v3541_v39 = vmul.f32 %v8914_v2, %v8898_v21  ;;  %6039 = vmatprep.mubr.bf16.mxu0 %v4006_v16  ;;  %v3746_v9 = vmul.f32 %v8956_v62, %v3706_v40  ;;  %v3436_v45 = vmul.f32 %v8893_v0, %v3706_v40  ;;  %v8960_v30 = vld [vmem:[#allocation2 + $0x1cf] sm:$0xff] }
 0x37c   : > { %v3748_v46 = vmul.f32 %v8956_v62, %v8947_v17  ;;  %v3852_v4 = vmul.f32 %v8938_v20, %v3055_v63  ;;  %v3707_v19 = vld [vmem:[#allocation2 + $0x1af] sm:$0xff]  ;;  %v3364_v5 = vadd.f32 %v3332_v61, %v3260_v55  ;;  %v3749_v31 = vmul.f32 %v8956_v62, %v8960_v30  ;;  %v6001_v58 = vpop.f32.mrb[28].mxu1 }
 0x37d   : > { %v3914_v42 = vld [vmem:[#allocation2 + $0x1a9] sm:$0xff]  ;;  %v3915_v8 = vld [vmem:[#allocation2 + $0x1b1] sm:$0xff]  ;;  %v3365_v54 = vadd.f32 %v3333_v12, %v3261_v59  ;;  %v3853_v3 = vmul.f32 %v8938_v20, %v8888_v35  ;;  %v3747_v37 = vmul.f32 %v8956_v62, %v3707_v19  ;;  %v3778_v44 = vadd.f32 %v3746_v9, %v3674_v60  ;;  %v3014_v28 = vpop.f32.mrb[29].mxu1 }
 0x37e   : > { %v3954_v23 = vmul.f32 %v8907_v25, %v3914_v42  ;;  %v3955_v56 = vmul.f32 %v8907_v25, %v3915_v8  ;;  %v3437_v63 = vmul.f32 %v8893_v0, %v3707_v19  ;;  %v3468_v43 = vadd.f32 %v3436_v45, %v3364_v5  ;;  %v6002_v18 = vpop.f32.mrb[30].mxu1  ;;  %v3916_v55 = vld [vmem:[#allocation2 + $0x1c9] sm:$0xff]  ;;  %v3917_v12 = vld [vmem:[#allocation2 + $0x1d1] sm:$0xff] }
 0x37f   : > { %v3644_v32 = vmul.f32 %v8925_v14, %v3914_v42  ;;  %v3645_v13 = vmul.f32 %v8925_v14, %v3915_v8  ;;  %v8978_v36 = vadd.f32 %v8874_v48, %v6001_v58  ;;  %v3779_v34 = vadd.f32 %v3747_v37, %v3675_v50  ;;  %v3017_v11 = vpop.f32.mrb[31].mxu1 }
 0x380   : > { %v3882_v10 = vadd.f32 %v3850_v33, %v3778_v44  ;;  %v3158_v49 = vmul.f32 %v8853_v22, %v3706_v40  ;;  %v3015_v41 = vadd.f32 %v8874_v48, %v3014_v28  ;;  %v3469_v53 = vadd.f32 %v3437_v63, %v3365_v54  ;;  %v6251_v40 = vld [vmem:[#allocation11 + $0x20] sm:$0xff]  }
 0x381   : > { %v3572_v26 = vadd.f32 %v3540_v7, %v3468_v43  ;;  %v3159_v52 = vmul.f32 %v8853_v22, %v3707_v19  ;;  %v3059_v1 = vmax.f32 %v8978_v36, 0.0  ;;  %v3026_v51 = vadd.f32 %v8874_v48, %v6002_v18  ;;  %6059 = vmatprep.subr.bf16.mxu1 %v6251_v40 }
 0x382   : > { %v3883_v29 = vadd.f32 %v3851_v24, %v3779_v34  ;;  %v3986_v47 = vadd.f32 %v3954_v23, %v3882_v10  ;;  %v8985_v57 = vmax.f32 %v3015_v41, 0.0  ;;  %v3018_v33 = vadd.f32 %v8874_v48, %v3017_v11  ;;  %6060 = vmatpush3.bf16.msra.mxu1 %v6251_v40 }
 0x383   : > { %v3573_v6 = vadd.f32 %v3541_v39, %v3469_v53  ;;  %v3676_v61 = vadd.f32 %v3644_v32, %v3572_v26  ;;  %3091 = vst [vmem:[#allocation2 + $0x208] sm:$0xff] %v3059_v1  ;;  %v8990_v16 = vmax.f32 %v3026_v51, 0.0  ;;  %v3230_v50 = vmul.f32 %v8845_v15, %v8883_v38  ;;  %v3502_v38 = vld [vmem:[#allocation2 + $0x1c8] sm:$0xff] }
 0x384   : > { %v3987_v60 = vadd.f32 %v3955_v56, %v3883_v29  ;;  %v3231_v24 = vmul.f32 %v8845_v15, %v8898_v21  ;;  %3089 = vst [vmem:[#allocation2 + $0x1e8] sm:$0xff] %v8985_v57  ;;  %v8997_v48 = vmax.f32 %v3018_v33, 0.0  ;;  %v3334_v39 = vmul.f32 %v8868_v27, %v3914_v42 }
 0x385   : > { %v3677_v59 = vadd.f32 %v3645_v13, %v3573_v6  ;;  %v3780_v7 = vadd.f32 %v3748_v46, %v3676_v61  ;;  %3092 = vst [vmem:[#allocation2 + $0x210] sm:$0xff] %v8990_v16  ;;  %v3262_v45 = vadd.f32 %v3230_v50, %v3158_v49  ;;  %v3335_v5 = vmul.f32 %v8868_v27, %v3915_v8 }
 0x386   : > { %v4007_v9 = vpack.c.bf16 %v3987_v60, %v3986_v47  ;;  %v3263_v19 = vadd.f32 %v3231_v24, %v3159_v52  ;;  %3090 = vst [vmem:[#allocation2 + $0x1f0] sm:$0xff] %v8997_v48  ;;  %v3956_v37 = vmul.f32 %v8907_v25, %v3916_v55  ;;  %v3957_v44 = vmul.f32 %v8907_v25, %v3917_v12 }
 0x387   : > { %v3781_v21 = vadd.f32 %v3749_v31, %v3677_v59  ;;  %v3884_v54 = vadd.f32 %v3852_v4, %v3780_v7  ;;  %v3366_v46 = vadd.f32 %v3334_v39, %v3262_v45  ;;  %v3438_v23 = vmul.f32 %v8893_v0, %v8947_v17 }
 0x388   : > { %6040 = vmatmul.mubr.bf16.gmra.mrb[52].mxu0 %v4007_v9  ;;  %v3367_v42 = vadd.f32 %v3335_v5, %v3263_v19  ;;  %v3439_v8 = vmul.f32 %v8893_v0, %v8960_v30  ;;  %v3542_v63 = vmul.f32 %v8914_v2, %v3502_v38  ;;  %v3543_v4 = vmul.f32 %v8914_v2, %v8888_v35 }
 0x389   : > { %v3885_v56 = vadd.f32 %v3853_v3, %v3781_v21  ;;  %v3988_v58 = vadd.f32 %v3956_v37, %v3884_v54  ;;  %v3470_v31 = vadd.f32 %v3438_v23, %v3366_v46  ;;  %v3646_v32 = vmul.f32 %v8925_v14, %v3916_v55 }
 0x38a   : > { %v3471_v43 = vadd.f32 %v3439_v8, %v3367_v42  ;;  %v3647_v13 = vmul.f32 %v8925_v14, %v3917_v12  ;;  %v3160_v34 = vmul.f32 %v8853_v22, %v8947_v17  ;;  %v3161_v10 = vmul.f32 %v8853_v22, %v8960_v30  ;;  %v3712_v19 = vld [vmem:[#allocation2 + $0x207] sm:$0xff] }
 0x38b   : > { %v3989_v28 = vadd.f32 %v3957_v44, %v3885_v56  ;;  %v3232_v3 = vmul.f32 %v8845_v15, %v3502_v38  ;;  %v3574_v49 = vadd.f32 %v3542_v63, %v3470_v31  ;;  %v3710_v18 = vld [vmem:[#allocation2 + $0x1e7] sm:$0xff]  ;;  %v3233_v53 = vmul.f32 %v8845_v15, %v8888_v35 }
 0x38c   : > { %v3575_v41 = vadd.f32 %v3543_v4, %v3471_v43  ;;  %v3336_v26 = vmul.f32 %v8868_v27, %v3916_v55  ;;  %v3750_v51 = vmul.f32 %v8956_v62, %v3710_v18  ;;  %v3337_v29 = vmul.f32 %v8868_v27, %v3917_v12  ;;  %v3713_v5 = vld [vmem:[#allocation2 + $0x20f] sm:$0xff] }
 0x38d   : > { %v4008_v52 = vpack.c.bf16 %v3989_v28, %v3988_v58  ;;  %v3264_v11 = vadd.f32 %v3232_v3, %v3160_v34  ;;  %v3678_v17 = vadd.f32 %v3646_v32, %v3574_v49  ;;  %v3711_v33 = vld [vmem:[#allocation2 + $0x1ef] sm:$0xff]  ;;  %v3265_v6 = vadd.f32 %v3233_v53, %v3161_v10 }
 0x38e   : > { %v3679_v47 = vadd.f32 %v3647_v13, %v3575_v41  ;;  %v3918_v30 = vld [vmem:[#allocation2 + $0x1e9] sm:$0xff]  ;;  %v3440_v61 = vmul.f32 %v8893_v0, %v3710_v18  ;;  %v3751_v60 = vmul.f32 %v8956_v62, %v3711_v33  ;;  %v3854_v35 = vmul.f32 %v8938_v20, %v8985_v57  ;;  %v3919_v55 = vld [vmem:[#allocation2 + $0x1f1] sm:$0xff] }
 0x38f   : > { %6043 = vmatprep.mubr.bf16.mxu0 %v4008_v52  ;;  %v3368_v50 = vadd.f32 %v3336_v26, %v3264_v11  ;;  %v3782_v24 = vadd.f32 %v3750_v51, %v3678_v17  ;;  %v3855_v40 = vmul.f32 %v8938_v20, %v8997_v48  ;;  %v3369_v12 = vadd.f32 %v3337_v29, %v3265_v6  ;;  %v3920_v28 = vld [vmem:[#allocation2 + $0x209] sm:$0xff]  ;;  %v3921_v34 = vld [vmem:[#allocation2 + $0x211] sm:$0xff] }
 0x390   : > { %v3441_v59 = vmul.f32 %v8893_v0, %v3711_v33  ;;  %v3783_v7 = vadd.f32 %v3751_v60, %v3679_v47  ;;  %v3958_v39 = vmul.f32 %v8907_v25, %v3918_v30  ;;  %v3544_v45 = vmul.f32 %v8914_v2, %v8985_v57  ;;  %v6252_v41 = vld [vmem:[#allocation11 + $0x28] sm:$0xff]  }
 0x391   : > { %v3472_v9 = vadd.f32 %v3440_v61, %v3368_v50  ;;  %v3886_v38 = vadd.f32 %v3854_v35, %v3782_v24  ;;  %v3959_v21 = vmul.f32 %v8907_v25, %v3919_v55  ;;  %v3545_v37 = vmul.f32 %v8914_v2, %v8997_v48  ;;  %6061 = vmatprep.subr.bf16.mxu1 %v6252_v41  ;;  %v3714_v6 = vld [vmem:[#allocation2 + $0x227] sm:$0xff]  ;;  %v3715_v60 = vld [vmem:[#allocation2 + $0x22f] sm:$0xff] }
 0x392   : > { %v3473_v54 = vadd.f32 %v3441_v59, %v3369_v12  ;;  %v3887_v44 = vadd.f32 %v3855_v40, %v3783_v7  ;;  %v3648_v42 = vmul.f32 %v8925_v14, %v3918_v30  ;;  %v3649_v23 = vmul.f32 %v8925_v14, %v3919_v55  ;;  %6062 = vmatpush3.bf16.msra.mxu1 %v6252_v41 }
 0x393   : > { %v3576_v46 = vadd.f32 %v3544_v45, %v3472_v9  ;;  %v3752_v56 = vmul.f32 %v8956_v62, %v3712_v19  ;;  %v3753_v58 = vmul.f32 %v8956_v62, %v3713_v5  ;;  %v3856_v63 = vmul.f32 %v8938_v20, %v3059_v1  ;;  %v3922_v45 = vld [vmem:[#allocation2 + $0x229] sm:$0xff] }
 0x394   : > { %v3577_v8 = vadd.f32 %v3545_v37, %v3473_v54  ;;  %v3990_v4 = vadd.f32 %v3958_v39, %v3886_v38  ;;  %v3991_v31 = vadd.f32 %v3959_v21, %v3887_v44  ;;  %v3162_v32 = vmul.f32 %v8853_v22, %v3710_v18 }
 0x395   : > { %v3680_v43 = vadd.f32 %v3648_v42, %v3576_v46  ;;  %v3163_v10 = vmul.f32 %v8853_v22, %v3711_v33  ;;  %v3234_v3 = vmul.f32 %v8845_v15, %v8985_v57  ;;  %v3235_v49 = vmul.f32 %v8845_v15, %v8997_v48  ;;  %v3506_v22 = vld [vmem:[#allocation2 + $0x208] sm:$0xff] }
 0x396   : > { %v3681_v13 = vadd.f32 %v3649_v23, %v3577_v8  ;;  %v4009_v36 = vpack.c.bf16 %v3991_v31, %v3990_v4  ;;  %v3857_v1 = vmul.f32 %v8938_v20, %v8990_v16  ;;  %v3338_v26 = vmul.f32 %v8868_v27, %v3918_v30 }
 0x397   : > { %v3784_v53 = vadd.f32 %v3752_v56, %v3680_v43  ;;  %v3266_v52 = vadd.f32 %v3234_v3, %v3162_v32  ;;  %v3267_v51 = vadd.f32 %v3235_v49, %v3163_v10  ;;  %v3339_v11 = vmul.f32 %v8868_v27, %v3919_v55  ;;  %v6254_v56 = vld [vmem:[#allocation11 + $0x38] sm:$0xff]   ;;  %v4309_v43 = vld [vmem:[#allocation2 + $0xf] sm:$0xff]  ;;  %v9082_v49 = vld [vmem:[%s9875_s1 + $0x1] ss:$0 sm:$0xff] }
 0x398   : > { %v3785_v18 = vadd.f32 %v3753_v58, %v3681_v13  ;;  %6044 = vmatmul.mubr.bf16.gmra.mrb[56].mxu0 %v4009_v36  ;;  %v3960_v29 = vmul.f32 %v8907_v25, %v3920_v28  ;;  %v3961_v15 = vmul.f32 %v8907_v25, %v3921_v34  ;;  %v3442_v48 = vmul.f32 %v8893_v0, %v3712_v19  ;;  %v3923_v19 = vld [vmem:[#allocation2 + $0x231] sm:$0xff]  ;;  %v9068_v58 = vld [vmem:[#allocation14] ss:$0 sm:$0xff] }
 0x399   : > { %v3888_v57 = vadd.f32 %v3856_v63, %v3784_v53  ;;  %v3370_v47 = vadd.f32 %v3338_v26, %v3266_v52  ;;  %v3371_v33 = vadd.f32 %v3339_v11, %v3267_v51  ;;  %v3443_v30 = vmul.f32 %v8893_v0, %v3713_v5  ;;  %v6290_v5 = vld [vmem:[#allocation2] sm:$0xff]  ;;  %v4484_v52 = vld [vmem:[#allocation2 + $0x11] sm:$0xff] }
 0x39a   : > { %v3889_v17 = vadd.f32 %v3857_v1, %v3785_v18  ;;  %v3546_v61 = vmul.f32 %v8914_v2, %v3506_v22  ;;  %v3547_v27 = vmul.f32 %v8914_v2, %v8990_v16  ;;  %v3650_v40 = vmul.f32 %v8925_v14, %v3920_v28  ;;  %v4308_v63 = vld [vmem:[#allocation2 + $0x7] sm:$0xff]  ;;  %v9092_v51 = vld [vmem:[%s9875_s1 + $0x2] ss:$0 sm:$0xff] }
 0x39b   : > { %v3992_v35 = vadd.f32 %v3960_v29, %v3888_v57  ;;  %v3474_v50 = vadd.f32 %v3442_v48, %v3370_v47  ;;  %v3475_v24 = vadd.f32 %v3443_v30, %v3371_v33  ;;  %v3651_v12 = vmul.f32 %v8925_v14, %v3921_v34  ;;  %v4483_v18 = vld [vmem:[#allocation2 + $0x9] sm:$0xff]  ;;  %v9100_v48 = vld [vmem:[%s9875_s1 + $0x7] ss:$0 sm:$0xff]  ;;  %v9110_v47 = vld [vmem:[%s9875_s1 + $0x3] ss:$0 sm:$0xff] }
 0x39c   : > { %v3993_v55 = vadd.f32 %v3961_v15, %v3889_v17  ;;  %v3754_v59 = vmul.f32 %v8956_v62, %v3714_v6  ;;  %v3755_v9 = vmul.f32 %v8956_v62, %v3715_v60  ;;  %v3858_v38 = vmul.f32 %v6290_v5, %v8938_v20  ;;  %v6253_v62 = vld [vmem:[#allocation11 + $0x30] sm:$0xff]   ;;  %v9105_v17 = vld [vmem:[%s9875_s1 + $0x4] ss:$0 sm:$0xff] }
 0x39d   : > { %v3578_v0 = vadd.f32 %v3546_v61, %v3474_v50  ;;  %v3579_v39 = vadd.f32 %v3547_v27, %v3475_v24  ;;  %v3962_v37 = vmul.f32 %v8907_v25, %v3922_v45  ;;  %v3963_v14 = vmul.f32 %v8907_v25, %v3923_v19  ;;  %6063 = vmatprep.subr.bf16.mxu1 %v6253_v62  ;;  %v9073_v25 = vld [vmem:[%s9875_s1] ss:$0 sm:$0xff]  ;;  %v9115_v61 = vld [vmem:[%s9875_s1 + $0x6] ss:$0 sm:$0xff] }
 0x39e   : > { %v4010_v7 = vpack.c.bf16 %v3993_v55, %v3992_v35  ;;  %6064 = vmatpush3.bf16.msra.mxu1 %v6253_v62  ;;  %v4347_v3 = vmul.f32 %v9073_v25, %v4308_v63  ;;  %v4348_v53 = vmul.f32 %v9073_v25, %v4309_v43  ;;  %v4419_v1 = vmul.f32 %v6290_v5, %v9082_v49 }
 0x39f   : > { %v3682_v2 = vadd.f32 %v3650_v40, %v3578_v0  ;;  %v3683_v16 = vadd.f32 %v3651_v12, %v3579_v39  ;;  %6065 = vmatprep.subr.bf16.mxu1 %v6254_v56  ;;  %v4523_v29 = vmul.f32 %v9092_v51, %v4483_v18  ;;  %v4524_v15 = vmul.f32 %v9092_v51, %v4484_v52  ;;  %v9126_v12 = vld [vmem:[%s9875_s1 + $0x5] ss:$0 sm:$0xff] }
 0x3a0   : > { %6047 = vmatprep.mubr.bf16.mxu0 %v4010_v7  ;;  %v4451_v22 = vadd.f32 %v4419_v1, %v4347_v3  ;;  %v4452_v57 = vadd.f32 %v4419_v1, %v4348_v53 }
 0x3a1   : > { %v3786_v21 = vadd.f32 %v3754_v59, %v3682_v2  ;;  %v3787_v54 = vadd.f32 %v3755_v9, %v3683_v16 }
 0x3a2   : > { %6066 = vmatpush3.bf16.msra.mxu1 %v6254_v56  ;;  %v4555_v33 = vadd.f32 %v4523_v29, %v4451_v22  ;;  %v4556_v30 = vadd.f32 %v4524_v15, %v4452_v57 }
 0x3a3   : > { %v3890_v44 = vadd.f32 %v3858_v38, %v3786_v21  ;;  %v3891_v46 = vadd.f32 %v3858_v38, %v3787_v54 }
 0x3a5   : > { %v3994_v42 = vadd.f32 %v3962_v37, %v3890_v44  ;;  %v3995_v23 = vadd.f32 %v3963_v14, %v3891_v46 }
 0x3a7   : > { %v4011_v8 = vpack.c.bf16 %v3995_v23, %v3994_v42 }
 0x3a9   : > { %6048 = vmatmul.mubr.bf16.gmra.mrb[60].mxu0 %v4011_v8 }
 0x3fb   : > { %v6021_v20 = vpop.f32.mrb[32].mxu0 }
 0x3fc   : > { %v4126_v4 = vadd.f32 %v6021_v20, %v9068_v58  ;;  %v4117_v31 = vpop.f32.mrb[33].mxu0 }
 0x3fd   : > { %v4118_v32 = vadd.f32 %v9068_v58, %v4117_v31  ;;  %v6022_v13 = vpop.f32.mrb[34].mxu0 }
 0x3fe   : > { %v4246_v28 = vmax.f32 %v4126_v4, 0.0  ;;  %v4129_v34 = vadd.f32 %v6022_v13, %v9068_v58  ;;  %v4120_v10 = vpop.f32.mrb[35].mxu0 }
 0x3ff   : > { %v4244_v41 = vmax.f32 %v4118_v32, 0.0  ;;  %v4121_v36 = vadd.f32 %v9068_v58, %v4120_v10 }
 0x400   : > { %4278 = vst [vmem:[#allocation2 + $0x48] sm:$0xff] %v4246_v28  ;;  %v9087_v26 = vmax.f32 %v4129_v34, 0.0  ;;  %v5043_v27 = vmul.f32 %v9100_v48, %v4246_v28  ;;  %v4733_v50 = vmul.f32 %v9105_v17, %v4246_v28  ;;  %v4423_v24 = vmul.f32 %v9082_v49, %v4246_v28 }
 0x401   : > { %4276 = vst [vmem:[#allocation2 + $0x28] sm:$0xff] %v4244_v41  ;;  %v4245_v11 = vmax.f32 %v4121_v36, 0.0  ;;  %v4731_v35 = vmul.f32 %v9105_v17, %v4244_v41  ;;  %v4421_v55 = vmul.f32 %v9082_v49, %v4244_v41 }
 0x402   : > { %4279 = vst [vmem:[#allocation2 + $0x50] sm:$0xff] %v9087_v26  ;;  %v5044_v7 = vmul.f32 %v9100_v48, %v9087_v26  ;;  %v4734_v39 = vmul.f32 %v9105_v17, %v9087_v26 }
 0x403   : > { %4277 = vst [vmem:[#allocation2 + $0x30] sm:$0xff] %v4245_v11  ;;  %v4732_v45 = vmul.f32 %v9105_v17, %v4245_v11  ;;  %v4422_v5 = vmul.f32 %v9082_v49, %v4245_v11 }
 0x407   : > { %v4899_v6 = vld [vmem:[#allocation2 + $0x47] sm:$0xff] }
 0x408   : > { %v4587_v60 = vld [vmem:[#allocation2 + $0x27] sm:$0xff]  ;;  %v4939_v16 = vmul.f32 %v9115_v61, %v4899_v6  ;;  %v4629_v38 = vmul.f32 %v9110_v47, %v4899_v6  ;;  %v4351_v14 = vmul.f32 %v9073_v25, %v4899_v6 }
 0x409   : > { %v4627_v40 = vmul.f32 %v9110_v47, %v4587_v60  ;;  %v4900_v59 = vld [vmem:[#allocation2 + $0x4f] sm:$0xff]  ;;  %v4349_v0 = vmul.f32 %v9073_v25, %v4587_v60  ;;  %v9156_v6 = vld [vmem:[%s9875_s1 + $0x8] ss:$0 sm:$0xff] }
 0x40a   : > { %v4588_v9 = vld [vmem:[#allocation2 + $0x2f] sm:$0xff]  ;;  %v4940_v37 = vmul.f32 %v9115_v61, %v4900_v59  ;;  %v4630_v23 = vmul.f32 %v9110_v47, %v4900_v59  ;;  %v4352_v41 = vmul.f32 %v9073_v25, %v4900_v59 }
 0x40b   : > { %v4795_v19 = vld [vmem:[#allocation2 + $0x29] sm:$0xff]  ;;  %v4796_v2 = vld [vmem:[#allocation2 + $0x31] sm:$0xff]  ;;  %v4628_v21 = vmul.f32 %v9110_v47, %v4588_v9  ;;  %v4659_v54 = vadd.f32 %v4627_v40, %v4555_v33  ;;  %v4350_v44 = vmul.f32 %v9073_v25, %v4588_v9  ;;  %v4453_v46 = vadd.f32 %v4421_v55, %v4349_v0 }
 0x40c   : > { %v4525_v42 = vmul.f32 %v9092_v51, %v4795_v19  ;;  %v4835_v20 = vmul.f32 %v9126_v12, %v4795_v19  ;;  %v4836_v63 = vmul.f32 %v9126_v12, %v4796_v2  ;;  %v4526_v32 = vmul.f32 %v9092_v51, %v4796_v2  ;;  %v5107_v18 = vld [vmem:[#allocation2 + $0x49] sm:$0xff] }
 0x40d   : > { %v6025_v8 = vpop.f32.mrb[36].mxu0  ;;  %v4660_v62 = vadd.f32 %v4628_v21, %v4556_v30  ;;  %v4763_v56 = vadd.f32 %v4731_v35, %v4659_v54  ;;  %v4454_v43 = vadd.f32 %v4422_v5, %v4350_v44  ;;  %v5108_v30 = vld [vmem:[#allocation2 + $0x51] sm:$0xff]  ;;  %v4424_v55 = vmul.f32 %v9082_v49, %v9087_v26 }
 0x40e   : > { %v4142_v4 = vadd.f32 %v6025_v8, %v9068_v58  ;;  %v4133_v31 = vpop.f32.mrb[37].mxu0  ;;  %v4557_v13 = vadd.f32 %v4525_v42, %v4453_v46  ;;  %v4837_v9 = vmul.f32 %v9126_v12, %v5107_v18  ;;  %v4455_v19 = vadd.f32 %v4423_v24, %v4351_v14 }
 0x40f   : > { %v4134_v28 = vadd.f32 %v9068_v58, %v4133_v31  ;;  %v6026_v34 = vpop.f32.mrb[38].mxu0  ;;  %v4764_v10 = vadd.f32 %v4732_v45, %v4660_v62  ;;  %v4867_v3 = vadd.f32 %v4835_v20, %v4763_v56  ;;  %v4558_v52 = vadd.f32 %v4526_v32, %v4454_v43 }
 0x410   : > { %v4250_v36 = vmax.f32 %v4142_v4, 0.0  ;;  %v4145_v53 = vadd.f32 %v6026_v34, %v9068_v58  ;;  %v4136_v1 = vpop.f32.mrb[39].mxu0  ;;  %v4661_v11 = vadd.f32 %v4629_v38, %v4557_v13  ;;  %v4456_v2 = vadd.f32 %v4424_v55, %v4352_v41 }
 0x411   : > { %v4248_v22 = vmax.f32 %v4134_v28, 0.0  ;;  %v4137_v57 = vadd.f32 %v9068_v58, %v4136_v1  ;;  %v4868_v29 = vadd.f32 %v4836_v63, %v4764_v10  ;;  %v4971_v15 = vadd.f32 %v4939_v16, %v4867_v3 }
 0x412   : > { %4282 = vst [vmem:[#allocation2 + $0x88] sm:$0xff] %v4250_v36  ;;  %v9151_v33 = vmax.f32 %v4145_v53, 0.0  ;;  %v4662_v60 = vadd.f32 %v4630_v23, %v4558_v52  ;;  %v4765_v35 = vadd.f32 %v4733_v50, %v4661_v11  ;;  %v4527_v16 = vmul.f32 %v9092_v51, %v5107_v18 }
 0x413   : > { %4280 = vst [vmem:[#allocation2 + $0x68] sm:$0xff] %v4248_v22  ;;  %v4249_v40 = vmax.f32 %v4137_v57, 0.0  ;;  %v4972_v59 = vadd.f32 %v4940_v37, %v4868_v29  ;;  %v5075_v0 = vadd.f32 %v5043_v27, %v4971_v15  ;;  %v5147_v50 = vmul.f32 %v9156_v6, %v5107_v18 }
 0x414   : > { %4283 = vst [vmem:[#allocation2 + $0x90] sm:$0xff] %v9151_v33  ;;  %v4766_v45 = vadd.f32 %v4734_v39, %v4662_v60  ;;  %v5148_v38 = vmul.f32 %v9156_v6, %v5108_v30  ;;  %v4838_v26 = vmul.f32 %v9126_v12, %v5108_v30  ;;  %v4869_v21 = vadd.f32 %v4837_v9, %v4765_v35 }
 0x415   : > { %4281 = vst [vmem:[#allocation2 + $0x70] sm:$0xff] %v4249_v40  ;;  %v5076_v5 = vadd.f32 %v5044_v7, %v4972_v59  ;;  %v5045_v27 = vmul.f32 %v9100_v48, %v4248_v22  ;;  %v4528_v54 = vmul.f32 %v9092_v51, %v5108_v30  ;;  %v5179_v37 = vadd.f32 %v5147_v50, %v5075_v0 }
 0x416   : > { %v5046_v24 = vmul.f32 %v9100_v48, %v4249_v40  ;;  %v4735_v39 = vmul.f32 %v9105_v17, %v4248_v22  ;;  %v4870_v14 = vadd.f32 %v4838_v26, %v4766_v45  ;;  %v4559_v46 = vadd.f32 %v4527_v16, %v4455_v19 }
 0x417   : > { %v5180_v44 = vadd.f32 %v5148_v38, %v5076_v5  ;;  %v4560_v7 = vadd.f32 %v4528_v54, %v4456_v2  ;;  %v4736_v42 = vmul.f32 %v9105_v17, %v4249_v40  ;;  %v9172_v62 = vmul.f32 %v9100_v48, %v4250_v36 }
 0x418   : > { %v9176_v56 = vmul.f32 %v9100_v48, %v9151_v33  ;;  %v4425_v20 = vmul.f32 %v9082_v49, %v4248_v22  ;;  %v4426_v4 = vmul.f32 %v9082_v49, %v4249_v40  ;;  %v9181_v31 = vmul.f32 %v9105_v17, %v4250_v36 }
 0x419   : > { %v5211_v23 = vpack.c.bf16 %v5180_v44, %v5179_v37  ;;  %v4903_v8 = vld [vmem:[#allocation2 + $0x87] sm:$0xff]  ;;  %v9185_v43 = vmul.f32 %v9105_v17, %v9151_v33  ;;  %v9188_v32 = vmul.f32 %v9082_v49, %v4250_v36 }
 0x41a   : > { %v4901_v63 = vld [vmem:[#allocation2 + $0x67] sm:$0xff]  ;;  %v4943_v10 = vmul.f32 %v9115_v61, %v4903_v8  ;;  %v4633_v36 = vmul.f32 %v9110_v47, %v4903_v8  ;;  %v4355_v11 = vmul.f32 %v9073_v25, %v4903_v8 }
 0x41b   : > { %6067 = vmatprep.mubr.bf16.mxu1 %v5211_v23  ;;  %v4941_v13 = vmul.f32 %v9115_v61, %v4901_v63  ;;  %v4631_v28 = vmul.f32 %v9110_v47, %v4901_v63  ;;  %v9192_v34 = vld [vmem:[#allocation2 + $0x8f] sm:$0xff]  ;;  %v4353_v3 = vmul.f32 %v9073_v25, %v4901_v63 }
 0x41c   : > { %v4902_v41 = vld [vmem:[#allocation2 + $0x6f] sm:$0xff]  ;;  %v4944_v18 = vmul.f32 %v9115_v61, %v9192_v34  ;;  %v4634_v52 = vmul.f32 %v9110_v47, %v9192_v34 }
 0x41d   : > { %v5109_v53 = vld [vmem:[#allocation2 + $0x69] sm:$0xff]  ;;  %v5110_v1 = vld [vmem:[#allocation2 + $0x71] sm:$0xff]  ;;  %v4942_v22 = vmul.f32 %v9115_v61, %v4902_v41  ;;  %v4973_v57 = vadd.f32 %v4941_v13, %v4869_v21  ;;  %v4632_v30 = vmul.f32 %v9110_v47, %v4902_v41  ;;  %v4663_v60 = vadd.f32 %v4631_v28, %v4559_v46 }
 0x41e   : > { %v5149_v29 = vmul.f32 %v9156_v6, %v5109_v53  ;;  %v5150_v15 = vmul.f32 %v9156_v6, %v5110_v1  ;;  %v4839_v35 = vmul.f32 %v9126_v12, %v5109_v53  ;;  %v4840_v55 = vmul.f32 %v9126_v12, %v5110_v1 }
 0x41f   : > { %v4974_v40 = vadd.f32 %v4942_v22, %v4870_v14  ;;  %v5077_v59 = vadd.f32 %v5045_v27, %v4973_v57  ;;  %v4354_v0 = vmul.f32 %v9073_v25, %v4902_v41  ;;  %v4457_v9 = vadd.f32 %v4425_v20, %v4353_v3  ;;  %v5111_v3 = vld [vmem:[#allocation2 + $0x89] sm:$0xff] }
 0x420   : > { %v6029_v45 = vpop.f32.mrb[40].mxu0  ;;  %v4664_v19 = vadd.f32 %v4632_v30, %v4560_v7  ;;  %v4767_v2 = vadd.f32 %v4735_v39, %v4663_v60  ;;  %v4529_v16 = vmul.f32 %v9092_v51, %v5109_v53  ;;  %v4530_v5 = vmul.f32 %v9092_v51, %v5110_v1 }
 0x421   : > { %v4158_v50 = vadd.f32 %v6029_v45, %v9068_v58  ;;  %v4149_v38 = vpop.f32.mrb[41].mxu0  ;;  %v5078_v26 = vadd.f32 %v5046_v24, %v4974_v40  ;;  %v5181_v21 = vadd.f32 %v5149_v29, %v5077_v59  ;;  %v4458_v54 = vadd.f32 %v4426_v4, %v4354_v0  ;;  %v5112_v4 = vld [vmem:[#allocation2 + $0x91] sm:$0xff] }
 0x422   : > { %v4150_v37 = vadd.f32 %v9068_v58, %v4149_v38  ;;  %v6030_v44 = vpop.f32.mrb[42].mxu0  ;;  %v4768_v27 = vadd.f32 %v4736_v42, %v4664_v19  ;;  %v4871_v14 = vadd.f32 %v4839_v35, %v4767_v2  ;;  %v4561_v46 = vadd.f32 %v4529_v16, %v4457_v9 }
 0x423   : > { %v9213_v23 = vmax.f32 %v4158_v50, 0.0  ;;  %v4161_v39 = vadd.f32 %v6030_v44, %v9068_v58  ;;  %v4152_v7 = vpop.f32.mrb[43].mxu0  ;;  %v5182_v8 = vadd.f32 %v5150_v15, %v5078_v26  ;;  %v4562_v20 = vadd.f32 %v4530_v5, %v4458_v54 }
 0x424   : > { %v4252_v63 = vmax.f32 %v4150_v37, 0.0  ;;  %v4153_v13 = vadd.f32 %v9068_v58, %v4152_v7  ;;  %v4872_v28 = vadd.f32 %v4840_v55, %v4768_v27  ;;  %v4975_v24 = vadd.f32 %v4943_v10, %v4871_v14 }
 0x425   : > { %4286 = vst [vmem:[#allocation2 + $0xc8] sm:$0xff] %v9213_v23  ;;  %v9218_v41 = vmax.f32 %v4161_v39, 0.0  ;;  %v5212_v42 = vpack.c.bf16 %v5182_v8, %v5181_v21  ;;  %v4665_v53 = vadd.f32 %v4633_v36, %v4561_v46  ;;  %v4666_v1 = vadd.f32 %v4634_v52, %v4562_v20 }
 0x426   : > { %4284 = vst [vmem:[#allocation2 + $0xa8] sm:$0xff] %v4252_v63  ;;  %v4253_v22 = vmax.f32 %v4153_v13, 0.0  ;;  %v4976_v57 = vadd.f32 %v4944_v18, %v4872_v28  ;;  %v5079_v29 = vadd.f32 %v9172_v62, %v4975_v24  ;;  %v4428_v15 = vmul.f32 %v9082_v49, %v9151_v33 }
 0x427   : > { %4287 = vst [vmem:[#allocation2 + $0xd0] sm:$0xff] %v9218_v41  ;;  %6068 = vmatmul.mubr.bf16.vlgmr.msra.gmra.mrb[32].mxu1 %v5212_v42  ;;  %v5151_v10 = vmul.f32 %v9156_v6, %v5111_v3  ;;  %v5152_v30 = vmul.f32 %v9156_v6, %v5112_v4  ;;  %v4769_v60 = vadd.f32 %v9181_v31, %v4665_v53 }
 0x428   : > { %v4770_v36 = vadd.f32 %v9185_v43, %v4666_v1  ;;  %4285 = vst [vmem:[#allocation2 + $0xb0] sm:$0xff] %v4253_v22  ;;  %v5080_v52 = vadd.f32 %v9176_v56, %v4976_v57  ;;  %v4841_v18 = vmul.f32 %v9126_v12, %v5111_v3  ;;  %v4842_v62 = vmul.f32 %v9126_v12, %v5112_v4 }
 0x429   : > { %v4356_v33 = vmul.f32 %v9073_v25, %v9192_v34  ;;  %v5183_v35 = vadd.f32 %v5151_v10, %v5079_v29  ;;  %v5049_v55 = vmul.f32 %v9100_v48, %v4252_v63  ;;  %v4459_v40 = vadd.f32 %v9188_v32, %v4355_v11 }
 0x42a   : > { %v4531_v59 = vmul.f32 %v9092_v51, %v5111_v3  ;;  %v5184_v31 = vadd.f32 %v5152_v30, %v5080_v52  ;;  %v4873_v0 = vadd.f32 %v4841_v18, %v4769_v60  ;;  %v5050_v43 = vmul.f32 %v9100_v48, %v4253_v22 }
 0x42b   : > { %v4460_v9 = vadd.f32 %v4428_v15, %v4356_v33  ;;  %v4874_v56 = vadd.f32 %v4842_v62, %v4770_v36  ;;  %v4532_v45 = vmul.f32 %v9092_v51, %v5112_v4  ;;  %v4739_v2 = vmul.f32 %v9105_v17, %v4252_v63 }
 0x42c   : > { %v4563_v19 = vadd.f32 %v4531_v59, %v4459_v40  ;;  %v5213_v16 = vpack.c.bf16 %v5184_v31, %v5183_v35  ;;  %v4740_v34 = vmul.f32 %v9105_v17, %v4253_v22  ;;  %v4907_v5 = vld [vmem:[#allocation2 + $0xc7] sm:$0xff]  ;;  %v9242_v32 = vmul.f32 %v9100_v48, %v9213_v23 }
 0x42d   : > { %v9246_v11 = vmul.f32 %v9100_v48, %v9218_v41  ;;  %v4905_v50 = vld [vmem:[#allocation2 + $0xa7] sm:$0xff]  ;;  %v4564_v38 = vadd.f32 %v4532_v45, %v4460_v9  ;;  %v4947_v26 = vmul.f32 %v9115_v61, %v4907_v5  ;;  %v4429_v21 = vmul.f32 %v9082_v49, %v4252_v63 }
 0x42e   : > { %v4430_v54 = vmul.f32 %v9082_v49, %v4253_v22  ;;  %6071 = vmatprep.mubr.bf16.mxu1 %v5213_v16  ;;  %v4945_v37 = vmul.f32 %v9115_v61, %v4905_v50  ;;  %v4635_v44 = vmul.f32 %v9110_v47, %v4905_v50  ;;  %v4908_v27 = vld [vmem:[#allocation2 + $0xcf] sm:$0xff]  ;;  %v4357_v46 = vmul.f32 %v9073_v25, %v4905_v50 }
 0x42f   : > { %v9253_v14 = vld [vmem:[#allocation2 + $0xc9] sm:$0xff]  ;;  %v4637_v39 = vmul.f32 %v9110_v47, %v4907_v5  ;;  %v5114_v20 = vld [vmem:[#allocation2 + $0xb1] sm:$0xff]  ;;  %v4948_v13 = vmul.f32 %v9115_v61, %v4908_v27  ;;  %v4741_v63 = vmul.f32 %v9105_v17, %v9213_v23  ;;  %v4742_v28 = vmul.f32 %v9105_v17, %v9218_v41 }
 0x430   : > { %v4906_v7 = vld [vmem:[#allocation2 + $0xaf] sm:$0xff]  ;;  %v9263_v24 = vmul.f32 %v9073_v25, %v4907_v5  ;;  %v4977_v4 = vadd.f32 %v4945_v37, %v4873_v0  ;;  %v5155_v42 = vmul.f32 %v9156_v6, %v9253_v14  ;;  %v4638_v53 = vmul.f32 %v9110_v47, %v4908_v27 }
 0x431   : > { %v5113_v8 = vld [vmem:[#allocation2 + $0xa9] sm:$0xff]  ;;  %v4946_v3 = vmul.f32 %v9115_v61, %v4906_v7  ;;  %v5154_v22 = vmul.f32 %v9156_v6, %v5114_v20  ;;  %v4636_v57 = vmul.f32 %v9110_v47, %v4906_v7  ;;  %v4667_v29 = vadd.f32 %v4635_v44, %v4563_v19  ;;  %v5116_v44 = vld [vmem:[#allocation2 + $0xd1] sm:$0xff] }
 0x432   : > { %v5153_v1 = vmul.f32 %v9156_v6, %v5113_v8  ;;  %v5081_v10 = vadd.f32 %v5049_v55, %v4977_v4  ;;  %v4358_v30 = vmul.f32 %v9073_v25, %v4906_v7  ;;  %v4461_v60 = vadd.f32 %v4429_v21, %v4357_v46 }
 0x433   : > { %v4978_v15 = vadd.f32 %v4946_v3, %v4874_v56  ;;  %v4668_v36 = vadd.f32 %v4636_v57, %v4564_v38  ;;  %v4771_v52 = vadd.f32 %v4739_v2, %v4667_v29  ;;  %v4843_v18 = vmul.f32 %v9126_v12, %v5113_v8 }
 0x434   : > { %v4533_v62 = vmul.f32 %v9092_v51, %v5113_v8  ;;  %v6033_v33 = vpop.f32.mrb[44].mxu0  ;;  %v4844_v40 = vmul.f32 %v9126_v12, %v5114_v20  ;;  %v4462_v59 = vadd.f32 %v4430_v54, %v4358_v30  ;;  %v4534_v31 = vmul.f32 %v9092_v51, %v5114_v20 }
 0x435   : > { %v5082_v35 = vadd.f32 %v5050_v43, %v4978_v15  ;;  %v4174_v0 = vadd.f32 %v6033_v33, %v9068_v58  ;;  %v4165_v9 = vpop.f32.mrb[45].mxu0  ;;  %v4772_v55 = vadd.f32 %v4740_v34, %v4668_v36  ;;  %v4875_v56 = vadd.f32 %v4843_v18, %v4771_v52 }
 0x436   : > { %v4565_v45 = vadd.f32 %v4533_v62, %v4461_v60  ;;  %v4166_v19 = vadd.f32 %v9068_v58, %v4165_v9  ;;  %v6034_v2 = vpop.f32.mrb[46].mxu0  ;;  %v5185_v16 = vadd.f32 %v5153_v1, %v5081_v10  ;;  %v4566_v50 = vadd.f32 %v4534_v31, %v4462_v59 }
 0x437   : > { %v5186_v5 = vadd.f32 %v5154_v22, %v5082_v35  ;;  %v4258_v38 = vmax.f32 %v4174_v0, 0.0  ;;  %v4177_v43 = vadd.f32 %v6034_v2, %v9068_v58  ;;  %v4168_v21 = vpop.f32.mrb[47].mxu0  ;;  %v4876_v37 = vadd.f32 %v4844_v40, %v4772_v55 }
 0x438   : > { %v4979_v54 = vadd.f32 %v4947_v26, %v4875_v56  ;;  %v4256_v46 = vmax.f32 %v4166_v19, 0.0  ;;  %v4169_v7 = vadd.f32 %v9068_v58, %v4168_v21  ;;  %v4669_v34 = vadd.f32 %v4637_v39, %v4565_v45 }
 0x439   : > { %v5214_v8 = vpack.c.bf16 %v5186_v5, %v5185_v16  ;;  %4290 = vst [vmem:[#allocation2 + $0x108] sm:$0xff] %v4258_v38  ;;  %v4259_v20 = vmax.f32 %v4177_v43, 0.0  ;;  %v4980_v3 = vadd.f32 %v4948_v13, %v4876_v37  ;;  %v4670_v1 = vadd.f32 %v4638_v53, %v4566_v50 }
 0x43a   : > { %v5083_v4 = vadd.f32 %v9242_v32, %v4979_v54  ;;  %4288 = vst [vmem:[#allocation2 + $0xe8] sm:$0xff] %v4256_v46  ;;  %v4257_v22 = vmax.f32 %v4169_v7, 0.0  ;;  %v5156_v57 = vmul.f32 %v9156_v6, %v5116_v44  ;;  %v4773_v29 = vadd.f32 %v4741_v63, %v4669_v34 }
 0x43b   : > { %6072 = vmatmul.mubr.bf16.gmra.mrb[36].mxu1 %v5214_v8  ;;  %v4360_v26 = vmul.f32 %v9073_v25, %v4908_v27  ;;  %4291 = vst [vmem:[#allocation2 + $0x110] sm:$0xff] %v4259_v20  ;;  %v5084_v15 = vadd.f32 %v9246_v11, %v4980_v3  ;;  %v4774_v10 = vadd.f32 %v4742_v28, %v4670_v1 }
 0x43c   : > { %v4845_v39 = vmul.f32 %v9126_v12, %v9253_v14  ;;  %v4431_v13 = vmul.f32 %v9082_v49, %v9213_v23  ;;  %4289 = vst [vmem:[#allocation2 + $0xf0] sm:$0xff] %v4257_v22  ;;  %v4846_v32 = vmul.f32 %v9126_v12, %v5116_v44  ;;  %v5053_v53 = vmul.f32 %v9100_v48, %v4256_v46 }
 0x43d   : > { %v4432_v63 = vmul.f32 %v9082_v49, %v9218_v41  ;;  %v4535_v27 = vmul.f32 %v9092_v51, %v9253_v14  ;;  %v5187_v30 = vadd.f32 %v5155_v42, %v5083_v4  ;;  %v5188_v11 = vadd.f32 %v5156_v57, %v5084_v15 }
 0x43e   : > { %v4877_v28 = vadd.f32 %v4845_v39, %v4773_v29  ;;  %v4463_v60 = vadd.f32 %v4431_v13, %v9263_v24  ;;  %v4878_v36 = vadd.f32 %v4846_v32, %v4774_v10  ;;  %v5054_v52 = vmul.f32 %v9100_v48, %v4257_v22 }
 0x43f   : > { %v4464_v23 = vadd.f32 %v4432_v63, %v4360_v26  ;;  %v4536_v18 = vmul.f32 %v9092_v51, %v5116_v44  ;;  %v5215_v62 = vpack.c.bf16 %v5188_v11, %v5187_v30  ;;  %v4743_v33 = vmul.f32 %v9105_v17, %v4256_v46 }
 0x440   : > { %v4744_v35 = vmul.f32 %v9105_v17, %v4257_v22  ;;  %v9301_v41 = vmul.f32 %v9100_v48, %v4258_v38  ;;  %v4567_v14 = vadd.f32 %v4535_v27, %v4463_v60  ;;  %v4911_v40 = vld [vmem:[#allocation2 + $0x107] sm:$0xff]  ;;  %v9304_v59 = vmul.f32 %v9100_v48, %v4259_v20 }
 0x441   : > { %v4568_v42 = vadd.f32 %v4536_v18, %v4464_v23  ;;  %v4433_v24 = vmul.f32 %v9082_v49, %v4256_v46  ;;  %v4395_v31 = vld [vmem:[#allocation2 + $0x108] sm:$0xff]  ;;  %6075 = vmatprep.mubr.bf16.mxu1 %v5215_v62  ;;  %v4951_v9 = vmul.f32 %v9115_v61, %v4911_v40  ;;  %v4434_v55 = vmul.f32 %v9082_v49, %v4257_v22 }
 0x442   : > { %v4909_v0 = vld [vmem:[#allocation2 + $0xe7] sm:$0xff]  ;;  %v9310_v56 = vmul.f32 %v9105_v17, %v4258_v38  ;;  %v9313_v45 = vmul.f32 %v9105_v17, %v4259_v20  ;;  %v9317_v16 = vld [vmem:[#allocation2 + $0x10f] sm:$0xff]  ;;  %v4641_v50 = vmul.f32 %v9110_v47, %v4911_v40  ;;  %v9326_v44 = vmul.f32 %v9073_v25, %v4911_v40 }
 0x443   : > { %v4949_v19 = vmul.f32 %v9115_v61, %v4909_v0  ;;  %v4639_v2 = vmul.f32 %v9110_v47, %v4909_v0  ;;  %v4361_v5 = vmul.f32 %v9073_v25, %v4909_v0  ;;  %v4910_v43 = vld [vmem:[#allocation2 + $0xef] sm:$0xff]  ;;  %v4952_v38 = vmul.f32 %v9115_v61, %v9317_v16 }
 0x444   : > { %v5117_v21 = vld [vmem:[#allocation2 + $0xe9] sm:$0xff]  ;;  %v5118_v37 = vld [vmem:[#allocation2 + $0xf1] sm:$0xff]  ;;  %v4642_v54 = vmul.f32 %v9110_v47, %v9317_v16  ;;  %v9329_v46 = vmul.f32 %v9082_v49, %v4395_v31  ;;  %v4950_v7 = vmul.f32 %v9115_v61, %v4910_v43  ;;  %v4640_v3 = vmul.f32 %v9110_v47, %v4910_v43 }
 0x445   : > { %v4981_v8 = vadd.f32 %v4949_v19, %v4877_v28  ;;  %v5157_v34 = vmul.f32 %v9156_v6, %v5117_v21  ;;  %v5158_v20 = vmul.f32 %v9156_v6, %v5118_v37  ;;  %v4671_v4 = vadd.f32 %v4639_v2, %v4567_v14 }
 0x446   : > { %v4847_v1 = vmul.f32 %v9126_v12, %v5117_v21  ;;  %v4848_v22 = vmul.f32 %v9126_v12, %v5118_v37  ;;  %v4982_v57 = vadd.f32 %v4950_v7, %v4878_v36  ;;  %v4362_v26 = vmul.f32 %v9073_v25, %v4910_v43 }
 0x447   : > { %v5085_v29 = vadd.f32 %v5053_v53, %v4981_v8  ;;  %v4465_v15 = vadd.f32 %v4433_v24, %v4361_v5  ;;  %v6037_v10 = vpop.f32.mrb[48].mxu0  ;;  %v4672_v39 = vadd.f32 %v4640_v3, %v4568_v42  ;;  %v4775_v13 = vadd.f32 %v4743_v33, %v4671_v4  ;;  %v5119_v24 = vld [vmem:[#allocation2 + $0x109] sm:$0xff]  ;;  %v5120_v5 = vld [vmem:[#allocation2 + $0x111] sm:$0xff] }
 0x448   : > { %v4537_v32 = vmul.f32 %v9092_v51, %v5117_v21  ;;  %v4538_v63 = vmul.f32 %v9092_v51, %v5118_v37  ;;  %v4190_v27 = vadd.f32 %v6037_v10, %v9068_v58  ;;  %v4181_v30 = vpop.f32.mrb[49].mxu0  ;;  %v5086_v11 = vadd.f32 %v5054_v52, %v4982_v57 }
 0x449   : > { %v5189_v28 = vadd.f32 %v5157_v34, %v5085_v29  ;;  %v4466_v60 = vadd.f32 %v4434_v55, %v4362_v26  ;;  %v4182_v23 = vadd.f32 %v9068_v58, %v4181_v30  ;;  %v6038_v36 = vpop.f32.mrb[50].mxu0  ;;  %v4776_v53 = vadd.f32 %v4744_v35, %v4672_v39 }
 0x44a   : > { %v4879_v18 = vadd.f32 %v4847_v1, %v4775_v13  ;;  %v4569_v62 = vadd.f32 %v4537_v32, %v4465_v15  ;;  %v4262_v14 = vmax.f32 %v4190_v27, 0.0  ;;  %v4193_v42 = vadd.f32 %v6038_v36, %v9068_v58  ;;  %v4184_v33 = vpop.f32.mrb[51].mxu0 }
 0x44b   : > { %v5190_v40 = vadd.f32 %v5158_v20, %v5086_v11  ;;  %v4570_v31 = vadd.f32 %v4538_v63, %v4466_v60  ;;  %v4260_v0 = vmax.f32 %v4182_v23, 0.0  ;;  %v4185_v19 = vadd.f32 %v9068_v58, %v4184_v33  ;;  %v4396_v20 = vld [vmem:[#allocation2 + $0x110] sm:$0xff] }
 0x44c   : > { %v4880_v2 = vadd.f32 %v4848_v22, %v4776_v53  ;;  %v4983_v52 = vadd.f32 %v4951_v9, %v4879_v18  ;;  %4294 = vst [vmem:[#allocation2 + $0x148] sm:$0xff] %v4262_v14  ;;  %v4263_v55 = vmax.f32 %v4193_v42, 0.0  ;;  %v4673_v21 = vadd.f32 %v4641_v50, %v4569_v62 }
 0x44d   : > { %v5216_v43 = vpack.c.bf16 %v5190_v40, %v5189_v28  ;;  %v4674_v35 = vadd.f32 %v4642_v54, %v4570_v31  ;;  %4292 = vst [vmem:[#allocation2 + $0x128] sm:$0xff] %v4260_v0  ;;  %v4261_v37 = vmax.f32 %v4185_v19, 0.0  ;;  %v5159_v34 = vmul.f32 %v9156_v6, %v5119_v24 }
 0x44e   : > { %v4984_v7 = vadd.f32 %v4952_v38, %v4880_v2  ;;  %v5087_v8 = vadd.f32 %v9301_v41, %v4983_v52  ;;  %4295 = vst [vmem:[#allocation2 + $0x150] sm:$0xff] %v4263_v55  ;;  %v5160_v3 = vmul.f32 %v9156_v6, %v5120_v5  ;;  %v4777_v9 = vadd.f32 %v9310_v56, %v4673_v21 }
 0x44f   : > { %6076 = vmatmul.mubr.bf16.gmra.mrb[40].mxu1 %v5216_v43  ;;  %v4778_v4 = vadd.f32 %v9313_v45, %v4674_v35  ;;  %v4849_v1 = vmul.f32 %v9126_v12, %v5119_v24  ;;  %4293 = vst [vmem:[#allocation2 + $0x130] sm:$0xff] %v4261_v37  ;;  %v4850_v38 = vmul.f32 %v9126_v12, %v5120_v5 }
 0x450   : > { %v5088_v50 = vadd.f32 %v9304_v59, %v4984_v7  ;;  %v5057_v41 = vmul.f32 %v9100_v48, %v4260_v0  ;;  %v4364_v54 = vmul.f32 %v9073_v25, %v9317_v16  ;;  %v5191_v22 = vadd.f32 %v5159_v34, %v5087_v8 }
 0x451   : > { %v5058_v57 = vmul.f32 %v9100_v48, %v4261_v37  ;;  %v4436_v29 = vmul.f32 %v9082_v49, %v4396_v20  ;;  %v4467_v56 = vadd.f32 %v9329_v46, %v9326_v44  ;;  %v4881_v26 = vadd.f32 %v4849_v1, %v4777_v9 }
 0x452   : > { %v5192_v45 = vadd.f32 %v5160_v3, %v5088_v50  ;;  %v4882_v15 = vadd.f32 %v4850_v38, %v4778_v4  ;;  %v4539_v59 = vmul.f32 %v9092_v51, %v5119_v24  ;;  %v4540_v39 = vmul.f32 %v9092_v51, %v5120_v5 }
 0x453   : > { %v4468_v10 = vadd.f32 %v4436_v29, %v4364_v54  ;;  %v4747_v13 = vmul.f32 %v9105_v17, %v4260_v0  ;;  %v4748_v16 = vmul.f32 %v9105_v17, %v4261_v37  ;;  %v9363_v27 = vld [vmem:[#allocation2 + $0x147] sm:$0xff]  ;;  %v9368_v44 = vmul.f32 %v9100_v48, %v4263_v55 }
 0x454   : > { %v5217_v32 = vpack.c.bf16 %v5192_v45, %v5191_v22  ;;  %v4571_v63 = vadd.f32 %v4539_v59, %v4467_v56  ;;  %v9365_v30 = vld [vmem:[#allocation2 + $0x148] sm:$0xff]  ;;  %v4437_v46 = vmul.f32 %v9082_v49, %v4260_v0  ;;  %v4955_v60 = vmul.f32 %v9115_v61, %v9363_v27 }
 0x455   : > { %v4913_v11 = vld [vmem:[#allocation2 + $0x127] sm:$0xff]  ;;  %v4572_v28 = vadd.f32 %v4540_v39, %v4468_v10  ;;  %v4438_v23 = vmul.f32 %v9082_v49, %v4261_v37  ;;  %v9375_v36 = vmul.f32 %v9105_v17, %v4263_v55  ;;  %v9379_v62 = vld [vmem:[#allocation2 + $0x14f] sm:$0xff]  ;;  %v5059_v14 = vmul.f32 %v9100_v48, %v9365_v30 }
 0x456   : > { %6079 = vmatprep.mubr.bf16.mxu1 %v5217_v32  ;;  %v4953_v53 = vmul.f32 %v9115_v61, %v4913_v11  ;;  %v4643_v18 = vmul.f32 %v9110_v47, %v4913_v11  ;;  %v4365_v42 = vmul.f32 %v9073_v25, %v4913_v11  ;;  %v4914_v33 = vld [vmem:[#allocation2 + $0x12f] sm:$0xff]  ;;  %v4956_v31 = vmul.f32 %v9115_v61, %v9379_v62 }
 0x457   : > { %v5121_v40 = vld [vmem:[#allocation2 + $0x129] sm:$0xff]  ;;  %v5122_v24 = vld [vmem:[#allocation2 + $0x131] sm:$0xff]  ;;  %v4645_v0 = vmul.f32 %v9110_v47, %v9363_v27  ;;  %v4646_v19 = vmul.f32 %v9110_v47, %v9379_v62  ;;  %v4749_v2 = vmul.f32 %v9105_v17, %v9365_v30  ;;  %v4954_v52 = vmul.f32 %v9115_v61, %v4914_v33 }
 0x458   : > { %v4985_v5 = vadd.f32 %v4953_v53, %v4881_v26  ;;  %v5161_v55 = vmul.f32 %v9156_v6, %v5121_v40  ;;  %v5162_v43 = vmul.f32 %v9156_v6, %v5122_v24  ;;  %v4644_v21 = vmul.f32 %v9110_v47, %v4914_v33 }
 0x459   : > { %v4675_v35 = vadd.f32 %v4643_v18, %v4571_v63  ;;  %v4851_v37 = vmul.f32 %v9126_v12, %v5121_v40  ;;  %v4852_v7 = vmul.f32 %v9126_v12, %v5122_v24  ;;  %v4986_v8 = vadd.f32 %v4954_v52, %v4882_v15 }
 0x45a   : > { %v5089_v34 = vadd.f32 %v5057_v41, %v4985_v5  ;;  %v4366_v20 = vmul.f32 %v9073_v25, %v4914_v33  ;;  %v4469_v3 = vadd.f32 %v4437_v46, %v4365_v42  ;;  %v4676_v4 = vadd.f32 %v4644_v21, %v4572_v28  ;;  %v5123_v46 = vld [vmem:[#allocation2 + $0x149] sm:$0xff]  ;;  %v5124_v42 = vld [vmem:[#allocation2 + $0x151] sm:$0xff] }
 0x45b   : > { %v6041_v9 = vpop.f32.mrb[52].mxu0  ;;  %v4779_v1 = vadd.f32 %v4747_v13, %v4675_v35  ;;  %v4541_v50 = vmul.f32 %v9092_v51, %v5121_v40  ;;  %v4542_v38 = vmul.f32 %v9092_v51, %v5122_v24  ;;  %v5090_v29 = vadd.f32 %v5058_v57, %v4986_v8  ;;  %v4400_v35 = vld [vmem:[#allocation2 + $0x150] sm:$0xff] }
 0x45c   : > { %v4206_v54 = vadd.f32 %v6041_v9, %v9068_v58  ;;  %v4197_v22 = vpop.f32.mrb[53].mxu0  ;;  %v5193_v56 = vadd.f32 %v5161_v55, %v5089_v34  ;;  %v4470_v45 = vadd.f32 %v4438_v23, %v4366_v20  ;;  %v4780_v41 = vadd.f32 %v4748_v16, %v4676_v4 }
 0x45d   : > { %v4198_v26 = vadd.f32 %v9068_v58, %v4197_v22  ;;  %v6042_v15 = vpop.f32.mrb[54].mxu0  ;;  %v4883_v59 = vadd.f32 %v4851_v37, %v4779_v1  ;;  %v4573_v10 = vadd.f32 %v4541_v50, %v4469_v3  ;;  %v5194_v63 = vadd.f32 %v5162_v43, %v5090_v29 }
 0x45e   : > { %v4266_v39 = vmax.f32 %v4206_v54, 0.0  ;;  %v4209_v32 = vadd.f32 %v6042_v15, %v9068_v58  ;;  %v4200_v13 = vpop.f32.mrb[55].mxu0  ;;  %v4574_v11 = vadd.f32 %v4542_v38, %v4470_v45  ;;  %v4884_v18 = vadd.f32 %v4852_v7, %v4780_v41 }
 0x45f   : > { %v4264_v28 = vmax.f32 %v4198_v26, 0.0  ;;  %v4201_v53 = vadd.f32 %v9068_v58, %v4200_v13  ;;  %v4987_v57 = vadd.f32 %v4955_v60, %v4883_v59  ;;  %v5218_v33 = vpack.c.bf16 %v5194_v63, %v5193_v56 }
 0x460   : > { %4298 = vst [vmem:[#allocation2 + $0x188] sm:$0xff] %v4266_v39  ;;  %v9405_v23 = vmax.f32 %v4209_v32, 0.0  ;;  %v4677_v16 = vadd.f32 %v4645_v0, %v4573_v10  ;;  %v4678_v40 = vadd.f32 %v4646_v19, %v4574_v11  ;;  %v4988_v52 = vadd.f32 %v4956_v31, %v4884_v18 }
 0x461   : > { %4296 = vst [vmem:[#allocation2 + $0x168] sm:$0xff] %v4264_v28  ;;  %v4265_v24 = vmax.f32 %v4201_v53, 0.0  ;;  %v5091_v5 = vadd.f32 %v5059_v14, %v4987_v57  ;;  %v5163_v55 = vmul.f32 %v9156_v6, %v5123_v46  ;;  %6080 = vmatmul.mubr.bf16.gmra.mrb[44].mxu1 %v5218_v33  ;;  %v5164_v58 = vmul.f32 %v9156_v6, %v5124_v42 }
 0x462   : > { %4299 = vst [vmem:[#allocation2 + $0x190] sm:$0xff] %v9405_v23  ;;  %v4781_v43 = vadd.f32 %v4749_v2, %v4677_v16  ;;  %v4782_v60 = vadd.f32 %v9375_v36, %v4678_v40  ;;  %v4853_v21 = vmul.f32 %v9126_v12, %v5123_v46  ;;  %v5092_v0 = vadd.f32 %v9368_v44, %v4988_v52 }
 0x463   : > { %4297 = vst [vmem:[#allocation2 + $0x170] sm:$0xff] %v4265_v24  ;;  %v4854_v19 = vmul.f32 %v9126_v12, %v5124_v42  ;;  %v5061_v14 = vmul.f32 %v9100_v48, %v4264_v28  ;;  %v4367_v31 = vmul.f32 %v9073_v25, %v9363_v27  ;;  %v5195_v37 = vadd.f32 %v5163_v55, %v5091_v5 }
 0x464   : > { %v5062_v7 = vmul.f32 %v9100_v48, %v4265_v24  ;;  %v4368_v2 = vmul.f32 %v9073_v25, %v9379_v62  ;;  %v4439_v36 = vmul.f32 %v9082_v49, %v9365_v30  ;;  %v5196_v8 = vadd.f32 %v5164_v58, %v5092_v0 }
 0x465   : > { %v4885_v34 = vadd.f32 %v4853_v21, %v4781_v43  ;;  %v4440_v44 = vmul.f32 %v9082_v49, %v4400_v35  ;;  %v4543_v20 = vmul.f32 %v9092_v51, %v5123_v46  ;;  %v4886_v3 = vadd.f32 %v4854_v19, %v4782_v60 }
 0x466   : > { %v4471_v9 = vadd.f32 %v4439_v36, %v4367_v31  ;;  %v4544_v4 = vmul.f32 %v9092_v51, %v5124_v42  ;;  %v4751_v27 = vmul.f32 %v9105_v17, %v4264_v28  ;;  %v5219_v1 = vpack.c.bf16 %v5196_v8, %v5195_v37 }
 0x467   : > { %v4472_v50 = vadd.f32 %v4440_v44, %v4368_v2  ;;  %v4752_v38 = vmul.f32 %v9105_v17, %v4265_v24  ;;  %v9427_v25 = vld [vmem:[#allocation2 + $0x187] sm:$0xff]  ;;  %v9433_v30 = vmul.f32 %v9100_v48, %v9405_v23  ;;  %v4441_v51 = vmul.f32 %v9082_v49, %v4264_v28 }
 0x468   : > { %v9429_v62 = vld [vmem:[#allocation2 + $0x188] sm:$0xff]  ;;  %v4575_v22 = vadd.f32 %v4543_v20, %v4471_v9  ;;  %v4959_v29 = vmul.f32 %v9115_v61, %v9427_v25  ;;  %v4442_v56 = vmul.f32 %v9082_v49, %v4265_v24  ;;  %6083 = vmatprep.mubr.bf16.mxu1 %v5219_v1  ;;  %v9449_v59 = vmul.f32 %v9110_v47, %v9427_v25  ;;  %v9469_v24 = vld [vmem:[#allocation14] ss:$0 sm:$0xff] }
 0x469   : > { %v4917_v54 = vld [vmem:[#allocation2 + $0x167] sm:$0xff]  ;;  %v9441_v26 = vld [vmem:[#allocation2 + $0x18f] sm:$0xff]  ;;  %v5063_v15 = vmul.f32 %v9100_v48, %v9429_v62  ;;  %v4576_v49 = vadd.f32 %v4544_v4, %v4472_v50  ;;  %v9460_v48 = vld [vmem:[%s9875_s1] ss:$0 sm:$0xff] }
 0x46a   : > { %v4957_v17 = vmul.f32 %v9115_v61, %v4917_v54  ;;  %v4647_v45 = vmul.f32 %v9110_v47, %v4917_v54  ;;  %v9445_v41 = vld [vmem:[#allocation2 + $0x189] sm:$0xff]  ;;  %v5126_v32 = vld [vmem:[#allocation2 + $0x171] sm:$0xff]  ;;  %v4960_v13 = vmul.f32 %v9115_v61, %v9441_v26  ;;  %v4369_v46 = vmul.f32 %v9460_v48, %v4917_v54  ;;  %v9488_v9 = vld [vmem:[%s9875_s1 + $0x2] ss:$0 sm:$0xff] }
 0x46b   : > { %v4918_v10 = vld [vmem:[#allocation2 + $0x16f] sm:$0xff]  ;;  %v9455_v63 = vmul.f32 %v9156_v6, %v9445_v41  ;;  %v5166_v18 = vmul.f32 %v9156_v6, %v5126_v32  ;;  %v6045_v57 = vpop.f32.mrb[56].mxu0  ;;  %v4856_v40 = vmul.f32 %v9126_v12, %v5126_v32  ;;  %v4546_v50 = vmul.f32 %v9488_v9, %v5126_v32 }
 0x46c   : > { %v5125_v39 = vld [vmem:[#allocation2 + $0x169] sm:$0xff]  ;;  %v4958_v11 = vmul.f32 %v9115_v61, %v4918_v10  ;;  %v4989_v28 = vadd.f32 %v4957_v17, %v4885_v34  ;;  %v4648_v42 = vmul.f32 %v9110_v47, %v4918_v10  ;;  %v4679_v33 = vadd.f32 %v4647_v45, %v4575_v22  ;;  %v4213_v5 = vpop.f32.mrb[57].mxu0  ;;  %v5128_v34 = vld [vmem:[#allocation2 + $0x191] sm:$0xff] }
 0x46d   : > { %v5165_v53 = vmul.f32 %v9156_v6, %v5125_v39  ;;  %v4855_v16 = vmul.f32 %v9126_v12, %v5125_v39  ;;  %v9472_v52 = vadd.f32 %v9469_v24, %v6045_v57  ;;  %v4370_v58 = vmul.f32 %v9460_v48, %v4918_v10  ;;  %v6046_v60 = vpop.f32.mrb[58].mxu0  ;;  %v9508_v10 = vld [vmem:[%s9875_s1 + $0x4] ss:$0 sm:$0xff] }
 0x46e   : > { %v4990_v61 = vadd.f32 %v4958_v11, %v4886_v3  ;;  %v5093_v55 = vadd.f32 %v5061_v14, %v4989_v28  ;;  %v4214_v43 = vadd.f32 %v9469_v24, %v4213_v5  ;;  %v4680_v21 = vadd.f32 %v4648_v42, %v4576_v49  ;;  %v4216_v19 = vpop.f32.mrb[59].mxu0 }
 0x46f   : > { %v4783_v47 = vadd.f32 %v4751_v27, %v4679_v33  ;;  %v4473_v35 = vadd.f32 %v4441_v51, %v4369_v46  ;;  %v4270_v0 = vmax.f32 %v9472_v52, 0.0  ;;  %v4225_v12 = vadd.f32 %v9469_v24, %v6046_v60  ;;  %v9500_v51 = vld [vmem:[%s9875_s1 + $0x3] ss:$0 sm:$0xff] }
 0x470   : > { %v5094_v31 = vadd.f32 %v5062_v7, %v4990_v61  ;;  %v5197_v37 = vadd.f32 %v5165_v53, %v5093_v55  ;;  %v9478_v2 = vmax.f32 %v4214_v43, 0.0  ;;  %v4217_v36 = vadd.f32 %v9469_v24, %v4216_v19 }
 0x471   : > { %v4784_v14 = vadd.f32 %v4752_v38, %v4680_v21  ;;  %v4887_v8 = vadd.f32 %v4855_v16, %v4783_v47  ;;  %4302 = vst [vmem:[#allocation2 + $0x1c8] sm:$0xff] %v4270_v0  ;;  %v9483_v44 = vmax.f32 %v4225_v12, 0.0  ;;  %v4474_v3 = vadd.f32 %v4442_v56, %v4370_v58 }
 0x472   : > { %v5198_v20 = vadd.f32 %v5166_v18, %v5094_v31  ;;  %v4545_v7 = vmul.f32 %v9488_v9, %v5125_v39  ;;  %4300 = vst [vmem:[#allocation2 + $0x1a8] sm:$0xff] %v9478_v2  ;;  %v9492_v4 = vmax.f32 %v4217_v36, 0.0  ;;  %v5168_v54 = vmul.f32 %v9156_v6, %v5128_v34  ;;  %v4404_v39 = vld [vmem:[#allocation2 + $0x190] sm:$0xff] }
 0x473   : > { %v4888_v27 = vadd.f32 %v4856_v40, %v4784_v14  ;;  %v4991_v1 = vadd.f32 %v4959_v29, %v4887_v8  ;;  %4303 = vst [vmem:[#allocation2 + $0x1d0] sm:$0xff] %v9483_v44  ;;  %v4650_v56 = vmul.f32 %v9500_v51, %v9441_v26  ;;  %v4578_v45 = vadd.f32 %v4546_v50, %v4474_v3 }
 0x474   : > { %v5220_v38 = vpack.c.bf16 %v5198_v20, %v5197_v37  ;;  %v4577_v22 = vadd.f32 %v4545_v7, %v4473_v35  ;;  %4301 = vst [vmem:[#allocation2 + $0x1b0] sm:$0xff] %v9492_v4  ;;  %v4753_v6 = vmul.f32 %v9508_v10, %v9429_v62  ;;  %v4754_v49 = vmul.f32 %v9508_v10, %v9405_v23 }
 0x475   : > { %v4992_v17 = vadd.f32 %v4960_v13, %v4888_v27  ;;  %v5095_v29 = vadd.f32 %v5063_v15, %v4991_v1  ;;  %v9518_v15 = vld [vmem:[%s9875_s1 + $0x5] ss:$0 sm:$0xff]  ;;  %v4682_v28 = vadd.f32 %v4650_v56, %v4578_v45  ;;  %v4371_v53 = vmul.f32 %v9460_v48, %v9427_v25  ;;  %v9570_v27 = vld [vmem:[%s9875_s1 + $0x8] ss:$0 sm:$0xff] }
 0x476   : > { %6084 = vmatmul.mubr.bf16.gmra.mrb[48].mxu1 %v5220_v38  ;;  %v4681_v32 = vadd.f32 %v9449_v59, %v4577_v22  ;;  %v4857_v13 = vmul.f32 %v9518_v15, %v9445_v41  ;;  %v4858_v46 = vmul.f32 %v9518_v15, %v5128_v34  ;;  %v9527_v59 = vld [vmem:[%s9875_s1 + $0x7] ss:$0 sm:$0xff]  ;;  %v4372_v57 = vmul.f32 %v9460_v48, %v9441_v26 }
 0x477   : > { %v5096_v11 = vadd.f32 %v9433_v30, %v4992_v17  ;;  %v5065_v23 = vmul.f32 %v9527_v59, %v9478_v2  ;;  %v9538_v30 = vld [vmem:[%s9875_s1 + $0x1] ss:$0 sm:$0xff]  ;;  %v5199_v16 = vadd.f32 %v9455_v63, %v5095_v29  ;;  %v4786_v5 = vadd.f32 %v4754_v49, %v4682_v28 }
 0x478   : > { %v4785_v18 = vadd.f32 %v4753_v6, %v4681_v32  ;;  %v4443_v42 = vmul.f32 %v9538_v30, %v9429_v62  ;;  %v4444_v33 = vmul.f32 %v9538_v30, %v4404_v39  ;;  %v4547_v25 = vmul.f32 %v9488_v9, %v9445_v41  ;;  %v9547_v60 = vld [vmem:[#allocation2 + $0x1c7] sm:$0xff]  ;;  %v9552_v62 = vld [vmem:[%s9875_s1 + $0x6] ss:$0 sm:$0xff] }
 0x479   : > { %v5200_v40 = vadd.f32 %v5168_v54, %v5096_v11  ;;  %v4921_v55 = vld [vmem:[#allocation2 + $0x1a7] sm:$0xff]  ;;  %v4548_v43 = vmul.f32 %v9488_v9, %v5128_v34  ;;  %v4890_v47 = vadd.f32 %v4858_v46, %v4786_v5  ;;  %v5066_v12 = vmul.f32 %v9527_v59, %v9492_v4 }
 0x47a   : > { %v4889_v61 = vadd.f32 %v4857_v13, %v4785_v18  ;;  %v4475_v26 = vadd.f32 %v4443_v42, %v4371_v53  ;;  %v4476_v58 = vadd.f32 %v4444_v33, %v4372_v57  ;;  %v4961_v63 = vmul.f32 %v9552_v62, %v4921_v55  ;;  %v4924_v22 = vld [vmem:[#allocation2 + $0x1cf] sm:$0xff] }
 0x47b   : > { %v5221_v21 = vpack.c.bf16 %v5200_v40, %v5199_v16  ;;  %v4651_v35 = vmul.f32 %v9500_v51, %v4921_v55  ;;  %v4922_v41 = vld [vmem:[#allocation2 + $0x1af] sm:$0xff]  ;;  %v4755_v14 = vmul.f32 %v9508_v10, %v9478_v2  ;;  %v4756_v20 = vmul.f32 %v9508_v10, %v9492_v4 }
 0x47c   : > { %v5129_v19 = vld [vmem:[#allocation2 + $0x1a9] sm:$0xff]  ;;  %v9558_v31 = vld [vmem:[#allocation2 + $0x1b1] sm:$0xff]  ;;  %v4579_v37 = vadd.f32 %v4547_v25, %v4475_v26  ;;  %v4580_v36 = vadd.f32 %v4548_v43, %v4476_v58  ;;  %v4962_v8 = vmul.f32 %v9552_v62, %v4922_v41  ;;  %v4993_v34 = vadd.f32 %v4961_v63, %v4889_v61  ;;  %v6049_v7 = vpop.f32.mrb[60].mxu0 }
 0x47d   : > { %6087 = vmatprep.mubr.bf16.mxu1 %v5221_v21  ;;  %v4963_v3 = vmul.f32 %v9552_v62, %v9547_v60  ;;  %v5169_v1 = vmul.f32 %v9570_v27, %v5129_v19  ;;  %v5170_v50 = vmul.f32 %v9570_v27, %v9558_v31  ;;  %v4652_v38 = vmul.f32 %v9500_v51, %v4922_v41  ;;  %v4229_v17 = vpop.f32.mrb[61].mxu0  ;;  %v5131_v21 = vld [vmem:[#allocation2 + $0x1c9] sm:$0xff]  ;;  %v5132_v63 = vld [vmem:[#allocation2 + $0x1d1] sm:$0xff] }
 0x47e   : > { %v4683_v54 = vadd.f32 %v4651_v35, %v4579_v37  ;;  %v9577_v56 = vadd.f32 %v9469_v24, %v6049_v7  ;;  %v4994_v29 = vadd.f32 %v4962_v8, %v4890_v47  ;;  %v5097_v45 = vadd.f32 %v5065_v23, %v4993_v34  ;;  %v6050_v32 = vpop.f32.mrb[62].mxu0 }
 0x47f   : > { %v4859_v6 = vmul.f32 %v9518_v15, %v5129_v19  ;;  %v4230_v39 = vadd.f32 %v9469_v24, %v4229_v17  ;;  %v4684_v49 = vadd.f32 %v4652_v38, %v4580_v36  ;;  %v4860_v46 = vmul.f32 %v9518_v15, %v9558_v31  ;;  %v4232_v53 = vpop.f32.mrb[63].mxu0 }
 0x480   : > { %v4787_v13 = vadd.f32 %v4755_v14, %v4683_v54  ;;  %v4274_v11 = vmax.f32 %v9577_v56, 0.0  ;;  %v4241_v28 = vadd.f32 %v9469_v24, %v6050_v32  ;;  %v5098_v18 = vadd.f32 %v5066_v12, %v4994_v29 }
 0x481   : > { %v4964_v57 = vmul.f32 %v9552_v62, %v4924_v22  ;;  %v9586_v42 = vmax.f32 %v4230_v39, 0.0  ;;  %v4233_v23 = vadd.f32 %v9469_v24, %v4232_v53  ;;  %v4788_v33 = vadd.f32 %v4756_v20, %v4684_v49  ;;  %v4717_v20 = vld [vmem:[#allocation2 + $0x1c8] sm:$0xff] }
 0x482   : > { %v4891_v16 = vadd.f32 %v4859_v6, %v4787_v13  ;;  %4306 = vst [vmem:[#allocation2 + $0x208] sm:$0xff] %v4274_v11  ;;  %v9591_v40 = vmax.f32 %v4241_v28, 0.0  ;;  %v5201_v5 = vadd.f32 %v5169_v1, %v5097_v45  ;;  %v5202_v25 = vadd.f32 %v5170_v50, %v5098_v18 }
 0x483   : > { %v5067_v61 = vmul.f32 %v9527_v59, %v4270_v0  ;;  %4304 = vst [vmem:[#allocation2 + $0x1e8] sm:$0xff] %v9586_v42  ;;  %v9597_v26 = vmax.f32 %v4233_v23, 0.0  ;;  %v4892_v58 = vadd.f32 %v4860_v46, %v4788_v33  ;;  %v5068_v24 = vmul.f32 %v9527_v59, %v9483_v44 }
 0x484   : > { %v4995_v43 = vadd.f32 %v4963_v3, %v4891_v16  ;;  %4307 = vst [vmem:[#allocation2 + $0x210] sm:$0xff] %v9591_v40  ;;  %v5222_v47 = vpack.c.bf16 %v5202_v25, %v5201_v5  ;;  %v4373_v35 = vmul.f32 %v9460_v48, %v4921_v55  ;;  %v4374_v52 = vmul.f32 %v9460_v48, %v4922_v41 }
 0x485   : > { %v4445_v0 = vmul.f32 %v9538_v30, %v9478_v2  ;;  %4305 = vst [vmem:[#allocation2 + $0x1f0] sm:$0xff] %v9597_v26  ;;  %v4996_v12 = vadd.f32 %v4964_v57, %v4892_v58  ;;  %v4446_v36 = vmul.f32 %v9538_v30, %v9492_v4  ;;  %v4549_v14 = vmul.f32 %v9488_v9, %v5129_v19 }
 0x486   : > { %v5099_v37 = vadd.f32 %v5067_v61, %v4995_v43  ;;  %6088 = vmatmul.mubr.bf16.gmra.mrb[52].mxu1 %v5222_v47  ;;  %v5171_v8 = vmul.f32 %v9570_v27, %v5131_v21  ;;  %v5172_v41 = vmul.f32 %v9570_v27, %v5132_v63  ;;  %v4550_v2 = vmul.f32 %v9488_v9, %v9558_v31 }
 0x487   : > { %v4477_v34 = vadd.f32 %v4445_v0, %v4373_v35  ;;  %v5100_v55 = vadd.f32 %v5068_v24, %v4996_v12  ;;  %v4478_v3 = vadd.f32 %v4446_v36, %v4374_v52  ;;  %v4653_v50 = vmul.f32 %v9500_v51, %v9547_v60 }
 0x488   : > { %v5203_v7 = vadd.f32 %v5171_v8, %v5099_v37  ;;  %v4654_v4 = vmul.f32 %v9500_v51, %v4924_v22  ;;  %v4757_v54 = vmul.f32 %v9508_v10, %v4717_v20  ;;  %v4758_v17 = vmul.f32 %v9508_v10, %v9483_v44 }
 0x489   : > { %v4581_v1 = vadd.f32 %v4549_v14, %v4477_v34  ;;  %v5204_v19 = vadd.f32 %v5172_v41, %v5100_v55  ;;  %v4582_v38 = vadd.f32 %v4550_v2, %v4478_v3  ;;  %v4375_v6 = vmul.f32 %v9460_v48, %v9547_v60  ;;  %v4927_v37 = vld [vmem:[#allocation2 + $0x207] sm:$0xff] }
 0x48a   : > { %v4925_v45 = vld [vmem:[#allocation2 + $0x1e7] sm:$0xff]  ;;  %v4376_v31 = vmul.f32 %v9460_v48, %v4924_v22  ;;  %v4447_v39 = vmul.f32 %v9538_v30, %v4717_v20  ;;  %v4861_v13 = vmul.f32 %v9518_v15, %v5131_v21  ;;  %v4862_v46 = vmul.f32 %v9518_v15, %v5132_v63 }
 0x48b   : > { %v4685_v29 = vadd.f32 %v4653_v50, %v4581_v1  ;;  %v5223_v32 = vpack.c.bf16 %v5204_v19, %v5203_v7  ;;  %v4686_v49 = vadd.f32 %v4654_v4, %v4582_v38  ;;  %v4448_v18 = vmul.f32 %v9538_v30, %v9483_v44  ;;  %v4928_v36 = vld [vmem:[#allocation2 + $0x20f] sm:$0xff] }
 0x48c   : > { %v4926_v53 = vld [vmem:[#allocation2 + $0x1ef] sm:$0xff]  ;;  %v4479_v57 = vadd.f32 %v4447_v39, %v4375_v6  ;;  %v4551_v23 = vmul.f32 %v9488_v9, %v5131_v21  ;;  %v4965_v22 = vmul.f32 %v9552_v62, %v4925_v45  ;;  %v5069_v33 = vmul.f32 %v9527_v59, %v9586_v42 }
 0x48d   : > { %v4789_v28 = vadd.f32 %v4757_v54, %v4685_v29  ;;  %6091 = vmatprep.mubr.bf16.mxu1 %v5223_v32  ;;  %v4790_v60 = vadd.f32 %v4758_v17, %v4686_v49  ;;  %v4552_v16 = vmul.f32 %v9488_v9, %v5132_v63  ;;  %v5133_v25 = vld [vmem:[#allocation2 + $0x1e9] sm:$0xff]  ;;  %v5134_v61 = vld [vmem:[#allocation2 + $0x1f1] sm:$0xff]  ;;  %v4480_v58 = vadd.f32 %v4448_v18, %v4376_v31 }
 0x48e   : > { %v4583_v43 = vadd.f32 %v4551_v23, %v4479_v57  ;;  %v4655_v24 = vmul.f32 %v9500_v51, %v4925_v45  ;;  %v4966_v47 = vmul.f32 %v9552_v62, %v4926_v53  ;;  %v5070_v21 = vmul.f32 %v9527_v59, %v9597_v26  ;;  %v5135_v18 = vld [vmem:[#allocation2 + $0x209] sm:$0xff] }
 0x48f   : > { %v4893_v5 = vadd.f32 %v4861_v13, %v4789_v28  ;;  %v4894_v44 = vadd.f32 %v4862_v46, %v4790_v60  ;;  %v4656_v35 = vmul.f32 %v9500_v51, %v4926_v53  ;;  %v4584_v0 = vadd.f32 %v4552_v16, %v4480_v58 }
 0x490   : > { %v4687_v12 = vadd.f32 %v4655_v24, %v4583_v43  ;;  %v4759_v63 = vmul.f32 %v9508_v10, %v9586_v42  ;;  %v5173_v8 = vmul.f32 %v9570_v27, %v5133_v25  ;;  %v5174_v34 = vmul.f32 %v9570_v27, %v5134_v61 }
 0x491   : > { %v4997_v52 = vadd.f32 %v4965_v22, %v4893_v5  ;;  %v4998_v14 = vadd.f32 %v4966_v47, %v4894_v44  ;;  %v4760_v20 = vmul.f32 %v9508_v10, %v9597_v26  ;;  %v4688_v41 = vadd.f32 %v4656_v35, %v4584_v0 }
 0x492   : > { %v4791_v3 = vadd.f32 %v4759_v63, %v4687_v12  ;;  %v4863_v2 = vmul.f32 %v9518_v15, %v5133_v25  ;;  %v4864_v1 = vmul.f32 %v9518_v15, %v5134_v61  ;;  %v4967_v50 = vmul.f32 %v9552_v62, %v4927_v37 }
 0x493   : > { %v5101_v55 = vadd.f32 %v5069_v33, %v4997_v52  ;;  %v5102_v7 = vadd.f32 %v5070_v21, %v4998_v14  ;;  %v4968_v4 = vmul.f32 %v9552_v62, %v4928_v36  ;;  %v4792_v38 = vadd.f32 %v4760_v20, %v4688_v41  ;;  %v4929_v33 = vld [vmem:[#allocation2 + $0x227] sm:$0xff] }
 0x494   : > { %v4895_v54 = vadd.f32 %v4863_v2, %v4791_v3  ;;  %v4377_v17 = vmul.f32 %v9460_v48, %v4925_v45  ;;  %v4378_v6 = vmul.f32 %v9460_v48, %v4926_v53  ;;  %v4449_v31 = vmul.f32 %v9538_v30, %v9586_v42  ;;  %v5136_v45 = vld [vmem:[#allocation2 + $0x211] sm:$0xff] }
 0x495   : > { %v5205_v19 = vadd.f32 %v5173_v8, %v5101_v55  ;;  %v5206_v29 = vadd.f32 %v5174_v34, %v5102_v7  ;;  %v4450_v39 = vmul.f32 %v9538_v30, %v9597_v26  ;;  %v4896_v32 = vadd.f32 %v4864_v1, %v4792_v38  ;;  %v4721_v26 = vld [vmem:[#allocation2 + $0x208] sm:$0xff]  ;;  %v6301_v34 = vld [vmem:[#allocation2] sm:$0xff] }
 0x496   : > { %v4999_v49 = vadd.f32 %v4967_v50, %v4895_v54  ;;  %v5071_v13 = vmul.f32 %v9527_v59, %v4274_v11  ;;  %v4553_v46 = vmul.f32 %v9488_v9, %v5133_v25  ;;  %v4481_v57 = vadd.f32 %v4449_v31, %v4377_v17  ;;  %v9675_v1 = vld [vmem:[#allocation15] ss:$0 sm:$0xff] }
 0x497   : > { %v5224_v28 = vpack.c.bf16 %v5206_v29, %v5205_v19  ;;  %v4482_v23 = vadd.f32 %v4450_v39, %v4378_v6  ;;  %v4554_v48 = vmul.f32 %v9488_v9, %v5134_v61  ;;  %v5000_v53 = vadd.f32 %v4968_v4, %v4896_v32  ;;  %v4930_v9 = vld [vmem:[#allocation2 + $0x22f] sm:$0xff] }
 0x498   : > { %v5072_v42 = vmul.f32 %v9527_v59, %v9591_v40  ;;  %v5103_v30 = vadd.f32 %v5071_v13, %v4999_v49  ;;  %v4585_v60 = vadd.f32 %v4553_v46, %v4481_v57  ;;  %v4657_v11 = vmul.f32 %v9500_v51, %v4927_v37  ;;  %v5137_v37 = vld [vmem:[#allocation2 + $0x229] sm:$0xff] }
 0x499   : > { %6092 = vmatmul.mubr.bf16.gmra.mrb[56].mxu1 %v5224_v28  ;;  %v4586_v56 = vadd.f32 %v4554_v48, %v4482_v23  ;;  %v4658_v22 = vmul.f32 %v9500_v51, %v4928_v36  ;;  %v5175_v5 = vmul.f32 %v9570_v27, %v5135_v18  ;;  %v5176_v25 = vmul.f32 %v9570_v27, %v5136_v45  ;;  %v5138_v36 = vld [vmem:[#allocation2 + $0x231] sm:$0xff] }
 0x49a   : > { %v5104_v16 = vadd.f32 %v5072_v42, %v5000_v53  ;;  %v4689_v61 = vadd.f32 %v4657_v11, %v4585_v60  ;;  %v4761_v43 = vmul.f32 %v9508_v10, %v4721_v26  ;;  %v4762_v24 = vmul.f32 %v9508_v10, %v9591_v40 }
 0x49b   : > { %v4690_v58 = vadd.f32 %v4658_v22, %v4586_v56  ;;  %v5207_v44 = vadd.f32 %v5175_v5, %v5103_v30  ;;  %v4865_v21 = vmul.f32 %v9518_v15, %v5135_v18  ;;  %v4969_v51 = vmul.f32 %v9552_v62, %v4929_v33 }
 0x49c   : > { %v5208_v47 = vadd.f32 %v5176_v25, %v5104_v16  ;;  %v4793_v35 = vadd.f32 %v4761_v43, %v4689_v61  ;;  %v4866_v0 = vmul.f32 %v9518_v15, %v5136_v45  ;;  %v4970_v12 = vmul.f32 %v9552_v62, %v4930_v9 }
 0x49d   : > { %v4794_v52 = vadd.f32 %v4762_v24, %v4690_v58  ;;  %v5073_v10 = vmul.f32 %v6301_v34, %v9527_v59  ;;  %v5177_v55 = vmul.f32 %v9570_v27, %v5137_v37  ;;  %v5178_v41 = vmul.f32 %v9570_v27, %v5138_v36 }
 0x49e   : > { %v5225_v63 = vpack.c.bf16 %v5208_v47, %v5207_v44  ;;  %v4897_v14 = vadd.f32 %v4865_v21, %v4793_v35 }
 0x49f   : > { %v4898_v8 = vadd.f32 %v4866_v0, %v4794_v52 }
 0x4a0   : > { %6095 = vmatprep.mubr.bf16.mxu1 %v5225_v63  ;;  %v5001_v40 = vadd.f32 %v4969_v51, %v4897_v14 }
 0x4a1   : > { %v5002_v20 = vadd.f32 %v4970_v12, %v4898_v8 }
 0x4a2   : > { %v5105_v3 = vadd.f32 %v5073_v10, %v5001_v40 }
 0x4a3   : > { %v5106_v2 = vadd.f32 %v5073_v10, %v5002_v20 }
 0x4a4   : > { %v5209_v15 = vadd.f32 %v5177_v55, %v5105_v3 }
 0x4a5   : > { %v5210_v62 = vadd.f32 %v5178_v41, %v5106_v2 }
 0x4a7   : > { %v5226_v7 = vpack.c.bf16 %v5210_v62, %v5209_v15 }
 0x4a9   : > { %6096 = vmatmul.mubr.bf16.gmra.mrb[60].mxu1 %v5226_v7 }
 0x4fa   : > { %v6069_v50 = vpop.f32.mrb[32].mxu1 }
 0x4fb   : > { %v5341_v4 = vadd.f32 %v6069_v50, %v9675_v1  ;;  %v5332_v59 = vpop.f32.mrb[33].mxu1 }
 0x4fc   : > { %v5333_v19 = vadd.f32 %v9675_v1, %v5332_v59  ;;  %v6070_v38 = vpop.f32.mrb[34].mxu1 }
 0x4fd   : > { %v5461_v54 = vmax.f32 %v5341_v4, 0.0  ;;  %v5344_v17 = vadd.f32 %v6070_v38, %v9675_v1  ;;  %v5335_v27 = vpop.f32.mrb[35].mxu1 }
 0x4fe   : > { %v5459_v29 = vmax.f32 %v5333_v19, 0.0  ;;  %v5336_v6 = vadd.f32 %v9675_v1, %v5335_v27 }
 0x4ff   : > { %5493 = vst [vmem:[%s9683_s16 + $0x10] sm:$0xff] %v5461_v54  ;;  %v5462_v31 = vmax.f32 %v5344_v17, 0.0 }
 0x500   : > { %5491 = vst [vmem:[%s9683_s16] sm:$0xff] %v5459_v29  ;;  %v5460_v39 = vmax.f32 %v5336_v6, 0.0 }
 0x501   : > { %5494 = vst [vmem:[%s9683_s16 + $0x18] sm:$0xff] %v5462_v31 }
 0x502   : > { %5492 = vst [vmem:[%s9683_s16 + $0x8] sm:$0xff] %v5460_v39 }
 0x50e   : > { %v6073_v32 = vpop.f32.mrb[36].mxu1 }
 0x50f   : > { %v5357_v49 = vadd.f32 %v6073_v32, %v9675_v1  ;;  %v5348_v13 = vpop.f32.mrb[37].mxu1 }
 0x510   : > { %v5349_v46 = vadd.f32 %v9675_v1, %v5348_v13  ;;  %v6074_v28 = vpop.f32.mrb[38].mxu1 }
 0x511   : > { %v5465_v18 = vmax.f32 %v5357_v49, 0.0  ;;  %v5360_v45 = vadd.f32 %v6074_v28, %v9675_v1  ;;  %v5351_v57 = vpop.f32.mrb[39].mxu1 }
 0x512   : > { %v5463_v23 = vmax.f32 %v5349_v46, 0.0  ;;  %v5352_v48 = vadd.f32 %v9675_v1, %v5351_v57 }
 0x513   : > { %5497 = vst [vmem:[%s9683_s16 + $0x30] sm:$0xff] %v5465_v18  ;;  %v5466_v53 = vmax.f32 %v5360_v45, 0.0 }
 0x514   : > { %5495 = vst [vmem:[%s9683_s16 + $0x20] sm:$0xff] %v5463_v23  ;;  %v5464_v42 = vmax.f32 %v5352_v48, 0.0 }
 0x515   : > { %5498 = vst [vmem:[%s9683_s16 + $0x38] sm:$0xff] %v5466_v53 }
 0x516   : > { %5496 = vst [vmem:[%s9683_s16 + $0x28] sm:$0xff] %v5464_v42 }
 0x522   : > { %v6077_v30 = vpop.f32.mrb[40].mxu1 }
 0x523   : > { %v5373_v26 = vadd.f32 %v6077_v30, %v9675_v1  ;;  %v5364_v60 = vpop.f32.mrb[41].mxu1 }
 0x524   : > { %v5365_v56 = vadd.f32 %v9675_v1, %v5364_v60  ;;  %v6078_v11 = vpop.f32.mrb[42].mxu1 }
 0x525   : > { %v5469_v22 = vmax.f32 %v5373_v26, 0.0  ;;  %v5376_v33 = vadd.f32 %v6078_v11, %v9675_v1  ;;  %v5367_v16 = vpop.f32.mrb[43].mxu1 }
 0x526   : > { %v5467_v5 = vmax.f32 %v5365_v56, 0.0  ;;  %v5368_v25 = vadd.f32 %v9675_v1, %v5367_v16 }
 0x527   : > { %5501 = vst [vmem:[%s9683_s16 + $0x50] sm:$0xff] %v5469_v22  ;;  %v5470_v9 = vmax.f32 %v5376_v33, 0.0 }
 0x528   : > { %5499 = vst [vmem:[%s9683_s16 + $0x40] sm:$0xff] %v5467_v5  ;;  %v5468_v61 = vmax.f32 %v5368_v25, 0.0 }
 0x529   : > { %5502 = vst [vmem:[%s9683_s16 + $0x58] sm:$0xff] %v5470_v9 }
 0x52a   : > { %5500 = vst [vmem:[%s9683_s16 + $0x48] sm:$0xff] %v5468_v61 }
 0x534   : > { %v6081_v58 = vpop.f32.mrb[44].mxu1 }
 0x535   : > { %v5389_v43 = vadd.f32 %v6081_v58, %v9675_v1  ;;  %v5380_v24 = vpop.f32.mrb[45].mxu1 }
 0x536   : > { %v5381_v44 = vadd.f32 %v9675_v1, %v5380_v24  ;;  %v6082_v47 = vpop.f32.mrb[46].mxu1 }
 0x537   : > { %v5473_v21 = vmax.f32 %v5389_v43, 0.0  ;;  %v5392_v51 = vadd.f32 %v6082_v47, %v9675_v1  ;;  %v5383_v35 = vpop.f32.mrb[47].mxu1 }
 0x538   : > { %v5471_v52 = vmax.f32 %v5381_v44, 0.0  ;;  %v5384_v0 = vadd.f32 %v9675_v1, %v5383_v35 }
 0x539   : > { %5505 = vst [vmem:[%s9683_s16 + $0x70] sm:$0xff] %v5473_v21  ;;  %v5474_v12 = vmax.f32 %v5392_v51, 0.0 }
 0x53a   : > { %5503 = vst [vmem:[%s9683_s16 + $0x60] sm:$0xff] %v5471_v52  ;;  %v5472_v63 = vmax.f32 %v5384_v0, 0.0 }
 0x53b   : > { %5506 = vst [vmem:[%s9683_s16 + $0x78] sm:$0xff] %v5474_v12 }
 0x53c   : > { %5504 = vst [vmem:[%s9683_s16 + $0x68] sm:$0xff] %v5472_v63 }
 0x549   : > { %v6085_v37 = vpop.f32.mrb[48].mxu1 }
 0x54a   : > { %v5405_v36 = vadd.f32 %v6085_v37, %v9675_v1  ;;  %v5396_v14 = vpop.f32.mrb[49].mxu1 }
 0x54b   : > { %v5397_v8 = vadd.f32 %v9675_v1, %v5396_v14  ;;  %v6086_v34 = vpop.f32.mrb[50].mxu1 }
 0x54c   : > { %v5477_v10 = vmax.f32 %v5405_v36, 0.0  ;;  %v5408_v40 = vadd.f32 %v6086_v34, %v9675_v1  ;;  %v5399_v20 = vpop.f32.mrb[51].mxu1 }
 0x54d   : > { %v5475_v55 = vmax.f32 %v5397_v8, 0.0  ;;  %v5400_v41 = vadd.f32 %v9675_v1, %v5399_v20 }
 0x54e   : > { %5509 = vst [vmem:[%s9683_s16 + $0x90] sm:$0xff] %v5477_v10  ;;  %v5478_v3 = vmax.f32 %v5408_v40, 0.0 }
 0x54f   : > { %5507 = vst [vmem:[%s9683_s16 + $0x80] sm:$0xff] %v5475_v55  ;;  %v5476_v2 = vmax.f32 %v5400_v41, 0.0 }
 0x550   : > { %5510 = vst [vmem:[%s9683_s16 + $0x98] sm:$0xff] %v5478_v3 }
 0x551   : > { %5508 = vst [vmem:[%s9683_s16 + $0x88] sm:$0xff] %v5476_v2 }
 0x559   : > { %v6089_v15 = vpop.f32.mrb[52].mxu1 }
 0x55a   : > { %v5421_v62 = vadd.f32 %v6089_v15, %v9675_v1  ;;  %v5412_v7 = vpop.f32.mrb[53].mxu1 }
 0x55b   : > { %v5413_v50 = vadd.f32 %v9675_v1, %v5412_v7  ;;  %v6090_v4 = vpop.f32.mrb[54].mxu1 }
 0x55c   : > { %v5481_v59 = vmax.f32 %v5421_v62, 0.0  ;;  %v5424_v19 = vadd.f32 %v6090_v4, %v9675_v1  ;;  %v5415_v38 = vpop.f32.mrb[55].mxu1 }
 0x55d   : > { %v5479_v54 = vmax.f32 %v5413_v50, 0.0  ;;  %v5416_v17 = vadd.f32 %v9675_v1, %v5415_v38 }
 0x55e   : > { %5513 = vst [vmem:[%s9683_s16 + $0xb0] sm:$0xff] %v5481_v59  ;;  %v5482_v27 = vmax.f32 %v5424_v19, 0.0 }
 0x55f   : > { %5511 = vst [vmem:[%s9683_s16 + $0xa0] sm:$0xff] %v5479_v54  ;;  %v5480_v29 = vmax.f32 %v5416_v17, 0.0 }
 0x560   : > { %5514 = vst [vmem:[%s9683_s16 + $0xb8] sm:$0xff] %v5482_v27 }
 0x561   : > { %5512 = vst [vmem:[%s9683_s16 + $0xa8] sm:$0xff] %v5480_v29 }
 0x56c   : > { %v6093_v6 = vpop.f32.mrb[56].mxu1 }
 0x56d   : > { %v5437_v31 = vadd.f32 %v6093_v6, %v9675_v1  ;;  %v5428_v39 = vpop.f32.mrb[57].mxu1 }
 0x56e   : > { %v5429_v32 = vadd.f32 %v9675_v1, %v5428_v39  ;;  %v6094_v49 = vpop.f32.mrb[58].mxu1 }
 0x56f   : > { %v5485_v13 = vmax.f32 %v5437_v31, 0.0  ;;  %v5440_v46 = vadd.f32 %v6094_v49, %v9675_v1  ;;  %v5431_v28 = vpop.f32.mrb[59].mxu1 }
 0x570   : > { %v5483_v18 = vmax.f32 %v5429_v32, 0.0  ;;  %v5432_v45 = vadd.f32 %v9675_v1, %v5431_v28 }
 0x571   : > { %5517 = vst [vmem:[%s9683_s16 + $0xd0] sm:$0xff] %v5485_v13  ;;  %v5486_v57 = vmax.f32 %v5440_v46, 0.0 }
 0x572   : > { %5515 = vst [vmem:[%s9683_s16 + $0xc0] sm:$0xff] %v5483_v18  ;;  %v5484_v23 = vmax.f32 %v5432_v45, 0.0 }
 0x573   : > { %5518 = vst [vmem:[%s9683_s16 + $0xd8] sm:$0xff] %v5486_v57 }
 0x574   : > { %5516 = vst [vmem:[%s9683_s16 + $0xc8] sm:$0xff] %v5484_v23 }
 0x57c   : > { %v6097_v48 = vpop.f32.mrb[60].mxu1 }
 0x57d   : > { %v5453_v53 = vadd.f32 %v6097_v48, %v9675_v1  ;;  %v5444_v42 = vpop.f32.mrb[61].mxu1 }
 0x57e   : > { %v5445_v30 = vadd.f32 %v9675_v1, %v5444_v42  ;;  %v6098_v26 = vpop.f32.mrb[62].mxu1 }
 0x57f   : > { %v5489_v60 = vmax.f32 %v5453_v53, 0.0  ;;  %v5456_v56 = vadd.f32 %v6098_v26, %v9675_v1  ;;  %v5447_v11 = vpop.f32.mrb[63].mxu1 }
 0x580   : > { %v5487_v22 = vmax.f32 %v5445_v30, 0.0  ;;  %v5448_v33 = vadd.f32 %v9675_v1, %v5447_v11 }
 0x581   : > { %5521 = vst [vmem:[%s9683_s16 + $0xf0] sm:$0xff] %v5489_v60  ;;  %v5490_v16 = vmax.f32 %v5456_v56, 0.0 }
 0x582   : > { %5519 = vst [vmem:[%s9683_s16 + $0xe0] sm:$0xff] %v5487_v22  ;;  %v5488_v5 = vmax.f32 %v5448_v33, 0.0 }
 0x583   : > { %5522 = vst [vmem:[%s9683_s16 + $0xf8] sm:$0xff] %v5490_v16 }
 0x584   : > { %5520 = vst [vmem:[%s9683_s16 + $0xe8] sm:$0xff] %v5488_v5 }
 0x585   : > { %6541 = shalt.err (!%p6538_p10)
}
 0x586   : > { %s6542_s16 = scalar_lea.hbm %s9747_s15, 4096  ;;  %s6546_s13 = scalar_lea.hbm %s9876_s11, 8192 }
 0x587   : > { %p6543_p11 = scmp.ne.s32.totalorder %s9747_s15, %s6542_s16  ;;  %p6547_p9 = scmp.lt.u32.totalorder %s9747_s15, %s9876_s11 }
 0x588   : > { %p6548_p7 = scmp.lt.u32.totalorder %s6546_s13, %s6542_s16  ;;  %p6550_p12 = scmp.lt.u32.totalorder %s6542_s16, %s9747_s15 }
 0x589   : > { %p6544_p3 = pnand %p6543_p11, %p9877_p1 }
 0x58a   : > { %p6549_p4 = por %p6548_p7, %p6547_p9 }
 0x58b   : > { %p6545_p5 = pneg %p6544_p3 }
 0x58c   : > { %p6551_p13 = por %p6550_p12, %p6549_p4 }
 0x58e   : > { %p6552_p0 = pnand %p6551_p13, %p6545_p5 }
 0x590   : > { %6555 = shalt.err (!%p6552_p0)
}
 0x591   : > { %s6626_s20 = smov 128   ;;  %s6627_s6 = smov 8  }
 0x592   : > { %s9878_s1 = scalar_lea.sflag [#allocation5], %s6978_s30 }
 0x593   : > { %6129 = dma.vmem_to_hbm [thread:$0]  (%p9877_p1), %s9749_s10, 4096, %s9747_s15, %s9878_s1, %s6626_s20, %s6626_s20, %s6627_s6  }
 0x594 PF: > { %s5552_s14 = sand.u32 1, %s6598_s25   ;;  %p9879_p2 = scmp.ne.s32.totalorder %s9848_s29, 0 }
 0x595   : > { %p9880_p8 = scmp.ge.s32.totalorder %s6610_s28, 2  ;;  %s5553_s16 = scalar_lea.sflag [#allocation5], %s5552_s14 }
 0x597   : > { %p6158_p6 = pnand %p9880_p8, %p9879_p2 }
 0x599   : > { %6593 = dma.done.wait (!%p6158_p6), %s5553_s16, 4096  }
 0x59a   : > { %6595 = vsyncadd (!%p6158_p6), %s5553_s16, 4294963200  ;;  %p30_p10 = scmp.ge.s32.totalorder %s6905_s18, 4   ;;  %s9881_s25 = smov %s6602_s26 }
 0x59b   : > { %s9882_s26 = smov %s6606_s27  ;;  %s9883_s27 = smov %s6917_s22 }
 0x59c   : > { %s9884_s28 = smov %s6905_s18  ;;  %32 = sbr.rel (!%p30_p10) target bundleno = 17 (0x11), region = 180 }
 0x5a3   :  { %5558 = vsyncpa [#allocation4], 1 }
 0x5a4   :  { %5560 = vsyncpa [#allocation4 + $0x1], 1 }
 0x5a5   :  { %5561 = vsyncpa [#allocation7], 1 }
 0x5a6   :  { %5562 = vsyncpa [#allocation10], 1 }
 0x5a7   :  { %5563 = vsyncpa [#allocation13], 1 }
 0x5a8   :  { %5564 = vsyncpa [#allocation16], 1 }
 0x5a9   :  { %5565 = vsyncpa [#allocation5], 1 }
 0x5aa   :  { %5567 = vsyncpa [#allocation5 + $0x1], 1 }

</bundles_post_ra>
